<compile_context>
chip_gen: v5e
topology: v5e:2x2
jax: 0.10.0
libtpu: 0.0.40
codegen_flags: <defaults>
</compile_context>

<pallas_src>
import jax
import jax.numpy as jnp
from jax import lax
from jax.experimental import pallas as pl
from jax.experimental.pallas import tpu as pltpu


# ----------------------------------------------------------------------------
# Weight preparation (hoisted, run ONCE per parameter set)
# ----------------------------------------------------------------------------
def _shift_rows(mat, shift):
    """new[r] = mat[r - shift] with zero fill (static shift)."""
    if shift == 0:
        return mat
    n, m = mat.shape
    if shift > 0:
        return jnp.concatenate(
            [jnp.zeros((shift, m), mat.dtype), mat[:n - shift]], axis=0)
    s = -shift
    return jnp.concatenate([mat[s:], jnp.zeros((s, m), mat.dtype)], axis=0)


def _band(w_hwio, W, pad):
    """Banded matmul weights for a stride-1 'same' conv in (rows, W*C) layout.

    Returns (kh, W*cin, W*cout) so that with vp the *vertically* zero-padded
    activation:  out[r] = sum_dy  vp[r + dy] @ band[dy]
    equals the conv output.  Horizontal zero padding is folded into the band
    matrices (rows shifted out of range are dropped)."""
    kh, kw, cin, cout = w_hwio.shape
    eye = jnp.eye(W, dtype=jnp.float32)
    out = []
    for dy in range(kh):
        B = jnp.zeros((W * cin, W * cout), jnp.float32)
        for dx in range(kw):
            blk = jnp.kron(eye, w_hwio[dy, dx].astype(jnp.float32))
            B = B + _shift_rows(blk, (dx - pad) * cin)
        out.append(B)
    return jnp.stack(out)


def _fold_tail(w_tail, b_tail):
    """Fold PixelShuffle(2) + conv3x3(3->3) into a conv3x3(12->12) on the
    pre-shuffle 12-channel map.  Output channel o = c*4 + 2*i + j corresponds
    to final pixel (2h+i, 2w+j), channel c."""
    w12 = jnp.zeros((3, 3, 12, 12), jnp.float32)
    for i in range(2):
        for j in range(2):
            for dy in range(3):
                for dx in range(3):
                    qy, qx = i + dy - 1, j + dx - 1
                    ey, py = qy // 2, qy % 2
                    ex, px = qx // 2, qx % 2
                    w12 = w12.at[ey + 1, ex + 1,
                                 (2 * py + px)::4,
                                 (2 * i + j)::4].set(w_tail[dy, dx])
    b12 = jnp.repeat(b_tail.reshape(-1).astype(jnp.float32), 4)
    return w12, b12


def prepare_syeisp(params, W):
    """Build kernel-ready (bf16 banded) weight tensors once per parameter set."""
    C = params['w_h1a'].shape[-1]
    WC, W12 = C * W, 12 * W
    ROWW = max(2 * WC, W12)
    bf16 = jnp.bfloat16

    wb5 = jnp.concatenate([_band(params['w_h1a'], W, 2),
                           _band(params['w_h2'], W, 2)], axis=2).astype(bf16)
    wb3h = _band(params['w_h1b'], W, 1).astype(bf16)          # head conv3 C->C
    wb3b = _band(params['w_b1'], W, 1).astype(bf16)           # body conv3 C->12
    wpt = jnp.kron(jnp.eye(W, dtype=jnp.float32),
                   params['w_b2'].astype(jnp.float32)).astype(bf16)  # 1x1 C->12
    w12, b12 = _fold_tail(params['w_tail'], params['b_tail'])
    wb3t = _band(w12, W, 1).astype(bf16)                      # folded tail 12->12

    # Attention: GAP folded into wa1, per-channel re-tiling folded into wa2.
    wa1 = jnp.tile(params['w_a1'].astype(jnp.float32), (W, 1)) / W   # (W12, 12)
    wa2 = jnp.tile(params['w_a2'].astype(jnp.float32), (1, W))       # (12, W12)

    def _tile(v):
        return jnp.tile(v.reshape(-1).astype(jnp.float32), W)

    def _pad(v):
        v = v.reshape(-1).astype(jnp.float32)
        return jnp.pad(v, (0, ROWW - v.shape[0]))

    rows = jnp.stack([
        _pad(jnp.concatenate([_tile(params['b_h1a']), _tile(params['b_h2'])])),  # 0
        _pad(_tile(params['alpha_h1'])),                                          # 1
        _pad(_tile(params['b_h1b'])),                                              # 2
        _pad(_tile(params['bias_head'])),                                          # 3
        _pad(_tile(params['b_b1'])),                                               # 4
        _pad(_tile(params['b_b2'])),                                               # 5
        _pad(_tile(params['bias_body'])),                                          # 6
        _pad(params['b_a1']),                                                      # 7
        _pad(params['alpha_a']),                                                   # 8
        _pad(_tile(params['b_a2'])),                                               # 9
        _pad(_tile(b12)),                                                          # 10
    ])                                                                 # (11, ROWW)
    return dict(wb5=wb5, wb3h=wb3h, wb3b=wb3b, wpt=wpt, wb3t=wb3t,
                rows=rows, wa1=wa1, wa2=wa2)


# ----------------------------------------------------------------------------
# Kernel
# ----------------------------------------------------------------------------
def _band_conv(vp_ref, wb_ref, m_out):
    """out[r] = sum_dy  vp[r+dy] @ band[dy]   (bf16 operands, f32 accumulation)."""
    kh = wb_ref.shape[0]
    ncols = wb_ref.shape[2]
    acc = jnp.zeros((m_out, ncols), jnp.float32)
    for dy in range(kh):
        acc = acc + jnp.dot(vp_ref[dy:dy + m_out, :], wb_ref[dy],
                            preferred_element_type=jnp.float32)
    return acc


def _syeisp_kernel(x_ref, wb5_ref, wb3h_ref, wb3b_ref, wpt_ref, wb3t_ref,
                   rows_ref, wa1_ref, wa2_ref, out_ref,
                   s4_ref, s8_ref, sb_ref, s12_ref):
    f32, bf16 = jnp.float32, jnp.bfloat16
    NB, H, W4 = x_ref.shape
    WC = wb3h_ref.shape[1]
    W12 = out_ref.shape[2]
    S = H + 4                          # per-image row stride (2-row halo each side)
    M5 = NB * S - 4                    # conv5 band-matmul output rows
    M3 = NB * S - 2                    # conv3 band-matmul output rows

    # Zero only the per-image vertical halo rows (horizontal pad is folded into
    # the banded weights); interiors are fully overwritten below.
    z4 = jnp.zeros((2, W4), bf16)
    zc = jnp.zeros((2, WC), bf16)
    z12 = jnp.zeros((2, W12), bf16)
    for n in range(NB):
        base = n * S
        s4_ref[base:base + 2, :] = z4
        s4_ref[base + 2 + H:base + 4 + H, :] = z4
        s8_ref[base:base + 2, :] = zc
        s8_ref[base + 2 + H:base + 4 + H, :] = zc
        s12_ref[base:base + 2, :] = z12
        s12_ref[base + 2 + H:base + 4 + H, :] = z12
        s4_ref[base + 2:base + 2 + H, :] = x_ref[n].astype(bf16)

    # ---- head: fused conv5x5  4 -> [C | C]   (block1 conv5 | block2 conv5) --
    hb = _band_conv(s4_ref, wb5_ref, M5) + rows_ref[0:1, :2 * WC]
    sb_ref[0:M5, :] = hb[:, WC:2 * WC].astype(bf16)          # spill branch b
    a = hb[:, :WC]
    alpha1 = rows_ref[1:2, :WC]
    a = jnp.where(a > 0, a, alpha1 * a)                      # PReLU(C), f32
    a_bf = a.astype(bf16)
    for n in range(NB):
        s8_ref[n * S + 2:n * S + 2 + H, :] = a_bf[n * S:n * S + H, :]
    a2 = _band_conv(s8_ref, wb3h_ref, M3) + rows_ref[2:3, :WC]   # conv3 C->C
    bias_head = rows_ref[3:4, :WC]
    for n in range(NB):
        head_n = (a2[n * S + 1:n * S + 1 + H, :]
                  * sb_ref[n * S:n * S + H, :].astype(f32) + bias_head)   # QCU
        s8_ref[n * S + 2:n * S + 2 + H, :] = head_n.astype(bf16)

    # ---- body: conv3x3 C->12  (QCU with)  1x1 C->12 --------------------------
    b1 = _band_conv(s8_ref, wb3b_ref, M3) + rows_ref[4:5, :W12]
    b2 = jnp.dot(s8_ref[...], wpt_ref[...],
                 preferred_element_type=f32) + rows_ref[5:6, :W12]
    bias_body = rows_ref[6:7, :W12]
    means = []
    for n in range(NB):
        body_n = (b1[n * S + 1:n * S + 1 + H, :]
                  * b2[n * S + 2:n * S + 2 + H, :] + bias_body)           # f32
        s12_ref[n * S + 2:n * S + 2 + H, :] = body_n.astype(bf16)
        means.append(jnp.mean(body_n, axis=0, keepdims=True))             # (1, W12)

    # ---- channel attention (GAP folded into wa1, channel tiling into wa2) ----
    gap = jnp.concatenate(means, axis=0)                                  # (NB, W12)
    t = jnp.dot(gap, wa1_ref[...],
                preferred_element_type=f32) + rows_ref[7:8, :12]
    alpha_a = rows_ref[8:9, :12]
    t = jnp.where(t > 0, t, alpha_a * t)                                  # PReLU(12)
    t = jnp.dot(t, wa2_ref[...],
                preferred_element_type=f32) + rows_ref[9:10, :W12]
    sg = jax.nn.sigmoid(t)                                                # (NB, W12)
    for n in range(NB):
        sl = slice(n * S + 2, n * S + 2 + H)
        s12_ref[sl, :] = (s12_ref[sl, :].astype(f32) * sg[n:n + 1, :]).astype(bf16)

    # ---- tail: PixelShuffle(2)+conv3(3->3) folded to conv3x3 12 -> 12 --------
    tail = _band_conv(s12_ref, wb3t_ref, M3)
    b_tail = rows_ref[10:11, :W12]
    for n in range(NB):
        out_ref[n] = tail[n * S + 1:n * S + 1 + H, :] + b_tail


# ----------------------------------------------------------------------------
# Wrapper
# ----------------------------------------------------------------------------
def syeisp_forward(x_nchw, prep, nb=None, single_buffer=True):
    """x_nchw: (N, 4, H, W) f32  ->  (N, 3, 2H, 2W) f32  (PyTorch layout)."""
    N, cin, H, W = x_nchw.shape
    assert cin == 4
    wb5, wb3h, wb3b = prep['wb5'], prep['wb3h'], prep['wb3b']
    wpt, wb3t, rows = prep['wpt'], prep['wb3t'], prep['rows']
    wa1, wa2 = prep['wa1'], prep['wa2']
    W4, WC, W12 = 4 * W, wb3h.shape[1], wb3t.shape[1]

    # NB images per grid step (raises matmul M; largest divisor of N up to 8).
    if nb is None:
        nb = 1
        for d in range(1, min(N, 8) + 1):
            if N % d == 0:
                nb = d
    assert N % nb == 0
    S = H + 4

    # Input: NCHW -> flattened lane-dense (N, H, W*4)
    x2d = jnp.transpose(x_nchw, (0, 2, 3, 1)).reshape(N, H, W4).astype(jnp.float32)

    def _wspec(arr):
        ndim = arr.ndim
        imap = lambda g, nd=ndim: (0,) * nd
        if single_buffer:
            return pl.BlockSpec(arr.shape, imap, pipeline_mode=pl.Buffered(1))
        return pl.BlockSpec(arr.shape, imap)

    # VMEM budget: single(/double)-buffered weights + scratches + I/O blocks.
    wbytes = sum(int(a.size) * a.dtype.itemsize
                 for a in (wb5, wb3h, wb3b, wpt, wb3t, rows, wa1, wa2))
    scratch_bytes = (nb * S) * (W4 + 2 * WC + W12) * 2            # bf16 scratches
    io_bytes = 2 * (nb * H * (W4 + W12) * 4)                      # double-buffered
    est = wbytes * (1 if single_buffer else 2) + scratch_bytes + io_bytes
    vlim = int(min(64 * 2 ** 20, max(16 * 2 ** 20, 2 * est + (4 << 20))))

    out12 = pl.pallas_call(
        _syeisp_kernel,
        out_shape=jax.ShapeDtypeStruct((N, H, W12), jnp.float32),
        grid_spec=pltpu.PrefetchScalarGridSpec(
            num_scalar_prefetch=0,
            grid=(N // nb,),
            in_specs=[
                pl.BlockSpec((nb, H, W4), lambda g: (g, 0, 0)),
                _wspec(wb5), _wspec(wb3h), _wspec(wb3b), _wspec(wpt),
                _wspec(wb3t), _wspec(rows), _wspec(wa1), _wspec(wa2),
            ],
            out_specs=pl.BlockSpec((nb, H, W12), lambda g: (g, 0, 0)),
            scratch_shapes=[
                pltpu.VMEM((nb * S, W4), jnp.bfloat16),    # s4  (conv5 input)
                pltpu.VMEM((nb * S, WC), jnp.bfloat16),    # s8  (head / body input)
                pltpu.VMEM((nb * S, WC), jnp.bfloat16),    # sb  (spilled branch b)
                pltpu.VMEM((nb * S, W12), jnp.bfloat16),   # s12 (attention / tail)
            ]),
        compiler_params=pltpu.CompilerParams(
            dimension_semantics=("parallel",),
            vmem_limit_bytes=vlim),
    )(x2d, wb5, wb3h, wb3b, wpt, wb3t, rows, wa1, wa2)

    # PixelShuffle layout + NCHW output (pure glue; tail conv already folded).
    o = out12.reshape(N, H, W, 3, 2, 2).transpose(0, 3, 1, 4, 2, 5)
    return o.reshape(N, 3, 2 * H, 2 * W)


# ----------------------------------------------------------------------------
# Deterministic synthetic parameters (HWIO conv weights)
# ----------------------------------------------------------------------------
def init_params(key, channels):
    ks = iter(jax.random.split(key, 32))
    nrm = lambda shape, s: s * jax.random.normal(next(ks), shape, jnp.float32)
    C = channels
    return {
        # head.block1: conv5(4->C) -> PReLU(C) -> conv3(C->C)
        'w_h1a': nrm((5, 5, 4, C), 0.05), 'b_h1a': nrm((1, C), 0.01),
        'alpha_h1': jnp.full((1, C), 0.25, jnp.float32),
        'w_h1b': nrm((3, 3, C, C), 0.05), 'b_h1b': nrm((1, C), 0.01),
        # head.block2: conv5(4->C)
        'w_h2': nrm((5, 5, 4, C), 0.05), 'b_h2': nrm((1, C), 0.01),
        'bias_head': nrm((1, C), 0.02),
        # body: conv3(C->12) * conv1x1(C->12) + bias(12)
        'w_b1': nrm((3, 3, C, 12), 0.05), 'b_b1': nrm((1, 12), 0.01),
        'w_b2': nrm((C, 12), 0.1), 'b_b2': nrm((1, 12), 0.01),
        'bias_body': nrm((1, 12), 0.02),
        # att: GAP -> 1x1(12->12) -> PReLU -> 1x1(12->12) -> sigmoid
        'w_a1': nrm((12, 12), 0.1), 'b_a1': nrm((1, 12), 0.01),
        'alpha_a': jnp.full((1, 12), 0.25, jnp.float32),
        'w_a2': nrm((12, 12), 0.1), 'b_a2': nrm((1, 12), 0.01),
        # tail: PixelShuffle(2) -> conv3(3->3)
        'w_tail': nrm((3, 3, 3, 3), 0.1), 'b_tail': nrm((1, 3), 0.01),
    }


# ----------------------------------------------------------------------------
# Pure-JAX reference (same math, XLA convs) for a correctness check
# ----------------------------------------------------------------------------
def _conv_ref(x, w, b, pad):
    y = lax.conv_general_dilated(x, w, (1, 1), [(pad, pad), (pad, pad)],
                                 dimension_numbers=('NHWC', 'HWIO', 'NHWC'),
                                 precision=lax.Precision.HIGHEST)
    return y + b.reshape(1, 1, 1, -1)


def syeisp_forward_ref(x_nchw, p):
    x = jnp.transpose(x_nchw, (0, 2, 3, 1)).astype(jnp.float32)
    a = _conv_ref(x, p['w_h1a'], p['b_h1a'], 2)
    a = jnp.where(a > 0, a, p['alpha_h1'].reshape(1, 1, 1, -1) * a)
    a = _conv_ref(a, p['w_h1b'], p['b_h1b'], 1)
    b = _conv_ref(x, p['w_h2'], p['b_h2'], 2)
    head = a * b + p['bias_head'].reshape(1, 1, 1, -1)

    b1 = _conv_ref(head, p['w_b1'], p['b_b1'], 1)
    b2 = jnp.einsum('nhwc,cd->nhwd', head, p['w_b2'],
                    precision=lax.Precision.HIGHEST) + p['b_b2'].reshape(1, 1, 1, -1)
    body = b1 * b2 + p['bias_body'].reshape(1, 1, 1, -1)

    g = jnp.mean(body, axis=(1, 2))                                   # (N,12)
    t = g @ p['w_a1'] + p['b_a1']
    t = jnp.where(t > 0, t, p['alpha_a'] * t)
    t = t @ p['w_a2'] + p['b_a2']
    s = jax.nn.sigmoid(t)
    att_out = body * s[:, None, None, :]

    N, H, W, _ = att_out.shape
    ps = att_out.reshape(N, H, W, 3, 2, 2).transpose(0, 1, 4, 2, 5, 3)
    ps = ps.reshape(N, 2 * H, 2 * W, 3)
    out = _conv_ref(ps, p['w_tail'], p['b_tail'], 1)
    return jnp.transpose(out, (0, 3, 1, 2))


# ----------------------------------------------------------------------------
if __name__ == "__main__":
    key = jax.random.PRNGKey(0)
    k_x, k_p = jax.random.split(key)

    N, C, H, W = 2, 8, 16, 16          # channels=8, input is 4-ch raw mosaic
    x = jax.random.normal(k_x, (N, 4, H, W), jnp.float32)
    params = init_params(k_p, C)

    # Hoisted weight preparation: done once per parameter set.
    prep = prepare_syeisp(params, W)

    def run(single_buffer):
        fwd = jax.jit(lambda xx, pp: syeisp_forward(xx, pp,
                                                    single_buffer=single_buffer))
        return jax.block_until_ready(fwd(x, prep))

    try:
        out = run(True)
    except Exception:
        # Fallback for JAX builds where pipeline_mode=pl.Buffered(1) is rejected.
        out = run(False)

    ref = jax.block_until_ready(syeisp_forward_ref(x, params))

    assert out.shape == (N, 3, 2 * H, 2 * W), out.shape
    max_err = float(jnp.max(jnp.abs(out - ref)))
    # bf16 MXU operands vs f32 XLA reference -> slightly looser tolerance.
    assert jnp.allclose(out, ref, rtol=3e-3, atol=3e-3), max_err
    print("KERNEL_OK")
</pallas_src>

<mosaic_0001>
module attributes {stable_mosaic.version = 11 : i64} {
  func.func @_syeisp_kernel(%arg0: i32, %arg1: memref<2x16x64xf32, #tpu.memory_space<vmem>>, %arg2: memref<5x64x256xbf16, #tpu.memory_space<vmem>>, %arg3: memref<3x128x128xbf16, #tpu.memory_space<vmem>>, %arg4: memref<3x128x192xbf16, #tpu.memory_space<vmem>>, %arg5: memref<128x192xbf16, #tpu.memory_space<vmem>>, %arg6: memref<3x192x192xbf16, #tpu.memory_space<vmem>>, %arg7: memref<11x256xf32, #tpu.memory_space<vmem>>, %arg8: memref<192x12xf32, #tpu.memory_space<vmem>>, %arg9: memref<12x192xf32, #tpu.memory_space<vmem>>, %arg10: memref<2x16x192xf32, #tpu.memory_space<vmem>>, %arg11: memref<40x64xbf16, #tpu.memory_space<vmem>>, %arg12: memref<40x128xbf16, #tpu.memory_space<vmem>>, %arg13: memref<40x128xbf16, #tpu.memory_space<vmem>>, %arg14: memref<40x192xbf16, #tpu.memory_space<vmem>>) attributes {dimension_semantics = [#tpu.dimension_semantics<parallel>], iteration_bounds = array<i64: 1>, scalar_prefetch = 0 : i64, scratch_operands = 4 : i64, tpu.core_type = #tpu.core_type<tc>, window_params = [{transform_indices = @transform_0, window_bounds = array<i64: 2, 16, 64>}, {pipeline_mode = #tpu.pipeline_mode<synchronous>, transform_indices = @transform_1, window_bounds = array<i64: 5, 64, 256>}, {pipeline_mode = #tpu.pipeline_mode<synchronous>, transform_indices = @transform_2, window_bounds = array<i64: 3, 128, 128>}, {pipeline_mode = #tpu.pipeline_mode<synchronous>, transform_indices = @transform_3, window_bounds = array<i64: 3, 128, 192>}, {pipeline_mode = #tpu.pipeline_mode<synchronous>, transform_indices = @transform_4, window_bounds = array<i64: 128, 192>}, {pipeline_mode = #tpu.pipeline_mode<synchronous>, transform_indices = @transform_5, window_bounds = array<i64: 3, 192, 192>}, {pipeline_mode = #tpu.pipeline_mode<synchronous>, transform_indices = @transform_6, window_bounds = array<i64: 11, 256>}, {pipeline_mode = #tpu.pipeline_mode<synchronous>, transform_indices = @transform_7, window_bounds = array<i64: 192, 12>}, {pipeline_mode = #tpu.pipeline_mode<synchronous>, transform_indices = @transform_8, window_bounds = array<i64: 12, 192>}, {transform_indices = @transform_9, window_bounds = array<i64: 2, 16, 192>}]} {
    %cst = arith.constant 0.000000e+00 : bf16
    %0 = vector.broadcast %cst : bf16 to vector<2x64xbf16>
    %cst_0 = arith.constant 0.000000e+00 : bf16
    %1 = vector.broadcast %cst_0 : bf16 to vector<2x128xbf16>
    %cst_1 = arith.constant 0.000000e+00 : bf16
    %2 = vector.broadcast %cst_1 : bf16 to vector<2x192xbf16>
    %c0 = arith.constant 0 : index
    %c0_2 = arith.constant 0 : index
    %3 = vector.load %arg11[%c0, %c0_2] : memref<40x64xbf16, #tpu.memory_space<vmem>>, vector<2x64xbf16>
    tpu.vector_store %arg11[%c0, %c0_2], %0 {strides = array<i32>} : memref<40x64xbf16, #tpu.memory_space<vmem>>, vector<2x64xbf16>,
    %c18 = arith.constant 18 : index
    %c0_3 = arith.constant 0 : index
    %4 = vector.load %arg11[%c18, %c0_3] : memref<40x64xbf16, #tpu.memory_space<vmem>>, vector<2x64xbf16>
    tpu.vector_store %arg11[%c18, %c0_3], %0 {strides = array<i32>} : memref<40x64xbf16, #tpu.memory_space<vmem>>, vector<2x64xbf16>,
    %c0_4 = arith.constant 0 : index
    %c0_5 = arith.constant 0 : index
    %5 = vector.load %arg12[%c0_4, %c0_5] : memref<40x128xbf16, #tpu.memory_space<vmem>>, vector<2x128xbf16>
    tpu.vector_store %arg12[%c0_4, %c0_5], %1 {strides = array<i32>} : memref<40x128xbf16, #tpu.memory_space<vmem>>, vector<2x128xbf16>,
    %c18_6 = arith.constant 18 : index
    %c0_7 = arith.constant 0 : index
    %6 = vector.load %arg12[%c18_6, %c0_7] : memref<40x128xbf16, #tpu.memory_space<vmem>>, vector<2x128xbf16>
    tpu.vector_store %arg12[%c18_6, %c0_7], %1 {strides = array<i32>} : memref<40x128xbf16, #tpu.memory_space<vmem>>, vector<2x128xbf16>,
    %c0_8 = arith.constant 0 : index
    %c0_9 = arith.constant 0 : index
    %7 = vector.load %arg14[%c0_8, %c0_9] : memref<40x192xbf16, #tpu.memory_space<vmem>>, vector<2x192xbf16>
    tpu.vector_store %arg14[%c0_8, %c0_9], %2 {strides = array<i32>} : memref<40x192xbf16, #tpu.memory_space<vmem>>, vector<2x192xbf16>,
    %c18_10 = arith.constant 18 : index
    %c0_11 = arith.constant 0 : index
    %8 = vector.load %arg14[%c18_10, %c0_11] : memref<40x192xbf16, #tpu.memory_space<vmem>>, vector<2x192xbf16>
    tpu.vector_store %arg14[%c18_10, %c0_11], %2 {strides = array<i32>} : memref<40x192xbf16, #tpu.memory_space<vmem>>, vector<2x192xbf16>,
    %c0_12 = arith.constant 0 : index
    %c0_13 = arith.constant 0 : index
    %c0_14 = arith.constant 0 : index
    %9 = vector.load %arg1[%c0_12, %c0_13, %c0_14] : memref<2x16x64xf32, #tpu.memory_space<vmem>>, vector<1x16x64xf32>
    %10 = vector.shape_cast %9 : vector<1x16x64xf32> to vector<16x64xf32>
    %11 = arith.truncf %10 : vector<16x64xf32> to vector<16x64xbf16>
    %c2 = arith.constant 2 : index
    %c0_15 = arith.constant 0 : index
    %12 = vector.load %arg11[%c2, %c0_15] : memref<40x64xbf16, #tpu.memory_space<vmem>>, vector<16x64xbf16>
    tpu.vector_store %arg11[%c2, %c0_15], %11 {strides = array<i32>} : memref<40x64xbf16, #tpu.memory_space<vmem>>, vector<16x64xbf16>,
    %c20 = arith.constant 20 : index
    %c0_16 = arith.constant 0 : index
    %13 = vector.load %arg11[%c20, %c0_16] : memref<40x64xbf16, #tpu.memory_space<vmem>>, vector<2x64xbf16>
    tpu.vector_store %arg11[%c20, %c0_16], %0 {strides = array<i32>} : memref<40x64xbf16, #tpu.memory_space<vmem>>, vector<2x64xbf16>,
    %c38 = arith.constant 38 : index
    %c0_17 = arith.constant 0 : index
    %14 = vector.load %arg11[%c38, %c0_17] : memref<40x64xbf16, #tpu.memory_space<vmem>>, vector<2x64xbf16>
    tpu.vector_store %arg11[%c38, %c0_17], %0 {strides = array<i32>} : memref<40x64xbf16, #tpu.memory_space<vmem>>, vector<2x64xbf16>,
    %c20_18 = arith.constant 20 : index
    %c0_19 = arith.constant 0 : index
    %15 = vector.load %arg12[%c20_18, %c0_19] : memref<40x128xbf16, #tpu.memory_space<vmem>>, vector<2x128xbf16>
    tpu.vector_store %arg12[%c20_18, %c0_19], %1 {strides = array<i32>} : memref<40x128xbf16, #tpu.memory_space<vmem>>, vector<2x128xbf16>,
    %c38_20 = arith.constant 38 : index
    %c0_21 = arith.constant 0 : index
    %16 = vector.load %arg12[%c38_20, %c0_21] : memref<40x128xbf16, #tpu.memory_space<vmem>>, vector<2x128xbf16>
    tpu.vector_store %arg12[%c38_20, %c0_21], %1 {strides = array<i32>} : memref<40x128xbf16, #tpu.memory_space<vmem>>, vector<2x128xbf16>,
    %c20_22 = arith.constant 20 : index
    %c0_23 = arith.constant 0 : index
    %17 = vector.load %arg14[%c20_22, %c0_23] : memref<40x192xbf16, #tpu.memory_space<vmem>>, vector<2x192xbf16>
    tpu.vector_store %arg14[%c20_22, %c0_23], %2 {strides = array<i32>} : memref<40x192xbf16, #tpu.memory_space<vmem>>, vector<2x192xbf16>,
    %c38_24 = arith.constant 38 : index
    %c0_25 = arith.constant 0 : index
    %18 = vector.load %arg14[%c38_24, %c0_25] : memref<40x192xbf16, #tpu.memory_space<vmem>>, vector<2x192xbf16>
    tpu.vector_store %arg14[%c38_24, %c0_25], %2 {strides = array<i32>} : memref<40x192xbf16, #tpu.memory_space<vmem>>, vector<2x192xbf16>,
    %c1 = arith.constant 1 : index
    %c0_26 = arith.constant 0 : index
    %c0_27 = arith.constant 0 : index
    %19 = vector.load %arg1[%c1, %c0_26, %c0_27] : memref<2x16x64xf32, #tpu.memory_space<vmem>>, vector<1x16x64xf32>
    %20 = vector.shape_cast %19 : vector<1x16x64xf32> to vector<16x64xf32>
    %21 = arith.truncf %20 : vector<16x64xf32> to vector<16x64xbf16>
    %c22 = arith.constant 22 : index
    %c0_28 = arith.constant 0 : index
    %22 = vector.load %arg11[%c22, %c0_28] : memref<40x64xbf16, #tpu.memory_space<vmem>>, vector<16x64xbf16>
    tpu.vector_store %arg11[%c22, %c0_28], %21 {strides = array<i32>} : memref<40x64xbf16, #tpu.memory_space<vmem>>, vector<16x64xbf16>,
    %cst_29 = arith.constant 0.000000e+00 : f32
    %23 = vector.broadcast %cst_29 : f32 to vector<36x256xf32>
    %c0_30 = arith.constant 0 : index
    %c0_31 = arith.constant 0 : index
    %24 = vector.load %arg11[%c0_30, %c0_31] : memref<40x64xbf16, #tpu.memory_space<vmem>>, vector<36x64xbf16>
    %c0_32 = arith.constant 0 : index
    %c0_33 = arith.constant 0 : index
    %c0_34 = arith.constant 0 : index
    %25 = vector.load %arg2[%c0_32, %c0_33, %c0_34] : memref<5x64x256xbf16, #tpu.memory_space<vmem>>, vector<1x64x256xbf16>
    %26 = vector.shape_cast %25 : vector<1x64x256xbf16> to vector<64x256xbf16>
    %cst_35 = arith.constant dense<0.000000e+00> : vector<36x256xf32>
    %27 = tpu.matmul %24, %26, %cst_35 {dimension_numbers = #tpu.dot_dimension_numbers<[1], [0], [0], [1], [0, 0, 1, 1], [], []>} : vector<36x64xbf16>, vector<64x256xbf16>, vector<36x256xf32> -> vector<36x256xf32>
    %28 = arith.addf %23, %27 : vector<36x256xf32>
    %c1_36 = arith.constant 1 : index
    %c0_37 = arith.constant 0 : index
    %29 = vector.load %arg11[%c1_36, %c0_37] : memref<40x64xbf16, #tpu.memory_space<vmem>>, vector<36x64xbf16>
    %c1_38 = arith.constant 1 : index
    %c0_39 = arith.constant 0 : index
    %c0_40 = arith.constant 0 : index
    %30 = vector.load %arg2[%c1_38, %c0_39, %c0_40] : memref<5x64x256xbf16, #tpu.memory_space<vmem>>, vector<1x64x256xbf16>
    %31 = vector.shape_cast %30 : vector<1x64x256xbf16> to vector<64x256xbf16>
    %cst_41 = arith.constant dense<0.000000e+00> : vector<36x256xf32>
    %32 = tpu.matmul %29, %31, %cst_41 {dimension_numbers = #tpu.dot_dimension_numbers<[1], [0], [0], [1], [0, 0, 1, 1], [], []>} : vector<36x64xbf16>, vector<64x256xbf16>, vector<36x256xf32> -> vector<36x256xf32>
    %33 = arith.addf %28, %32 : vector<36x256xf32>
    %c2_42 = arith.constant 2 : index
    %c0_43 = arith.constant 0 : index
    %34 = vector.load %arg11[%c2_42, %c0_43] : memref<40x64xbf16, #tpu.memory_space<vmem>>, vector<36x64xbf16>
    %c2_44 = arith.constant 2 : index
    %c0_45 = arith.constant 0 : index
    %c0_46 = arith.constant 0 : index
    %35 = vector.load %arg2[%c2_44, %c0_45, %c0_46] : memref<5x64x256xbf16, #tpu.memory_space<vmem>>, vector<1x64x256xbf16>
    %36 = vector.shape_cast %35 : vector<1x64x256xbf16> to vector<64x256xbf16>
    %cst_47 = arith.constant dense<0.000000e+00> : vector<36x256xf32>
    %37 = tpu.matmul %34, %36, %cst_47 {dimension_numbers = #tpu.dot_dimension_numbers<[1], [0], [0], [1], [0, 0, 1, 1], [], []>} : vector<36x64xbf16>, vector<64x256xbf16>, vector<36x256xf32> -> vector<36x256xf32>
    %38 = arith.addf %33, %37 : vector<36x256xf32>
    %c3 = arith.constant 3 : index
    %c0_48 = arith.constant 0 : index
    %39 = vector.load %arg11[%c3, %c0_48] : memref<40x64xbf16, #tpu.memory_space<vmem>>, vector<36x64xbf16>
    %c3_49 = arith.constant 3 : index
    %c0_50 = arith.constant 0 : index
    %c0_51 = arith.constant 0 : index
    %40 = vector.load %arg2[%c3_49, %c0_50, %c0_51] : memref<5x64x256xbf16, #tpu.memory_space<vmem>>, vector<1x64x256xbf16>
    %41 = vector.shape_cast %40 : vector<1x64x256xbf16> to vector<64x256xbf16>
    %cst_52 = arith.constant dense<0.000000e+00> : vector<36x256xf32>
    %42 = tpu.matmul %39, %41, %cst_52 {dimension_numbers = #tpu.dot_dimension_numbers<[1], [0], [0], [1], [0, 0, 1, 1], [], []>} : vector<36x64xbf16>, vector<64x256xbf16>, vector<36x256xf32> -> vector<36x256xf32>
    %43 = arith.addf %38, %42 : vector<36x256xf32>
    %c4 = arith.constant 4 : index
    %c0_53 = arith.constant 0 : index
    %44 = vector.load %arg11[%c4, %c0_53] : memref<40x64xbf16, #tpu.memory_space<vmem>>, vector<36x64xbf16>
    %c4_54 = arith.constant 4 : index
    %c0_55 = arith.constant 0 : index
    %c0_56 = arith.constant 0 : index
    %45 = vector.load %arg2[%c4_54, %c0_55, %c0_56] : memref<5x64x256xbf16, #tpu.memory_space<vmem>>, vector<1x64x256xbf16>
    %46 = vector.shape_cast %45 : vector<1x64x256xbf16> to vector<64x256xbf16>
    %cst_57 = arith.constant dense<0.000000e+00> : vector<36x256xf32>
    %47 = tpu.matmul %44, %46, %cst_57 {dimension_numbers = #tpu.dot_dimension_numbers<[1], [0], [0], [1], [0, 0, 1, 1], [], []>} : vector<36x64xbf16>, vector<64x256xbf16>, vector<36x256xf32> -> vector<36x256xf32>
    %48 = arith.addf %43, %47 : vector<36x256xf32>
    %c0_58 = arith.constant 0 : index
    %c0_59 = arith.constant 0 : index
    %49 = vector.load %arg7[%c0_58, %c0_59] : memref<11x256xf32, #tpu.memory_space<vmem>>, vector<1x256xf32>
    %50 = vector.broadcast %49 : vector<1x256xf32> to vector<36x256xf32>
    %51 = arith.addf %48, %50 : vector<36x256xf32>
    %52 = vector.extract_strided_slice %51 {offsets = [0, 128], sizes = [36, 128], strides = [1, 1]} : vector<36x256xf32> to vector<36x128xf32>
    %53 = arith.truncf %52 : vector<36x128xf32> to vector<36x128xbf16>
    %c0_60 = arith.constant 0 : index
    %c0_61 = arith.constant 0 : index
    %54 = vector.load %arg13[%c0_60, %c0_61] : memref<40x128xbf16, #tpu.memory_space<vmem>>, vector<36x128xbf16>
    tpu.vector_store %arg13[%c0_60, %c0_61], %53 {strides = array<i32>} : memref<40x128xbf16, #tpu.memory_space<vmem>>, vector<36x128xbf16>,
    %55 = vector.extract_strided_slice %51 {offsets = [0, 0], sizes = [36, 128], strides = [1, 1]} : vector<36x256xf32> to vector<36x128xf32>
    %c1_62 = arith.constant 1 : index
    %c0_63 = arith.constant 0 : index
    %56 = vector.load %arg7[%c1_62, %c0_63] : memref<11x256xf32, #tpu.memory_space<vmem>>, vector<1x128xf32>
    %cst_64 = arith.constant 0.000000e+00 : f32
    %57 = vector.broadcast %cst_64 : f32 to vector<36x128xf32>
    %58 = arith.cmpf ogt, %55, %57 : vector<36x128xf32>
    %59 = vector.broadcast %56 : vector<1x128xf32> to vector<36x128xf32>
    %60 = arith.mulf %59, %55 : vector<36x128xf32>
    %61 = arith.select %58, %55, %60 : vector<36x128xi1>, vector<36x128xf32>
    %62 = arith.truncf %61 : vector<36x128xf32> to vector<36x128xbf16>
    %63 = vector.extract_strided_slice %62 {offsets = [0, 0], sizes = [16, 128], strides = [1, 1]} : vector<36x128xbf16> to vector<16x128xbf16>
    %c2_65 = arith.constant 2 : index
    %c0_66 = arith.constant 0 : index
    %64 = vector.load %arg12[%c2_65, %c0_66] : memref<40x128xbf16, #tpu.memory_space<vmem>>, vector<16x128xbf16>
    tpu.vector_store %arg12[%c2_65, %c0_66], %63 {strides = array<i32>} : memref<40x128xbf16, #tpu.memory_space<vmem>>, vector<16x128xbf16>,
    %65 = vector.extract_strided_slice %62 {offsets = [20, 0], sizes = [16, 128], strides = [1, 1]} : vector<36x128xbf16> to vector<16x128xbf16>
    %c22_67 = arith.constant 22 : index
    %c0_68 = arith.constant 0 : index
    %66 = vector.load %arg12[%c22_67, %c0_68] : memref<40x128xbf16, #tpu.memory_space<vmem>>, vector<16x128xbf16>
    tpu.vector_store %arg12[%c22_67, %c0_68], %65 {strides = array<i32>} : memref<40x128xbf16, #tpu.memory_space<vmem>>, vector<16x128xbf16>,
    %cst_69 = arith.constant 0.000000e+00 : f32
    %67 = vector.broadcast %cst_69 : f32 to vector<38x128xf32>
    %c0_70 = arith.constant 0 : index
    %c0_71 = arith.constant 0 : index
    %68 = vector.load %arg12[%c0_70, %c0_71] : memref<40x128xbf16, #tpu.memory_space<vmem>>, vector<38x128xbf16>
    %c0_72 = arith.constant 0 : index
    %c0_73 = arith.constant 0 : index
    %c0_74 = arith.constant 0 : index
    %69 = vector.load %arg3[%c0_72, %c0_73, %c0_74] : memref<3x128x128xbf16, #tpu.memory_space<vmem>>, vector<1x128x128xbf16>
    %70 = vector.shape_cast %69 : vector<1x128x128xbf16> to vector<128x128xbf16>
    %cst_75 = arith.constant dense<0.000000e+00> : vector<38x128xf32>
    %71 = tpu.matmul %68, %70, %cst_75 {dimension_numbers = #tpu.dot_dimension_numbers<[1], [0], [0], [1], [0, 0, 1, 1], [], []>} : vector<38x128xbf16>, vector<128x128xbf16>, vector<38x128xf32> -> vector<38x128xf32>
    %72 = arith.addf %67, %71 : vector<38x128xf32>
    %c1_76 = arith.constant 1 : index
    %c0_77 = arith.constant 0 : index
    %73 = vector.load %arg12[%c1_76, %c0_77] : memref<40x128xbf16, #tpu.memory_space<vmem>>, vector<38x128xbf16>
    %c1_78 = arith.constant 1 : index
    %c0_79 = arith.constant 0 : index
    %c0_80 = arith.constant 0 : index
    %74 = vector.load %arg3[%c1_78, %c0_79, %c0_80] : memref<3x128x128xbf16, #tpu.memory_space<vmem>>, vector<1x128x128xbf16>
    %75 = vector.shape_cast %74 : vector<1x128x128xbf16> to vector<128x128xbf16>
    %cst_81 = arith.constant dense<0.000000e+00> : vector<38x128xf32>
    %76 = tpu.matmul %73, %75, %cst_81 {dimension_numbers = #tpu.dot_dimension_numbers<[1], [0], [0], [1], [0, 0, 1, 1], [], []>} : vector<38x128xbf16>, vector<128x128xbf16>, vector<38x128xf32> -> vector<38x128xf32>
    %77 = arith.addf %72, %76 : vector<38x128xf32>
    %c2_82 = arith.constant 2 : index
    %c0_83 = arith.constant 0 : index
    %78 = vector.load %arg12[%c2_82, %c0_83] : memref<40x128xbf16, #tpu.memory_space<vmem>>, vector<38x128xbf16>
    %c2_84 = arith.constant 2 : index
    %c0_85 = arith.constant 0 : index
    %c0_86 = arith.constant 0 : index
    %79 = vector.load %arg3[%c2_84, %c0_85, %c0_86] : memref<3x128x128xbf16, #tpu.memory_space<vmem>>, vector<1x128x128xbf16>
    %80 = vector.shape_cast %79 : vector<1x128x128xbf16> to vector<128x128xbf16>
    %cst_87 = arith.constant dense<0.000000e+00> : vector<38x128xf32>
    %81 = tpu.matmul %78, %80, %cst_87 {dimension_numbers = #tpu.dot_dimension_numbers<[1], [0], [0], [1], [0, 0, 1, 1], [], []>} : vector<38x128xbf16>, vector<128x128xbf16>, vector<38x128xf32> -> vector<38x128xf32>
    %82 = arith.addf %77, %81 : vector<38x128xf32>
    %c2_88 = arith.constant 2 : index
    %c0_89 = arith.constant 0 : index
    %83 = vector.load %arg7[%c2_88, %c0_89] : memref<11x256xf32, #tpu.memory_space<vmem>>, vector<1x128xf32>
    %84 = vector.broadcast %83 : vector<1x128xf32> to vector<38x128xf32>
    %85 = arith.addf %82, %84 : vector<38x128xf32>
    %c3_90 = arith.constant 3 : index
    %c0_91 = arith.constant 0 : index
    %86 = vector.load %arg7[%c3_90, %c0_91] : memref<11x256xf32, #tpu.memory_space<vmem>>, vector<1x128xf32>
    %87 = vector.extract_strided_slice %85 {offsets = [1, 0], sizes = [16, 128], strides = [1, 1]} : vector<38x128xf32> to vector<16x128xf32>
    %c0_92 = arith.constant 0 : index
    %c0_93 = arith.constant 0 : index
    %88 = vector.load %arg13[%c0_92, %c0_93] : memref<40x128xbf16, #tpu.memory_space<vmem>>, vector<16x128xbf16>
    %89 = arith.extf %88 : vector<16x128xbf16> to vector<16x128xf32>
    %90 = arith.mulf %87, %89 : vector<16x128xf32>
    %91 = vector.broadcast %86 : vector<1x128xf32> to vector<16x128xf32>
    %92 = arith.addf %90, %91 : vector<16x128xf32>
    %93 = arith.truncf %92 : vector<16x128xf32> to vector<16x128xbf16>
    %c2_94 = arith.constant 2 : index
    %c0_95 = arith.constant 0 : index
    %94 = vector.load %arg12[%c2_94, %c0_95] : memref<40x128xbf16, #tpu.memory_space<vmem>>, vector<16x128xbf16>
    tpu.vector_store %arg12[%c2_94, %c0_95], %93 {strides = array<i32>} : memref<40x128xbf16, #tpu.memory_space<vmem>>, vector<16x128xbf16>,
    %95 = vector.extract_strided_slice %85 {offsets = [21, 0], sizes = [16, 128], strides = [1, 1]} : vector<38x128xf32> to vector<16x128xf32>
    %c20_96 = arith.constant 20 : index
    %c0_97 = arith.constant 0 : index
    %96 = vector.load %arg13[%c20_96, %c0_97] : memref<40x128xbf16, #tpu.memory_space<vmem>>, vector<16x128xbf16>
    %97 = arith.extf %96 : vector<16x128xbf16> to vector<16x128xf32>
    %98 = arith.mulf %95, %97 : vector<16x128xf32>
    %99 = vector.broadcast %86 : vector<1x128xf32> to vector<16x128xf32>
    %100 = arith.addf %98, %99 : vector<16x128xf32>
    %101 = arith.truncf %100 : vector<16x128xf32> to vector<16x128xbf16>
    %c22_98 = arith.constant 22 : index
    %c0_99 = arith.constant 0 : index
    %102 = vector.load %arg12[%c22_98, %c0_99] : memref<40x128xbf16, #tpu.memory_space<vmem>>, vector<16x128xbf16>
    tpu.vector_store %arg12[%c22_98, %c0_99], %101 {strides = array<i32>} : memref<40x128xbf16, #tpu.memory_space<vmem>>, vector<16x128xbf16>,
    %cst_100 = arith.constant 0.000000e+00 : f32
    %103 = vector.broadcast %cst_100 : f32 to vector<38x192xf32>
    %c0_101 = arith.constant 0 : index
    %c0_102 = arith.constant 0 : index
    %104 = vector.load %arg12[%c0_101, %c0_102] : memref<40x128xbf16, #tpu.memory_space<vmem>>, vector<38x128xbf16>
    %c0_103 = arith.constant 0 : index
    %c0_104 = arith.constant 0 : index
    %c0_105 = arith.constant 0 : index
    %105 = vector.load %arg4[%c0_103, %c0_104, %c0_105] : memref<3x128x192xbf16, #tpu.memory_space<vmem>>, vector<1x128x192xbf16>
    %106 = vector.shape_cast %105 : vector<1x128x192xbf16> to vector<128x192xbf16>
    %cst_106 = arith.constant dense<0.000000e+00> : vector<38x192xf32>
    %107 = tpu.matmul %104, %106, %cst_106 {dimension_numbers = #tpu.dot_dimension_numbers<[1], [0], [0], [1], [0, 0, 1, 1], [], []>} : vector<38x128xbf16>, vector<128x192xbf16>, vector<38x192xf32> -> vector<38x192xf32>
    %108 = arith.addf %103, %107 : vector<38x192xf32>
    %c1_107 = arith.constant 1 : index
    %c0_108 = arith.constant 0 : index
    %109 = vector.load %arg12[%c1_107, %c0_108] : memref<40x128xbf16, #tpu.memory_space<vmem>>, vector<38x128xbf16>
    %c1_109 = arith.constant 1 : index
    %c0_110 = arith.constant 0 : index
    %c0_111 = arith.constant 0 : index
    %110 = vector.load %arg4[%c1_109, %c0_110, %c0_111] : memref<3x128x192xbf16, #tpu.memory_space<vmem>>, vector<1x128x192xbf16>
    %111 = vector.shape_cast %110 : vector<1x128x192xbf16> to vector<128x192xbf16>
    %cst_112 = arith.constant dense<0.000000e+00> : vector<38x192xf32>
    %112 = tpu.matmul %109, %111, %cst_112 {dimension_numbers = #tpu.dot_dimension_numbers<[1], [0], [0], [1], [0, 0, 1, 1], [], []>} : vector<38x128xbf16>, vector<128x192xbf16>, vector<38x192xf32> -> vector<38x192xf32>
    %113 = arith.addf %108, %112 : vector<38x192xf32>
    %c2_113 = arith.constant 2 : index
    %c0_114 = arith.constant 0 : index
    %114 = vector.load %arg12[%c2_113, %c0_114] : memref<40x128xbf16, #tpu.memory_space<vmem>>, vector<38x128xbf16>
    %c2_115 = arith.constant 2 : index
    %c0_116 = arith.constant 0 : index
    %c0_117 = arith.constant 0 : index
    %115 = vector.load %arg4[%c2_115, %c0_116, %c0_117] : memref<3x128x192xbf16, #tpu.memory_space<vmem>>, vector<1x128x192xbf16>
    %116 = vector.shape_cast %115 : vector<1x128x192xbf16> to vector<128x192xbf16>
    %cst_118 = arith.constant dense<0.000000e+00> : vector<38x192xf32>
    %117 = tpu.matmul %114, %116, %cst_118 {dimension_numbers = #tpu.dot_dimension_numbers<[1], [0], [0], [1], [0, 0, 1, 1], [], []>} : vector<38x128xbf16>, vector<128x192xbf16>, vector<38x192xf32> -> vector<38x192xf32>
    %118 = arith.addf %113, %117 : vector<38x192xf32>
    %c4_119 = arith.constant 4 : index
    %c0_120 = arith.constant 0 : index
    %119 = vector.load %arg7[%c4_119, %c0_120] : memref<11x256xf32, #tpu.memory_space<vmem>>, vector<1x192xf32>
    %120 = vector.broadcast %119 : vector<1x192xf32> to vector<38x192xf32>
    %121 = arith.addf %118, %120 : vector<38x192xf32>
    %c0_121 = arith.constant 0 : index
    %c0_122 = arith.constant 0 : index
    %122 = vector.load %arg12[%c0_121, %c0_122] : memref<40x128xbf16, #tpu.memory_space<vmem>>, vector<40x128xbf16>
    %c0_123 = arith.constant 0 : index
    %c0_124 = arith.constant 0 : index
    %123 = vector.load %arg5[%c0_123, %c0_124] : memref<128x192xbf16, #tpu.memory_space<vmem>>, vector<128x192xbf16>
    %cst_125 = arith.constant dense<0.000000e+00> : vector<40x192xf32>
    %124 = tpu.matmul %122, %123, %cst_125 {dimension_numbers = #tpu.dot_dimension_numbers<[1], [0], [0], [1], [0, 0, 1, 1], [], []>} : vector<40x128xbf16>, vector<128x192xbf16>, vector<40x192xf32> -> vector<40x192xf32>
    %c5 = arith.constant 5 : index
    %c0_126 = arith.constant 0 : index
    %125 = vector.load %arg7[%c5, %c0_126] : memref<11x256xf32, #tpu.memory_space<vmem>>, vector<1x192xf32>
    %126 = vector.broadcast %125 : vector<1x192xf32> to vector<40x192xf32>
    %127 = arith.addf %124, %126 : vector<40x192xf32>
    %c6 = arith.constant 6 : index
    %c0_127 = arith.constant 0 : index
    %128 = vector.load %arg7[%c6, %c0_127] : memref<11x256xf32, #tpu.memory_space<vmem>>, vector<1x192xf32>
    %129 = vector.extract_strided_slice %121 {offsets = [1, 0], sizes = [16, 192], strides = [1, 1]} : vector<38x192xf32> to vector<16x192xf32>
    %130 = vector.extract_strided_slice %127 {offsets = [2, 0], sizes = [16, 192], strides = [1, 1]} : vector<40x192xf32> to vector<16x192xf32>
    %131 = arith.mulf %129, %130 : vector<16x192xf32>
    %132 = vector.broadcast %128 : vector<1x192xf32> to vector<16x192xf32>
    %133 = arith.addf %131, %132 : vector<16x192xf32>
    %134 = arith.truncf %133 : vector<16x192xf32> to vector<16x192xbf16>
    %c2_128 = arith.constant 2 : index
    %c0_129 = arith.constant 0 : index
    %135 = vector.load %arg14[%c2_128, %c0_129] : memref<40x192xbf16, #tpu.memory_space<vmem>>, vector<16x192xbf16>
    tpu.vector_store %arg14[%c2_128, %c0_129], %134 {strides = array<i32>} : memref<40x192xbf16, #tpu.memory_space<vmem>>, vector<16x192xbf16>,
    %cst_130 = arith.constant dense<0.000000e+00> : vector<192xf32>
    %136 = vector.multi_reduction <add>, %133, %cst_130 [0] : vector<16x192xf32> to vector<192xf32>
    %137 = vector.shape_cast %136 : vector<192xf32> to vector<1x192xf32>
    %cst_131 = arith.constant 1.600000e+01 : f32
    %138 = vector.broadcast %cst_131 : f32 to vector<1x192xf32>
    %139 = arith.divf %137, %138 : vector<1x192xf32>
    %140 = vector.extract_strided_slice %121 {offsets = [21, 0], sizes = [16, 192], strides = [1, 1]} : vector<38x192xf32> to vector<16x192xf32>
    %141 = vector.extract_strided_slice %127 {offsets = [22, 0], sizes = [16, 192], strides = [1, 1]} : vector<40x192xf32> to vector<16x192xf32>
    %142 = arith.mulf %140, %141 : vector<16x192xf32>
    %143 = vector.broadcast %128 : vector<1x192xf32> to vector<16x192xf32>
    %144 = arith.addf %142, %143 : vector<16x192xf32>
    %145 = arith.truncf %144 : vector<16x192xf32> to vector<16x192xbf16>
    %c22_132 = arith.constant 22 : index
    %c0_133 = arith.constant 0 : index
    %146 = vector.load %arg14[%c22_132, %c0_133] : memref<40x192xbf16, #tpu.memory_space<vmem>>, vector<16x192xbf16>
    tpu.vector_store %arg14[%c22_132, %c0_133], %145 {strides = array<i32>} : memref<40x192xbf16, #tpu.memory_space<vmem>>, vector<16x192xbf16>,
    %cst_134 = arith.constant dense<0.000000e+00> : vector<192xf32>
    %147 = vector.multi_reduction <add>, %144, %cst_134 [0] : vector<16x192xf32> to vector<192xf32>
    %148 = vector.shape_cast %147 : vector<192xf32> to vector<1x192xf32>
    %cst_135 = arith.constant 1.600000e+01 : f32
    %149 = vector.broadcast %cst_135 : f32 to vector<1x192xf32>
    %150 = arith.divf %148, %149 : vector<1x192xf32>
    %151 = tpu.concatenate %139, %150 in 0 : vector<1x192xf32>, vector<1x192xf32> -> vector<2x192xf32>
    %c0_136 = arith.constant 0 : index
    %c0_137 = arith.constant 0 : index
    %152 = vector.load %arg8[%c0_136, %c0_137] : memref<192x12xf32, #tpu.memory_space<vmem>>, vector<192x12xf32>
    %cst_138 = arith.constant dense<0.000000e+00> : vector<2x12xf32>
    %153 = tpu.matmul %151, %152, %cst_138 {dimension_numbers = #tpu.dot_dimension_numbers<[1], [0], [0], [1], [0, 0, 1, 1], [], []>} : vector<2x192xf32>, vector<192x12xf32>, vector<2x12xf32> -> vector<2x12xf32>
    %c7 = arith.constant 7 : index
    %c0_139 = arith.constant 0 : index
    %154 = vector.load %arg7[%c7, %c0_139] : memref<11x256xf32, #tpu.memory_space<vmem>>, vector<1x12xf32>
    %155 = vector.broadcast %154 : vector<1x12xf32> to vector<2x12xf32>
    %156 = arith.addf %153, %155 : vector<2x12xf32>
    %c8 = arith.constant 8 : index
    %c0_140 = arith.constant 0 : index
    %157 = vector.load %arg7[%c8, %c0_140] : memref<11x256xf32, #tpu.memory_space<vmem>>, vector<1x12xf32>
    %cst_141 = arith.constant 0.000000e+00 : f32
    %158 = vector.broadcast %cst_141 : f32 to vector<2x12xf32>
    %159 = arith.cmpf ogt, %156, %158 : vector<2x12xf32>
    %160 = vector.broadcast %157 : vector<1x12xf32> to vector<2x12xf32>
    %161 = arith.mulf %160, %156 : vector<2x12xf32>
    %162 = arith.select %159, %156, %161 : vector<2x12xi1>, vector<2x12xf32>
    %c0_142 = arith.constant 0 : index
    %c0_143 = arith.constant 0 : index
    %163 = vector.load %arg9[%c0_142, %c0_143] : memref<12x192xf32, #tpu.memory_space<vmem>>, vector<12x192xf32>
    %cst_144 = arith.constant dense<0.000000e+00> : vector<2x192xf32>
    %164 = tpu.matmul %162, %163, %cst_144 {dimension_numbers = #tpu.dot_dimension_numbers<[1], [0], [0], [1], [0, 0, 1, 1], [], []>} : vector<2x12xf32>, vector<12x192xf32>, vector<2x192xf32> -> vector<2x192xf32>
    %c9 = arith.constant 9 : index
    %c0_145 = arith.constant 0 : index
    %165 = vector.load %arg7[%c9, %c0_145] : memref<11x256xf32, #tpu.memory_space<vmem>>, vector<1x192xf32>
    %166 = vector.broadcast %165 : vector<1x192xf32> to vector<2x192xf32>
    %167 = arith.addf %164, %166 : vector<2x192xf32>
    %168 = arith.negf %167 : vector<2x192xf32>
    %169 = math.exp %168 : vector<2x192xf32>
    %cst_146 = arith.constant 1.000000e+00 : f32
    %170 = vector.broadcast %cst_146 : f32 to vector<2x192xf32>
    %171 = arith.addf %170, %169 : vector<2x192xf32>
    %172 = arith.divf %170, %171 : vector<2x192xf32>
    %c2_147 = arith.constant 2 : index
    %c0_148 = arith.constant 0 : index
    %173 = vector.load %arg14[%c2_147, %c0_148] : memref<40x192xbf16, #tpu.memory_space<vmem>>, vector<16x192xbf16>
    %174 = arith.extf %173 : vector<16x192xbf16> to vector<16x192xf32>
    %175 = vector.extract_strided_slice %172 {offsets = [0, 0], sizes = [1, 192], strides = [1, 1]} : vector<2x192xf32> to vector<1x192xf32>
    %176 = vector.broadcast %175 : vector<1x192xf32> to vector<16x192xf32>
    %177 = arith.mulf %174, %176 : vector<16x192xf32>
    %178 = arith.truncf %177 : vector<16x192xf32> to vector<16x192xbf16>
    %c2_149 = arith.constant 2 : index
    %c0_150 = arith.constant 0 : index
    %179 = vector.load %arg14[%c2_149, %c0_150] : memref<40x192xbf16, #tpu.memory_space<vmem>>, vector<16x192xbf16>
    tpu.vector_store %arg14[%c2_149, %c0_150], %178 {strides = array<i32>} : memref<40x192xbf16, #tpu.memory_space<vmem>>, vector<16x192xbf16>,
    %c22_151 = arith.constant 22 : index
    %c0_152 = arith.constant 0 : index
    %180 = vector.load %arg14[%c22_151, %c0_152] : memref<40x192xbf16, #tpu.memory_space<vmem>>, vector<16x192xbf16>
    %181 = arith.extf %180 : vector<16x192xbf16> to vector<16x192xf32>
    %182 = vector.extract_strided_slice %172 {offsets = [1, 0], sizes = [1, 192], strides = [1, 1]} : vector<2x192xf32> to vector<1x192xf32>
    %183 = vector.broadcast %182 : vector<1x192xf32> to vector<16x192xf32>
    %184 = arith.mulf %181, %183 : vector<16x192xf32>
    %185 = arith.truncf %184 : vector<16x192xf32> to vector<16x192xbf16>
    %c22_153 = arith.constant 22 : index
    %c0_154 = arith.constant 0 : index
    %186 = vector.load %arg14[%c22_153, %c0_154] : memref<40x192xbf16, #tpu.memory_space<vmem>>, vector<16x192xbf16>
    tpu.vector_store %arg14[%c22_153, %c0_154], %185 {strides = array<i32>} : memref<40x192xbf16, #tpu.memory_space<vmem>>, vector<16x192xbf16>,
    %cst_155 = arith.constant 0.000000e+00 : f32
    %187 = vector.broadcast %cst_155 : f32 to vector<38x192xf32>
    %c0_156 = arith.constant 0 : index
    %c0_157 = arith.constant 0 : index
    %188 = vector.load %arg14[%c0_156, %c0_157] : memref<40x192xbf16, #tpu.memory_space<vmem>>, vector<38x192xbf16>
    %c0_158 = arith.constant 0 : index
    %c0_159 = arith.constant 0 : index
    %c0_160 = arith.constant 0 : index
    %189 = vector.load %arg6[%c0_158, %c0_159, %c0_160] : memref<3x192x192xbf16, #tpu.memory_space<vmem>>, vector<1x192x192xbf16>
    %190 = vector.shape_cast %189 : vector<1x192x192xbf16> to vector<192x192xbf16>
    %cst_161 = arith.constant dense<0.000000e+00> : vector<38x192xf32>
    %191 = tpu.matmul %188, %190, %cst_161 {dimension_numbers = #tpu.dot_dimension_numbers<[1], [0], [0], [1], [0, 0, 1, 1], [], []>} : vector<38x192xbf16>, vector<192x192xbf16>, vector<38x192xf32> -> vector<38x192xf32>
    %192 = arith.addf %187, %191 : vector<38x192xf32>
    %c1_162 = arith.constant 1 : index
    %c0_163 = arith.constant 0 : index
    %193 = vector.load %arg14[%c1_162, %c0_163] : memref<40x192xbf16, #tpu.memory_space<vmem>>, vector<38x192xbf16>
    %c1_164 = arith.constant 1 : index
    %c0_165 = arith.constant 0 : index
    %c0_166 = arith.constant 0 : index
    %194 = vector.load %arg6[%c1_164, %c0_165, %c0_166] : memref<3x192x192xbf16, #tpu.memory_space<vmem>>, vector<1x192x192xbf16>
    %195 = vector.shape_cast %194 : vector<1x192x192xbf16> to vector<192x192xbf16>
    %cst_167 = arith.constant dense<0.000000e+00> : vector<38x192xf32>
    %196 = tpu.matmul %193, %195, %cst_167 {dimension_numbers = #tpu.dot_dimension_numbers<[1], [0], [0], [1], [0, 0, 1, 1], [], []>} : vector<38x192xbf16>, vector<192x192xbf16>, vector<38x192xf32> -> vector<38x192xf32>
    %197 = arith.addf %192, %196 : vector<38x192xf32>
    %c2_168 = arith.constant 2 : index
    %c0_169 = arith.constant 0 : index
    %198 = vector.load %arg14[%c2_168, %c0_169] : memref<40x192xbf16, #tpu.memory_space<vmem>>, vector<38x192xbf16>
    %c2_170 = arith.constant 2 : index
    %c0_171 = arith.constant 0 : index
    %c0_172 = arith.constant 0 : index
    %199 = vector.load %arg6[%c2_170, %c0_171, %c0_172] : memref<3x192x192xbf16, #tpu.memory_space<vmem>>, vector<1x192x192xbf16>
    %200 = vector.shape_cast %199 : vector<1x192x192xbf16> to vector<192x192xbf16>
    %cst_173 = arith.constant dense<0.000000e+00> : vector<38x192xf32>
    %201 = tpu.matmul %198, %200, %cst_173 {dimension_numbers = #tpu.dot_dimension_numbers<[1], [0], [0], [1], [0, 0, 1, 1], [], []>} : vector<38x192xbf16>, vector<192x192xbf16>, vector<38x192xf32> -> vector<38x192xf32>
    %202 = arith.addf %197, %201 : vector<38x192xf32>
    %c10 = arith.constant 10 : index
    %c0_174 = arith.constant 0 : index
    %203 = vector.load %arg7[%c10, %c0_174] : memref<11x256xf32, #tpu.memory_space<vmem>>, vector<1x192xf32>
    %204 = vector.extract_strided_slice %202 {offsets = [1, 0], sizes = [16, 192], strides = [1, 1]} : vector<38x192xf32> to vector<16x192xf32>
    %205 = vector.broadcast %203 : vector<1x192xf32> to vector<16x192xf32>
    %206 = arith.addf %204, %205 : vector<16x192xf32>
    %c0_175 = arith.constant 0 : index
    %c0_176 = arith.constant 0 : index
    %c0_177 = arith.constant 0 : index
    %207 = vector.load %arg10[%c0_175, %c0_176, %c0_177] : memref<2x16x192xf32, #tpu.memory_space<vmem>>, vector<1x16x192xf32>
    %208 = vector.shape_cast %207 : vector<1x16x192xf32> to vector<16x192xf32>
    %209 = vector.shape_cast %206 : vector<16x192xf32> to vector<1x16x192xf32>
    tpu.vector_store %arg10[%c0_175, %c0_176, %c0_177], %209 {strides = array<i32>} : memref<2x16x192xf32, #tpu.memory_space<vmem>>, vector<1x16x192xf32>,
    %210 = vector.extract_strided_slice %202 {offsets = [21, 0], sizes = [16, 192], strides = [1, 1]} : vector<38x192xf32> to vector<16x192xf32>
    %211 = vector.broadcast %203 : vector<1x192xf32> to vector<16x192xf32>
    %212 = arith.addf %210, %211 : vector<16x192xf32>
    %c1_178 = arith.constant 1 : index
    %c0_179 = arith.constant 0 : index
    %c0_180 = arith.constant 0 : index
    %213 = vector.load %arg10[%c1_178, %c0_179, %c0_180] : memref<2x16x192xf32, #tpu.memory_space<vmem>>, vector<1x16x192xf32>
    %214 = vector.shape_cast %213 : vector<1x16x192xf32> to vector<16x192xf32>
    %215 = vector.shape_cast %212 : vector<16x192xf32> to vector<1x16x192xf32>
    tpu.vector_store %arg10[%c1_178, %c0_179, %c0_180], %215 {strides = array<i32>} : memref<2x16x192xf32, #tpu.memory_space<vmem>>, vector<1x16x192xf32>,
    return
  }
  func.func @transform_0(%arg0: i32) -> (i32, i32, i32) {
    %c0_i32 = arith.constant 0 : i32
    %c0_i32_0 = arith.constant 0 : i32
    %c0_i32_1 = arith.constant 0 : i32
    return %arg0, %c0_i32, %c0_i32_0 : i32, i32, i32
  }
  func.func @transform_1(%arg0: i32) -> (i32, i32, i32) {
    %c0_i32 = arith.constant 0 : i32
    %c0_i32_0 = arith.constant 0 : i32
    %c0_i32_1 = arith.constant 0 : i32
    %c0_i32_2 = arith.constant 0 : i32
    return %c0_i32, %c0_i32_0, %c0_i32_1 : i32, i32, i32
  }
  func.func @transform_2(%arg0: i32) -> (i32, i32, i32) {
    %c0_i32 = arith.constant 0 : i32
    %c0_i32_0 = arith.constant 0 : i32
    %c0_i32_1 = arith.constant 0 : i32
    %c0_i32_2 = arith.constant 0 : i32
    return %c0_i32, %c0_i32_0, %c0_i32_1 : i32, i32, i32
  }
  func.func @transform_3(%arg0: i32) -> (i32, i32, i32) {
    %c0_i32 = arith.constant 0 : i32
    %c0_i32_0 = arith.constant 0 : i32
    %c0_i32_1 = arith.constant 0 : i32
    %c0_i32_2 = arith.constant 0 : i32
    return %c0_i32, %c0_i32_0, %c0_i32_1 : i32, i32, i32
  }
  func.func @transform_4(%arg0: i32) -> (i32, i32) {
    %c0_i32 = arith.constant 0 : i32
    %c0_i32_0 = arith.constant 0 : i32
    %c0_i32_1 = arith.constant 0 : i32
    return %c0_i32, %c0_i32_0 : i32, i32
  }
  func.func @transform_5(%arg0: i32) -> (i32, i32, i32) {
    %c0_i32 = arith.constant 0 : i32
    %c0_i32_0 = arith.constant 0 : i32
    %c0_i32_1 = arith.constant 0 : i32
    %c0_i32_2 = arith.constant 0 : i32
    return %c0_i32, %c0_i32_0, %c0_i32_1 : i32, i32, i32
  }
  func.func @transform_6(%arg0: i32) -> (i32, i32) {
    %c0_i32 = arith.constant 0 : i32
    %c0_i32_0 = arith.constant 0 : i32
    %c0_i32_1 = arith.constant 0 : i32
    return %c0_i32, %c0_i32_0 : i32, i32
  }
  func.func @transform_7(%arg0: i32) -> (i32, i32) {
    %c0_i32 = arith.constant 0 : i32
    %c0_i32_0 = arith.constant 0 : i32
    %c0_i32_1 = arith.constant 0 : i32
    return %c0_i32, %c0_i32_0 : i32, i32
  }
  func.func @transform_8(%arg0: i32) -> (i32, i32) {
    %c0_i32 = arith.constant 0 : i32
    %c0_i32_0 = arith.constant 0 : i32
    %c0_i32_1 = arith.constant 0 : i32
    return %c0_i32, %c0_i32_0 : i32, i32
  }
  func.func @transform_9(%arg0: i32) -> (i32, i32, i32) {
    %c0_i32 = arith.constant 0 : i32
    %c0_i32_0 = arith.constant 0 : i32
    %c0_i32_1 = arith.constant 0 : i32
    return %arg0, %c0_i32, %c0_i32_0 : i32, i32, i32
  }
}

module attributes {stable_mosaic.version = 11 : i64} {
  func.func @_syeisp_kernel(%arg0: i32, %arg1: memref<2x16x64xf32, #tpu.memory_space<vmem>>, %arg2: memref<5x64x256xbf16, #tpu.memory_space<vmem>>, %arg3: memref<3x128x128xbf16, #tpu.memory_space<vmem>>, %arg4: memref<3x128x192xbf16, #tpu.memory_space<vmem>>, %arg5: memref<128x192xbf16, #tpu.memory_space<vmem>>, %arg6: memref<3x192x192xbf16, #tpu.memory_space<vmem>>, %arg7: memref<11x256xf32, #tpu.memory_space<vmem>>, %arg8: memref<192x12xf32, #tpu.memory_space<vmem>>, %arg9: memref<12x192xf32, #tpu.memory_space<vmem>>, %arg10: memref<2x16x192xf32, #tpu.memory_space<vmem>>, %arg11: memref<40x64xbf16, #tpu.memory_space<vmem>>, %arg12: memref<40x128xbf16, #tpu.memory_space<vmem>>, %arg13: memref<40x128xbf16, #tpu.memory_space<vmem>>, %arg14: memref<40x192xbf16, #tpu.memory_space<vmem>>) attributes {dimension_semantics = [#tpu.dimension_semantics<parallel>], iteration_bounds = array<i64: 1>, scalar_prefetch = 0 : i64, scratch_operands = 4 : i64, tpu.core_type = #tpu.core_type<tc>, window_params = [{transform_indices = @transform_0, window_bounds = array<i64: 2, 16, 64>}, {pipeline_mode = #tpu.pipeline_mode<synchronous>, transform_indices = @transform_1, window_bounds = array<i64: 5, 64, 256>}, {pipeline_mode = #tpu.pipeline_mode<synchronous>, transform_indices = @transform_2, window_bounds = array<i64: 3, 128, 128>}, {pipeline_mode = #tpu.pipeline_mode<synchronous>, transform_indices = @transform_3, window_bounds = array<i64: 3, 128, 192>}, {pipeline_mode = #tpu.pipeline_mode<synchronous>, transform_indices = @transform_4, window_bounds = array<i64: 128, 192>}, {pipeline_mode = #tpu.pipeline_mode<synchronous>, transform_indices = @transform_5, window_bounds = array<i64: 3, 192, 192>}, {pipeline_mode = #tpu.pipeline_mode<synchronous>, transform_indices = @transform_6, window_bounds = array<i64: 11, 256>}, {pipeline_mode = #tpu.pipeline_mode<synchronous>, transform_indices = @transform_7, window_bounds = array<i64: 192, 12>}, {pipeline_mode = #tpu.pipeline_mode<synchronous>, transform_indices = @transform_8, window_bounds = array<i64: 12, 192>}, {transform_indices = @transform_9, window_bounds = array<i64: 2, 16, 192>}]} {
    %cst = arith.constant 0.000000e+00 : bf16
    %0 = vector.broadcast %cst : bf16 to vector<2x64xbf16>
    %cst_0 = arith.constant 0.000000e+00 : bf16
    %1 = vector.broadcast %cst_0 : bf16 to vector<2x128xbf16>
    %cst_1 = arith.constant 0.000000e+00 : bf16
    %2 = vector.broadcast %cst_1 : bf16 to vector<2x192xbf16>
    %c0 = arith.constant 0 : index
    %c0_2 = arith.constant 0 : index
    %3 = vector.load %arg11[%c0, %c0_2] : memref<40x64xbf16, #tpu.memory_space<vmem>>, vector<2x64xbf16>
    tpu.vector_store %arg11[%c0, %c0_2], %0 {strides = array<i32>} : memref<40x64xbf16, #tpu.memory_space<vmem>>, vector<2x64xbf16>,
    %c18 = arith.constant 18 : index
    %c0_3 = arith.constant 0 : index
    %4 = vector.load %arg11[%c18, %c0_3] : memref<40x64xbf16, #tpu.memory_space<vmem>>, vector<2x64xbf16>
    tpu.vector_store %arg11[%c18, %c0_3], %0 {strides = array<i32>} : memref<40x64xbf16, #tpu.memory_space<vmem>>, vector<2x64xbf16>,
    %c0_4 = arith.constant 0 : index
    %c0_5 = arith.constant 0 : index
    %5 = vector.load %arg12[%c0_4, %c0_5] : memref<40x128xbf16, #tpu.memory_space<vmem>>, vector<2x128xbf16>
    tpu.vector_store %arg12[%c0_4, %c0_5], %1 {strides = array<i32>} : memref<40x128xbf16, #tpu.memory_space<vmem>>, vector<2x128xbf16>,
    %c18_6 = arith.constant 18 : index
    %c0_7 = arith.constant 0 : index
    %6 = vector.load %arg12[%c18_6, %c0_7] : memref<40x128xbf16, #tpu.memory_space<vmem>>, vector<2x128xbf16>
    tpu.vector_store %arg12[%c18_6, %c0_7], %1 {strides = array<i32>} : memref<40x128xbf16, #tpu.memory_space<vmem>>, vector<2x128xbf16>,
    %c0_8 = arith.constant 0 : index
    %c0_9 = arith.constant 0 : index
    %7 = vector.load %arg14[%c0_8, %c0_9] : memref<40x192xbf16, #tpu.memory_space<vmem>>, vector<2x192xbf16>
    tpu.vector_store %arg14[%c0_8, %c0_9], %2 {strides = array<i32>} : memref<40x192xbf16, #tpu.memory_space<vmem>>, vector<2x192xbf16>,
    %c18_10 = arith.constant 18 : index
    %c0_11 = arith.constant 0 : index
    %8 = vector.load %arg14[%c18_10, %c0_11] : memref<40x192xbf16, #tpu.memory_space<vmem>>, vector<2x192xbf16>
    tpu.vector_store %arg14[%c18_10, %c0_11], %2 {strides = array<i32>} : memref<40x192xbf16, #tpu.memory_space<vmem>>, vector<2x192xbf16>,
    %c0_12 = arith.constant 0 : index
    %c0_13 = arith.constant 0 : index
    %c0_14 = arith.constant 0 : index
    %9 = vector.load %arg1[%c0_12, %c0_13, %c0_14] : memref<2x16x64xf32, #tpu.memory_space<vmem>>, vector<1x16x64xf32>
    %10 = vector.shape_cast %9 : vector<1x16x64xf32> to vector<16x64xf32>
    %11 = arith.truncf %10 : vector<16x64xf32> to vector<16x64xbf16>
    %c2 = arith.constant 2 : index
    %c0_15 = arith.constant 0 : index
    %12 = vector.load %arg11[%c2, %c0_15] : memref<40x64xbf16, #tpu.memory_space<vmem>>, vector<16x64xbf16>
    tpu.vector_store %arg11[%c2, %c0_15], %11 {strides = array<i32>} : memref<40x64xbf16, #tpu.memory_space<vmem>>, vector<16x64xbf16>,
    %c20 = arith.constant 20 : index
    %c0_16 = arith.constant 0 : index
    %13 = vector.load %arg11[%c20, %c0_16] : memref<40x64xbf16, #tpu.memory_space<vmem>>, vector<2x64xbf16>
    tpu.vector_store %arg11[%c20, %c0_16], %0 {strides = array<i32>} : memref<40x64xbf16, #tpu.memory_space<vmem>>, vector<2x64xbf16>,
    %c38 = arith.constant 38 : index
    %c0_17 = arith.constant 0 : index
    %14 = vector.load %arg11[%c38, %c0_17] : memref<40x64xbf16, #tpu.memory_space<vmem>>, vector<2x64xbf16>
    tpu.vector_store %arg11[%c38, %c0_17], %0 {strides = array<i32>} : memref<40x64xbf16, #tpu.memory_space<vmem>>, vector<2x64xbf16>,
    %c20_18 = arith.constant 20 : index
    %c0_19 = arith.constant 0 : index
    %15 = vector.load %arg12[%c20_18, %c0_19] : memref<40x128xbf16, #tpu.memory_space<vmem>>, vector<2x128xbf16>
    tpu.vector_store %arg12[%c20_18, %c0_19], %1 {strides = array<i32>} : memref<40x128xbf16, #tpu.memory_space<vmem>>, vector<2x128xbf16>,
    %c38_20 = arith.constant 38 : index
    %c0_21 = arith.constant 0 : index
    %16 = vector.load %arg12[%c38_20, %c0_21] : memref<40x128xbf16, #tpu.memory_space<vmem>>, vector<2x128xbf16>
    tpu.vector_store %arg12[%c38_20, %c0_21], %1 {strides = array<i32>} : memref<40x128xbf16, #tpu.memory_space<vmem>>, vector<2x128xbf16>,
    %c20_22 = arith.constant 20 : index
    %c0_23 = arith.constant 0 : index
    %17 = vector.load %arg14[%c20_22, %c0_23] : memref<40x192xbf16, #tpu.memory_space<vmem>>, vector<2x192xbf16>
    tpu.vector_store %arg14[%c20_22, %c0_23], %2 {strides = array<i32>} : memref<40x192xbf16, #tpu.memory_space<vmem>>, vector<2x192xbf16>,
    %c38_24 = arith.constant 38 : index
    %c0_25 = arith.constant 0 : index
    %18 = vector.load %arg14[%c38_24, %c0_25] : memref<40x192xbf16, #tpu.memory_space<vmem>>, vector<2x192xbf16>
    tpu.vector_store %arg14[%c38_24, %c0_25], %2 {strides = array<i32>} : memref<40x192xbf16, #tpu.memory_space<vmem>>, vector<2x192xbf16>,
    %c1 = arith.constant 1 : index
    %c0_26 = arith.constant 0 : index
    %c0_27 = arith.constant 0 : index
    %19 = vector.load %arg1[%c1, %c0_26, %c0_27] : memref<2x16x64xf32, #tpu.memory_space<vmem>>, vector<1x16x64xf32>
    %20 = vector.shape_cast %19 : vector<1x16x64xf32> to vector<16x64xf32>
    %21 = arith.truncf %20 : vector<16x64xf32> to vector<16x64xbf16>
    %c22 = arith.constant 22 : index
    %c0_28 = arith.constant 0 : index
    %22 = vector.load %arg11[%c22, %c0_28] : memref<40x64xbf16, #tpu.memory_space<vmem>>, vector<16x64xbf16>
    tpu.vector_store %arg11[%c22, %c0_28], %21 {strides = array<i32>} : memref<40x64xbf16, #tpu.memory_space<vmem>>, vector<16x64xbf16>,
    %cst_29 = arith.constant 0.000000e+00 : f32
    %23 = vector.broadcast %cst_29 : f32 to vector<36x256xf32>
    %c0_30 = arith.constant 0 : index
    %c0_31 = arith.constant 0 : index
    %24 = vector.load %arg11[%c0_30, %c0_31] : memref<40x64xbf16, #tpu.memory_space<vmem>>, vector<36x64xbf16>
    %c0_32 = arith.constant 0 : index
    %c0_33 = arith.constant 0 : index
    %c0_34 = arith.constant 0 : index
    %25 = vector.load %arg2[%c0_32, %c0_33, %c0_34] : memref<5x64x256xbf16, #tpu.memory_space<vmem>>, vector<1x64x256xbf16>
    %26 = vector.shape_cast %25 : vector<1x64x256xbf16> to vector<64x256xbf16>
    %cst_35 = arith.constant dense<0.000000e+00> : vector<36x256xf32>
    %27 = tpu.matmul %24, %26, %cst_35 {dimension_numbers = #tpu.dot_dimension_numbers<[1], [0], [0], [1], [0, 0, 1, 1], [], []>} : vector<36x64xbf16>, vector<64x256xbf16>, vector<36x256xf32> -> vector<36x256xf32>
    %28 = arith.addf %23, %27 : vector<36x256xf32>
    %c1_36 = arith.constant 1 : index
    %c0_37 = arith.constant 0 : index
    %29 = vector.load %arg11[%c1_36, %c0_37] : memref<40x64xbf16, #tpu.memory_space<vmem>>, vector<36x64xbf16>
    %c1_38 = arith.constant 1 : index
    %c0_39 = arith.constant 0 : index
    %c0_40 = arith.constant 0 : index
    %30 = vector.load %arg2[%c1_38, %c0_39, %c0_40] : memref<5x64x256xbf16, #tpu.memory_space<vmem>>, vector<1x64x256xbf16>
    %31 = vector.shape_cast %30 : vector<1x64x256xbf16> to vector<64x256xbf16>
    %cst_41 = arith.constant dense<0.000000e+00> : vector<36x256xf32>
    %32 = tpu.matmul %29, %31, %cst_41 {dimension_numbers = #tpu.dot_dimension_numbers<[1], [0], [0], [1], [0, 0, 1, 1], [], []>} : vector<36x64xbf16>, vector<64x256xbf16>, vector<36x256xf32> -> vector<36x256xf32>
    %33 = arith.addf %28, %32 : vector<36x256xf32>
    %c2_42 = arith.constant 2 : index
    %c0_43 = arith.constant 0 : index
    %34 = vector.load %arg11[%c2_42, %c0_43] : memref<40x64xbf16, #tpu.memory_space<vmem>>, vector<36x64xbf16>
    %c2_44 = arith.constant 2 : index
    %c0_45 = arith.constant 0 : index
    %c0_46 = arith.constant 0 : index
    %35 = vector.load %arg2[%c2_44, %c0_45, %c0_46] : memref<5x64x256xbf16, #tpu.memory_space<vmem>>, vector<1x64x256xbf16>
    %36 = vector.shape_cast %35 : vector<1x64x256xbf16> to vector<64x256xbf16>
    %cst_47 = arith.constant dense<0.000000e+00> : vector<36x256xf32>
    %37 = tpu.matmul %34, %36, %cst_47 {dimension_numbers = #tpu.dot_dimension_numbers<[1], [0], [0], [1], [0, 0, 1, 1], [], []>} : vector<36x64xbf16>, vector<64x256xbf16>, vector<36x256xf32> -> vector<36x256xf32>
    %38 = arith.addf %33, %37 : vector<36x256xf32>
    %c3 = arith.constant 3 : index
    %c0_48 = arith.constant 0 : index
    %39 = vector.load %arg11[%c3, %c0_48] : memref<40x64xbf16, #tpu.memory_space<vmem>>, vector<36x64xbf16>
    %c3_49 = arith.constant 3 : index
    %c0_50 = arith.constant 0 : index
    %c0_51 = arith.constant 0 : index
    %40 = vector.load %arg2[%c3_49, %c0_50, %c0_51] : memref<5x64x256xbf16, #tpu.memory_space<vmem>>, vector<1x64x256xbf16>
    %41 = vector.shape_cast %40 : vector<1x64x256xbf16> to vector<64x256xbf16>
    %cst_52 = arith.constant dense<0.000000e+00> : vector<36x256xf32>
    %42 = tpu.matmul %39, %41, %cst_52 {dimension_numbers = #tpu.dot_dimension_numbers<[1], [0], [0], [1], [0, 0, 1, 1], [], []>} : vector<36x64xbf16>, vector<64x256xbf16>, vector<36x256xf32> -> vector<36x256xf32>
    %43 = arith.addf %38, %42 : vector<36x256xf32>
    %c4 = arith.constant 4 : index
    %c0_53 = arith.constant 0 : index
    %44 = vector.load %arg11[%c4, %c0_53] : memref<40x64xbf16, #tpu.memory_space<vmem>>, vector<36x64xbf16>
    %c4_54 = arith.constant 4 : index
    %c0_55 = arith.constant 0 : index
    %c0_56 = arith.constant 0 : index
    %45 = vector.load %arg2[%c4_54, %c0_55, %c0_56] : memref<5x64x256xbf16, #tpu.memory_space<vmem>>, vector<1x64x256xbf16>
    %46 = vector.shape_cast %45 : vector<1x64x256xbf16> to vector<64x256xbf16>
    %cst_57 = arith.constant dense<0.000000e+00> : vector<36x256xf32>
    %47 = tpu.matmul %44, %46, %cst_57 {dimension_numbers = #tpu.dot_dimension_numbers<[1], [0], [0], [1], [0, 0, 1, 1], [], []>} : vector<36x64xbf16>, vector<64x256xbf16>, vector<36x256xf32> -> vector<36x256xf32>
    %48 = arith.addf %43, %47 : vector<36x256xf32>
    %c0_58 = arith.constant 0 : index
    %c0_59 = arith.constant 0 : index
    %49 = vector.load %arg7[%c0_58, %c0_59] : memref<11x256xf32, #tpu.memory_space<vmem>>, vector<1x256xf32>
    %50 = vector.broadcast %49 : vector<1x256xf32> to vector<36x256xf32>
    %51 = arith.addf %48, %50 : vector<36x256xf32>
    %52 = vector.extract_strided_slice %51 {offsets = [0, 128], sizes = [36, 128], strides = [1, 1]} : vector<36x256xf32> to vector<36x128xf32>
    %53 = arith.truncf %52 : vector<36x128xf32> to vector<36x128xbf16>
    %c0_60 = arith.constant 0 : index
    %c0_61 = arith.constant 0 : index
    %54 = vector.load %arg13[%c0_60, %c0_61] : memref<40x128xbf16, #tpu.memory_space<vmem>>, vector<36x128xbf16>
    tpu.vector_store %arg13[%c0_60, %c0_61], %53 {strides = array<i32>} : memref<40x128xbf16, #tpu.memory_space<vmem>>, vector<36x128xbf16>,
    %55 = vector.extract_strided_slice %51 {offsets = [0, 0], sizes = [36, 128], strides = [1, 1]} : vector<36x256xf32> to vector<36x128xf32>
    %c1_62 = arith.constant 1 : index
    %c0_63 = arith.constant 0 : index
    %56 = vector.load %arg7[%c1_62, %c0_63] : memref<11x256xf32, #tpu.memory_space<vmem>>, vector<1x128xf32>
    %cst_64 = arith.constant 0.000000e+00 : f32
    %57 = vector.broadcast %cst_64 : f32 to vector<36x128xf32>
    %58 = arith.cmpf ogt, %55, %57 : vector<36x128xf32>
    %59 = vector.broadcast %56 : vector<1x128xf32> to vector<36x128xf32>
    %60 = arith.mulf %59, %55 : vector<36x128xf32>
    %61 = arith.select %58, %55, %60 : vector<36x128xi1>, vector<36x128xf32>
    %62 = arith.truncf %61 : vector<36x128xf32> to vector<36x128xbf16>
    %63 = vector.extract_strided_slice %62 {offsets = [0, 0], sizes = [16, 128], strides = [1, 1]} : vector<36x128xbf16> to vector<16x128xbf16>
    %c2_65 = arith.constant 2 : index
    %c0_66 = arith.constant 0 : index
    %64 = vector.load %arg12[%c2_65, %c0_66] : memref<40x128xbf16, #tpu.memory_space<vmem>>, vector<16x128xbf16>
    tpu.vector_store %arg12[%c2_65, %c0_66], %63 {strides = array<i32>} : memref<40x128xbf16, #tpu.memory_space<vmem>>, vector<16x128xbf16>,
    %65 = vector.extract_strided_slice %62 {offsets = [20, 0], sizes = [16, 128], strides = [1, 1]} : vector<36x128xbf16> to vector<16x128xbf16>
    %c22_67 = arith.constant 22 : index
    %c0_68 = arith.constant 0 : index
    %66 = vector.load %arg12[%c22_67, %c0_68] : memref<40x128xbf16, #tpu.memory_space<vmem>>, vector<16x128xbf16>
    tpu.vector_store %arg12[%c22_67, %c0_68], %65 {strides = array<i32>} : memref<40x128xbf16, #tpu.memory_space<vmem>>, vector<16x128xbf16>,
    %cst_69 = arith.constant 0.000000e+00 : f32
    %67 = vector.broadcast %cst_69 : f32 to vector<38x128xf32>
    %c0_70 = arith.constant 0 : index
    %c0_71 = arith.constant 0 : index
    %68 = vector.load %arg12[%c0_70, %c0_71] : memref<40x128xbf16, #tpu.memory_space<vmem>>, vector<38x128xbf16>
    %c0_72 = arith.constant 0 : index
    %c0_73 = arith.constant 0 : index
    %c0_74 = arith.constant 0 : index
    %69 = vector.load %arg3[%c0_72, %c0_73, %c0_74] : memref<3x128x128xbf16, #tpu.memory_space<vmem>>, vector<1x128x128xbf16>
    %70 = vector.shape_cast %69 : vector<1x128x128xbf16> to vector<128x128xbf16>
    %cst_75 = arith.constant dense<0.000000e+00> : vector<38x128xf32>
    %71 = tpu.matmul %68, %70, %cst_75 {dimension_numbers = #tpu.dot_dimension_numbers<[1], [0], [0], [1], [0, 0, 1, 1], [], []>} : vector<38x128xbf16>, vector<128x128xbf16>, vector<38x128xf32> -> vector<38x128xf32>
    %72 = arith.addf %67, %71 : vector<38x128xf32>
    %c1_76 = arith.constant 1 : index
    %c0_77 = arith.constant 0 : index
    %73 = vector.load %arg12[%c1_76, %c0_77] : memref<40x128xbf16, #tpu.memory_space<vmem>>, vector<38x128xbf16>
    %c1_78 = arith.constant 1 : index
    %c0_79 = arith.constant 0 : index
    %c0_80 = arith.constant 0 : index
    %74 = vector.load %arg3[%c1_78, %c0_79, %c0_80] : memref<3x128x128xbf16, #tpu.memory_space<vmem>>, vector<1x128x128xbf16>
    %75 = vector.shape_cast %74 : vector<1x128x128xbf16> to vector<128x128xbf16>
    %cst_81 = arith.constant dense<0.000000e+00> : vector<38x128xf32>
    %76 = tpu.matmul %73, %75, %cst_81 {dimension_numbers = #tpu.dot_dimension_numbers<[1], [0], [0], [1], [0, 0, 1, 1], [], []>} : vector<38x128xbf16>, vector<128x128xbf16>, vector<38x128xf32> -> vector<38x128xf32>
    %77 = arith.addf %72, %76 : vector<38x128xf32>
    %c2_82 = arith.constant 2 : index
    %c0_83 = arith.constant 0 : index
    %78 = vector.load %arg12[%c2_82, %c0_83] : memref<40x128xbf16, #tpu.memory_space<vmem>>, vector<38x128xbf16>
    %c2_84 = arith.constant 2 : index
    %c0_85 = arith.constant 0 : index
    %c0_86 = arith.constant 0 : index
    %79 = vector.load %arg3[%c2_84, %c0_85, %c0_86] : memref<3x128x128xbf16, #tpu.memory_space<vmem>>, vector<1x128x128xbf16>
    %80 = vector.shape_cast %79 : vector<1x128x128xbf16> to vector<128x128xbf16>
    %cst_87 = arith.constant dense<0.000000e+00> : vector<38x128xf32>
    %81 = tpu.matmul %78, %80, %cst_87 {dimension_numbers = #tpu.dot_dimension_numbers<[1], [0], [0], [1], [0, 0, 1, 1], [], []>} : vector<38x128xbf16>, vector<128x128xbf16>, vector<38x128xf32> -> vector<38x128xf32>
    %82 = arith.addf %77, %81 : vector<38x128xf32>
    %c2_88 = arith.constant 2 : index
    %c0_89 = arith.constant 0 : index
    %83 = vector.load %arg7[%c2_88, %c0_89] : memref<11x256xf32, #tpu.memory_space<vmem>>, vector<1x128xf32>
    %84 = vector.broadcast %83 : vector<1x128xf32> to vector<38x128xf32>
    %85 = arith.addf %82, %84 : vector<38x128xf32>
    %c3_90 = arith.constant 3 : index
    %c0_91 = arith.constant 0 : index
    %86 = vector.load %arg7[%c3_90, %c0_91] : memref<11x256xf32, #tpu.memory_space<vmem>>, vector<1x128xf32>
    %87 = vector.extract_strided_slice %85 {offsets = [1, 0], sizes = [16, 128], strides = [1, 1]} : vector<38x128xf32> to vector<16x128xf32>
    %c0_92 = arith.constant 0 : index
    %c0_93 = arith.constant 0 : index
    %88 = vector.load %arg13[%c0_92, %c0_93] : memref<40x128xbf16, #tpu.memory_space<vmem>>, vector<16x128xbf16>
    %89 = arith.extf %88 : vector<16x128xbf16> to vector<16x128xf32>
    %90 = arith.mulf %87, %89 : vector<16x128xf32>
    %91 = vector.broadcast %86 : vector<1x128xf32> to vector<16x128xf32>
    %92 = arith.addf %90, %91 : vector<16x128xf32>
    %93 = arith.truncf %92 : vector<16x128xf32> to vector<16x128xbf16>
    %c2_94 = arith.constant 2 : index
    %c0_95 = arith.constant 0 : index
    %94 = vector.load %arg12[%c2_94, %c0_95] : memref<40x128xbf16, #tpu.memory_space<vmem>>, vector<16x128xbf16>
    tpu.vector_store %arg12[%c2_94, %c0_95], %93 {strides = array<i32>} : memref<40x128xbf16, #tpu.memory_space<vmem>>, vector<16x128xbf16>,
    %95 = vector.extract_strided_slice %85 {offsets = [21, 0], sizes = [16, 128], strides = [1, 1]} : vector<38x128xf32> to vector<16x128xf32>
    %c20_96 = arith.constant 20 : index
    %c0_97 = arith.constant 0 : index
    %96 = vector.load %arg13[%c20_96, %c0_97] : memref<40x128xbf16, #tpu.memory_space<vmem>>, vector<16x128xbf16>
    %97 = arith.extf %96 : vector<16x128xbf16> to vector<16x128xf32>
    %98 = arith.mulf %95, %97 : vector<16x128xf32>
    %99 = vector.broadcast %86 : vector<1x128xf32> to vector<16x128xf32>
    %100 = arith.addf %98, %99 : vector<16x128xf32>
    %101 = arith.truncf %100 : vector<16x128xf32> to vector<16x128xbf16>
    %c22_98 = arith.constant 22 : index
    %c0_99 = arith.constant 0 : index
    %102 = vector.load %arg12[%c22_98, %c0_99] : memref<40x128xbf16, #tpu.memory_space<vmem>>, vector<16x128xbf16>
    tpu.vector_store %arg12[%c22_98, %c0_99], %101 {strides = array<i32>} : memref<40x128xbf16, #tpu.memory_space<vmem>>, vector<16x128xbf16>,
    %cst_100 = arith.constant 0.000000e+00 : f32
    %103 = vector.broadcast %cst_100 : f32 to vector<38x192xf32>
    %c0_101 = arith.constant 0 : index
    %c0_102 = arith.constant 0 : index
    %104 = vector.load %arg12[%c0_101, %c0_102] : memref<40x128xbf16, #tpu.memory_space<vmem>>, vector<38x128xbf16>
    %c0_103 = arith.constant 0 : index
    %c0_104 = arith.constant 0 : index
    %c0_105 = arith.constant 0 : index
    %105 = vector.load %arg4[%c0_103, %c0_104, %c0_105] : memref<3x128x192xbf16, #tpu.memory_space<vmem>>, vector<1x128x192xbf16>
    %106 = vector.shape_cast %105 : vector<1x128x192xbf16> to vector<128x192xbf16>
    %cst_106 = arith.constant dense<0.000000e+00> : vector<38x192xf32>
    %107 = tpu.matmul %104, %106, %cst_106 {dimension_numbers = #tpu.dot_dimension_numbers<[1], [0], [0], [1], [0, 0, 1, 1], [], []>} : vector<38x128xbf16>, vector<128x192xbf16>, vector<38x192xf32> -> vector<38x192xf32>
    %108 = arith.addf %103, %107 : vector<38x192xf32>
    %c1_107 = arith.constant 1 : index
    %c0_108 = arith.constant 0 : index
    %109 = vector.load %arg12[%c1_107, %c0_108] : memref<40x128xbf16, #tpu.memory_space<vmem>>, vector<38x128xbf16>
    %c1_109 = arith.constant 1 : index
    %c0_110 = arith.constant 0 : index
    %c0_111 = arith.constant 0 : index
    %110 = vector.load %arg4[%c1_109, %c0_110, %c0_111] : memref<3x128x192xbf16, #tpu.memory_space<vmem>>, vector<1x128x192xbf16>
    %111 = vector.shape_cast %110 : vector<1x128x192xbf16> to vector<128x192xbf16>
    %cst_112 = arith.constant dense<0.000000e+00> : vector<38x192xf32>
    %112 = tpu.matmul %109, %111, %cst_112 {dimension_numbers = #tpu.dot_dimension_numbers<[1], [0], [0], [1], [0, 0, 1, 1], [], []>} : vector<38x128xbf16>, vector<128x192xbf16>, vector<38x192xf32> -> vector<38x192xf32>
    %113 = arith.addf %108, %112 : vector<38x192xf32>
    %c2_113 = arith.constant 2 : index
    %c0_114 = arith.constant 0 : index
    %114 = vector.load %arg12[%c2_113, %c0_114] : memref<40x128xbf16, #tpu.memory_space<vmem>>, vector<38x128xbf16>
    %c2_115 = arith.constant 2 : index
    %c0_116 = arith.constant 0 : index
    %c0_117 = arith.constant 0 : index
    %115 = vector.load %arg4[%c2_115, %c0_116, %c0_117] : memref<3x128x192xbf16, #tpu.memory_space<vmem>>, vector<1x128x192xbf16>
    %116 = vector.shape_cast %115 : vector<1x128x192xbf16> to vector<128x192xbf16>
    %cst_118 = arith.constant dense<0.000000e+00> : vector<38x192xf32>
    %117 = tpu.matmul %114, %116, %cst_118 {dimension_numbers = #tpu.dot_dimension_numbers<[1], [0], [0], [1], [0, 0, 1, 1], [], []>} : vector<38x128xbf16>, vector<128x192xbf16>, vector<38x192xf32> -> vector<38x192xf32>
    %118 = arith.addf %113, %117 : vector<38x192xf32>
    %c4_119 = arith.constant 4 : index
    %c0_120 = arith.constant 0 : index
    %119 = vector.load %arg7[%c4_119, %c0_120] : memref<11x256xf32, #tpu.memory_space<vmem>>, vector<1x192xf32>
    %120 = vector.broadcast %119 : vector<1x192xf32> to vector<38x192xf32>
    %121 = arith.addf %118, %120 : vector<38x192xf32>
    %c0_121 = arith.constant 0 : index
    %c0_122 = arith.constant 0 : index
    %122 = vector.load %arg12[%c0_121, %c0_122] : memref<40x128xbf16, #tpu.memory_space<vmem>>, vector<40x128xbf16>
    %c0_123 = arith.constant 0 : index
    %c0_124 = arith.constant 0 : index
    %123 = vector.load %arg5[%c0_123, %c0_124] : memref<128x192xbf16, #tpu.memory_space<vmem>>, vector<128x192xbf16>
    %cst_125 = arith.constant dense<0.000000e+00> : vector<40x192xf32>
    %124 = tpu.matmul %122, %123, %cst_125 {dimension_numbers = #tpu.dot_dimension_numbers<[1], [0], [0], [1], [0, 0, 1, 1], [], []>} : vector<40x128xbf16>, vector<128x192xbf16>, vector<40x192xf32> -> vector<40x192xf32>
    %c5 = arith.constant 5 : index
    %c0_126 = arith.constant 0 : index
    %125 = vector.load %arg7[%c5, %c0_126] : memref<11x256xf32, #tpu.memory_space<vmem>>, vector<1x192xf32>
    %126 = vector.broadcast %125 : vector<1x192xf32> to vector<40x192xf32>
    %127 = arith.addf %124, %126 : vector<40x192xf32>
    %c6 = arith.constant 6 : index
    %c0_127 = arith.constant 0 : index
    %128 = vector.load %arg7[%c6, %c0_127] : memref<11x256xf32, #tpu.memory_space<vmem>>, vector<1x192xf32>
    %129 = vector.extract_strided_slice %121 {offsets = [1, 0], sizes = [16, 192], strides = [1, 1]} : vector<38x192xf32> to vector<16x192xf32>
    %130 = vector.extract_strided_slice %127 {offsets = [2, 0], sizes = [16, 192], strides = [1, 1]} : vector<40x192xf32> to vector<16x192xf32>
    %131 = arith.mulf %129, %130 : vector<16x192xf32>
    %132 = vector.broadcast %128 : vector<1x192xf32> to vector<16x192xf32>
    %133 = arith.addf %131, %132 : vector<16x192xf32>
    %134 = arith.truncf %133 : vector<16x192xf32> to vector<16x192xbf16>
    %c2_128 = arith.constant 2 : index
    %c0_129 = arith.constant 0 : index
    %135 = vector.load %arg14[%c2_128, %c0_129] : memref<40x192xbf16, #tpu.memory_space<vmem>>, vector<16x192xbf16>
    tpu.vector_store %arg14[%c2_128, %c0_129], %134 {strides = array<i32>} : memref<40x192xbf16, #tpu.memory_space<vmem>>, vector<16x192xbf16>,
    %cst_130 = arith.constant dense<0.000000e+00> : vector<192xf32>
    %136 = vector.multi_reduction <add>, %133, %cst_130 [0] : vector<16x192xf32> to vector<192xf32>
    %137 = vector.shape_cast %136 : vector<192xf32> to vector<1x192xf32>
    %cst_131 = arith.constant 1.600000e+01 : f32
    %138 = vector.broadcast %cst_131 : f32 to vector<1x192xf32>
    %139 = arith.divf %137, %138 : vector<1x192xf32>
    %140 = vector.extract_strided_slice %121 {offsets = [21, 0], sizes = [16, 192], strides = [1, 1]} : vector<38x192xf32> to vector<16x192xf32>
    %141 = vector.extract_strided_slice %127 {offsets = [22, 0], sizes = [16, 192], strides = [1, 1]} : vector<40x192xf32> to vector<16x192xf32>
    %142 = arith.mulf %140, %141 : vector<16x192xf32>
    %143 = vector.broadcast %128 : vector<1x192xf32> to vector<16x192xf32>
    %144 = arith.addf %142, %143 : vector<16x192xf32>
    %145 = arith.truncf %144 : vector<16x192xf32> to vector<16x192xbf16>
    %c22_132 = arith.constant 22 : index
    %c0_133 = arith.constant 0 : index
    %146 = vector.load %arg14[%c22_132, %c0_133] : memref<40x192xbf16, #tpu.memory_space<vmem>>, vector<16x192xbf16>
    tpu.vector_store %arg14[%c22_132, %c0_133], %145 {strides = array<i32>} : memref<40x192xbf16, #tpu.memory_space<vmem>>, vector<16x192xbf16>,
    %cst_134 = arith.constant dense<0.000000e+00> : vector<192xf32>
    %147 = vector.multi_reduction <add>, %144, %cst_134 [0] : vector<16x192xf32> to vector<192xf32>
    %148 = vector.shape_cast %147 : vector<192xf32> to vector<1x192xf32>
    %cst_135 = arith.constant 1.600000e+01 : f32
    %149 = vector.broadcast %cst_135 : f32 to vector<1x192xf32>
    %150 = arith.divf %148, %149 : vector<1x192xf32>
    %151 = tpu.concatenate %139, %150 in 0 : vector<1x192xf32>, vector<1x192xf32> -> vector<2x192xf32>
    %c0_136 = arith.constant 0 : index
    %c0_137 = arith.constant 0 : index
    %152 = vector.load %arg8[%c0_136, %c0_137] : memref<192x12xf32, #tpu.memory_space<vmem>>, vector<192x12xf32>
    %cst_138 = arith.constant dense<0.000000e+00> : vector<2x12xf32>
    %153 = tpu.matmul %151, %152, %cst_138 {dimension_numbers = #tpu.dot_dimension_numbers<[1], [0], [0], [1], [0, 0, 1, 1], [], []>} : vector<2x192xf32>, vector<192x12xf32>, vector<2x12xf32> -> vector<2x12xf32>
    %c7 = arith.constant 7 : index
    %c0_139 = arith.constant 0 : index
    %154 = vector.load %arg7[%c7, %c0_139] : memref<11x256xf32, #tpu.memory_space<vmem>>, vector<1x12xf32>
    %155 = vector.broadcast %154 : vector<1x12xf32> to vector<2x12xf32>
    %156 = arith.addf %153, %155 : vector<2x12xf32>
    %c8 = arith.constant 8 : index
    %c0_140 = arith.constant 0 : index
    %157 = vector.load %arg7[%c8, %c0_140] : memref<11x256xf32, #tpu.memory_space<vmem>>, vector<1x12xf32>
    %cst_141 = arith.constant 0.000000e+00 : f32
    %158 = vector.broadcast %cst_141 : f32 to vector<2x12xf32>
    %159 = arith.cmpf ogt, %156, %158 : vector<2x12xf32>
    %160 = vector.broadcast %157 : vector<1x12xf32> to vector<2x12xf32>
    %161 = arith.mulf %160, %156 : vector<2x12xf32>
    %162 = arith.select %159, %156, %161 : vector<2x12xi1>, vector<2x12xf32>
    %c0_142 = arith.constant 0 : index
    %c0_143 = arith.constant 0 : index
    %163 = vector.load %arg9[%c0_142, %c0_143] : memref<12x192xf32, #tpu.memory_space<vmem>>, vector<12x192xf32>
    %cst_144 = arith.constant dense<0.000000e+00> : vector<2x192xf32>
    %164 = tpu.matmul %162, %163, %cst_144 {dimension_numbers = #tpu.dot_dimension_numbers<[1], [0], [0], [1], [0, 0, 1, 1], [], []>} : vector<2x12xf32>, vector<12x192xf32>, vector<2x192xf32> -> vector<2x192xf32>
    %c9 = arith.constant 9 : index
    %c0_145 = arith.constant 0 : index
    %165 = vector.load %arg7[%c9, %c0_145] : memref<11x256xf32, #tpu.memory_space<vmem>>, vector<1x192xf32>
    %166 = vector.broadcast %165 : vector<1x192xf32> to vector<2x192xf32>
    %167 = arith.addf %164, %166 : vector<2x192xf32>
    %168 = arith.negf %167 : vector<2x192xf32>
    %169 = math.exp %168 : vector<2x192xf32>
    %cst_146 = arith.constant 1.000000e+00 : f32
    %170 = vector.broadcast %cst_146 : f32 to vector<2x192xf32>
    %171 = arith.addf %170, %169 : vector<2x192xf32>
    %172 = arith.divf %170, %171 : vector<2x192xf32>
    %c2_147 = arith.constant 2 : index
    %c0_148 = arith.constant 0 : index
    %173 = vector.load %arg14[%c2_147, %c0_148] : memref<40x192xbf16, #tpu.memory_space<vmem>>, vector<16x192xbf16>
    %174 = arith.extf %173 : vector<16x192xbf16> to vector<16x192xf32>
    %175 = vector.extract_strided_slice %172 {offsets = [0, 0], sizes = [1, 192], strides = [1, 1]} : vector<2x192xf32> to vector<1x192xf32>
    %176 = vector.broadcast %175 : vector<1x192xf32> to vector<16x192xf32>
    %177 = arith.mulf %174, %176 : vector<16x192xf32>
    %178 = arith.truncf %177 : vector<16x192xf32> to vector<16x192xbf16>
    %c2_149 = arith.constant 2 : index
    %c0_150 = arith.constant 0 : index
    %179 = vector.load %arg14[%c2_149, %c0_150] : memref<40x192xbf16, #tpu.memory_space<vmem>>, vector<16x192xbf16>
    tpu.vector_store %arg14[%c2_149, %c0_150], %178 {strides = array<i32>} : memref<40x192xbf16, #tpu.memory_space<vmem>>, vector<16x192xbf16>,
    %c22_151 = arith.constant 22 : index
    %c0_152 = arith.constant 0 : index
    %180 = vector.load %arg14[%c22_151, %c0_152] : memref<40x192xbf16, #tpu.memory_space<vmem>>, vector<16x192xbf16>
    %181 = arith.extf %180 : vector<16x192xbf16> to vector<16x192xf32>
    %182 = vector.extract_strided_slice %172 {offsets = [1, 0], sizes = [1, 192], strides = [1, 1]} : vector<2x192xf32> to vector<1x192xf32>
    %183 = vector.broadcast %182 : vector<1x192xf32> to vector<16x192xf32>
    %184 = arith.mulf %181, %183 : vector<16x192xf32>
    %185 = arith.truncf %184 : vector<16x192xf32> to vector<16x192xbf16>
    %c22_153 = arith.constant 22 : index
    %c0_154 = arith.constant 0 : index
    %186 = vector.load %arg14[%c22_153, %c0_154] : memref<40x192xbf16, #tpu.memory_space<vmem>>, vector<16x192xbf16>
    tpu.vector_store %arg14[%c22_153, %c0_154], %185 {strides = array<i32>} : memref<40x192xbf16, #tpu.memory_space<vmem>>, vector<16x192xbf16>,
    %cst_155 = arith.constant 0.000000e+00 : f32
    %187 = vector.broadcast %cst_155 : f32 to vector<38x192xf32>
    %c0_156 = arith.constant 0 : index
    %c0_157 = arith.constant 0 : index
    %188 = vector.load %arg14[%c0_156, %c0_157] : memref<40x192xbf16, #tpu.memory_space<vmem>>, vector<38x192xbf16>
    %c0_158 = arith.constant 0 : index
    %c0_159 = arith.constant 0 : index
    %c0_160 = arith.constant 0 : index
    %189 = vector.load %arg6[%c0_158, %c0_159, %c0_160] : memref<3x192x192xbf16, #tpu.memory_space<vmem>>, vector<1x192x192xbf16>
    %190 = vector.shape_cast %189 : vector<1x192x192xbf16> to vector<192x192xbf16>
    %cst_161 = arith.constant dense<0.000000e+00> : vector<38x192xf32>
    %191 = tpu.matmul %188, %190, %cst_161 {dimension_numbers = #tpu.dot_dimension_numbers<[1], [0], [0], [1], [0, 0, 1, 1], [], []>} : vector<38x192xbf16>, vector<192x192xbf16>, vector<38x192xf32> -> vector<38x192xf32>
    %192 = arith.addf %187, %191 : vector<38x192xf32>
    %c1_162 = arith.constant 1 : index
    %c0_163 = arith.constant 0 : index
    %193 = vector.load %arg14[%c1_162, %c0_163] : memref<40x192xbf16, #tpu.memory_space<vmem>>, vector<38x192xbf16>
    %c1_164 = arith.constant 1 : index
    %c0_165 = arith.constant 0 : index
    %c0_166 = arith.constant 0 : index
    %194 = vector.load %arg6[%c1_164, %c0_165, %c0_166] : memref<3x192x192xbf16, #tpu.memory_space<vmem>>, vector<1x192x192xbf16>
    %195 = vector.shape_cast %194 : vector<1x192x192xbf16> to vector<192x192xbf16>
    %cst_167 = arith.constant dense<0.000000e+00> : vector<38x192xf32>
    %196 = tpu.matmul %193, %195, %cst_167 {dimension_numbers = #tpu.dot_dimension_numbers<[1], [0], [0], [1], [0, 0, 1, 1], [], []>} : vector<38x192xbf16>, vector<192x192xbf16>, vector<38x192xf32> -> vector<38x192xf32>
    %197 = arith.addf %192, %196 : vector<38x192xf32>
    %c2_168 = arith.constant 2 : index
    %c0_169 = arith.constant 0 : index
    %198 = vector.load %arg14[%c2_168, %c0_169] : memref<40x192xbf16, #tpu.memory_space<vmem>>, vector<38x192xbf16>
    %c2_170 = arith.constant 2 : index
    %c0_171 = arith.constant 0 : index
    %c0_172 = arith.constant 0 : index
    %199 = vector.load %arg6[%c2_170, %c0_171, %c0_172] : memref<3x192x192xbf16, #tpu.memory_space<vmem>>, vector<1x192x192xbf16>
    %200 = vector.shape_cast %199 : vector<1x192x192xbf16> to vector<192x192xbf16>
    %cst_173 = arith.constant dense<0.000000e+00> : vector<38x192xf32>
    %201 = tpu.matmul %198, %200, %cst_173 {dimension_numbers = #tpu.dot_dimension_numbers<[1], [0], [0], [1], [0, 0, 1, 1], [], []>} : vector<38x192xbf16>, vector<192x192xbf16>, vector<38x192xf32> -> vector<38x192xf32>
    %202 = arith.addf %197, %201 : vector<38x192xf32>
    %c10 = arith.constant 10 : index
    %c0_174 = arith.constant 0 : index
    %203 = vector.load %arg7[%c10, %c0_174] : memref<11x256xf32, #tpu.memory_space<vmem>>, vector<1x192xf32>
    %204 = vector.extract_strided_slice %202 {offsets = [1, 0], sizes = [16, 192], strides = [1, 1]} : vector<38x192xf32> to vector<16x192xf32>
    %205 = vector.broadcast %203 : vector<1x192xf32> to vector<16x192xf32>
    %206 = arith.addf %204, %205 : vector<16x192xf32>
    %c0_175 = arith.constant 0 : index
    %c0_176 = arith.constant 0 : index
    %c0_177 = arith.constant 0 : index
    %207 = vector.load %arg10[%c0_175, %c0_176, %c0_177] : memref<2x16x192xf32, #tpu.memory_space<vmem>>, vector<1x16x192xf32>
    %208 = vector.shape_cast %207 : vector<1x16x192xf32> to vector<16x192xf32>
    %209 = vector.shape_cast %206 : vector<16x192xf32> to vector<1x16x192xf32>
    tpu.vector_store %arg10[%c0_175, %c0_176, %c0_177], %209 {strides = array<i32>} : memref<2x16x192xf32, #tpu.memory_space<vmem>>, vector<1x16x192xf32>,
    %210 = vector.extract_strided_slice %202 {offsets = [21, 0], sizes = [16, 192], strides = [1, 1]} : vector<38x192xf32> to vector<16x192xf32>
    %211 = vector.broadcast %203 : vector<1x192xf32> to vector<16x192xf32>
    %212 = arith.addf %210, %211 : vector<16x192xf32>
    %c1_178 = arith.constant 1 : index
    %c0_179 = arith.constant 0 : index
    %c0_180 = arith.constant 0 : index
    %213 = vector.load %arg10[%c1_178, %c0_179, %c0_180] : memref<2x16x192xf32, #tpu.memory_space<vmem>>, vector<1x16x192xf32>
    %214 = vector.shape_cast %213 : vector<1x16x192xf32> to vector<16x192xf32>
    %215 = vector.shape_cast %212 : vector<16x192xf32> to vector<1x16x192xf32>
    tpu.vector_store %arg10[%c1_178, %c0_179, %c0_180], %215 {strides = array<i32>} : memref<2x16x192xf32, #tpu.memory_space<vmem>>, vector<1x16x192xf32>,
    return
  }
  func.func @transform_0(%arg0: i32) -> (i32, i32, i32) {
    %c0_i32 = arith.constant 0 : i32
    %c0_i32_0 = arith.constant 0 : i32
    %c0_i32_1 = arith.constant 0 : i32
    return %arg0, %c0_i32, %c0_i32_0 : i32, i32, i32
  }
  func.func @transform_1(%arg0: i32) -> (i32, i32, i32) {
    %c0_i32 = arith.constant 0 : i32
    %c0_i32_0 = arith.constant 0 : i32
    %c0_i32_1 = arith.constant 0 : i32
    %c0_i32_2 = arith.constant 0 : i32
    return %c0_i32, %c0_i32_0, %c0_i32_1 : i32, i32, i32
  }
  func.func @transform_2(%arg0: i32) -> (i32, i32, i32) {
    %c0_i32 = arith.constant 0 : i32
    %c0_i32_0 = arith.constant 0 : i32
    %c0_i32_1 = arith.constant 0 : i32
    %c0_i32_2 = arith.constant 0 : i32
    return %c0_i32, %c0_i32_0, %c0_i32_1 : i32, i32, i32
  }
  func.func @transform_3(%arg0: i32) -> (i32, i32, i32) {
    %c0_i32 = arith.constant 0 : i32
    %c0_i32_0 = arith.constant 0 : i32
    %c0_i32_1 = arith.constant 0 : i32
    %c0_i32_2 = arith.constant 0 : i32
    return %c0_i32, %c0_i32_0, %c0_i32_1 : i32, i32, i32
  }
  func.func @transform_4(%arg0: i32) -> (i32, i32) {
    %c0_i32 = arith.constant 0 : i32
    %c0_i32_0 = arith.constant 0 : i32
    %c0_i32_1 = arith.constant 0 : i32
    return %c0_i32, %c0_i32_0 : i32, i32
  }
  func.func @transform_5(%arg0: i32) -> (i32, i32, i32) {
    %c0_i32 = arith.constant 0 : i32
    %c0_i32_0 = arith.constant 0 : i32
    %c0_i32_1 = arith.constant 0 : i32
    %c0_i32_2 = arith.constant 0 : i32
    return %c0_i32, %c0_i32_0, %c0_i32_1 : i32, i32, i32
  }
  func.func @transform_6(%arg0: i32) -> (i32, i32) {
    %c0_i32 = arith.constant 0 : i32
    %c0_i32_0 = arith.constant 0 : i32
    %c0_i32_1 = arith.constant 0 : i32
    return %c0_i32, %c0_i32_0 : i32, i32
  }
  func.func @transform_7(%arg0: i32) -> (i32, i32) {
    %c0_i32 = arith.constant 0 : i32
    %c0_i32_0 = arith.constant 0 : i32
    %c0_i32_1 = arith.constant 0 : i32
    return %c0_i32, %c0_i32_0 : i32, i32
  }
  func.func @transform_8(%arg0: i32) -> (i32, i32) {
    %c0_i32 = arith.constant 0 : i32
    %c0_i32_0 = arith.constant 0 : i32
    %c0_i32_1 = arith.constant 0 : i32
    return %c0_i32, %c0_i32_0 : i32, i32
  }
  func.func @transform_9(%arg0: i32) -> (i32, i32, i32) {
    %c0_i32 = arith.constant 0 : i32
    %c0_i32_0 = arith.constant 0 : i32
    %c0_i32_1 = arith.constant 0 : i32
    return %arg0, %c0_i32, %c0_i32_0 : i32, i32, i32
  }
}

</mosaic_0001>

<bundles_post_ra>
// kernel: _lambda_.1
= control target key start
LH: loop header
LB: loop body
LE: loop exit
PB: predicated region body
PF: predicated region fallthrough
CT: control target
= control target key end

     0   :  { %14 = vsyncpa [#allocation7], 0  ;;  %s6073_s0 = inlined_call_operand.vmem [shape: f32[2,16,64], index: 0, kind: input, shape index: {}]   ;;  %s6074_s1 = inlined_call_operand.hbm [shape: bf16[5,64,256], index: 1, kind: input, shape index: {}]   ;;  %s6075_s2 = inlined_call_operand.hbm [shape: bf16[3,128,128], index: 2, kind: input, shape index: {}]   ;;  %s6076_s3 = inlined_call_operand.vmem [shape: bf16[3,128,192], index: 3, kind: input, shape index: {}]   ;;  %s6077_s4 = inlined_call_operand.vmem [shape: bf16[128,192], index: 4, kind: input, shape index: {}]   ;;  %s6078_s5 = inlined_call_operand.hbm [shape: bf16[3,192,192], index: 5, kind: input, shape index: {}]   ;;  %s6079_s6 = inlined_call_operand.hbm [shape: f32[11,256], index: 6, kind: input, shape index: {}]   ;;  %s6080_s7 = inlined_call_operand.vmem [shape: f32[192,12], index: 7, kind: input, shape index: {}]   ;;  %s6081_s8 = inlined_call_operand.hbm [shape: f32[12,192], index: 8, kind: input, shape index: {}]   ;;  %s6082_s9 = inlined_call_operand.vmem [shape: f32[2,16,192], index: 9, kind: output, shape index: {}]  }
   0x1   :  { %15 = vsyncpa [#allocation9], 0  ;;  %s36_s11 = sshll.u32 %s6075_s2, 4  ;;  %s37_s11 = int_to_ptr.hbm [resolvable:$true] %s36_s11 }
   0x2   :  { %16 = vsyncpa [#allocation12], 0  ;;  %s4679_s12 = smov [#allocation8]   ;;  %s66_s16 = sshll.u32 %s6079_s6, 4  ;;  %s67_s16 = int_to_ptr.hbm [resolvable:$true] %s66_s16 }
   0x3   :  { %s38_s13 = sshll.u32 %s4679_s12, 4  ;;  %s4680_s17 = smov 64   ;;  %s39_s13 = int_to_ptr.vmem [resolvable:$true] %s38_s13 }
   0x4   :  { %s4681_s18 = smov 4   ;;  %s4682_s19 = smov [#allocation11]  }
   0x5   :  { %44 = dma.hbm_to_vmem [thread:$0]  %s37_s11, 3072, %s39_s13, [#allocation9], %s4680_s17, %s4680_s17, %s4681_s18  }
   0x6   :  { %s68_s20 = sshll.u32 %s4682_s19, 4  ;;  %s4683_s21 = smov 256   ;;  %s69_s20 = int_to_ptr.vmem [resolvable:$true] %s68_s20 }
   0x7   :  { %s4684_s22 = smov 16   ;;  %s23_s24 = sshll.u32 %s6074_s1, 4  ;;  %s24_s24 = int_to_ptr.hbm [resolvable:$true] %s23_s24 }
   0x8   :  { %74 = dma.hbm_to_vmem [thread:$0]  %s67_s16, 512, %s69_s20, [#allocation12], %s4683_s21, %s4683_s21, %s4684_s22  }
   0x9   :  { %s4685_s25 = smov [#allocation6]   ;;  %s53_s28 = sshll.u32 %s6078_s5, 4  ;;  %s54_s28 = int_to_ptr.hbm [resolvable:$true] %s53_s28 }
   0xa   :  { %s25_s26 = sshll.u32 %s4685_s25, 4  ;;  %s4686_s29 = smov 128   ;;  %s26_s26 = int_to_ptr.vmem [resolvable:$true] %s25_s26 }
   0xb   :  { %s4687_s30 = smov 8   ;;  %s4688_s10 = smov [#allocation10]  }
   0xc   :  { %31 = dma.hbm_to_vmem [thread:$0]  %s24_s24, 5120, %s26_s26, [#allocation7], %s4686_s29, %s4686_s29, %s4687_s30  }
   0xd   :  { %s55_s11 = sshll.u32 %s4688_s10, 4  ;;  %s81_s14 = sshll.u32 %s6081_s8, 4  ;;  %s56_s11 = int_to_ptr.vmem [resolvable:$true] %s55_s11  ;;  %s82_s14 = int_to_ptr.hbm [resolvable:$true] %s81_s14 }
   0xe   :  { %61 = dma.hbm_to_vmem [thread:$0]  %s54_s28, 9216, %s56_s11, [#allocation9], %s4686_s29, %s4686_s29, %s4687_s30  }
   0xf   :  { %s4689_s1 = smov [#allocation13]  }
  0x10   :  { %s83_s15 = sshll.u32 %s4689_s1, 4  ;;  %s84_s15 = int_to_ptr.vmem [resolvable:$true] %s83_s15 }
  0x11   :  { %89 = dma.hbm_to_vmem [thread:$0]  %s82_s14, 512, %s84_s15, [#allocation12], %s4683_s21, %s4683_s21, %s4684_s22  }
  0x12   :  { %4673 = dma.done.wait [#allocation7], 5120  }
  0x13   :  { %4674 = vsyncadd [#allocation7], 4294962176 }
  0x14   :  { %4675 = dma.done.wait [#allocation9], 12288  }
  0x15   :  { %4676 = vsyncadd [#allocation9], 4294955008 }
  0x16   :  { %4677 = dma.done.wait [#allocation12], 1024  }
  0x17   :  { %4678 = vsyncadd [#allocation12], 4294966272  ;;  %vm111_vm0 = vcmask 516096   ;;  %v4690_v0 = vmov 0   ;;  %vm149_vm1 = vcmask 519171   ;;  %vm117_vm2 = vcmask 1040384  }
  0x18   :  { %112 = vst.msk [vmem:[#allocation2] sm:$0x1] %vm111_vm0, %v4690_v0  ;;  %v3449_v1 = vld [vmem:[#allocation6 + $0x30] sm:$0xf]  ;;  %v4300_v2 = vld [vmem:[#allocation6 + $0x34] sm:$0xf0] }
  0x19   :  { %115 = vst [vmem:[#allocation3] sm:$0x1] %v4690_v0  ;;  %v3441_v3 = vld [vmem:[#allocation6 + $0x20] sm:$0xf]  ;;  %v3450_v4 = vor.u32 %v4300_v2, %v3449_v1  ;;  %v4298_v5 = vld [vmem:[#allocation6 + $0x24] sm:$0xf0] }
  0x1a   :  { %116 = vst [vmem:[#allocation3 + $0x8] sm:$0x2] %v4690_v0  ;;  %v3411_v6 = vld [vmem:[#allocation6 + $0x70] sm:$0xf]  ;;  %v4308_v7 = vld [vmem:[#allocation6 + $0x74] sm:$0xf0]  ;;  %v3442_v10 = vor.u32 %v4298_v5, %v3441_v3 }
  0x1b   :  { %150 = vst.msk [vmem:[#allocation2 + $0x10] sm:$0x8] %vm149_vm1, %v4690_v0  ;;  %v3412_v8 = vor.u32 %v4308_v7, %v3411_v6  ;;  %v3403_v9 = vld [vmem:[#allocation6 + $0x60] sm:$0xf]  ;;  %vm132_vm3 = vcmask 1044484   ;;  %vm113_vm4 = vcmask 517121   ;;  %393 = vmatpush.bf16.msra.mxu2 %v3450_v4 }
  0x1c   :  { %151 = vst [vmem:[#allocation3 + $0x8] sm:$0x4] %v4690_v0  ;;  %vm147_vm5 = vcmask 518146   ;;  %v3433_v11 = vld [vmem:[#allocation6 + $0x10] sm:$0xf]  ;;  %v125_v17 = vld [vmem:[%s6073_s0] sm:$0xff]  ;;  %vm4783_vm9 = vmor %vm117_vm2, %vm132_vm3 }
  0x1d   :  { %152 = vst [vmem:[#allocation3 + $0x10] sm:$0x8] %v4690_v0  ;;  %v4296_v12 = vld [vmem:[#allocation6 + $0x14] sm:$0xf0]  ;;  %v4306_v13 = vld [vmem:[#allocation6 + $0x64] sm:$0xf0]  ;;  %297 = vmatpush.bf16.msra.mxu0 %v3412_v8  ;;  %v127_v19 = vpack.c.bf16 %v125_v17, %v125_v17 }
  0x1e   :  { %v3404_v14 = vor.u32 %v4306_v13, %v3403_v9  ;;  %v3395_v15 = vld [vmem:[#allocation6 + $0x50] sm:$0xf]  ;;  %v4304_v16 = vld [vmem:[#allocation6 + $0x54] sm:$0xf0]  ;;  %vm142_vm6 = vcmask 519169   ;;  %v126_v18 = vld [vmem:[%s6073_s0 + $0x8] sm:$0xff]  ;;  %v3434_v26 = vor.u32 %v4296_v12, %v3433_v11 }
  0x1f   :  { %v3379_v20 = vld [vmem:[%s6073_s0 + $0x10] sm:$0xff]  ;;  %v3380_v21 = vld [vmem:[%s6073_s0 + $0x18] sm:$0xff]  ;;  %vm6083_vm7 = vcmask 1042432   ;;  %114 = vst.msk [vmem:[#allocation2 + $0x8] sm:$0x2] %vm113_vm4, %v4690_v0  ;;  %v128_v23 = vpack.c.bf16 %v126_v18, %v126_v18  ;;  %vm169_vm8 = vcmask 1046532   ;;  %394 = vmatpush.bf16.msra.mxu2 %v3442_v10  ;;  %v3396_v30 = vor.u32 %v4304_v16, %v3395_v15 }
  0x20   :  { %v3425_v22 = vld [vmem:[#allocation6] sm:$0xf]  ;;  %v164_v24 = vpack.c.bf16 %v3379_v20, %v3379_v20  ;;  %v165_v25 = vpack.c.bf16 %v3380_v21, %v3380_v21  ;;  %148 = vst.msk [vmem:[#allocation2 + $0x8] sm:$0x4] %vm147_vm5, %v4690_v0  ;;  %v4294_v27 = vld [vmem:[#allocation6 + $0x4] sm:$0xf0]  ;;  %vm170_vm11 = vmor %vm6083_vm7, %vm169_vm8 }
  0x21   :  { %v134_v28 = vrot.slane %v127_v19, 7  ;;  %v3387_v29 = vld [vmem:[#allocation6 + $0x40] sm:$0xf]  ;;  %298 = vmatpush.bf16.msra.mxu0 %v3404_v14  ;;  %v136_v32 = vrot.slane %v128_v23, 7  ;;  %v4302_v35 = vld [vmem:[#allocation6 + $0x44] sm:$0xf0]  ;;  %v3426_v41 = vor.u32 %v4294_v27, %v3425_v22 }
  0x22   :  { %v171_v33 = vrot.slane %v164_v24, 5  ;;  %v173_v34 = vrot.slane %v165_v25, 5  ;;  %vm144_vm10 = vcmask 519168   ;;  %v3487_v37 = vld [vmem:[#allocation6 + $0xb0] sm:$0xf]  ;;  %v3388_v45 = vor.u32 %v4302_v35, %v3387_v29 }
  0x23   :  { %v135_v36 = vrot.slane %v134_v28, 4  ;;  %143 = vst.msk [vmem:[#allocation2] sm:$0xe] %vm142_vm6, %v134_v28  ;;  %v138_v38 = vrot.slane %v136_v32, 4  ;;  %v4316_v40 = vld [vmem:[#allocation6 + $0xb4] sm:$0xf0]  ;;  %395 = vmatpush.bf16.msra.mxu2 %v3434_v26 }
  0x24   :  { %v172_v39 = vrot.slane %v171_v33, 4  ;;  %179 = vst.msk [vmem:[#allocation2 + $0x8] sm:$0x8] %vm149_vm1, %v171_v33  ;;  %v175_v43 = vrot.slane %v173_v34, 4  ;;  %vm181_vm12 = vcmask 518144   ;;  %v3488_v46 = vor.u32 %v4316_v40, %v3487_v37 }
  0x25   :  { %v137_v42 = vsel %vm4783_vm9, %v135_v36, %v136_v32  ;;  %299 = vmatpush.bf16.msra.mxu0 %v3396_v30  ;;  %146 = vst.msk [vmem:[#allocation2 + $0x8] sm:$0x1] %vm111_vm0, %v138_v38  ;;  %v3479_v47 = vld [vmem:[#allocation6 + $0xa0] sm:$0xf]  ;;  %v4314_v48 = vld [vmem:[#allocation6 + $0xa4] sm:$0xf0] }
  0x26   :  { %145 = vst.msk [vmem:[#allocation2 + $0x4] sm:$0xf] %vm144_vm10, %v137_v42  ;;  %v174_v44 = vsel %vm170_vm11, %v172_v39, %v173_v34  ;;  %vm283_vm13 = vcmask 523264   ;;  %v3480_v49 = vor.u32 %v4314_v48, %v3479_v47  ;;  %v3471_v50 = vld [vmem:[#allocation6 + $0x90] sm:$0xf]  ;;  %vm6084_vm0 = vcmask 1046528  }
  0x27   :  { %180 = vst.msk [vmem:[#allocation2 + $0xc] sm:$0xf] %vm144_vm10, %v174_v44  ;;  %396 = vmatpush.bf16.msra.mxu2 %v3426_v41  ;;  %v4312_v51 = vld [vmem:[#allocation6 + $0x94] sm:$0xf0]  ;;  %v3525_v55 = vld [vmem:[#allocation6 + $0xf0] sm:$0xf] }
  0x28   :  { %182 = vst.msk [vmem:[#allocation2 + $0x10] sm:$0x7] %vm181_vm12, %v175_v43  ;;  %v4324_v56 = vld [vmem:[#allocation6 + $0xf4] sm:$0xf0]  ;;  %v3472_v58 = vor.u32 %v4312_v51, %v3471_v50  ;;  %vm219_vm14 = vsmask.f32 7424 }
  0x29   :  { %300 = vmatpush.bf16.msra.mxu0 %v3388_v45  ;;  %v3526_v59 = vor.u32 %v4324_v56, %v3525_v55  ;;  %v3517_v3 = vld [vmem:[#allocation6 + $0xe0] sm:$0xf]  ;;  %v4322_v4 = vld [vmem:[#allocation6 + $0xe4] sm:$0xf0]  ;;  %v3509_v9 = vld [vmem:[#allocation6 + $0xd0] sm:$0xf] }
  0x2a   :  { %v3518_v6 = vor.u32 %v4322_v4, %v3517_v3  ;;  %v3463_v7 = vld [vmem:[#allocation6 + $0x80] sm:$0xf]  ;;  %v4310_v8 = vld [vmem:[#allocation6 + $0x84] sm:$0xf0]  ;;  %v4320_v12 = vld [vmem:[#allocation6 + $0xd4] sm:$0xf0] }
  0x2b   :  { %647 = vmatpush.bf16.msrb.mxu2 %v3526_v59  ;;  %v3464_v11 = vor.u32 %v4310_v8, %v3463_v7  ;;  %v3510_v13 = vor.u32 %v4320_v12, %v3509_v9  ;;  %v3501_v14 = vld [vmem:[#allocation6 + $0xc0] sm:$0xf]  ;;  %v4318_v15 = vld [vmem:[#allocation6 + $0xc4] sm:$0xf0]  ;;  %v4307_v23 = vld [vmem:[#allocation6 + $0x74] sm:$0xf] }
  0x2c   :  { %v3502_v18 = vor.u32 %v4318_v15, %v3501_v14  ;;  %v3413_v24 = vld [vmem:[#allocation6 + $0x78] sm:$0xf0]  ;;  %v3563_v28 = vld [vmem:[#allocation6 + $0x130] sm:$0xf]  ;;  %v4332_v29 = vld [vmem:[#allocation6 + $0x134] sm:$0xf0] }
  0x2d   :  { %507 = vmatpush.bf16.msrb.mxu0 %v3488_v46  ;;  %v4796_v52 = vld [vmem:[#allocation2] sm:$0xff]   ;;  %v3416_v26 = vor.u32 %v4307_v23, %v3413_v24  ;;  %v4305_v30 = vld [vmem:[#allocation6 + $0x64] sm:$0xf]  ;;  %v3564_v34 = vor.u32 %v4332_v29, %v3563_v28  ;;  %v3405_v35 = vld [vmem:[#allocation6 + $0x68] sm:$0xf0]  ;;  %vm712_vm1 = vcmask 1045504  }
  0x2e   :  { %3455 = vmatmul.msk.bf16.vlgmr.msra.gmra.mxu2 %vm283_vm13, %v4796_v52  ;;  %v221_v53 = vshrl.u32 %v4796_v52, 16  ;;  %v223_v54 = vshll.u32 %v4796_v52, 16  ;;  %v4802_v57 = vld [vmem:[#allocation2 + $0x8] sm:$0xff]  ;;  %v435_v25 = vld [vmem:[#allocation2] sm:$0xe]  ;;  %v4500_v32 = vunpack.c.h.b16 %v4796_v52  ;;  %v3408_v38 = vor.u32 %v4305_v30, %v3405_v35 }
  0x2f   :  { %v196_v61 = vld [vmem:[#allocation2 + $0x10] sm:$0x7]  ;;  %v228_v62 = vshll.u32 %v4802_v57, 16  ;;  %648 = vmatpush.bf16.msrb.mxu2 %v3518_v6  ;;  %v232_v16 = vshrl.u32 %v4802_v57, 16  ;;  %320 = vmatpush.bf16.msra.mxu1 %v3416_v26  ;;  %v446_v33 = vunpack.c.l.b16 %v435_v25  ;;  %v4303_v36 = vld [vmem:[#allocation6 + $0x54] sm:$0xf] }
  0x30   :  { %v225_v60 = vrot.slane %v223_v54, 1  ;;  %v215_v2 = vunpack.c.l.b16 %v196_v61  ;;  %v187_v22 = vld [vmem:[#allocation2 + $0x10] sm:$0x3]  ;;  %v3397_v37 = vld [vmem:[#allocation6 + $0x58] sm:$0xf0]  ;;  %vm118_vm12 = vcmask 520196  }
  0x31   :  { %508 = vmatpush.bf16.msrb.mxu0 %v3480_v49  ;;  %v230_v1 = vrot.slane %v228_v62, 1  ;;  %v340_v27 = vunpack.c.l.b16 %v187_v22  ;;  %v3400_v40 = vor.u32 %v4303_v36, %v3397_v37  ;;  %v447_v41 = vpack.c.b16 %v4500_v32, %v446_v33  ;;  %v3555_v43 = vld [vmem:[#allocation6 + $0x120] sm:$0xf]  ;;  %v4330_v44 = vld [vmem:[#allocation6 + $0x124] sm:$0xf0] }
  0x32   :  { %v226_v63 = vor.u32 %v225_v60, %v221_v53  ;;  %v4812_v10 = vpack.c.b16 %v215_v2, %v215_v2  ;;  %v4301_v45 = vld [vmem:[#allocation6 + $0x44] sm:$0xf]  ;;  %v3556_v48 = vor.u32 %v4330_v44, %v3555_v43  ;;  %v3389_v49 = vld [vmem:[#allocation6 + $0x48] sm:$0xf0]  ;;  %v581_v55 = vrot.slane %v232_v16, 1 }
  0x33   :  { %649 = vmatpush.bf16.msrb.mxu2 %v3510_v13  ;;  %v234_v19 = vor.u32 %v232_v16, %v230_v1  ;;  %v4824_v39 = vpack.c.b16 %v340_v27, %v340_v27  ;;  %321 = vmatpush.bf16.msra.mxu1 %v3408_v38  ;;  %v574_v46 = vshrl.u32 %v447_v41, 16  ;;  %v577_v47 = vshll.u32 %v447_v41, 16  ;;  %v3547_v59 = vld [vmem:[#allocation6 + $0x110] sm:$0xf]  ;;  %v4328_v60 = vld [vmem:[#allocation6 + $0x114] sm:$0xf0] }
  0x34   :  { %v4808_v5 = vsel %vm219_vm14, %v226_v63, %v230_v1  ;;  %v236_v17 = vshll.u32 %v4812_v10, 16  ;;  %v240_v42 = vshrl.u32 %v4812_v10, 16  ;;  %v3392_v50 = vor.u32 %v4301_v45, %v3389_v49  ;;  %v3539_v12 = vld [vmem:[#allocation6 + $0x100] sm:$0xf]  ;;  %v4326_v13 = vld [vmem:[#allocation6 + $0x104] sm:$0xf0] }
  0x35   :  { %509 = vmatpush.bf16.msrb.mxu0 %v3472_v58  ;;  %v576_v53 = vrot.slane %v574_v46, 1  ;;  %v579_v54 = vrot.slane %v577_v47, 2  ;;  %v582_v56 = vrot.slane %v228_v62, 2  ;;  %v559_v58 = vld [vmem:[#allocation2 + $0x10] sm:$0xf]  ;;  %v3548_v2 = vor.u32 %v4328_v60, %v3547_v59 }
  0x36   :  { %3417 = vmatmul.msk.bf16.vlgmr.msra.gmra.mxu0 %vm283_vm13, %v4808_v5  ;;  %v238_v20 = vrot.slane %v236_v17, 1  ;;  %v570_v1 = vunpack.c.l.b16 %v559_v58  ;;  %vm572_vm15 = vsmask.f32 6400  ;;  %v449_v62 = vrot.slane %v447_v41, 1  ;;  %v4299_v14 = vld [vmem:[#allocation6 + $0x34] sm:$0xf] }
  0x37   :  { %650 = vmatpush.bf16.msrb.mxu2 %v3502_v18  ;;  %322 = vmatpush.bf16.msra.mxu1 %v3400_v40  ;;  %v580_v61 = vor.u32 %v579_v54, %v576_v53  ;;  %v583_v63 = vor.u32 %v582_v56, %v581_v55  ;;  %v3540_v16 = vor.u32 %v4326_v13, %v3539_v12  ;;  %v3451_v17 = vld [vmem:[#allocation6 + $0x38] sm:$0xf0]  ;;  %v4297_v18 = vld [vmem:[#allocation6 + $0x24] sm:$0xf]  ;;  %v4295_v25 = vld [vmem:[#allocation6 + $0x14] sm:$0xf] }
  0x38   :  { %v4819_v21 = vsel %vm219_vm14, %v234_v19, %v238_v20  ;;  %v242_v51 = vor.u32 %v240_v42, %v238_v20  ;;  %v4839_v4 = vpack.c.b16 %v570_v1, %v570_v1  ;;  %v3443_v19 = vld [vmem:[#allocation6 + $0x28] sm:$0xf0]  ;;  %v3454_v20 = vor.u32 %v4299_v14, %v3451_v17  ;;  %v3435_v26 = vld [vmem:[#allocation6 + $0x18] sm:$0xf0]  ;;  %v4315_v27 = vld [vmem:[#allocation6 + $0xb4] sm:$0xf] }
  0x39   :  { %510 = vmatpush.bf16.msrb.mxu0 %v3464_v11  ;;  %v4837_v3 = vsel %vm572_vm15, %v580_v61, %v583_v63  ;;  %v3446_v22 = vor.u32 %v4297_v18, %v3443_v19  ;;  %v3438_v28 = vor.u32 %v4295_v25, %v3435_v26  ;;  %v3489_v29 = vld [vmem:[#allocation6 + $0xb8] sm:$0xf0]  ;;  %v4293_v33 = vld [vmem:[#allocation6 + $0x4] sm:$0xf]  ;;  %v3481_v37 = vld [vmem:[#allocation6 + $0xa8] sm:$0xf0] }
  0x3a   :  { %v586_v6 = vshrl.u32 %v4839_v4, 16  ;;  %v589_v7 = vshll.u32 %v4839_v4, 16  ;;  %416 = vmatpush.bf16.msra.mxu3 %v3454_v20  ;;  %v3492_v30 = vor.u32 %v4315_v27, %v3489_v29  ;;  %v4313_v35 = vld [vmem:[#allocation6 + $0xa4] sm:$0xf]  ;;  %v4311_v38 = vld [vmem:[#allocation6 + $0x94] sm:$0xf] }
  0x3b   :  { %323 = vmatpush.bf16.msra.mxu1 %v3392_v50  ;;  %v3473_v40 = vld [vmem:[#allocation6 + $0x98] sm:$0xf0]  ;;  %v4309_v42 = vld [vmem:[#allocation6 + $0x84] sm:$0xf]  ;;  %v3465_v43 = vld [vmem:[#allocation6 + $0x88] sm:$0xf0] }
  0x3c   :  { %v588_v9 = vrot.slane %v586_v6, 1  ;;  %v591_v11 = vrot.slane %v589_v7, 2  ;;  %v3476_v41 = vor.u32 %v4311_v38, %v3473_v40  ;;  %v3468_v44 = vor.u32 %v4309_v42, %v3465_v43  ;;  %v699_v45 = vld [vmem:[#allocation2] sm:$0xc]  ;;  %v3519_v55 = vld [vmem:[#allocation6 + $0xe8] sm:$0xf0] }
  0x3d   :  { %771 = vmatpush.bf16.msra.mxu0 %v3564_v34  ;;  %v3427_v34 = vld [vmem:[#allocation6 + $0x8] sm:$0xf0]  ;;  %v710_v46 = vunpack.c.l.b16 %v699_v45  ;;  %v714_v49 = vrot.slane %v4802_v57, 2  ;;  %v3527_v53 = vld [vmem:[#allocation6 + $0xf8] sm:$0xf0]  ;;  %v4340_v42 = vld [vmem:[#allocation8 + $0x30] sm:$0xff] }
  0x3e   :  { %3456 = vmatmul.msk.bf16.gmra.mxu2 %vm283_vm13, %v4802_v57  ;;  %3420 = vmatmul.msk.bf16.vlgmr.msra.gmra.mxu1 %vm283_vm13, %v4808_v5  ;;  %v450_v5 = vrot.slane %v4802_v57, 1  ;;  %v4850_v15 = vor.u32 %v591_v11, %v588_v9  ;;  %v3430_v36 = vor.u32 %v4293_v33, %v3427_v34  ;;  %v4319_v58 = vld [vmem:[#allocation6 + $0xd4] sm:$0xf]  ;;  %v3511_v59 = vld [vmem:[#allocation6 + $0xd8] sm:$0xf0]  ;;  %v4339_v43 = vld [vmem:[#allocation8 + $0x28] sm:$0xff] }
  0x3f   :  { %417 = vmatpush.bf16.msra.mxu3 %v3446_v22  ;;  %530 = vmatpush.bf16.msrb.mxu1 %v3492_v30  ;;  %v711_v47 = vpack.c.b16 %v4500_v32, %v710_v46  ;;  %v4321_v32 = vld [vmem:[#allocation6 + $0xe4] sm:$0xf]  ;;  %v4331_v60 = vld [vmem:[#allocation6 + $0x134] sm:$0xf]  ;;  %v3514_v61 = vor.u32 %v4319_v58, %v3511_v59  ;;  %v3541_v12 = vld [vmem:[#allocation6 + $0x108] sm:$0xf0] }
  0x40   :  { %v451_v8 = vsel %vm6084_vm0, %v449_v62, %v450_v5  ;;  %v4854_v23 = vsel %vm572_vm15, %v583_v63, %v4850_v15  ;;  %v3522_v56 = vor.u32 %v4321_v32, %v3519_v55  ;;  %v3565_v63 = vld [vmem:[#allocation6 + $0x138] sm:$0xf0]  ;;  %v4327_v7 = vld [vmem:[#allocation6 + $0x114] sm:$0xf]  ;;  %v4325_v11 = vld [vmem:[#allocation6 + $0x104] sm:$0xf] }
  0x41   :  { %772 = vmatpush.bf16.msra.mxu0 %v3556_v48  ;;  %v713_v48 = vrot.slane %v711_v47, 2  ;;  %v3568_v1 = vor.u32 %v4331_v60, %v3565_v63  ;;  %v3544_v13 = vor.u32 %v4325_v11, %v3541_v12  ;;  %v4338_v47 = vld [vmem:[#allocation8 + $0x20] sm:$0xff]  ;;  %v4336_v32 = vld [vmem:[#allocation8 + $0x10] sm:$0xff]  ;;  %v4355_v63 = vld [vmem:[#allocation8 + $0xa8] sm:$0xff]  ;;  %vm1259_vm10 = vsmask.f32 4368 }
  0x42   :  { %v4356_v55 = vld [vmem:[#allocation8 + $0xb0] sm:$0xff]  ;;  %v4353_v12 = vld [vmem:[#allocation8 + $0x98] sm:$0xff]  ;;  %vm157_vm15 = vcmask 1043459  }
  0x43   :  { %418 = vmatpush.bf16.msra.mxu3 %v3438_v28  ;;  %v715_v50 = vsel %vm712_vm1, %v713_v48, %v714_v49  ;;  %v4349_v48 = vld [vmem:[#allocation8 + $0x78] sm:$0xff]  ;;  %v4348_v58 = vld [vmem:[#allocation8 + $0x70] sm:$0xff] }
  0x44   :  { %1025 = vmatpush.bf16.msra.mxu2 %v4349_v48 }
  0x45   :  { %773 = vmatpush.bf16.msra.mxu0 %v3548_v2  ;;  %v3503_v2 = vld [vmem:[#allocation6 + $0xc8] sm:$0xf0] }
  0x46   :  { %3418 = vmatmul.msk.bf16.gmra.mxu0 %vm283_vm13, %v4819_v21 }
  0x47   :  { %419 = vmatpush.bf16.msra.mxu3 %v3430_v36 }
  0x48   :  { %1026 = vmatpush.bf16.msra.mxu2 %v4348_v58 }
  0x49   :  { %774 = vmatpush.bf16.msra.mxu0 %v3540_v16 }
  0x4a   :  { %3458 = vmatmul.msk.bf16.vlgmr.msra.gmra.mxu3 %vm283_vm13, %v4796_v52  ;;  %v716_v52 = vrot.slane %v4839_v4, 2  ;;  %v4329_v4 = vld [vmem:[#allocation6 + $0x124] sm:$0xf] }
  0x4e   :  { %3457 = vmatmul.msk.bf16.gmra.mxu2 %vm283_vm13, %v4824_v39  ;;  %3421 = vmatmul.msk.bf16.gmra.mxu1 %vm283_vm13, %v4819_v21  ;;  %v452_v21 = vrot.slane %v4812_v10, 1  ;;  %v3484_v10 = vor.u32 %v4313_v35, %v3481_v37 }
  0x50   :  { %v453_v24 = vsel %vm6084_vm0, %v450_v5, %v452_v21  ;;  %531 = vmatpush.bf16.msrb.mxu1 %v3484_v10  ;;  %v3557_v5 = vld [vmem:[#allocation6 + $0x128] sm:$0xf0]  ;;  %v4341_v10 = vld [vmem:[#allocation8 + $0x38] sm:$0xff] }
  0x51   :  { %v3560_v6 = vor.u32 %v4329_v4, %v3557_v5  ;;  %v4937_v4 = vld [vmem:[#allocation11] ss:$8 sm:$0x3] }
  0x52   :  { %v4354_v5 = vld [vmem:[#allocation8 + $0xa0] sm:$0xff] }
  0x54   :  { %532 = vmatpush.bf16.msrb.mxu1 %v3476_v41 }
  0x56   :  { %3419 = vmatmul.msk.bf16.gmra.mxu0 %vm283_vm13, %v242_v51 }
  0x58   :  { %533 = vmatpush.bf16.msrb.mxu1 %v3468_v44 }
  0x5a   :  { %3459 = vmatmul.msk.bf16.gmra.mxu3 %vm283_vm13, %v4802_v57  ;;  %v717_v57 = vsel %vm712_vm1, %v714_v49, %v716_v52  ;;  %v4337_v49 = vld [vmem:[#allocation8 + $0x18] sm:$0xff]  ;;  %vm158_vm1 = vcmask 523271  }
  0x5c   :  { %794 = vmatpush.bf16.msra.mxu1 %v3568_v1  ;;  %v4334_v1 = vld [vmem:[#allocation8] sm:$0xff] }
  0x5e   :  { %3531 = vmatmul.msk.bf16.vlgmr.msrb.gmra.mxu2 %vm283_vm13, %v4837_v3  ;;  %3422 = vmatmul.msk.bf16.gmra.mxu1 %vm283_vm13, %v242_v51  ;;  %v4323_v51 = vld [vmem:[#allocation6 + $0xf4] sm:$0xf] }
  0x5f   :  { %v3530_v54 = vor.u32 %v4323_v51, %v3527_v53 }
  0x60   :  { %795 = vmatpush.bf16.msra.mxu1 %v3560_v6 }
  0x61   :  { %670 = vmatpush.bf16.msrb.mxu3 %v3530_v54  ;;  %v4357_v54 = vld [vmem:[#allocation8 + $0xb8] sm:$0xff] }
  0x65   :  { %671 = vmatpush.bf16.msrb.mxu3 %v3522_v56  ;;  %v4335_v56 = vld [vmem:[#allocation8 + $0x8] sm:$0xff] }
  0x66   :  { %3493 = vmatmul.msk.bf16.vlgmr.msrb.gmra.mxu0 %vm283_vm13, %v451_v8 }
  0x67   :  { %1202 = vmatpush.bf16.msrb.mxu0 %v4357_v54 }
  0x69   :  { %672 = vmatpush.bf16.msrb.mxu3 %v3514_v61 }
  0x6a   :  { %3460 = vmatmul.msk.bf16.gmra.mxu3 %vm283_vm13, %v4824_v39  ;;  %v4317_v39 = vld [vmem:[#allocation6 + $0xc4] sm:$0xf] }
  0x6b   :  { %v3506_v62 = vor.u32 %v4317_v39, %v3503_v2  ;;  %1203 = vmatpush.bf16.msrb.mxu0 %v4356_v55  ;;  %v4347_v39 = vld [vmem:[#allocation8 + $0x68] sm:$0xff] }
  0x6c   :  { %1027 = vmatpush.bf16.msra.mxu2 %v4347_v39 }
  0x6d   :  { %673 = vmatpush.bf16.msrb.mxu3 %v3506_v62  ;;  %v4346_v62 = vld [vmem:[#allocation8 + $0x60] sm:$0xff] }
  0x6e   :  { %3532 = vmatmul.msk.bf16.gmra.mxu2 %vm283_vm13, %v4854_v23  ;;  %3496 = vmatmul.msk.bf16.vlgmr.msrb.gmra.mxu1 %vm283_vm13, %v451_v8  ;;  %v3549_v8 = vld [vmem:[#allocation6 + $0x118] sm:$0xf0] }
  0x6f   :  { %v3552_v9 = vor.u32 %v4327_v7, %v3549_v8  ;;  %1204 = vmatpush.bf16.msrb.mxu0 %v4355_v63  ;;  %v4942_v8 = vperm.slane %v4937_v4, 0 }
  0x70   :  { %1028 = vmatpush.bf16.msra.mxu2 %v4346_v62 }
  0x71   :  { %796 = vmatpush.bf16.msra.mxu1 %v3552_v9  ;;  %1102 = vmatpush.bf16.msra.mxu3 %v4341_v10 }
  0x73   :  { %1205 = vmatpush.bf16.msrb.mxu0 %v4354_v5 }
  0x75   :  { %797 = vmatpush.bf16.msra.mxu1 %v3544_v13  ;;  %1103 = vmatpush.bf16.msra.mxu3 %v4340_v42 }
  0x76   :  { %3494 = vmatmul.msk.bf16.gmra.mxu0 %vm283_vm13, %v453_v24 }
  0x77   :  { %1206 = vmatpush.bf16.msrb.mxu0 %v4353_v12 }
  0x79   :  { %1104 = vmatpush.bf16.msra.mxu3 %v4339_v43 }
  0x7a   :  { %3534 = vmatmul.msk.bf16.vlgmr.msrb.gmra.mxu3 %vm283_vm13, %v4837_v3 }
  0x7d   :  { %1105 = vmatpush.bf16.msra.mxu3 %v4338_v47 }
  0x7e   :  { %3533 = vmatmul.msk.bf16.gmra.mxu2 %vm283_vm13, %v4850_v15  ;;  %3497 = vmatmul.msk.bf16.gmra.mxu1 %vm283_vm13, %v453_v24 }
  0x81   :  { %1106 = vmatpush.bf16.msra.mxu3 %v4337_v49  ;;  %v4350_v49 = vld [vmem:[#allocation8 + $0x80] sm:$0xff] }
  0x85   :  { %1107 = vmatpush.bf16.msra.mxu3 %v4336_v32  ;;  %v4342_v32 = vld [vmem:[#allocation8 + $0x40] sm:$0xff] }
  0x86   :  { %3495 = vmatmul.msk.bf16.gmra.mxu0 %vm283_vm13, %v452_v21 }
  0x89   :  { %1108 = vmatpush.bf16.msra.mxu3 %v4335_v56 }
  0x8a   :  { %3535 = vmatmul.msk.bf16.gmra.mxu3 %vm283_vm13, %v4854_v23 }
  0x8d   :  { %1109 = vmatpush.bf16.msra.mxu3 %v4334_v1 }
  0x8e   :  { %3498 = vmatmul.msk.bf16.gmra.mxu1 %vm283_vm13, %v452_v21 }
  0x96   :  { %3569 = vmatmul.msk.bf16.vlgmr.msra.gmra.mxu0 %vm283_vm13, %v715_v50 }
  0x9a   :  { %3536 = vmatmul.msk.bf16.gmra.mxu3 %vm283_vm13, %v4850_v15 }
  0x9e   :  { %3572 = vmatmul.msk.bf16.vlgmr.msra.gmra.mxu1 %vm283_vm13, %v715_v50 }
  0xa6   :  { %3570 = vmatmul.msk.bf16.gmra.mxu0 %vm283_vm13, %v717_v57 }
  0xae   :  { %3573 = vmatmul.msk.bf16.gmra.mxu1 %vm283_vm13, %v717_v57 }
  0xb1   :  { %v398_v14 = vpop.f32.mrf.mxu2 }
  0xb3   :  { %v302_v16 = vpop.f32.mrf.mxu0 }
  0xb4   :  { %v4882_v17 = vadd.f32 %v398_v14, %v302_v16  ;;  %v4948_v16 = vld [vmem:[#allocation11 + $0x1] ss:$0 sm:$0xff] }
  0xb6   :  { %3571 = vmatmul.msk.bf16.gmra.mxu0 %vm283_vm13, %v716_v52 }
  0xb9   :  { %v4886_v18 = vpop.f32.mrf.mxu2 }
  0xbb   :  { %v4888_v19 = vpop.f32.mrf.mxu0  ;;  %v4901_v26 = vpop.f32.mrf.mxu1 }
  0xbc   :  { %v401_v13 = vadd.f32 %v4886_v18, %v4888_v19 }
  0xbe   :  { %3574 = vmatmul.msk.bf16.gmra.mxu1 %vm283_vm13, %v716_v52 }
  0xc1   :  { %v403_v3 = vpop.f32.mrf.mxu2 }
  0xc3   :  { %v307_v20 = vpop.f32.mrf.mxu0  ;;  %v4906_v29 = vpop.f32.mrf.mxu1 }
  0xc4   :  { %v4892_v22 = vadd.f32 %v403_v3, %v307_v20 }
  0xc9   :  { %v4895_v21 = vpop.f32.mrf.mxu2 }
  0xcb   :  { %v4897_v24 = vpop.f32.mrf.mxu0  ;;  %v4908_v34 = vpop.f32.mrf.mxu1 }
  0xcd   :  { %v4924_v50 = vpop.f32.mrf.mxu3 }
  0xd1   :  { %v408_v25 = vpop.f32.mrf.mxu2 }
  0xd3   :  { %v312_v27 = vpop.f32.mrf.mxu0  ;;  %v4912_v37 = vpop.f32.mrf.mxu1 }
  0xd4   :  { %v4903_v28 = vadd.f32 %v408_v25, %v312_v27  ;;  %v4352_v25 = vld [vmem:[#allocation8 + $0x90] sm:$0xff] }
  0xd5   :  { %v4932_v57 = vpop.f32.mrf.mxu3  ;;  %1207 = vmatpush.bf16.msrb.mxu0 %v4352_v25 }
  0xd9   :  { %v410_v23 = vpop.f32.mrf.mxu2 }
  0xdb   :  { %v314_v30 = vpop.f32.mrf.mxu0  ;;  %v4916_v40 = vpop.f32.mrf.mxu1 }
  0xdc   :  { %v4344_v30 = vld [vmem:[#allocation8 + $0x50] sm:$0xff] }
  0xdd   :  { %v4939_v6 = vpop.f32.mrf.mxu3 }
  0xe1   :  { %v652_v33 = vpop.f32.mrf.mxu2 }
  0xe3   :  { %v512_v35 = vpop.f32.mrf.mxu0  ;;  %v337_v45 = vpop.f32.mrf.mxu1 }
  0xe4   :  { %v549_v2 = vadd.f32 %v512_v35, %v4882_v17  ;;  %v4345_v17 = vld [vmem:[#allocation8 + $0x58] sm:$0xff]  ;;  %v4343_v45 = vld [vmem:[#allocation8 + $0x48] sm:$0xff] }
  0xe5   :  { %1029 = vmatpush.bf16.msra.mxu2 %v4345_v17  ;;  %v4952_v23 = vpop.f32.mrf.mxu3 }
  0xe6   :  { %v689_v7 = vadd.f32 %v652_v33, %v549_v2 }
  0xe9   :  { %v4910_v36 = vpop.f32.mrf.mxu2  ;;  %1030 = vmatpush.bf16.msra.mxu2 %v4344_v30 }
  0xeb   :  { %v514_v15 = vpop.f32.mrf.mxu0  ;;  %v4930_v52 = vpop.f32.mrf.mxu1 }
  0xec   :  { %v551_v3 = vadd.f32 %v514_v15, %v401_v13  ;;  %v4351_v15 = vld [vmem:[#allocation8 + $0x88] sm:$0xff] }
  0xed   :  { %1208 = vmatpush.bf16.msrb.mxu0 %v4351_v15  ;;  %1031 = vmatpush.bf16.msra.mxu2 %v4343_v45  ;;  %v4961_v54 = vpop.f32.mrf.mxu3 }
  0xee   :  { %v691_v33 = vadd.f32 %v4910_v36, %v551_v3 }
  0xf1   :  { %v4914_v38 = vpop.f32.mrf.mxu2  ;;  %1209 = vmatpush.bf16.msrb.mxu0 %v4350_v49  ;;  %1032 = vmatpush.bf16.msra.mxu2 %v4342_v32 }
  0xf3   :  { %v4918_v41 = vpop.f32.mrf.mxu0  ;;  %v4934_v61 = vpop.f32.mrf.mxu1 }
  0xf4   :  { %v553_v47 = vadd.f32 %v4918_v41, %v4892_v22  ;;  %v406_v22 = vadd.f32 %v4895_v21, %v4897_v24 }
  0xf6   :  { %v693_v55 = vadd.f32 %v4914_v38, %v553_v47 }
  0xf9   :  { %v4920_v44 = vpop.f32.mrf.mxu2 }
  0xfb   :  { %v4922_v46 = vpop.f32.mrf.mxu0  ;;  %v4944_v11 = vpop.f32.mrf.mxu1 }
  0xfc   :  { %v555_v39 = vadd.f32 %v4922_v46, %v406_v22  ;;  %v422_v46 = vadd.f32 %v4924_v50, %v4901_v26  ;;  %v424_v26 = vadd.f32 %v4932_v57, %v4906_v29  ;;  %v4990_v57 = vperm.slane %v4937_v4, 1 }
 0x101   :  { %v4926_v51 = vpop.f32.mrf.mxu2 }
 0x103   :  { %v4928_v53 = vpop.f32.mrf.mxu0  ;;  %v4955_v10 = vpop.f32.mrf.mxu1 }
 0x104   :  { %v557_v3 = vadd.f32 %v4928_v53, %v4903_v28 }
 0x109   :  { %v664_v59 = vpop.f32.mrf.mxu2 }
 0x10b   :  { %v524_v60 = vpop.f32.mrf.mxu0 }
 0x10c   :  { %v4964_v60 = vpop.f32.mrf.mxu1 }
 0x113   :  { %v776_v9 = vpop.f32.mrf.mxu0 }
 0x114   :  { %v813_v14 = vadd.f32 %v776_v9, %v689_v7  ;;  %v433_v7 = vpop.f32.mrf.mxu3  ;;  %v695_v9 = vadd.f32 %v4920_v44, %v555_v39  ;;  %v547_v13 = vpop.f32.mrf.mxu1 }
 0x116   :  { %v829_v20 = vadd.f32 %v4942_v8, %v813_v14 }
 0x118   :  { %vm850_vm3 = vcmp.gt.f32.partialorder %v829_v20, 0.0  ;;  %v855_v27 = vmul.f32 %v4948_v16, %v829_v20 }
 0x11a   :  { %v860_v18 = vsel %vm850_vm3, %v829_v20, %v855_v27  ;;  %v550_v27 = vadd.f32 %v4930_v52, %v422_v46  ;;  %v552_v52 = vadd.f32 %v4934_v61, %v424_v26  ;;  %vm5543_vm3 = vmor %vm118_vm12, %vm117_vm2 }
 0x11b   :  { %v865_v19 = vpack.c.bf16 %v860_v18, %v860_v18  ;;  %v778_v35 = vpop.f32.mrf.mxu0  ;;  %120 = vst.msk [vmem:[#allocation5] sm:$0x11] %vm5543_vm3, %v4690_v0 }
 0x11c   :  { %v815_v42 = vadd.f32 %v778_v35, %v691_v33  ;;  %v675_v30 = vpop.f32.mrf.mxu3  ;;  %v697_v33 = vadd.f32 %v4926_v51, %v557_v3  ;;  %v799_v28 = vpop.f32.mrf.mxu1 }
 0x11d   :  { %v872_v43 = vrot.slane %v865_v19, 7  ;;  %v690_v35 = vadd.f32 %v675_v30, %v550_v27 }
 0x11e   :  { %v831_v48 = vadd.f32 %v4942_v8, %v815_v42 }
 0x11f   :  { %880 = vst [vmem:[#allocation3] sm:$0xe] %v872_v43  ;;  %v873_v63 = vrot.slane %v872_v43, 4  ;;  %v814_v29 = vadd.f32 %v799_v28, %v690_v35 }
 0x120   :  { %vm851_vm4 = vcmp.gt.f32.partialorder %v831_v48, 0.0  ;;  %v856_v36 = vmul.f32 %v4948_v16, %v831_v48 }
 0x122   :  { %v861_v56 = vsel %vm851_vm4, %v831_v48, %v856_v36  ;;  %vm5550_vm4 = vmor %vm158_vm1, %vm157_vm15  ;;  %vm2200_vm15 = vcmask 522244  }
 0x123   :  { %v866_v58 = vpack.c.bf16 %v861_v56, %v861_v56  ;;  %v781_v59 = vpop.f32.mrf.mxu0  ;;  %160 = vst.msk [vmem:[#allocation5 + $0x20] sm:$0x88] %vm5550_vm4, %v4690_v0 }
 0x124   :  { %v817_v41 = vadd.f32 %v781_v59, %v693_v55  ;;  %v677_v47 = vpop.f32.mrf.mxu3  ;;  %v801_v56 = vpop.f32.mrf.mxu1  ;;  %v830_v59 = vadd.f32 %v4990_v57, %v814_v29 }
 0x125   :  { %v874_v1 = vrot.slane %v866_v58, 7  ;;  %v692_v36 = vadd.f32 %v677_v47, %v552_v52 }
 0x126   :  { %v833_v2 = vadd.f32 %v4942_v8, %v817_v41  ;;  %v4525_v58 = vld [vmem:[#allocation3] sm:$0xe] }
 0x127   :  { %v875_v62 = vsel %vm4783_vm9, %v873_v63, %v874_v1  ;;  %v876_v38 = vrot.slane %v874_v1, 4  ;;  %v816_v22 = vadd.f32 %v801_v56, %v692_v36 }
 0x128   :  { %881 = vst [vmem:[#allocation3 + $0x4] sm:$0xf] %v875_v62  ;;  %vm852_vm5 = vcmp.gt.f32.partialorder %v833_v2, 0.0  ;;  %v857_v5 = vmul.f32 %v4948_v16, %v833_v2 }
 0x129   :  { %882 = vst [vmem:[#allocation3 + $0x8] sm:$0x1] %v876_v38  ;;  %v832_v4 = vadd.f32 %v4990_v57, %v816_v22  ;;  %v4372_v22 = vld [vmem:[%s6076_s3 + $0x64] sm:$0xf0] }
 0x12a   :  { %v862_v21 = vsel %vm852_vm5, %v833_v2, %v857_v5  ;;  %vm2082_vm5 = vcmask 1043457  }
 0x12b   :  { %v867_v24 = vpack.c.bf16 %v862_v21, %v862_v21  ;;  %v783_v12 = vpop.f32.mrf.mxu0  ;;  %v4999_v38 = vpack.c.bf16 %v832_v4, %v830_v59  ;;  %v429_v21 = vadd.f32 %v4952_v23, %v4912_v37  ;;  %v432_v37 = vadd.f32 %v4961_v54, %v4916_v40  ;;  %v3809_v59 = vld [vmem:[%s6076_s3 + $0x60] sm:$0xf] }
 0x12c   :  { %v819_v14 = vadd.f32 %v783_v12, %v695_v9  ;;  %v680_v9 = vpop.f32.mrf.mxu3  ;;  %v804_v13 = vpop.f32.mrf.mxu1 }
 0x12d   :  { %v886_v17 = vrot.slane %v867_v24, 7 }
 0x12e   :  { %v835_v20 = vadd.f32 %v4942_v8, %v819_v14  ;;  %v556_v14 = vadd.f32 %v4955_v10, %v429_v21  ;;  %v4367_v21 = vld [vmem:[%s6076_s3 + $0x44] sm:$0xf] }
 0x12f   :  { %896 = vst [vmem:[#allocation3 + $0x8] sm:$0x8] %v886_v17  ;;  %v4512_v25 = vld [vmem:[#allocation3] sm:$0xff]   ;;  %v887_v15 = vrot.slane %v886_v17, 4 }
 0x130   :  { %vm853_vm6 = vcmp.gt.f32.partialorder %v835_v20, 0.0  ;;  %v858_v44 = vmul.f32 %v4948_v16, %v835_v20  ;;  %1110 = vmatmul.bf16.vlgmr.msra.gmra.mxu3 %v4512_v25  ;;  %v4524_v49 = vld [vmem:[#allocation3] sm:$0xf0]  ;;  %v954_v61 = vshll.u32 %v4512_v25, 16  ;;  %v952_v5 = vshrl.u32 %v4512_v25, 16 }
 0x131   :  { %v4526_v63 = vor.u32 %v4525_v58, %v4524_v49 }
 0x132   :  { %v863_v50 = vsel %vm853_vm6, %v835_v20, %v858_v44  ;;  %v956_v2 = vrot.slane %v954_v61, 1  ;;  %v4374_v61 = vld [vmem:[%s6076_s3 + $0x74] sm:$0xf0]  ;;  %vm2083_vm6 = vcmask 523269  }
 0x133   :  { %v868_v18 = vpack.c.bf16 %v863_v50, %v863_v50  ;;  %v786_v19 = vpop.f32.mrf.mxu0 }
 0x134   :  { %v821_v53 = vadd.f32 %v786_v19, %v697_v33  ;;  %v957_v31 = vor.u32 %v956_v2, %v952_v5  ;;  %v682_v27 = vpop.f32.mrf.mxu3  ;;  %v806_v33 = vpop.f32.mrf.mxu1  ;;  %v558_v19 = vadd.f32 %v4964_v60, %v432_v37  ;;  %v4370_v2 = vld [vmem:[%s6076_s3 + $0x54] sm:$0xf0]  ;;  %v4363_v37 = vld [vmem:[%s6076_s3 + $0x24] sm:$0xf] }
 0x135   :  { %v888_v42 = vrot.slane %v868_v18, 7  ;;  %v696_v44 = vadd.f32 %v682_v27, %v556_v14  ;;  %v4365_v14 = vld [vmem:[%s6076_s3 + $0x34] sm:$0xf]  ;;  %v4364_v27 = vld [vmem:[%s6076_s3 + $0x24] sm:$0xf0] }
 0x136   :  { %v837_v43 = vadd.f32 %v4942_v8, %v821_v53  ;;  %v427_v8 = vadd.f32 %v4939_v6, %v4908_v34  ;;  %v1146_v34 = vrot.slane %v4526_v63, 1  ;;  %v3811_v63 = vld [vmem:[%s6076_s3 + $0x68] sm:$0xf0] }
 0x137   :  { %v889_v45 = vsel %vm4783_vm9, %v887_v15, %v888_v42  ;;  %v820_v50 = vadd.f32 %v806_v33, %v696_v44  ;;  %v4389_v33 = vld [vmem:[%s6076_s3 + $0xf4] sm:$0xf] }
 0x138   :  { %897 = vst [vmem:[#allocation3 + $0xc] sm:$0xf] %v889_v45  ;;  %vm854_vm8 = vcmp.gt.f32.partialorder %v837_v43, 0.0  ;;  %v859_v51 = vmul.f32 %v4948_v16, %v837_v43  ;;  %v890_v16 = vrot.slane %v888_v42, 4  ;;  %v554_v62 = vadd.f32 %v4944_v11, %v427_v8  ;;  %v3819_v8 = vld [vmem:[%s6076_s3 + $0x78] sm:$0xf0] }
 0x139   :  { %v836_v10 = vadd.f32 %v4990_v57, %v820_v50  ;;  %v3753_v50 = vld [vmem:[%s6076_s3 + $0xf0] sm:$0xf] }
 0x13a   :  { %v864_v48 = vsel %vm854_vm8, %v837_v43, %v859_v51  ;;  %v694_v46 = vadd.f32 %v680_v9, %v554_v62  ;;  %v4369_v62 = vld [vmem:[%s6076_s3 + $0x54] sm:$0xf]  ;;  %v4368_v9 = vld [vmem:[%s6076_s3 + $0x44] sm:$0xf0]  ;;  %vm5649_vm8 = vmor %vm2083_vm6, %vm2082_vm5  ;;  %vm2326_vm6 = vcmask 97280  }
 0x13b   :  { %v869_v32 = vpack.c.bf16 %v864_v48, %v864_v48  ;;  %v788_v55 = vpop.f32.mrf.mxu0  ;;  %vm5799_vm5 = vmor %vm2200_vm15, %vm6083_vm7 }
 0x13c   :  { %v818_v25 = vadd.f32 %v804_v13, %v694_v46  ;;  %v685_v52 = vpop.f32.mrf.mxu3  ;;  %v809_v45 = vpop.f32.mrf.mxu1  ;;  %v3817_v55 = vld [vmem:[%s6076_s3 + $0x70] sm:$0xf] }
 0x13d   :  { %v891_v41 = vrot.slane %v869_v32, 7  ;;  %v698_v40 = vadd.f32 %v685_v52, %v558_v19  ;;  %v3818_v56 = vor.u32 %v4374_v61, %v3817_v55  ;;  %v3785_v46 = vld [vmem:[%s6076_s3 + $0x30] sm:$0xf]  ;;  %v4517_v55 = vunpack.c.l.bf16 %v4999_v38 }
 0x13e   :  { %v834_v26 = vadd.f32 %v4990_v57, %v818_v25  ;;  %v3777_v25 = vld [vmem:[%s6076_s3 + $0x20] sm:$0xf] }
 0x13f   :  { %v892_v1 = vsel %vm4783_vm9, %v890_v16, %v891_v41  ;;  %v4333_v39 = vld [vmem:[#allocation3 + $0x8] sm:$0xff]  ;;  %v822_v51 = vadd.f32 %v809_v45, %v698_v40  ;;  %1635 = vmatpush.bf16.msrb.mxu3 %v3818_v56  ;;  %v4371_v16 = vld [vmem:[%s6076_s3 + $0x64] sm:$0xf]  ;;  %v3810_v41 = vor.u32 %v4372_v22, %v3809_v59  ;;  %v3778_v44 = vor.u32 %v4364_v27, %v3777_v25  ;;  %v3721_v25 = vld [vmem:[%s6076_s3 + $0xb0] sm:$0xf] }
 0x140   :  { %898 = vst [vmem:[#allocation3 + $0x10] sm:$0x7] %v892_v1  ;;  %1115 = vmatmul.bf16.gmra.mxu3 %v4333_v39  ;;  %v1147_v6 = vrot.slane %v4333_v39, 1  ;;  %v959_v7 = vshll.u32 %v4333_v39, 16  ;;  %v4509_v35 = vpack.c.bf16 %v836_v10, %v834_v26  ;;  %v963_v15 = vshrl.u32 %v4333_v39, 16 }
 0x141   :  { %v838_v60 = vadd.f32 %v4990_v57, %v822_v51  ;;  %v4373_v57 = vld [vmem:[%s6076_s3 + $0x74] sm:$0xf]  ;;  %v3814_v4 = vor.u32 %v4371_v16, %v3811_v63  ;;  %v3801_v39 = vld [vmem:[%s6076_s3 + $0x50] sm:$0xf]  ;;  %v3755_v26 = vld [vmem:[%s6076_s3 + $0xf8] sm:$0xf0] }
 0x142   :  { %v1148_v24 = vsel %vm6084_vm0, %v1146_v34, %v1147_v6  ;;  %v961_v12 = vrot.slane %v959_v7, 1  ;;  %4523 = vst [vmem:[#allocation4 + $0x8] sm:$0xff] %v4509_v35   ;;  %v3822_v58 = vor.u32 %v4373_v57, %v3819_v8  ;;  %v3802_v34 = vor.u32 %v4370_v2, %v3801_v39  ;;  %v3793_v7 = vld [vmem:[%s6076_s3 + $0x40] sm:$0xf]  ;;  %v4390_v10 = vld [vmem:[%s6076_s3 + $0xf4] sm:$0xf0] }
 0x143   :  { %1210 = vmatmul.bf16.vlgmr.msrb.gmra.mxu0 %v1148_v24  ;;  %v843_v47 = vpack.c.bf16 %v838_v60, %v838_v60  ;;  %1636 = vmatpush.bf16.msrb.mxu3 %v3810_v41  ;;  %v3794_v24 = vor.u32 %v4368_v9, %v3793_v7  ;;  %v3758_v19 = vor.u32 %v4389_v33, %v3755_v26  ;;  %v3769_v35 = vld [vmem:[%s6076_s3 + $0x10] sm:$0xf]  ;;  %v3771_v40 = vld [vmem:[%s6076_s3 + $0x18] sm:$0xf0]  ;;  %v3745_v45 = vld [vmem:[%s6076_s3 + $0xe0] sm:$0xf] }
 0x144   :  { %v962_v11 = vsel %vm219_vm14, %v957_v31, %v961_v12  ;;  %v965_v43 = vor.u32 %v963_v15, %v961_v12  ;;  %v687_v48 = vpop.f32.mrf.mxu3  ;;  %v811_v49 = vpop.f32.mrf.mxu1  ;;  %1658 = vmatpush.bf16.msra.mxu0 %v3822_v58  ;;  %v3795_v31 = vld [vmem:[%s6076_s3 + $0x48] sm:$0xf0]  ;;  %v4362_v15 = vld [vmem:[%s6076_s3 + $0x14] sm:$0xf0]  ;;  %v4388_v60 = vld [vmem:[%s6076_s3 + $0xe4] sm:$0xf0] }
 0x145   :  { %1033 = vmatmul.bf16.vlgmr.msra.gmra.mxu2 %v962_v11  ;;  %848 = vst [vmem:[#allocation4 + $0x10] sm:$0x3] %v843_v47  ;;  %v3798_v12 = vor.u32 %v4367_v21, %v3795_v31  ;;  %v4366_v11 = vld [vmem:[%s6076_s3 + $0x34] sm:$0xf0]  ;;  %v3770_v52 = vor.u32 %v4362_v15, %v3769_v35  ;;  %v3746_v47 = vor.u32 %v4388_v60, %v3745_v45  ;;  %v3761_v48 = vld [vmem:[%s6076_s3] sm:$0xf]  ;;  %v4518_v21 = vunpack.c.h.bf16 %v4999_v38 }
 0x146   :  { %1526 = vmatpush.bf16.msrb.mxu2 %v3758_v19  ;;  %v4360_v49 = vld [vmem:[%s6076_s3 + $0x4] sm:$0xf0]  ;;  %v3763_v57 = vld [vmem:[%s6076_s3 + $0x8] sm:$0xf0]  ;;  %v4385_v58 = vld [vmem:[%s6076_s3 + $0xd4] sm:$0xf] }
 0x147   :  { %v920_v17 = vld [vmem:[#allocation3 + $0x10] sm:$0xf]  ;;  %1637 = vmatpush.bf16.msrb.mxu3 %v3802_v34  ;;  %v3762_v56 = vor.u32 %v4360_v49, %v3761_v48  ;;  %v3739_v59 = vld [vmem:[%s6076_s3 + $0xd8] sm:$0xf0]  ;;  %v3737_v16 = vld [vmem:[%s6076_s3 + $0xd0] sm:$0xf] }
 0x148   :  { %v903_v3 = vld [vmem:[#allocation3 + $0x10] sm:$0x7]  ;;  %v947_v20 = vunpack.c.l.b16 %v920_v17  ;;  %1659 = vmatpush.bf16.msra.mxu0 %v3814_v4  ;;  %v3786_v17 = vor.u32 %v4366_v11, %v3785_v46  ;;  %v3742_v63 = vor.u32 %v4385_v58, %v3739_v59  ;;  %v4386_v4 = vld [vmem:[%s6076_s3 + $0xd4] sm:$0xf0]  ;;  %v3729_v7 = vld [vmem:[%s6076_s3 + $0xc0] sm:$0xf] }
 0x149   :  { %v1049_v30 = vunpack.c.l.b16 %v903_v3  ;;  %v3787_v3 = vld [vmem:[%s6076_s3 + $0x38] sm:$0xf0]  ;;  %v5151_v41 = vld [vmem:[#allocation11 + $0x2] ss:$0 sm:$0xff]  ;;  %v3738_v2 = vor.u32 %v4386_v4, %v3737_v16  ;;  %v5168_v9 = vld [vmem:[#allocation11 + $0x3] ss:$0 sm:$0xff] }
 0x14a   :  { %v950_v23 = vpack.c.b16 %v947_v20, %v947_v20  ;;  %v3790_v20 = vor.u32 %v4365_v14, %v3787_v3  ;;  %v4384_v31 = vld [vmem:[%s6076_s3 + $0xc4] sm:$0xf0]  ;;  %v3723_v38 = vld [vmem:[%s6076_s3 + $0xb8] sm:$0xf0]  ;;  %v1244_v27 = vrot.slane %v4518_v21, 7 }
 0x14b   :  { %v1050_v28 = vpack.c.b16 %v1049_v30, %v1049_v30  ;;  %1638 = vmatpush.bf16.msrb.mxu3 %v3794_v24  ;;  %v3779_v30 = vld [vmem:[%s6076_s3 + $0x28] sm:$0xf0]  ;;  %v3730_v46 = vor.u32 %v4384_v31, %v3729_v7  ;;  %vm1258_vm9 = vsmask.f32 256  ;;  %v1289_v58 = vld [vmem:[#allocation4 + $0xc] sm:$0xf] }
 0x14c   :  { %v967_v18 = vshll.u32 %v950_v23, 16  ;;  %v1149_v53 = vrot.slane %v950_v23, 1  ;;  %v971_v36 = vshrl.u32 %v950_v23, 16  ;;  %v3699_v16 = vld [vmem:[%s6076_s3 + $0x88] sm:$0xf0]  ;;  %vm5252_vm11 = vmor %vm1258_vm9, %vm1259_vm10  ;;  %vm2086_vm9 = vcmask 1043456  }
 0x14d   :  { %v3963_v21 = vld [vmem:[%s6077_s4 + $0x78] sm:$0xf0]  ;;  %v4376_v31 = vld [vmem:[%s6076_s3 + $0x84] sm:$0xf0]  ;;  %vm2087_vm10 = vcmask 523268  }
 0x14e   :  { %v969_v42 = vrot.slane %v967_v18, 1  ;;  %v1150_v54 = vsel %vm6084_vm0, %v1147_v6, %v1149_v53  ;;  %v3803_v6 = vld [vmem:[%s6076_s3 + $0x58] sm:$0xf0]  ;;  %v3782_v18 = vor.u32 %v4363_v37, %v3779_v30  ;;  %v1288_v37 = vld [vmem:[#allocation4 + $0x8] sm:$0xc]  ;;  %vm5738_vm12 = vmor %vm2087_vm10, %vm2086_vm9  ;;  %vm122_vm10 = vcmask 521221  }
 0x14f   :  { %v3806_v5 = vor.u32 %v4369_v62, %v3803_v6  ;;  %1639 = vmatpush.bf16.msrb.mxu3 %v3786_v17  ;;  %v1243_v62 = vrot.slane %v4517_v55, 7  ;;  %v4383_v6 = vld [vmem:[%s6076_s3 + $0xc4] sm:$0xf]  ;;  %v1291_v19 = vunpack.c.l.bf16 %v1288_v37  ;;  %v4420_v37 = vld [vmem:[%s6077_s4 + $0x64] sm:$0xf0] }
 0x150   :  { %1120 = vmatmul.bf16.gmra.mxu3 %v1050_v28  ;;  %v970_v29 = vsel %vm219_vm14, %v965_v43, %v969_v42  ;;  %v973_v32 = vor.u32 %v971_v36, %v969_v42  ;;  %v4361_v42 = vld [vmem:[%s6076_s3 + $0x14] sm:$0xf]  ;;  %v3747_v43 = vld [vmem:[%s6076_s3 + $0xe8] sm:$0xf0]  ;;  %v4359_v36 = vld [vmem:[%s6076_s3 + $0x4] sm:$0xf] }
 0x151   :  { %1660 = vmatpush.bf16.msra.mxu0 %v3806_v5  ;;  %v3774_v51 = vor.u32 %v4361_v42, %v3771_v40  ;;  %v3766_v22 = vor.u32 %v4359_v36, %v3763_v57  ;;  %v3731_v5 = vld [vmem:[%s6076_s3 + $0xc8] sm:$0xf0]  ;;  %v1245_v35 = vsel %vm117_vm2, %v1243_v62, %v1244_v27  ;;  %v3713_v42 = vld [vmem:[%s6076_s3 + $0xa0] sm:$0xf]  ;;  %v5211_v49 = vrot.slane %v1291_v19, 7 }
 0x152   :  { %v3734_v24 = vor.u32 %v4383_v6, %v3731_v5  ;;  %v4377_v36 = vld [vmem:[%s6076_s3 + $0x94] sm:$0xf]  ;;  %v1292_v5 = vunpack.c.l.bf16 %v1289_v58  ;;  %v1290_v19 = vld [vmem:[#allocation4 + $0x10] sm:$0x3] }
 0x153   :  { %1215 = vmatmul.bf16.gmra.mxu0 %v1150_v54  ;;  %1640 = vmatpush.bf16.msrb.mxu3 %v3778_v44  ;;  %v4387_v54 = vld [vmem:[%s6076_s3 + $0xe4] sm:$0xf]  ;;  %v4421_v6 = vld [vmem:[%s6077_s4 + $0x74] sm:$0xf] }
 0x155   :  { %1038 = vmatmul.bf16.gmra.mxu2 %v970_v29  ;;  %1661 = vmatpush.bf16.msra.mxu0 %v3798_v12  ;;  %v3750_v29 = vor.u32 %v4387_v54, %v3747_v43 }
 0x157   :  { %1641 = vmatpush.bf16.msrb.mxu3 %v3770_v52  ;;  %1527 = vmatpush.bf16.msrb.mxu2 %v3750_v29  ;;  %v4380_v52 = vld [vmem:[%s6076_s3 + $0xa4] sm:$0xf0] }
 0x158   :  { %v3714_v45 = vor.u32 %v4380_v52, %v3713_v42  ;;  %v4405_v52 = vld [vmem:[%s6076_s3 + $0x174] sm:$0xf] }
 0x159   :  { %1662 = vmatpush.bf16.msra.mxu0 %v3790_v20  ;;  %v4381_v20 = vld [vmem:[%s6076_s3 + $0xb4] sm:$0xf] }
 0x15b   :  { %1642 = vmatpush.bf16.msrb.mxu3 %v3762_v56  ;;  %1528 = vmatpush.bf16.msrb.mxu2 %v3742_v63  ;;  %v3961_v63 = vld [vmem:[%s6077_s4 + $0x70] sm:$0xf] }
 0x15d   :  { %1663 = vmatpush.bf16.msra.mxu0 %v3782_v18 }
 0x15f   :  { %1529 = vmatpush.bf16.msrb.mxu2 %v3734_v24  ;;  %v3697_v24 = vld [vmem:[%s6076_s3 + $0x80] sm:$0xf] }
 0x161   :  { %1664 = vmatpush.bf16.msra.mxu0 %v3774_v51 }
 0x163   :  { %1220 = vmatmul.bf16.gmra.mxu0 %v1149_v53  ;;  %v3754_v53 = vor.u32 %v4390_v10, %v3753_v50  ;;  %v4379_v10 = vld [vmem:[%s6076_s3 + $0xa4] sm:$0xf] }
 0x165   :  { %1043 = vmatmul.bf16.gmra.mxu2 %v973_v32  ;;  %1503 = vmatpush.bf16.msrb.mxu1 %v3754_v53  ;;  %v3715_v53 = vld [vmem:[%s6076_s3 + $0xa8] sm:$0xf0] }
 0x166   :  { %1665 = vmatpush.bf16.msra.mxu0 %v3766_v22  ;;  %v3718_v15 = vor.u32 %v4379_v10, %v3715_v53  ;;  %v4375_v22 = vld [vmem:[%s6076_s3 + $0x84] sm:$0xf] }
 0x169   :  { %1504 = vmatpush.bf16.msrb.mxu1 %v3746_v47 }
 0x16d   :  { %1505 = vmatpush.bf16.msrb.mxu1 %v3738_v2 }
 0x171   :  { %1506 = vmatpush.bf16.msrb.mxu1 %v3730_v46 }
 0x1b3   :  { %v5038_v1 = vpop.f32.mrf.mxu3 }
 0x1bb   :  { %v5064_v13 = vpop.f32.mrf.mxu3 }
 0x1c0   :  { %v1211_v23 = vpop.f32.mrf.mxu0 }
 0x1c3   :  { %v5102_v28 = vpop.f32.mrf.mxu3 }
 0x1c8   :  { %v1034_v32 = vpop.f32.mrf.mxu2  ;;  %v1213_v61 = vpop.f32.mrf.mxu0 }
 0x1c9   :  { %v1112_v8 = vadd.f32 %v5038_v1, %v1034_v32  ;;  %v3707_v32 = vld [vmem:[%s6076_s3 + $0x98] sm:$0xf0] }
 0x1ca   :  { %v3710_v55 = vor.u32 %v4377_v36, %v3707_v32  ;;  %v3947_v32 = vld [vmem:[%s6077_s4 + $0x58] sm:$0xf0] }
 0x1cb   :  { %v1225_v1 = vadd.f32 %v1211_v23, %v1112_v8  ;;  %v5156_v39 = vpop.f32.mrf.mxu3  ;;  %v3726_v23 = vor.u32 %v4381_v20, %v3723_v38  ;;  %v3698_v38 = vor.u32 %v4376_v31, %v3697_v24 }
 0x1cd   :  { %v1231_v34 = vadd.f32 %v5151_v41, %v1225_v1  ;;  %1530 = vmatpush.bf16.msrb.mxu2 %v3726_v23 }
 0x1cf   :  { %v1249_v12 = vmul.f32 %v1243_v62, %v1231_v34  ;;  %v3702_v62 = vor.u32 %v4375_v22, %v3699_v16  ;;  %v4422_v34 = vld [vmem:[%s6077_s4 + $0x74] sm:$0xf0]  ;;  %v4416_v16 = vld [vmem:[%s6077_s4 + $0x44] sm:$0xf0] }
 0x1d0   :  { %v1036_v11 = vpop.f32.mrf.mxu2  ;;  %v1216_v14 = vpop.f32.mrf.mxu0  ;;  %v3962_v7 = vor.u32 %v4422_v34, %v3961_v63  ;;  %v4415_v63 = vld [vmem:[%s6077_s4 + $0x44] sm:$0xf] }
 0x1d1   :  { %v1252_v17 = vadd.f32 %v1249_v12, %v5168_v9  ;;  %v1114_v3 = vadd.f32 %v5064_v13, %v1036_v11  ;;  %v4382_v13 = vld [vmem:[%s6076_s3 + $0xb4] sm:$0xf0]  ;;  %1531 = vmatpush.bf16.msrb.mxu2 %v3718_v15 }
 0x1d2   :  { %v3722_v26 = vor.u32 %v4382_v13, %v3721_v25  ;;  %1967 = vmatpush.bf16.msra.mxu3 %v3962_v7  ;;  %v3953_v25 = vld [vmem:[%s6077_s4 + $0x60] sm:$0xf] }
 0x1d3   :  { %v1255_v44 = vpack.c.bf16 %v1252_v17, %v1252_v17  ;;  %v1226_v30 = vadd.f32 %v1213_v61, %v1114_v3  ;;  %v5188_v33 = vpop.f32.mrf.mxu3  ;;  %v3705_v61 = vld [vmem:[%s6076_s3 + $0x90] sm:$0xf]  ;;  %v3966_v17 = vor.u32 %v4421_v6, %v3963_v21  ;;  %v3954_v10 = vor.u32 %v4420_v37, %v3953_v25 }
 0x1d4   :  { %1507 = vmatpush.bf16.msrb.mxu1 %v3722_v26  ;;  %v3955_v26 = vld [vmem:[%s6077_s4 + $0x68] sm:$0xf0] }
 0x1d5   :  { %v1262_v50 = vshrl.u32 %v1255_v44, 16  ;;  %v1232_v18 = vadd.f32 %v5151_v41, %v1226_v30  ;;  %v1265_v54 = vshll.u32 %v1255_v44, 16  ;;  %1532 = vmatpush.bf16.msrb.mxu2 %v3710_v55  ;;  %1990 = vmatpush.bf16.msrb.mxu0 %v3966_v17 }
 0x1d6   :  { %1968 = vmatpush.bf16.msra.mxu3 %v3954_v10 }
 0x1d7   :  { %v5204_v40 = vrot.slane %v1262_v50, 7  ;;  %v1250_v43 = vmul.f32 %v1245_v35, %v1232_v18  ;;  %v5275_v18 = vrot.slane %v1292_v5, 7 }
 0x1d8   :  { %v1039_v51 = vpop.f32.mrf.mxu2  ;;  %v5206_v29 = vpop.f32.mrf.mxu0  ;;  %1508 = vmatpush.bf16.msrb.mxu1 %v3714_v45  ;;  %v4418_v45 = vld [vmem:[%s6077_s4 + $0x54] sm:$0xf0] }
 0x1d9   :  { %v1267_v60 = vor.u32 %v1265_v54, %v5204_v40  ;;  %v1253_v47 = vadd.f32 %v1250_v43, %v5168_v9  ;;  %v1117_v48 = vadd.f32 %v5102_v28, %v1039_v51  ;;  %v4378_v28 = vld [vmem:[%s6076_s3 + $0x94] sm:$0xf0]  ;;  %1533 = vmatpush.bf16.msrb.mxu2 %v3702_v62  ;;  %v1268_v23 = vrot.slane %v5204_v40, 4  ;;  %v3899_v40 = vld [vmem:[%s6076_s3 + $0x178] sm:$0xf0] }
 0x1da   :  { %v3706_v59 = vor.u32 %v4378_v28, %v3705_v61  ;;  %v3902_v43 = vor.u32 %v4405_v52, %v3899_v40  ;;  %v4417_v51 = vld [vmem:[%s6077_s4 + $0x54] sm:$0xf]  ;;  %v1299_v55 = vsel %vm117_vm2, %v5211_v49, %v5275_v18  ;;  %v1293_v61 = vunpack.c.l.bf16 %v1290_v19  ;;  %v3939_v62 = vld [vmem:[%s6077_s4 + $0x48] sm:$0xf0]  ;;  %v4411_v52 = vld [vmem:[%s6077_s4 + $0x24] sm:$0xf] }
 0x1db   :  { %1285 = vst [vmem:[#allocation3] sm:$0xe] %v1267_v60  ;;  %v1256_v56 = vpack.c.bf16 %v1253_v47, %v1253_v47  ;;  %v1227_v57 = vadd.f32 %v1216_v14, %v1117_v48  ;;  %v1123_v8 = vpop.f32.mrf.mxu3  ;;  %v3950_v28 = vor.u32 %v4417_v51, %v3947_v32  ;;  %v3942_v7 = vor.u32 %v4415_v63, %v3939_v62  ;;  %v3923_v40 = vld [vmem:[%s6077_s4 + $0x28] sm:$0xf0]  ;;  %v4404_v51 = vld [vmem:[%s6076_s3 + $0x164] sm:$0xf0] }
 0x1dc   :  { %1509 = vmatpush.bf16.msrb.mxu1 %v3706_v59  ;;  %v3937_v8 = vld [vmem:[%s6077_s4 + $0x40] sm:$0xf]  ;;  %v1300_v24 = vrot.slane %v1293_v61, 7  ;;  %v3913_v32 = vld [vmem:[%s6077_s4 + $0x10] sm:$0xf] }
 0x1dd   :  { %v1270_v4 = vshrl.u32 %v1256_v56, 16  ;;  %v1273_v1 = vshll.u32 %v1256_v56, 16  ;;  %v1233_v2 = vadd.f32 %v5151_v41, %v1227_v57  ;;  %1813 = vmatpush.bf16.msra.mxu2 %v3902_v43  ;;  %v4403_v56 = vld [vmem:[%s6076_s3 + $0x164] sm:$0xf]  ;;  %v3891_v57 = vld [vmem:[%s6076_s3 + $0x168] sm:$0xf0]  ;;  %v3938_v5 = vor.u32 %v4416_v16, %v3937_v8 }
 0x1de   :  { %v3894_v22 = vor.u32 %v4403_v56, %v3891_v57  ;;  %v1301_v37 = vsel %vm117_vm2, %v5275_v18, %v1300_v24  ;;  %v3926_v43 = vor.u32 %v4411_v52, %v3923_v40  ;;  %v4409_v57 = vld [vmem:[%s6077_s4 + $0x14] sm:$0xf]  ;;  %v3915_v8 = vld [vmem:[%s6077_s4 + $0x18] sm:$0xf0]  ;;  %v3905_v62 = vld [vmem:[%s6077_s4] sm:$0xf] }
 0x1df   :  { %v1272_v46 = vrot.slane %v1270_v4, 7  ;;  %v1251_v11 = vmul.f32 %v1244_v27, %v1233_v2  ;;  %v1305_v14 = vmul.f32 %v5211_v49, %v1233_v2  ;;  %v4419_v27 = vld [vmem:[%s6077_s4 + $0x64] sm:$0xf]  ;;  %v3918_v16 = vor.u32 %v4409_v57, %v3915_v8  ;;  %v3907_v24 = vld [vmem:[%s6077_s4 + $0x8] sm:$0xf0] }
 0x1e0   :  { %v1041_v3 = vpop.f32.mrf.mxu2  ;;  %v5257_v20 = vpop.f32.mrf.mxu0  ;;  %1510 = vmatpush.bf16.msrb.mxu1 %v3698_v38  ;;  %v3958_v53 = vor.u32 %v4419_v27, %v3955_v26  ;;  %v3931_v38 = vld [vmem:[%s6077_s4 + $0x38] sm:$0xf0]  ;;  %v3897_v27 = vld [vmem:[%s6076_s3 + $0x170] sm:$0xf] }
 0x1e1   :  { %v1275_v13 = vor.u32 %v1273_v1, %v1272_v46  ;;  %v1254_v44 = vadd.f32 %v1251_v11, %v5168_v9  ;;  %v1308_v30 = vadd.f32 %v1305_v14, %v5168_v9  ;;  %v1119_v50 = vadd.f32 %v5156_v39, %v1041_v3  ;;  %v3945_v39 = vld [vmem:[%s6077_s4 + $0x50] sm:$0xf]  ;;  %1814 = vmatpush.bf16.msra.mxu2 %v3894_v22  ;;  %v4414_v14 = vld [vmem:[%s6077_s4 + $0x34] sm:$0xf0] }
 0x1e2   :  { %v1277_v60 = vrot.slane %v1272_v46, 4  ;;  %1991 = vmatpush.bf16.msrb.mxu0 %v3958_v53  ;;  %v3946_v36 = vor.u32 %v4418_v45, %v3945_v39  ;;  %v3921_v53 = vld [vmem:[%s6077_s4 + $0x20] sm:$0xf] }
 0x1e3   :  { %v1276_v35 = vsel %vm5252_vm11, %v1268_v23, %v1275_v13  ;;  %v1257_v15 = vpack.c.bf16 %v1254_v44, %v1254_v44  ;;  %v1311_v42 = vpack.c.bf16 %v1308_v30, %v1308_v30  ;;  %v1228_v54 = vadd.f32 %v5206_v29, %v1119_v50  ;;  %v4406_v13 = vld [vmem:[%s6076_s3 + $0x174] sm:$0xf0]  ;;  %v4401_v44 = vld [vmem:[%s6076_s3 + $0x154] sm:$0xf]  ;;  %v3883_v30 = vld [vmem:[%s6076_s3 + $0x158] sm:$0xf0] }
 0x1e4   :  { %1286 = vst [vmem:[#allocation3 + $0x4] sm:$0xf] %v1276_v35  ;;  %1969 = vmatpush.bf16.msra.mxu3 %v3946_v36  ;;  %v3898_v19 = vor.u32 %v4406_v13, %v3897_v27  ;;  %v3886_v10 = vor.u32 %v4401_v44, %v3883_v30  ;;  %v4412_v35 = vld [vmem:[%s6077_s4 + $0x24] sm:$0xf0]  ;;  %v3875_v36 = vld [vmem:[%s6076_s3 + $0x148] sm:$0xf0] }
 0x1e5   :  { %v1279_v47 = vshll.u32 %v1257_v15, 16  ;;  %v1315_v48 = vshrl.u32 %v1311_v42, 16  ;;  %v1234_v29 = vadd.f32 %v5151_v41, %v1228_v54  ;;  %v1318_v49 = vshll.u32 %v1311_v42, 16  ;;  %v3859_v27 = vld [vmem:[%s6076_s3 + $0x128] sm:$0xf0] }
 0x1e6   :  { %1992 = vmatpush.bf16.msrb.mxu0 %v3950_v28  ;;  %v3922_v42 = vor.u32 %v4412_v35, %v3921_v53  ;;  %1790 = vmatpush.bf16.msra.mxu1 %v3898_v19  ;;  %v3865_v44 = vld [vmem:[%s6076_s3 + $0x130] sm:$0xf]  ;;  %v4398_v30 = vld [vmem:[%s6076_s3 + $0x134] sm:$0xf0]  ;;  %v3851_v35 = vld [vmem:[%s6076_s3 + $0x118] sm:$0xf0] }
 0x1e7   :  { %v1281_v58 = vsel %vm5252_vm11, %v1277_v60, %v1279_v47  ;;  %v5313_v59 = vrot.slane %v1315_v48, 7  ;;  %v1306_v4 = vmul.f32 %v1299_v55, %v1234_v29  ;;  %1815 = vmatpush.bf16.msra.mxu2 %v3886_v10  ;;  %v4399_v60 = vld [vmem:[%s6076_s3 + $0x144] sm:$0xf]  ;;  %v4410_v29 = vld [vmem:[%s6077_s4 + $0x14] sm:$0xf0] }
 0x1e8   :  { %1287 = vst [vmem:[#allocation3 + $0x8] sm:$0x1] %v1281_v58  ;;  %v1044_v1 = vpop.f32.mrf.mxu2  ;;  %v1223_v2 = vpop.f32.mrf.mxu0  ;;  %1970 = vmatpush.bf16.msra.mxu3 %v3938_v5  ;;  %v3878_v28 = vor.u32 %v4399_v60, %v3875_v36  ;;  %v3914_v56 = vor.u32 %v4410_v29, %v3913_v32  ;;  %v3881_v58 = vld [vmem:[%s6076_s3 + $0x150] sm:$0xf]  ;;  %v4393_v10 = vld [vmem:[%s6076_s3 + $0x114] sm:$0xf] }
 0x1e9   :  { %v1320_v34 = vor.u32 %v1318_v49, %v5313_v59  ;;  %v1122_v6 = vadd.f32 %v5188_v33, %v1044_v1  ;;  %v1309_v21 = vadd.f32 %v1306_v4, %v5168_v9  ;;  %v3929_v33 = vld [vmem:[%s6077_s4 + $0x30] sm:$0xf]  ;;  %v1321_v39 = vrot.slane %v5313_v59, 4  ;;  %v4402_v59 = vld [vmem:[%s6076_s3 + $0x154] sm:$0xf0] }
 0x1ea   :  { %1993 = vmatpush.bf16.msrb.mxu0 %v3942_v7  ;;  %v3930_v3 = vor.u32 %v4414_v14, %v3929_v33  ;;  %v3882_v63 = vor.u32 %v4402_v59, %v3881_v58  ;;  %v4397_v4 = vld [vmem:[%s6076_s3 + $0x134] sm:$0xf]  ;;  %v3867_v1 = vld [vmem:[%s6076_s3 + $0x138] sm:$0xf0]  ;;  %v3854_v52 = vor.u32 %v4393_v10, %v3851_v35  ;;  %v3841_v32 = vld [vmem:[%s6076_s3 + $0x100] sm:$0xf] }
 0x1eb   :  { %1342 = vst [vmem:[#allocation3 + $0x8] sm:$0x8] %v1320_v34  ;;  %v1229_v31 = vadd.f32 %v5257_v20, %v1122_v6  ;;  %v5328_v46 = vld [vmem:[#allocation3] sm:$0xff]   ;;  %v1312_v11 = vpack.c.bf16 %v1309_v21, %v1309_v21  ;;  %1816 = vmatpush.bf16.msra.mxu2 %v3878_v28  ;;  %v3870_v2 = vor.u32 %v4397_v4, %v3867_v1  ;;  %v4408_v34 = vld [vmem:[%s6077_s4 + $0x4] sm:$0xf0] }
 0x1ec   :  { %1643 = vmatmul.bf16.vlgmr.msrb.gmra.mxu3 %v5328_v46  ;;  %1666 = vmatmul.bf16.vlgmr.msra.gmra.mxu0 %v5328_v46  ;;  %v4413_v20 = vld [vmem:[%s6077_s4 + $0x34] sm:$0xf]  ;;  %v1400_v61 = vshll.u32 %v5328_v46, 16  ;;  %v4407_v6 = vld [vmem:[%s6077_s4 + $0x4] sm:$0xf]  ;;  %v3906_v21 = vor.u32 %v4408_v34, %v3905_v62 }
 0x1ed   :  { %v1235_v17 = vadd.f32 %v5151_v41, %v1229_v31  ;;  %v1323_v25 = vshrl.u32 %v1312_v11, 16  ;;  %v3934_v41 = vor.u32 %v4413_v20, %v3931_v38  ;;  %v1326_v50 = vshll.u32 %v1312_v11, 16  ;;  %1971 = vmatpush.bf16.msra.mxu3 %v3930_v3  ;;  %v4400_v3 = vld [vmem:[%s6076_s3 + $0x144] sm:$0xf0]  ;;  %v4527_v59 = vld [vmem:[#allocation3] sm:$0xf0] }
 0x1ee   :  { %v3910_v31 = vor.u32 %v4407_v6, %v3907_v24  ;;  %v1402_v14 = vrot.slane %v1400_v61, 1  ;;  %v1398_v20 = vshrl.u32 %v5328_v46, 16  ;;  %v4392_v29 = vld [vmem:[%s6076_s3 + $0x104] sm:$0xf0] }
 0x1ef   :  { %v1307_v23 = vmul.f32 %v1301_v37, %v1235_v17  ;;  %v1325_v26 = vrot.slane %v1323_v25, 7  ;;  %1994 = vmatpush.bf16.msrb.mxu0 %v3934_v41  ;;  %1817 = vmatpush.bf16.msra.mxu2 %v3870_v2  ;;  %v3873_v17 = vld [vmem:[%s6076_s3 + $0x140] sm:$0xf]  ;;  %v4395_v37 = vld [vmem:[%s6076_s3 + $0x124] sm:$0xf]  ;;  %v3842_v28 = vor.u32 %v4392_v29, %v3841_v32 }
 0x1f0   :  { %v1046_v18 = vpop.f32.mrf.mxu2  ;;  %v3874_v25 = vor.u32 %v4400_v3, %v3873_v17  ;;  %v3862_v41 = vor.u32 %v4395_v37, %v3859_v27  ;;  %v1880_v10 = vld [vmem:[#allocation11 + $0x5] ss:$8 sm:$0x3] }
 0x1f1   :  { %v1310_v15 = vadd.f32 %v1307_v23, %v5168_v9  ;;  %v1328_v54 = vor.u32 %v1326_v50, %v1325_v26  ;;  %v3889_v9 = vld [vmem:[%s6076_s3 + $0x160] sm:$0xf]  ;;  %1972 = vmatpush.bf16.msra.mxu3 %v3922_v42  ;;  %v1330_v5 = vrot.slane %v1325_v26, 4  ;;  %v1403_v23 = vor.u32 %v1402_v14, %v1398_v20  ;;  %v4396_v42 = vld [vmem:[%s6076_s3 + $0x124] sm:$0xf0] }
 0x1f2   :  { %v3890_v48 = vor.u32 %v4404_v51, %v3889_v9  ;;  %v3866_v50 = vor.u32 %v4398_v30, %v3865_v44  ;;  %v3843_v9 = vld [vmem:[%s6076_s3 + $0x108] sm:$0xf0]  ;;  %v5520_v35 = vperm.slane %v1880_v10, 0 }
 0x1f3   :  { %v1313_v45 = vpack.c.bf16 %v1310_v15, %v1310_v15  ;;  %v1329_v47 = vsel %vm5252_vm11, %v1321_v39, %v1328_v54  ;;  %1995 = vmatpush.bf16.msrb.mxu0 %v3926_v43  ;;  %1818 = vmatpush.bf16.msra.mxu2 %v3862_v41  ;;  %v3857_v15 = vld [vmem:[%s6076_s3 + $0x120] sm:$0xf]  ;;  %v3849_v39 = vld [vmem:[%s6076_s3 + $0x110] sm:$0xf]  ;;  %v4394_v54 = vld [vmem:[%s6076_s3 + $0x114] sm:$0xf0] }
 0x1f4   :  { %1343 = vst [vmem:[#allocation3 + $0xc] sm:$0xf] %v1329_v47  ;;  %1791 = vmatpush.bf16.msra.mxu1 %v3890_v48  ;;  %v3858_v40 = vor.u32 %v4396_v42, %v3857_v15  ;;  %v4391_v43 = vld [vmem:[%s6076_s3 + $0x104] sm:$0xf]  ;;  %v3850_v47 = vor.u32 %v4394_v54, %v3849_v39 }
 0x1f5   :  { %v1332_v55 = vshrl.u32 %v1313_v45, 16  ;;  %v1335_v22 = vshll.u32 %v1313_v45, 16  ;;  %1973 = vmatpush.bf16.msra.mxu3 %v3914_v56  ;;  %v3846_v51 = vor.u32 %v4391_v43, %v3843_v9 }
 0x1f7   :  { %v1334_v49 = vrot.slane %v1332_v55, 7  ;;  %1996 = vmatpush.bf16.msrb.mxu0 %v3918_v16  ;;  %1819 = vmatpush.bf16.msra.mxu2 %v3854_v52  ;;  %v2258_v52 = vld [vmem:[%s6080_s7 + $0x78] sm:$0xff] }
 0x1f8   :  { %1792 = vmatpush.bf16.msra.mxu1 %v3882_v63 }
 0x1f9   :  { %v1337_v7 = vor.u32 %v1335_v22, %v1334_v49  ;;  %1974 = vmatpush.bf16.msra.mxu3 %v3906_v21  ;;  %v4528_v49 = vld [vmem:[#allocation3] sm:$0xe] }
 0x1fa   :  { %v4529_v22 = vor.u32 %v4528_v49, %v4527_v59  ;;  %v2255_v59 = vld [vmem:[%s6080_s7 + $0x60] sm:$0xff] }
 0x1fb   :  { %v1338_v11 = vsel %vm5252_vm11, %v1330_v5, %v1337_v7  ;;  %v5426_v33 = vld [vmem:[#allocation3 + $0x8] sm:$0xff]  ;;  %1997 = vmatpush.bf16.msrb.mxu0 %v3910_v31  ;;  %1820 = vmatpush.bf16.msra.mxu2 %v3846_v51 }
 0x1fc   :  { %1344 = vst [vmem:[#allocation3 + $0x10] sm:$0x7] %v1338_v11  ;;  %1648 = vmatmul.bf16.gmra.mxu3 %v5426_v33  ;;  %1671 = vmatmul.bf16.gmra.mxu0 %v5426_v33  ;;  %v1405_v38 = vshll.u32 %v5426_v33, 16  ;;  %v1409_v55 = vshrl.u32 %v5426_v33, 16  ;;  %v1703_v16 = vrot.slane %v5426_v33, 1  ;;  %v1702_v63 = vrot.slane %v4529_v22, 1 }
 0x1fd   :  { %1793 = vmatpush.bf16.msra.mxu1 %v3874_v25  ;;  %v2266_v51 = vld [vmem:[%s6080_s7 + $0xb8] sm:$0xff] }
 0x1fe   :  { %v1407_v13 = vrot.slane %v1405_v38, 1  ;;  %v1704_v4 = vsel %vm6084_vm0, %v1702_v63, %v1703_v16 }
 0x200   :  { %v1408_v26 = vsel %vm219_vm14, %v1403_v23, %v1407_v13  ;;  %v1411_v56 = vor.u32 %v1409_v55, %v1407_v13  ;;  %v2256_v55 = vld [vmem:[%s6080_s7 + $0x68] sm:$0xff] }
 0x201   :  { %1511 = vmatmul.bf16.vlgmr.msrb.gmra.mxu1 %v1408_v26  ;;  %1534 = vmatmul.bf16.vlgmr.msrb.gmra.mxu2 %v1408_v26 }
 0x202   :  { %1794 = vmatpush.bf16.msra.mxu1 %v3866_v50  ;;  %2299 = vmatpush.msrb.mxu2 %v2266_v51 }
 0x203   :  { %v1349_v18 = vld [vmem:[#allocation3 + $0x10] sm:$0x7] }
 0x204   :  { %v1366_v19 = vld [vmem:[#allocation3 + $0x10] sm:$0xf]  ;;  %v1550_v60 = vunpack.c.l.b16 %v1349_v18 }
 0x205   :  { %v1393_v53 = vunpack.c.l.b16 %v1366_v19 }
 0x206   :  { %1795 = vmatpush.bf16.msra.mxu1 %v3858_v40  ;;  %v1551_v36 = vpack.c.b16 %v1550_v60, %v1550_v60  ;;  %v5525_v40 = vperm.slane %v1880_v10, 1  ;;  %v2257_v60 = vld [vmem:[%s6080_s7 + $0x70] sm:$0xff] }
 0x207   :  { %v1396_v45 = vpack.c.b16 %v1393_v53, %v1393_v53  ;;  %v1847_v53 = vld [vmem:[#allocation11 + $0x4] ss:$8 sm:$0x3] }
 0x208   :  { %v5530_v43 = vperm.slane %v1847_v53, 0 }
 0x209   :  { %v1413_v48 = vshll.u32 %v1396_v45, 16  ;;  %v1417_v8 = vshrl.u32 %v1396_v45, 16 }
 0x20a   :  { %1796 = vmatpush.bf16.msra.mxu1 %v3850_v47 }
 0x20b   :  { %v1415_v61 = vrot.slane %v1413_v48, 1 }
 0x20c   :  { %1653 = vmatmul.bf16.gmra.mxu3 %v1551_v36  ;;  %1676 = vmatmul.bf16.gmra.mxu0 %v1551_v36  ;;  %v4110_v36 = vld [vmem:[#allocation10 + $0x30] sm:$0xf] }
 0x20d   :  { %v1416_v57 = vsel %vm219_vm14, %v1411_v56, %v1415_v61  ;;  %v1419_v58 = vor.u32 %v1417_v8, %v1415_v61  ;;  %v2014_v8 = vld [vmem:[#allocation11 + $0x6] ss:$8 sm:$0x3] }
 0x20e   :  { %1797 = vmatpush.bf16.msra.mxu1 %v3842_v28 }
 0x211   :  { %1516 = vmatmul.bf16.gmra.mxu1 %v1416_v57  ;;  %1539 = vmatmul.bf16.gmra.mxu2 %v1416_v57 }
 0x212   :  { %2271 = vmatpush.msrb.mxu1 %v2258_v52 }
 0x214   :  { %2272 = vmatpush.msrb.mxu1 %v2257_v60 }
 0x216   :  { %2273 = vmatpush.msrb.mxu1 %v2256_v55 }
 0x218   :  { %2274 = vmatpush.msrb.mxu1 %v2255_v59 }
 0x21c   :  { %1975 = vmatmul.bf16.vlgmr.msra.gmra.mxu3 %v5328_v46  ;;  %1998 = vmatmul.bf16.vlgmr.msrb.gmra.mxu0 %v5328_v46  ;;  %v1705_v46 = vrot.slane %v1396_v45, 1 }
 0x21e   :  { %v1706_v1 = vsel %vm6084_vm0, %v1703_v16, %v1705_v46 }
 0x221   :  { %1521 = vmatmul.bf16.gmra.mxu1 %v1419_v58  ;;  %1544 = vmatmul.bf16.gmra.mxu2 %v1419_v58  ;;  %v5563_v58 = vperm.slane %v1847_v53, 1 }
 0x22c   :  { %1980 = vmatmul.bf16.gmra.mxu3 %v5426_v33  ;;  %2003 = vmatmul.bf16.gmra.mxu0 %v5426_v33 }
 0x231   :  { %1798 = vmatmul.bf16.vlgmr.msra.gmra.mxu1 %v1704_v4  ;;  %1821 = vmatmul.bf16.vlgmr.msra.gmra.mxu2 %v1704_v4 }
 0x23c   :  { %1985 = vmatmul.bf16.gmra.mxu3 %v1396_v45  ;;  %2008 = vmatmul.bf16.gmra.mxu0 %v1396_v45 }
 0x241   :  { %1803 = vmatmul.bf16.gmra.mxu1 %v1706_v1  ;;  %1826 = vmatmul.bf16.gmra.mxu2 %v1706_v1 }
 0x251   :  { %1808 = vmatmul.bf16.gmra.mxu1 %v1705_v46  ;;  %1831 = vmatmul.bf16.gmra.mxu2 %v1705_v46  ;;  %v2254_v46 = vld [vmem:[%s6080_s7 + $0x58] sm:$0xff] }
 0x252   :  { %2275 = vmatpush.msrb.mxu1 %v2254_v46 }
 0x269   :  { %v1667_v2 = vpop.f32.mrf.mxu0 }
 0x26f   :  { %v1644_v62 = vpop.f32.mrf.mxu3 }
 0x271   :  { %v5490_v34 = vpop.f32.mrf.mxu0 }
 0x277   :  { %v5492_v6 = vpop.f32.mrf.mxu3 }
 0x279   :  { %v5494_v5 = vpop.f32.mrf.mxu0 }
 0x27e   :  { %v1512_v7 = vpop.f32.mrf.mxu1 }
 0x27f   :  { %v5496_v21 = vpop.f32.mrf.mxu3  ;;  %v1645_v42 = vadd.f32 %v1644_v62, %v1512_v7  ;;  %v5574_v62 = vperm.slane %v2014_v8, 0 }
 0x281   :  { %v5498_v24 = vpop.f32.mrf.mxu0 }
 0x284   :  { %v1535_v31 = vpop.f32.mrf.mxu2 }
 0x285   :  { %v1668_v56 = vadd.f32 %v1667_v2, %v1535_v31 }
 0x286   :  { %v1514_v11 = vpop.f32.mrf.mxu1 }
 0x287   :  { %v5500_v33 = vpop.f32.mrf.mxu3  ;;  %v1647_v63 = vadd.f32 %v5492_v6, %v1514_v11  ;;  %v5581_v11 = vperm.slane %v2014_v8, 1 }
 0x289   :  { %v5502_v14 = vpop.f32.mrf.mxu0 }
 0x28c   :  { %v5504_v17 = vpop.f32.mrf.mxu2 }
 0x28d   :  { %v1670_v52 = vadd.f32 %v5490_v34, %v5504_v17 }
 0x28e   :  { %v5506_v3 = vpop.f32.mrf.mxu1 }
 0x28f   :  { %v5508_v20 = vpop.f32.mrf.mxu3 }
 0x291   :  { %v1679_v38 = vpop.f32.mrf.mxu0 }
 0x292   :  { %v2265_v38 = vld [vmem:[%s6080_s7 + $0xb0] sm:$0xff] }
 0x293   :  { %2300 = vmatpush.msrb.mxu2 %v2265_v38 }
 0x294   :  { %v5510_v25 = vpop.f32.mrf.mxu2 }
 0x296   :  { %v5512_v37 = vpop.f32.mrf.mxu1 }
 0x297   :  { %v1656_v27 = vpop.f32.mrf.mxu3 }
 0x299   :  { %v1999_v41 = vpop.f32.mrf.mxu0 }
 0x29a   :  { %v2000_v61 = vadd.f32 %v1999_v41, %v5525_v40 }
 0x29c   :  { %v5514_v23 = vpop.f32.mrf.mxu2  ;;  %v2025_v1 = vrot.slane %v2000_v61, 1 }
 0x29e   :  { %v5516_v13 = vpop.f32.mrf.mxu1 }
 0x29f   :  { %v1976_v44 = vpop.f32.mrf.mxu3 }
 0x2a0   :  { %v1977_v47 = vadd.f32 %v1976_v44, %v5520_v35 }
 0x2a1   :  { %v2001_v30 = vpop.f32.mrf.mxu0 }
 0x2a2   :  { %v5540_v48 = vadd.f32 %v2001_v30, %v5525_v40  ;;  %v2022_v49 = vrot.slane %v1977_v47, 1  ;;  %v2253_v30 = vld [vmem:[%s6080_s7 + $0x50] sm:$0xff]  ;;  %v2250_v47 = vld [vmem:[%s6080_s7 + $0x38] sm:$0xff] }
 0x2a3   :  { %2276 = vmatpush.msrb.mxu1 %v2253_v30  ;;  %v4691_v30 = vmov 16.0  }
 0x2a4   :  { %v5518_v26 = vpop.f32.mrf.mxu2  ;;  %v2026_v22 = vrot.slane %v5540_v48, 1  ;;  %v1650_v48 = vadd.f32 %v5496_v21, %v5506_v3  ;;  %v1673_v21 = vadd.f32 %v5494_v5, %v5510_v25  ;;  %v2248_v5 = vld [vmem:[%s6080_s7 + $0x28] sm:$0xff]  ;;  %v1652_v25 = vadd.f32 %v5500_v33, %v5512_v37  ;;  %v2247_v37 = vld [vmem:[%s6080_s7 + $0x20] sm:$0xff] }
 0x2a5   :  { %4543 = vrcp.f32 %v4691_v30 }
 0x2a6   :  { %v1524_v50 = vpop.f32.mrf.mxu1 }
 0x2a7   :  { %v1978_v18 = vpop.f32.mrf.mxu3  ;;  %v2027_v50 = vsel %vm6084_vm0, %v2025_v1, %v2026_v22 }
 0x2a8   :  { %v5528_v39 = vadd.f32 %v1978_v18, %v5520_v35 }
 0x2a9   :  { %v2004_v19 = vpop.f32.mrf.mxu0 }
 0x2aa   :  { %v2023_v28 = vrot.slane %v5528_v39, 1  ;;  %v2005_v18 = vadd.f32 %v2004_v19, %v5525_v40 }
 0x2ac   :  { %v1547_v15 = vpop.f32.mrf.mxu2  ;;  %v2024_v2 = vsel %vm6084_vm0, %v2022_v49, %v2023_v28  ;;  %v2249_v49 = vld [vmem:[%s6080_s7 + $0x30] sm:$0xff] }
 0x2ad   :  { %v2252_v15 = vld [vmem:[%s6080_s7 + $0x48] sm:$0xff] }
 0x2ae   :  { %v1799_v54 = vpop.f32.mrf.mxu1  ;;  %2277 = vmatpush.msrb.mxu1 %v2252_v15 }
 0x2af   :  { %v1836_v45 = vadd.f32 %v1799_v54, %v1645_v42  ;;  %v1981_v9 = vpop.f32.mrf.mxu3 }
 0x2b0   :  { %v1982_v7 = vadd.f32 %v1981_v9, %v5520_v35  ;;  %v5607_v9 = vrot.slane %v2005_v18, 1 }
 0x2b1   :  { %v2006_v32 = vpop.f32.mrf.mxu0  ;;  %v1853_v57 = vadd.f32 %v5530_v43, %v1836_v45  ;;  %v2251_v45 = vld [vmem:[%s6080_s7 + $0x40] sm:$0xff] }
 0x2b2   :  { %v5593_v42 = vrot.slane %v1982_v7, 1  ;;  %2278 = vmatpush.msrb.mxu1 %v2251_v45  ;;  %v5610_v60 = vadd.f32 %v2006_v32, %v5525_v40  ;;  %v2031_v3 = vsel %vm6084_vm0, %v2026_v22, %v5607_v9  ;;  %v5645_v22 = vadd.f32 %v5498_v24, %v5514_v23  ;;  %v4118_v7 = vld [vmem:[#allocation10 + $0x40] sm:$0xf] }
 0x2b3   :  { %v2038_v27 = vmul.f32 %v2024_v2, %v1853_v57  ;;  %v5668_v23 = vadd.f32 %v5508_v20, %v5516_v13  ;;  %v2246_v20 = vld [vmem:[%s6080_s7 + $0x18] sm:$0xff] }
 0x2b4   :  { %v1822_v16 = vpop.f32.mrf.mxu2  ;;  %v2029_v55 = vsel %vm6084_vm0, %v2023_v28, %v5593_v42  ;;  %2279 = vmatpush.msrb.mxu1 %v2250_v47 }
 0x2b5   :  { %v1837_v4 = vadd.f32 %v1822_v16, %v1668_v56  ;;  %v5598_v39 = vadd.f32 %v5574_v62, %v2038_v27  ;;  %v2264_v16 = vld [vmem:[%s6080_s7 + $0xa8] sm:$0xff] }
 0x2b6   :  { %v1801_v31 = vpop.f32.mrf.mxu1  ;;  %2280 = vmatpush.msrb.mxu1 %v2249_v49  ;;  %2301 = vmatpush.msrb.mxu2 %v2264_v16  ;;  %v2261_v49 = vld [vmem:[%s6080_s7 + $0x90] sm:$0xff] }
 0x2b7   :  { %v1854_v6 = vadd.f32 %v5563_v58, %v1837_v4  ;;  %v1838_v41 = vadd.f32 %v1801_v31, %v1647_v63  ;;  %v1983_v44 = vpop.f32.mrf.mxu3  ;;  %v2142_v63 = vrot.slane %v5610_v60, 1  ;;  %v2097_v13 = vrot.slane %v5598_v39, 1 }
 0x2b8   :  { %v5622_v61 = vadd.f32 %v1983_v44, %v5520_v35  ;;  %2281 = vmatpush.msrb.mxu1 %v2248_v5 }
 0x2b9   :  { %v2039_v10 = vmul.f32 %v2027_v50, %v1854_v6  ;;  %v5588_v53 = vpop.f32.mrf.mxu0  ;;  %v1855_v19 = vadd.f32 %v5530_v43, %v1838_v41  ;;  %v2143_v18 = vsel %vm6084_vm0, %v5607_v9, %v2142_v63 }
 0x2ba   :  { %v2140_v31 = vrot.slane %v5622_v61, 1  ;;  %2282 = vmatpush.msrb.mxu1 %v2247_v37  ;;  %v2259_v61 = vld [vmem:[%s6080_s7 + $0x80] sm:$0xff] }
 0x2bb   :  { %v5601_v54 = vadd.f32 %v5581_v11, %v2039_v10  ;;  %v2040_v57 = vmul.f32 %v2029_v55, %v1855_v19  ;;  %v5684_v10 = vadd.f32 %v5588_v53, %v5525_v40  ;;  %v2263_v40 = vld [vmem:[%s6080_s7 + $0xa0] sm:$0xff]  ;;  %v2262_v53 = vld [vmem:[%s6080_s7 + $0x98] sm:$0xff] }
 0x2bc   :  { %v1824_v51 = vpop.f32.mrf.mxu2  ;;  %2283 = vmatpush.msrb.mxu1 %v2246_v20  ;;  %2302 = vmatpush.msrb.mxu2 %v2263_v40 }
 0x2bd   :  { %v2055_v34 = vpack.c.bf16 %v5601_v54, %v5598_v39  ;;  %v1839_v17 = vadd.f32 %v1824_v51, %v1670_v52  ;;  %v2051_v6 = vadd.f32 %v5574_v62, %v2040_v57  ;;  %v2141_v52 = vsel %vm6084_vm0, %v5593_v42, %v2140_v31 }
 0x2be   :  { %v1804_v32 = vpop.f32.mrf.mxu1  ;;  %v2146_v16 = vrot.slane %v5684_v10, 1  ;;  %2303 = vmatpush.msrb.mxu2 %v2262_v53 }
 0x2bf   :  { %v2059_v56 = vshrl.u32 %v2055_v34, 16  ;;  %v1856_v8 = vadd.f32 %v5563_v58, %v1839_v17  ;;  %v1986_v59 = vpop.f32.mrf.mxu3  ;;  %v1840_v28 = vadd.f32 %v1804_v32, %v1650_v48  ;;  %v2062_v46 = vshll.u32 %v2055_v34, 16  ;;  %v2245_v32 = vld [vmem:[%s6080_s7 + $0x10] sm:$0xff] }
 0x2c0   :  { %v5661_v24 = vadd.f32 %v1986_v59, %v5520_v35  ;;  %v2098_v45 = vrot.slane %v2051_v6, 1  ;;  %2284 = vmatpush.msrb.mxu1 %v2245_v32  ;;  %2304 = vmatpush.msrb.mxu2 %v2261_v49  ;;  %v2147_v20 = vsel %vm6084_vm0, %v2142_v63, %v2146_v16 }
 0x2c1   :  { %v5636_v4 = vrot.slane %v2059_v56, 7  ;;  %v2041_v1 = vmul.f32 %v2031_v3, %v1856_v8  ;;  %v2011_v2 = vpop.f32.mrf.mxu0  ;;  %v1857_v38 = vadd.f32 %v5530_v43, %v1840_v28  ;;  %v5710_v3 = vpop.eup %4543  ;;  %v2100_v28 = vrot.slane %v5601_v54, 1  ;;  %v2260_v54 = vld [vmem:[%s6080_s7 + $0x88] sm:$0xff] }
 0x2c2   :  { %v2144_v34 = vrot.slane %v5661_v24, 1  ;;  %v2099_v5 = vsel %vm6084_vm0, %v2097_v13, %v2098_v45  ;;  %2305 = vmatpush.msrb.mxu2 %v2260_v54  ;;  %vm2132_vm1 = vweird.f32 %v5710_v3 }
 0x2c3   :  { %v2064_v27 = vor.u32 %v2062_v46, %v5636_v4  ;;  %v5658_v33 = vadd.f32 %v5581_v11, %v2041_v1  ;;  %v2042_v41 = vmul.f32 %v5593_v42, %v1857_v38  ;;  %v2154_v48 = vmul.f32 %v2141_v52, %v1857_v38  ;;  %v2243_v1 = vld [vmem:[%s6080_s7] sm:$0xff] }
 0x2c4   :  { %v1827_v44 = vpop.f32.mrf.mxu2  ;;  %v2065_v2 = vrot.slane %v5636_v4, 4  ;;  %v2145_v4 = vsel %vm6084_vm0, %v2140_v31, %v2144_v34  ;;  %2306 = vmatpush.msrb.mxu2 %v2259_v61 }
 0x2c5   :  { %2085 = vst.msk [vmem:[#allocation5] sm:$0xee] %vm5649_vm8, %v2064_v27  ;;  %v2056_v35 = vpack.c.bf16 %v5658_v33, %v2051_v6  ;;  %v1841_v50 = vadd.f32 %v1827_v44, %v1673_v21  ;;  %v2053_v15 = vadd.f32 %v5574_v62, %v2042_v41  ;;  %v2101_v47 = vrot.slane %v5658_v33, 1  ;;  %v2244_v21 = vld [vmem:[%s6080_s7 + $0x8] sm:$0xff] }
 0x2c6   :  { %v1806_v19 = vpop.f32.mrf.mxu1  ;;  %2285 = vmatpush.msrb.mxu1 %v2244_v21  ;;  %v5726_v6 = vadd.f32 %v2154_v48, %v5574_v62 }
 0x2c7   :  { %v2067_v51 = vshrl.u32 %v2056_v35, 16  ;;  %v1858_v17 = vadd.f32 %v5563_v58, %v1841_v50  ;;  %v1988_v39 = vpop.f32.mrf.mxu3  ;;  %v2103_v42 = vrot.slane %v2053_v15, 1  ;;  %v1842_v55 = vadd.f32 %v1806_v19, %v1652_v25 }
 0x2c8   :  { %v2070_v57 = vshll.u32 %v2056_v35, 16  ;;  %v2102_v44 = vsel %vm6084_vm0, %v2100_v28, %v2101_v47  ;;  %2286 = vmatpush.msrb.mxu1 %v2243_v1 }
 0x2c9   :  { %v2069_v56 = vrot.slane %v2067_v51, 7  ;;  %v2043_v8 = vmul.f32 %v5607_v9, %v1858_v17  ;;  %v2155_v59 = vmul.f32 %v2143_v18, %v1858_v17  ;;  %v2104_v46 = vsel %vm6084_vm0, %v2098_v45, %v2103_v42 }
 0x2ca   :  { %v1859_v9 = vadd.f32 %v5530_v43, %v1842_v55  ;;  %v2111_v27 = vadd.f32 %v2104_v46, %v2099_v5  ;;  %v2118_v51 = vsel %vm283_vm13, %v2102_v44, 0.0 }
 0x2cb   :  { %v2072_v25 = vor.u32 %v2070_v57, %v2069_v56  ;;  %v2054_v38 = vadd.f32 %v5581_v11, %v2043_v8  ;;  %v5729_v33 = vadd.f32 %v2155_v59, %v5581_v11  ;;  %v2317_v57 = vld [vmem:[#allocation13 + $0x10] sm:$0xf]  ;;  %v2315_v8 = vld [vmem:[#allocation13] sm:$0xff]  ;;  %v1678_v59 = vadd.f32 %v5502_v14, %v5518_v26 }
 0x2cc   :  { %v1829_v37 = vpop.f32.mrf.mxu2  ;;  %v2156_v18 = vmul.f32 %v2145_v4, %v1859_v9  ;;  %v2112_v17 = vrot.slane %v2111_v27, 4  ;;  %3968 = vmatpush.msk.msrb.mxu3 %vm2086_vm9, %v2317_v57 }
 0x2cd   :  { %v2057_v30 = vpack.c.bf16 %v2054_v38, %v2053_v15  ;;  %v2105_v35 = vrot.slane %v2054_v38, 1  ;;  %v1843_v50 = vadd.f32 %v1829_v37, %v5645_v22  ;;  %v2166_v31 = vpack.c.bf16 %v5729_v33, %v5726_v6 }
 0x2ce   :  { %v1809_v13 = vpop.f32.mrf.mxu1  ;;  %v2073_v22 = vsel %vm5252_vm11, %v2065_v2, %v2072_v25  ;;  %v2074_v15 = vrot.slane %v2069_v56, 4  ;;  %v2162_v55 = vadd.f32 %v2156_v18, %v5574_v62  ;;  %v2128_v2 = vmul.f32 16.0, %v5710_v3  ;;  %2351 = vmatpush.msrb.mxu3 %v2315_v8 }
 0x2cf   :  { %v2076_v52 = vshll.u32 %v2057_v30, 16  ;;  %v2106_v19 = vsel %vm6084_vm0, %v2101_v47, %v2105_v35  ;;  %v1860_v45 = vadd.f32 %v5563_v58, %v1843_v50  ;;  %2089 = vst.msk [vmem:[#allocation5 + $0x8] sm:$0xff] %vm5738_vm12, %v2073_v22  ;;  %v2170_v63 = vshrl.u32 %v2166_v31, 16 }
 0x2d0   :  { %v2119_v60 = vsel %vm283_vm13, %v2106_v19, 0.0  ;;  %v1844_v42 = vadd.f32 %v1809_v13, %v5668_v23  ;;  %v2173_v48 = vshll.u32 %v2166_v31, 16  ;;  %v2113_v23 = vadd.f32 %v2112_v17, %v2111_v27 }
 0x2d1   :  { %v2078_v39 = vsel %vm5252_vm11, %v2074_v15, %v2076_v52  ;;  %v2120_v40 = vadd.f32 %v2119_v60, %v2118_v51  ;;  %v2157_v53 = vmul.f32 %v2147_v20, %v1860_v45  ;;  %v2172_v47 = vrot.slane %v2170_v63, 7 }
 0x2d2   :  { %2090 = vst.msk [vmem:[#allocation5 + $0x10] sm:$0x11] %vm5543_vm3, %v2078_v39  ;;  %v1861_v56 = vadd.f32 %v5530_v43, %v1844_v42  ;;  %v2210_v9 = vrot.slane %v2162_v55, 5  ;;  %v2209_v25 = vrot.slane %v5726_v6, 5  ;;  %v2114_v27 = vrot.slane %v2113_v23, 2 }
 0x2d3   :  { %v2163_v32 = vadd.f32 %v2157_v53, %v5581_v11  ;;  %v2175_v49 = vor.u32 %v2173_v48, %v2172_v47  ;;  %v2121_v5 = vrot.slane %v2120_v40, 4  ;;  %v2129_v30 = vsub.f32 1.0, %v2128_v2 }
 0x2d4   :  { %v1832_v21 = vpop.f32.mrf.mxu2  ;;  %v2158_v46 = vmul.f32 %v2144_v34, %v1861_v56  ;;  %v2211_v4 = vsel %vm6083_vm7, %v2209_v25, %v2210_v9  ;;  %v2176_v50 = vrot.slane %v2172_v47, 4  ;;  %v2212_v6 = vrot.slane %v5729_v33, 5 }
 0x2d5   :  { %v2167_v28 = vpack.c.bf16 %v2163_v32, %v2162_v55  ;;  %2197 = vst.msk [vmem:[#allocation5 + $0x10] sm:$0x88] %vm5550_vm4, %v2175_v49  ;;  %v1845_v1 = vadd.f32 %v1832_v21, %v1678_v59  ;;  %v2213_v37 = vrot.slane %v2163_v32, 5  ;;  %v2122_v35 = vadd.f32 %v2121_v5, %v2120_v40 }
 0x2d6   :  { %v1811_v43 = vpop.f32.mrf.mxu1  ;;  %v2164_v26 = vadd.f32 %v2158_v46, %v5574_v62  ;;  %v2115_v20 = vadd.f32 %v2114_v27, %v2113_v23  ;;  %v2130_v52 = vmul.f32 %v5710_v3, %v2129_v30 }
 0x2d7   :  { %v2178_v14 = vshrl.u32 %v2167_v28, 16  ;;  %v1862_v38 = vadd.f32 %v5563_v58, %v1845_v1  ;;  %v2181_v24 = vshll.u32 %v2167_v28, 16  ;;  %v2214_v22 = vsel %vm6083_vm7, %v2212_v6, %v2213_v37 }
 0x2d8   :  { %v2215_v34 = vrot.slane %v2164_v26, 5  ;;  %v2123_v19 = vrot.slane %v2122_v35, 2  ;;  %v2230_v51 = vsel %vm283_vm13, %v2214_v22, 0.0  ;;  %v2116_v60 = vrot.slane %v2115_v20, 1 }
 0x2d9   :  { %v2180_v54 = vrot.slane %v2178_v14, 7  ;;  %v2159_v44 = vmul.f32 %v2146_v16, %v1862_v38  ;;  %v2131_v42 = vadd.f32 %v5710_v3, %v2130_v52 }
 0x2da   :  { %v2216_v62 = vsel %vm6083_vm7, %v2210_v9, %v2215_v34  ;;  %v2124_v47 = vadd.f32 %v2123_v19, %v2122_v35  ;;  %v2117_v49 = vadd.f32 %v2116_v60, %v2115_v20  ;;  %v2267_v34 = vld [vmem:[#allocation11 + $0x7] ss:$0 sm:$0xff]  ;;  %v4463_v20 = vld [vmem:[#allocation10 + $0x134] sm:$0xf]  ;;  %v4032_v19 = vld [vmem:[#allocation10 + $0x120] sm:$0xf] }
 0x2db   :  { %v2183_v61 = vor.u32 %v2181_v24, %v2180_v54  ;;  %v2223_v31 = vadd.f32 %v2216_v62, %v2211_v4  ;;  %v2165_v58 = vadd.f32 %v2159_v44, %v5581_v11  ;;  %v2185_v48 = vrot.slane %v2180_v54, 4  ;;  %v2318_v24 = vld [vmem:[#allocation13 + $0x18] sm:$0xf]  ;;  %v2311_v44 = vld [vmem:[#allocation11 + $0x10] ss:$0 sm:$0xff] }
 0x2dc   :  { %v1834_v18 = vpop.f32.mrf.mxu2  ;;  %v2133_v23 = vsel %vm2132_vm1, %v5710_v3, %v2131_v42  ;;  %v2125_v46 = vrot.slane %v2124_v47, 1  ;;  %3970 = vmatpush.msk.msra.mxu1 %vm2086_vm9, %v2318_v24  ;;  %v2316_v3 = vld [vmem:[#allocation13 + $0x8] sm:$0xff]  ;;  %v4467_v24 = vld [vmem:[#allocation10 + $0x154] sm:$0xf]  ;;  %vm121_vm9 = vcmask 1041409  }
 0x2dd   :  { %v2184_v13 = vsel %vm5252_vm11, %v2176_v50, %v2183_v61  ;;  %v2224_v10 = vrot.slane %v2223_v31, 4  ;;  %v2168_v16 = vpack.c.bf16 %v2165_v58, %v2164_v26  ;;  %v2217_v15 = vrot.slane %v2165_v58, 5  ;;  %v2320_v61 = vld [vmem:[#allocation11 + $0x11] ss:$8 sm:$0x3] }
 0x2de   :  { %2198 = vst.msk [vmem:[#allocation5 + $0x18] sm:$0xff] %vm5738_vm12, %v2184_v13  ;;  %v2134_v1 = vmul.f32 %v2133_v23, %v2117_v49  ;;  %v2126_v14 = vadd.f32 %v2125_v46, %v2124_v47  ;;  %2371 = vmatpush.msra.mxu1 %v2316_v3  ;;  %v2323_v62 = vperm.slane %v2320_v61, 1  ;;  %v4040_v58 = vld [vmem:[#allocation10 + $0x130] sm:$0xf]  ;;  %v4464_v18 = vld [vmem:[#allocation10 + $0x134] sm:$0xf0] }
 0x2df   :  { %v2225_v33 = vadd.f32 %v2224_v10, %v2223_v31  ;;  %v2187_v45 = vshrl.u32 %v2168_v16, 16  ;;  %v2218_v11 = vsel %vm6083_vm7, %v2213_v37, %v2217_v15  ;;  %v2190_v39 = vshll.u32 %v2168_v16, 16  ;;  %v4042_v16 = vld [vmem:[#allocation10 + $0x138] sm:$0xf0]  ;;  %v4018_v49 = vld [vmem:[#allocation10 + $0x108] sm:$0xf0] }
 0x2e0   :  { %v2231_v17 = vsel %vm283_vm13, %v2218_v11, 0.0  ;;  %v2135_v25 = vmul.f32 %v2133_v23, %v2126_v14  ;;  %v2322_v22 = vperm.slane %v2320_v61, 0  ;;  %v4041_v10 = vor.u32 %v4464_v18, %v4040_v58  ;;  %v4058_v3 = vld [vmem:[#allocation10 + $0x158] sm:$0xf0] }
 0x2e1   :  { %v2189_v63 = vrot.slane %v2187_v45, 7  ;;  %v2232_v40 = vadd.f32 %v2231_v17, %v2230_v51  ;;  %v2226_v53 = vrot.slane %v2225_v33, 2  ;;  %v4045_v15 = vor.u32 %v4463_v20, %v4042_v16  ;;  %v4461_v45 = vld [vmem:[#allocation10 + $0x124] sm:$0xf]  ;;  %v4034_v17 = vld [vmem:[#allocation10 + $0x128] sm:$0xf0] }
 0x2e2   :  { %2714 = vmatpush.bf16.msra.mxu2 %v4041_v10  ;;  %v4037_v60 = vor.u32 %v4461_v45, %v4034_v17  ;;  %v4064_v20 = vld [vmem:[#allocation10 + $0x160] sm:$0xf]  ;;  %v4453_v16 = vld [vmem:[#allocation10 + $0xe4] sm:$0xf]  ;;  %v4452_v45 = vld [vmem:[#allocation10 + $0xd4] sm:$0xf0] }
 0x2e3   :  { %v2192_v55 = vor.u32 %v2190_v39, %v2189_v63  ;;  %v2233_v56 = vrot.slane %v2232_v40, 4  ;;  %v2227_v57 = vadd.f32 %v2226_v53, %v2225_v33  ;;  %v4462_v33 = vld [vmem:[#allocation10 + $0x124] sm:$0xf0]  ;;  %v4024_v39 = vld [vmem:[#allocation10 + $0x110] sm:$0xf]  ;;  %vm154_vm7 = vcmask 522246  }
 0x2e4   :  { %v4033_v51 = vor.u32 %v4462_v33, %v4032_v19  ;;  %v4459_v53 = vld [vmem:[#allocation10 + $0x114] sm:$0xf] }
 0x2e5   :  { %v2193_v8 = vsel %vm5252_vm11, %v2185_v48, %v2192_v55  ;;  %v2234_v59 = vadd.f32 %v2233_v56, %v2232_v40  ;;  %v2228_v21 = vrot.slane %v2227_v57, 1  ;;  %v4460_v40 = vld [vmem:[#allocation10 + $0x114] sm:$0xf0]  ;;  %v4026_v48 = vld [vmem:[#allocation10 + $0x118] sm:$0xf0] }
 0x2e6   :  { %2202 = vst.msk [vmem:[#allocation5 + $0x20] sm:$0x77] %vm5799_vm5, %v2193_v8  ;;  %2715 = vmatpush.bf16.msra.mxu2 %v4033_v51  ;;  %v4025_v47 = vor.u32 %v4460_v40, %v4024_v39  ;;  %v4029_v56 = vor.u32 %v4459_v53, %v4026_v48  ;;  %v4458_v8 = vld [vmem:[#allocation10 + $0x104] sm:$0xf0]  ;;  %v4468_v51 = vld [vmem:[#allocation10 + $0x154] sm:$0xf0] }
 0x2e7   :  { %v2229_v28 = vadd.f32 %v2228_v21, %v2227_v57  ;;  %v2235_v9 = vrot.slane %v2234_v59, 2  ;;  %v4016_v57 = vld [vmem:[#allocation10 + $0x100] sm:$0xf]  ;;  %v4465_v39 = vld [vmem:[#allocation10 + $0x144] sm:$0xf] }
 0x2e8   :  { %v5834_v53 = vld [vmem:[#allocation5] sm:$0xee] }
 0x2e9   :  { %v2239_v43 = vmul.f32 %v2229_v28, %v2133_v23  ;;  %v2236_v2 = vadd.f32 %v2235_v9, %v2234_v59  ;;  %v4457_v59 = vld [vmem:[#allocation10 + $0x104] sm:$0xf]  ;;  %v4471_v9 = vld [vmem:[#allocation10 + $0x174] sm:$0xf] }
 0x2ea   :  { %2716 = vmatpush.bf16.msra.mxu2 %v4025_v47  ;;  %v4021_v28 = vor.u32 %v4457_v59, %v4018_v49 }
 0x2eb   :  { %v2241_v5 = vsel %vm117_vm2, %v2134_v1, %v2239_v43  ;;  %v2237_v26 = vrot.slane %v2236_v2, 1  ;;  %v4074_v1 = vld [vmem:[#allocation10 + $0x178] sm:$0xf0]  ;;  %v4469_v43 = vld [vmem:[#allocation10 + $0x164] sm:$0xf] }
 0x2ec   :  { %2287 = vmatmul.f32.vlgmr.msrb.gmra.mxu1 %v2241_v5  ;;  %v4077_v14 = vor.u32 %v4471_v9, %v4074_v1  ;;  %v4048_v1 = vld [vmem:[#allocation10 + $0x140] sm:$0xf] }
 0x2ed   :  { %v2238_v12 = vadd.f32 %v2237_v26, %v2236_v2  ;;  %2760 = vmatpush.bf16.msrb.mxu1 %v4045_v15  ;;  %v4066_v26 = vld [vmem:[#allocation10 + $0x168] sm:$0xf0] }
 0x2ee   :  { %2787 = vmatpush.bf16.msra.mxu0 %v4077_v14  ;;  %v4002_v15 = vld [vmem:[#allocation10 + $0xe8] sm:$0xf0]  ;;  %v2418_v14 = vunpack.c.h.bf16 %v5834_v53 }
 0x2ef   :  { %v2240_v38 = vmul.f32 %v2238_v12, %v2133_v23  ;;  %v4017_v23 = vor.u32 %v4458_v8, %v4016_v57  ;;  %v4008_v12 = vld [vmem:[#allocation10 + $0xf0] sm:$0xf]  ;;  %v4005_v33 = vor.u32 %v4453_v16, %v4002_v15  ;;  %v5847_v8 = vld [vmem:[#allocation5 + $0x10] sm:$0x11]  ;;  %v4166_v57 = vld [vmem:[#allocation10 + $0xa0] sm:$0xf] }
 0x2f1   :  { %v2242_v54 = vsel %vm117_vm2, %v2135_v25, %v2240_v38  ;;  %2761 = vmatpush.bf16.msrb.mxu1 %v4037_v60  ;;  %2717 = vmatpush.bf16.msra.mxu2 %v4017_v23  ;;  %v4456_v25 = vld [vmem:[#allocation10 + $0xf4] sm:$0xf0]  ;;  %v4451_v60 = vld [vmem:[#allocation10 + $0xd4] sm:$0xf]  ;;  %v4450_v23 = vld [vmem:[#allocation10 + $0xc4] sm:$0xf0] }
 0x2f2   :  { %3967 = vmatmul.msk.f32.vlgmr.msrb.gmra.mxu2 %vm283_vm13, %v2242_v54  ;;  %v4069_v54 = vor.u32 %v4469_v43, %v4066_v26  ;;  %v4466_v43 = vld [vmem:[#allocation10 + $0x144] sm:$0xf0]  ;;  %v4449_v26 = vld [vmem:[#allocation10 + $0xc4] sm:$0xf] }
 0x2f4   :  { %2788 = vmatpush.bf16.msra.mxu0 %v4069_v54 }
 0x2f5   :  { %2762 = vmatpush.bf16.msrb.mxu1 %v4029_v56  ;;  %v4050_v56 = vld [vmem:[#allocation10 + $0x148] sm:$0xf0] }
 0x2f6   :  { %v4053_v49 = vor.u32 %v4465_v39, %v4050_v56  ;;  %v4176_v39 = vld [vmem:[#allocation10 + $0xb8] sm:$0xf0] }
 0x2f9   :  { %2763 = vmatpush.bf16.msrb.mxu1 %v4021_v28 }
 0x369   :  { %v2288_v27 = vpop.f32.mrf.mxu1 }
 0x36a   :  { %v2289_v4 = vadd.f32 %v2288_v27, %v2267_v34  ;;  %v4072_v34 = vld [vmem:[#allocation10 + $0x170] sm:$0xf] }
 0x375   :  { %v2308_v37 = vpop.f32.mrf.mxu2 }
 0x376   :  { %v2309_v30 = vadd.f32 %v2308_v37, %v2289_v4  ;;  %v4009_v37 = vor.u32 %v4456_v25, %v4008_v12  ;;  %v3986_v12 = vld [vmem:[#allocation10 + $0xc8] sm:$0xf0] }
 0x377   :  { %v5860_v25 = vld [vmem:[#allocation5 + $0x10] sm:$0x88] }
 0x378   :  { %vm2312_vm11 = vcmp.gt.f32.partialorder %v2309_v30, 0.0  ;;  %v2313_v35 = vmul.f32 %v2311_v44, %v2309_v30  ;;  %v4472_v44 = vld [vmem:[#allocation10 + $0x174] sm:$0xf0]  ;;  %2718 = vmatpush.bf16.msra.mxu2 %v4009_v37  ;;  %v2440_v15 = vunpack.c.l.bf16 %v5860_v25 }
 0x379   :  { %v4073_v61 = vor.u32 %v4472_v44, %v4072_v34 }
 0x37a   :  { %v2314_v50 = vsel %vm2312_vm11, %v2309_v30, %v2313_v35  ;;  %v4455_v30 = vld [vmem:[#allocation10 + $0xf4] sm:$0xf]  ;;  %v4010_v35 = vld [vmem:[#allocation10 + $0xf8] sm:$0xf0] }
 0x37b   :  { %3969 = vmatmul.msk.f32.vlgmr.msrb.gmra.mxu3 %vm2326_vm6, %v2314_v50  ;;  %3971 = vmatmul.msk.f32.vlgmr.msra.gmra.mxu1 %vm2326_vm6, %v2314_v50  ;;  %vm153_vm6 = vcmask 1042434  }
 0x37c   :  { %2741 = vmatpush.bf16.msra.mxu3 %v4073_v61  ;;  %v3989_v61 = vor.u32 %v4449_v26, %v3986_v12 }
 0x3f8   :  { %v2373_v6 = vpop.f32.mrf.mxu1 }
 0x3f9   :  { %v2374_v31 = vadd.f32 %v2373_v6, %v2323_v62  ;;  %v4013_v62 = vor.u32 %v4455_v30, %v4010_v35  ;;  %v4000_v6 = vld [vmem:[#allocation10 + $0xe0] sm:$0xf]  ;;  %v4049_v30 = vor.u32 %v4466_v43, %v4048_v1 }
 0x3fb   :  { %v3973_v13 = vmul.f32 -1.442695, %v2374_v31  ;;  %v4454_v31 = vld [vmem:[#allocation10 + $0xe4] sm:$0xf0]  ;;  %2764 = vmatpush.bf16.msrb.mxu1 %v4013_v62  ;;  %v4142_v62 = vld [vmem:[#allocation10 + $0x70] sm:$0xf] }
 0x3fc   :  { %v4001_v18 = vor.u32 %v4454_v31, %v4000_v6  ;;  %v4440_v6 = vld [vmem:[#allocation10 + $0x74] sm:$0xf0]  ;;  %v4174_v31 = vld [vmem:[#allocation10 + $0xb0] sm:$0xf] }
 0x3fd   :  { %4545 = vpow2.f32 %v3973_v13  ;;  %v4470_v13 = vld [vmem:[#allocation10 + $0x164] sm:$0xf0] }
 0x3fe   :  { %v2353_v52 = vpop.f32.mrf.mxu3  ;;  %v4065_v10 = vor.u32 %v4470_v13, %v4064_v20  ;;  %2719 = vmatpush.bf16.msra.mxu2 %v4001_v18  ;;  %v4143_v20 = vor.u32 %v4440_v6, %v4142_v62  ;;  %v4448_v13 = vld [vmem:[#allocation10 + $0xb4] sm:$0xf0]  ;;  %v4445_v62 = vld [vmem:[#allocation10 + $0xa4] sm:$0xf] }
 0x3ff   :  { %v2354_v11 = vadd.f32 %v2353_v52, %v2322_v22  ;;  %v4061_v22 = vor.u32 %v4467_v24, %v4058_v3  ;;  %v3992_v52 = vld [vmem:[#allocation10 + $0xd0] sm:$0xf]  ;;  %2765 = vmatpush.bf16.msrb.mxu1 %v4005_v33  ;;  %v2417_v24 = vunpack.c.l.bf16 %v5834_v53  ;;  %v4439_v33 = vld [vmem:[#allocation10 + $0x74] sm:$0xf] }
 0x400   :  { %v3993_v48 = vor.u32 %v4452_v45, %v3992_v52  ;;  %2742 = vmatpush.bf16.msra.mxu3 %v4065_v10  ;;  %v4438_v10 = vld [vmem:[#allocation10 + $0x64] sm:$0xf0]  ;;  %v4144_v45 = vld [vmem:[#allocation10 + $0x78] sm:$0xf0] }
 0x401   :  { %v3972_v63 = vmul.f32 -1.442695, %v2354_v11  ;;  %v4056_v11 = vld [vmem:[#allocation10 + $0x150] sm:$0xf]  ;;  %2789 = vmatpush.bf16.msra.mxu0 %v4061_v22  ;;  %v4134_v22 = vld [vmem:[#allocation10 + $0x60] sm:$0xf] }
 0x402   :  { %v4057_v59 = vor.u32 %v4468_v51, %v4056_v11  ;;  %2720 = vmatpush.bf16.msra.mxu2 %v3993_v48  ;;  %v4447_v11 = vld [vmem:[#allocation10 + $0xb4] sm:$0xf]  ;;  %v4135_v48 = vor.u32 %v4438_v10, %v4134_v22 }
 0x403   :  { %v4546_v42 = vpop.eup %4545  ;;  %4547 = vpow2.f32 %v3972_v63  ;;  %v3994_v63 = vld [vmem:[#allocation10 + $0xd8] sm:$0xf0]  ;;  %v4179_v56 = vor.u32 %v4447_v11, %v4176_v39 }
 0x404   :  { %v5812_v55 = vadd.f32 1.0, %v4546_v42  ;;  %v3997_v9 = vor.u32 %v4451_v60, %v3994_v63  ;;  %2743 = vmatpush.bf16.msra.mxu3 %v4057_v59  ;;  %v4147_v63 = vor.u32 %v4439_v33, %v4144_v45 }
 0x405   :  { %2790 = vmatpush.bf16.msra.mxu0 %v4053_v49 }
 0x406   :  { %4549 = vrcp.f32 %v5812_v55  ;;  %v2408_v21 = vand.u32 2147483647, %v5812_v55  ;;  %v2410_v2 = vand.u32 2147483648, %v5812_v55  ;;  %vm2404_vm1 = vweird.f32 %v5812_v55  ;;  %2766 = vmatpush.bf16.msrb.mxu1 %v3997_v9 }
 0x408   :  { %vm5824_vm2 = vcmp.eq.f32.partialorder %v2408_v21, 8.507059e+37  ;;  %v2411_v50 = vor.u32 1.1754944e-38, %v2410_v2  ;;  %v3984_v21 = vld [vmem:[#allocation10 + $0xc0] sm:$0xf]  ;;  %2744 = vmatpush.bf16.msra.mxu3 %v4049_v30 }
 0x409   :  { %v4548_v46 = vpop.eup %4547  ;;  %v3985_v3 = vor.u32 %v4450_v23, %v3984_v21  ;;  %3014 = vmatpush.bf16.msrb.mxu0 %v4179_v56 }
 0x40a   :  { %v5817_v5 = vadd.f32 1.0, %v4548_v46  ;;  %2767 = vmatpush.bf16.msrb.mxu1 %v3989_v61  ;;  %v4128_v61 = vld [vmem:[#allocation10 + $0x58] sm:$0xf0] }
 0x40b   :  { %2721 = vmatpush.bf16.msra.mxu2 %v3985_v3 }
 0x40c   :  { %v5819_v38 = vpop.eup %4549  ;;  %4551 = vrcp.f32 %v5817_v5  ;;  %v2395_v47 = vand.u32 2147483648, %v5817_v5  ;;  %vm2389_vm0 = vweird.f32 %v5817_v5  ;;  %v2393_v37 = vand.u32 2147483647, %v5817_v5  ;;  %2941 = vmatpush.bf16.msrb.mxu3 %v4143_v20  ;;  %v4432_v20 = vld [vmem:[#allocation10 + $0x34] sm:$0xf0] }
 0x40d   :  { %v2400_v27 = vmul.f32 %v5819_v38, %v5812_v55  ;;  %vm2405_vm15 = vweird.f32 %v5819_v38  ;;  %v5845_v55 = vld [vmem:[#allocation5 + $0x8] sm:$0xff]  ;;  %v4111_v10 = vor.u32 %v4432_v20, %v4110_v36 }
 0x40e   :  { %vm5841_vm11 = vmor %vm2404_vm1, %vm2405_vm15  ;;  %v2396_v44 = vor.u32 1.1754944e-38, %v2395_v47  ;;  %v2420_v35 = vunpack.c.h.bf16 %v5845_v55  ;;  %2987 = vmatpush.bf16.msra.mxu1 %v4147_v63  ;;  %v4441_v36 = vld [vmem:[#allocation10 + $0x84] sm:$0xf] }
 0x40f   :  { %v2401_v58 = vsub.f32 1.0, %v2400_v27  ;;  %vm123_vm1 = vmor %vm122_vm10, %vm121_vm9  ;;  %v5868_v27 = vld [vmem:[#allocation5 + $0x20] sm:$0x77]  ;;  %vm6113_vm10 = vcmask 1042432  }
 0x410   :  { %124 = vst.msk [vmem:[#allocation5 + $0x10] sm:$0x22] %vm123_vm1, %v4690_v0  ;;  %v2444_v49 = vunpack.c.l.bf16 %v5868_v27  ;;  %2942 = vmatpush.bf16.msrb.mxu3 %v4135_v48 }
 0x411   :  { %v2402_v19 = vmul.f32 %v5819_v38, %v2401_v58  ;;  %v2441_v58 = vunpack.c.h.bf16 %v5860_v25 }
 0x412   :  { %v5830_v17 = vpop.eup %4551 }
 0x413   :  { %v2403_v40 = vadd.f32 %v5819_v38, %v2402_v19  ;;  %v2385_v42 = vmul.f32 %v5830_v17, %v5817_v5  ;;  %vm2390_vm15 = vweird.f32 %v5830_v17  ;;  %v2421_v5 = vunpack.c.l.bf16 %v5847_v8 }
 0x414   :  { %v4175_v19 = vor.u32 %v4448_v13, %v4174_v31  ;;  %v4158_v13 = vld [vmem:[#allocation10 + $0x90] sm:$0xf] }
 0x415   :  { %v2407_v28 = vsel %vm5841_vm11, %v5819_v38, %v2403_v40  ;;  %v2386_v46 = vsub.f32 1.0, %v2385_v42  ;;  %vm155_vm11 = vmor %vm154_vm7, %vm153_vm6  ;;  %v5862_v38 = vld [vmem:[#allocation5 + $0x18] sm:$0xff]  ;;  %v2445_v42 = vunpack.c.h.bf16 %v5868_v27 }
 0x416   :  { %v2412_v2 = vsel %vm5824_vm2, %v2411_v50, %v2407_v28  ;;  %156 = vst.msk [vmem:[#allocation5 + $0x10] sm:$0x44] %vm155_vm11, %v4690_v0  ;;  %vm5872_vm7 = vmor %vm2389_vm0, %vm2390_vm15  ;;  %v2422_v50 = vunpack.c.h.bf16 %v5847_v8  ;;  %v2419_v0 = vunpack.c.l.bf16 %v5845_v55  ;;  %v2443_v16 = vunpack.c.h.bf16 %v5862_v38  ;;  %v4126_v40 = vld [vmem:[#allocation10 + $0x50] sm:$0xf]  ;;  %v4446_v55 = vld [vmem:[#allocation10 + $0xa4] sm:$0xf0]  ;;  %2968 = vmatpush.bf16.msrb.mxu2 %v4175_v19 }
 0x417   :  { %v2387_v54 = vmul.f32 %v5830_v17, %v2386_v46  ;;  %v2424_v34 = vperm.slane %v2412_v2, 0  ;;  %v2442_v52 = vunpack.c.l.bf16 %v5862_v38  ;;  %v2447_v51 = vperm.slane %v2412_v2, 1  ;;  %v4437_v8 = vld [vmem:[#allocation10 + $0x64] sm:$0xf]  ;;  %v4136_v28 = vld [vmem:[#allocation10 + $0x68] sm:$0xf0]  ;;  %vm6114_vm6 = vmmov %vm6113_vm10 }
 0x418   :  { %vm2394_vm0 = vcmp.eq.f32.partialorder %v2393_v37, 8.507059e+37  ;;  %v4167_v23 = vor.u32 %v4446_v55, %v4166_v57  ;;  %v4139_v43 = vor.u32 %v4437_v8, %v4136_v28  ;;  %v4431_v8 = vld [vmem:[#allocation10 + $0x34] sm:$0xf]  ;;  %vm6115_vm15 = vmmov %vm6114_vm6 }
 0x419   :  { %v2388_v18 = vadd.f32 %v5830_v17, %v2387_v54  ;;  %v2426_v46 = vmul.f32 %v2424_v34, %v2418_v14  ;;  %v2428_v9 = vmul.f32 %v2424_v34, %v2420_v35  ;;  %v2430_v1 = vmul.f32 %v2424_v34, %v2422_v50  ;;  %v4434_v35 = vld [vmem:[#allocation10 + $0x44] sm:$0xf0]  ;;  %vm6116_vm1 = vmmov %vm6114_vm6 }
 0x41a   :  { %v2449_v38 = vmul.f32 %v2447_v51, %v2441_v58  ;;  %v2451_v4 = vmul.f32 %v2447_v51, %v2443_v16  ;;  %2969 = vmatpush.bf16.msrb.mxu2 %v4167_v23  ;;  %v2453_v14 = vmul.f32 %v2447_v51, %v2445_v42  ;;  %2988 = vmatpush.bf16.msra.mxu1 %v4139_v43  ;;  %v4168_v58 = vld [vmem:[#allocation10 + $0xa8] sm:$0xf0]  ;;  %v4444_v16 = vld [vmem:[#allocation10 + $0x94] sm:$0xf0]  ;;  %v4102_v51 = vld [vmem:[#allocation10 + $0x20] sm:$0xf] }
 0x41b   :  { %v2392_v60 = vsel %vm5872_vm7, %v5830_v17, %v2388_v18  ;;  %v4436_v17 = vld [vmem:[#allocation10 + $0x54] sm:$0xf0]  ;;  %v4119_v50 = vor.u32 %v4434_v35, %v4118_v7  ;;  %v4171_v41 = vor.u32 %v4445_v62, %v4168_v58  ;;  %v4159_v45 = vor.u32 %v4444_v16, %v4158_v13  ;;  %v4430_v42 = vld [vmem:[#allocation10 + $0x24] sm:$0xf0]  ;;  %v4160_v23 = vld [vmem:[#allocation10 + $0x98] sm:$0xf0] }
 0x41c   :  { %v2397_v47 = vsel %vm2394_vm0, %v2396_v44, %v2392_v60  ;;  %v4127_v27 = vor.u32 %v4436_v17, %v4126_v40  ;;  %v4103_v56 = vor.u32 %v4430_v42, %v4102_v51  ;;  %v4443_v17 = vld [vmem:[#allocation10 + $0x94] sm:$0xf]  ;;  %v4096_v62 = vld [vmem:[#allocation10 + $0x18] sm:$0xf0]  ;;  %v4426_v58 = vld [vmem:[#allocation10 + $0x4] sm:$0xf0] }
 0x41d   :  { %v2423_v59 = vperm.slane %v2397_v47, 0  ;;  %v2446_v21 = vperm.slane %v2397_v47, 1  ;;  %3015 = vmatpush.bf16.msrb.mxu0 %v4171_v41  ;;  %v4425_v16 = vld [vmem:[#allocation10 + $0x4] sm:$0xf] }
 0x41e   :  { %2943 = vmatpush.bf16.msrb.mxu3 %v4127_v27  ;;  %2970 = vmatpush.bf16.msrb.mxu2 %v4159_v45 }
 0x41f   :  { %v2425_v2 = vmul.f32 %v2423_v59, %v2417_v24  ;;  %v2427_v26 = vmul.f32 %v2423_v59, %v2419_v0  ;;  %v2429_v12 = vmul.f32 %v2423_v59, %v2421_v5  ;;  %v2448_v25 = vmul.f32 %v2446_v21, %v2440_v15  ;;  %v4435_v0 = vld [vmem:[#allocation10 + $0x54] sm:$0xf]  ;;  %v4433_v15 = vld [vmem:[#allocation10 + $0x44] sm:$0xf]  ;;  %v4112_v59 = vld [vmem:[#allocation10 + $0x38] sm:$0xf0] }
 0x420   :  { %v2450_v54 = vmul.f32 %v2446_v21, %v2442_v52  ;;  %v2452_v3 = vmul.f32 %v2446_v21, %v2444_v49  ;;  %v4131_v31 = vor.u32 %v4435_v0, %v4128_v61  ;;  %v4120_v52 = vld [vmem:[#allocation10 + $0x48] sm:$0xf0]  ;;  %v4427_v61 = vld [vmem:[#allocation10 + $0x14] sm:$0xf] }
 0x421   :  { %v2431_v37 = vpack.c.bf16 %v2426_v46, %v2425_v2  ;;  %v2432_v44 = vpack.c.bf16 %v2428_v9, %v2427_v26  ;;  %v2433_v30 = vpack.c.bf16 %v2430_v1, %v2429_v12  ;;  %v2454_v34 = vpack.c.bf16 %v2449_v38, %v2448_v25  ;;  %v4104_v0 = vld [vmem:[#allocation10 + $0x28] sm:$0xf0] }
 0x422   :  { %v2455_v53 = vpack.c.bf16 %v2451_v4, %v2450_v54  ;;  %v2456_v24 = vpack.c.bf16 %v2453_v14, %v2452_v3  ;;  %2944 = vmatpush.bf16.msrb.mxu3 %v4119_v50  ;;  %2989 = vmatpush.bf16.msra.mxu1 %v4131_v31  ;;  %v4123_v11 = vor.u32 %v4433_v15, %v4120_v52  ;;  %v4086_v31 = vld [vmem:[#allocation10] sm:$0xf]  ;;  %v4088_v15 = vld [vmem:[#allocation10 + $0x8] sm:$0xf0] }
 0x423   :  { %2434 = vst.msk [vmem:[#allocation5] sm:$0xee] %vm5649_vm8, %v2431_v37  ;;  %v4115_v26 = vor.u32 %v4431_v8, %v4112_v59  ;;  %v4163_v54 = vor.u32 %v4443_v17, %v4160_v23  ;;  %v4099_v41 = vor.u32 %v4427_v61, %v4096_v62  ;;  %v4496_v59 = vld [vmem:[#allocation10 + $0x234] sm:$0xf0]  ;;  %v4487_v23 = vld [vmem:[#allocation10 + $0x1f4] sm:$0xf] }
 0x424   :  { %2435 = vst.msk [vmem:[#allocation5 + $0x8] sm:$0xff] %vm5738_vm12, %v2432_v44  ;;  %v4094_v44 = vld [vmem:[#allocation10 + $0x10] sm:$0xf]  ;;  %v4230_v61 = vld [vmem:[#allocation10 + $0x1d8] sm:$0xf0] }
 0x425   :  { %2436 = vst.msk [vmem:[#allocation5 + $0x10] sm:$0x11] %vm5543_vm3, %v2433_v30  ;;  %3016 = vmatpush.bf16.msrb.mxu0 %v4163_v54  ;;  %v4428_v30 = vld [vmem:[#allocation10 + $0x14] sm:$0xf0]  ;;  %v4485_v54 = vld [vmem:[#allocation10 + $0x1e4] sm:$0xf] }
 0x426   :  { %2457 = vst.msk [vmem:[#allocation5 + $0x10] sm:$0x88] %vm5550_vm4, %v2454_v34  ;;  %2945 = vmatpush.bf16.msrb.mxu3 %v4111_v10  ;;  %2990 = vmatpush.bf16.msra.mxu1 %v4123_v11  ;;  %v4095_v14 = vor.u32 %v4428_v30, %v4094_v44  ;;  %v4150_v34 = vld [vmem:[#allocation10 + $0x80] sm:$0xf]  ;;  %v4493_v62 = vld [vmem:[#allocation10 + $0x224] sm:$0xf] }
 0x427   :  { %2458 = vst.msk [vmem:[#allocation5 + $0x18] sm:$0xff] %vm5738_vm12, %v2455_v53  ;;  %v4442_v53 = vld [vmem:[#allocation10 + $0x84] sm:$0xf0] }
 0x428   :  { %2459 = vst.msk [vmem:[#allocation5 + $0x20] sm:$0x77] %vm5799_vm5, %v2456_v24  ;;  %v4429_v24 = vld [vmem:[#allocation10 + $0x24] sm:$0xf]  ;;  %v4151_v50 = vor.u32 %v4442_v53, %v4150_v34  ;;  %v4220_v53 = vld [vmem:[#allocation10 + $0x1c0] sm:$0xf] }
 0x42a   :  { %v2460_v6 = vld [vmem:[#allocation5] sm:$0xff]  ;;  %2946 = vmatpush.bf16.msrb.mxu3 %v4103_v56  ;;  %2991 = vmatpush.bf16.msra.mxu1 %v4115_v26  ;;  %v4244_v56 = vld [vmem:[#allocation10 + $0x1f0] sm:$0xf] }
 0x42b   :  { %v5907_v18 = vld [vmem:[#allocation5 + $0x8] sm:$0xff]  ;;  %v2520_v29 = vunpack.c.l.b16 %v2460_v6  ;;  %v2521_v5 = vunpack.c.h.b16 %v2460_v6  ;;  %v4107_v6 = vor.u32 %v4429_v24, %v4104_v0  ;;  %2971 = vmatpush.bf16.msrb.mxu2 %v4151_v50  ;;  %v4484_v26 = vld [vmem:[#allocation10 + $0x1d4] sm:$0xf0]  ;;  %v4482_v24 = vld [vmem:[#allocation10 + $0x1c4] sm:$0xf0] }
 0x42c   :  { %v2522_v32 = vunpack.c.l.b16 %v5907_v18  ;;  %v2523_v22 = vunpack.c.h.b16 %v5907_v18  ;;  %v4483_v50 = vld [vmem:[#allocation10 + $0x1d4] sm:$0xf]  ;;  %v4221_v0 = vor.u32 %v4482_v24, %v4220_v53 }
 0x42d   :  { %v3976_v19 = vld [vmem:[#allocation5 + $0x10] sm:$0xf]  ;;  %v4423_v33 = vld [vmem:[#allocation5 + $0x14] sm:$0xf] }
 0x42e   :  { %v4424_v60 = vld [vmem:[#allocation5 + $0x14] sm:$0xf0]  ;;  %v5913_v63 = vpack.c.b16 %v2522_v32, %v2520_v29  ;;  %v3978_v39 = vld [vmem:[#allocation5 + $0x18] sm:$0xf0]  ;;  %v5917_v40 = vpack.c.b16 %v2523_v22, %v2521_v5  ;;  %2947 = vmatpush.bf16.msrb.mxu3 %v4095_v14  ;;  %v4087_v29 = vor.u32 %v4426_v58, %v4086_v31  ;;  %v4152_v5 = vld [vmem:[#allocation10 + $0x88] sm:$0xf0]  ;;  %2992 = vmatpush.bf16.msra.mxu1 %v4107_v6 }
 0x42f   :  { %v5919_v47 = vor.u32 %v4424_v60, %v3976_v19  ;;  %v5921_v48 = vor.u32 %v4423_v33, %v3978_v39  ;;  %v2489_v2 = vld [vmem:[#allocation5 + $0x20] sm:$0xff]  ;;  %v4155_v20 = vor.u32 %v4441_v36, %v4152_v5  ;;  %v4091_v33 = vor.u32 %v4425_v16, %v4088_v15  ;;  %v4270_v6 = vld [vmem:[#allocation10 + $0x228] sm:$0xf0]  ;;  %v4212_v36 = vld [vmem:[#allocation10 + $0x1b0] sm:$0xf] }
 0x430   :  { %v2539_v57 = vshll.u32 %v5913_v63, 16  ;;  %v2551_v55 = vshll.u32 %v5917_v40, 16  ;;  %v2537_v28 = vshrl.u32 %v5913_v63, 16  ;;  %v2549_v9 = vshrl.u32 %v5917_v40, 16  ;;  %v4260_v5 = vld [vmem:[#allocation10 + $0x210] sm:$0xf] }
 0x431   :  { %v2544_v49 = vshll.u32 %v5919_v47, 16  ;;  %v2556_v21 = vshll.u32 %v5921_v48, 16  ;;  %v2528_v4 = vunpack.c.l.b16 %v2489_v2  ;;  %v2529_v37 = vunpack.c.h.b16 %v2489_v2  ;;  %3017 = vmatpush.bf16.msrb.mxu0 %v4155_v20  ;;  %v4228_v2 = vld [vmem:[#allocation10 + $0x1d0] sm:$0xf]  ;;  %v4492_v20 = vld [vmem:[#allocation10 + $0x214] sm:$0xf0] }
 0x432   :  { %v2541_v46 = vrot.slane %v2539_v57, 1  ;;  %v2553_v1 = vrot.slane %v2551_v55, 1  ;;  %2948 = vmatpush.bf16.msrb.mxu3 %v4087_v29  ;;  %v2560_v52 = vshrl.u32 %v5919_v47, 16  ;;  %v2568_v19 = vshrl.u32 %v5921_v48, 16  ;;  %2993 = vmatpush.bf16.msra.mxu1 %v4099_v41  ;;  %v4488_v57 = vld [vmem:[#allocation10 + $0x1f4] sm:$0xf0] }
 0x433   :  { %v2546_v43 = vrot.slane %v2544_v49, 1  ;;  %v2558_v38 = vrot.slane %v2556_v21, 1  ;;  %v5933_v7 = vpack.c.b16 %v2528_v4, %v2528_v4  ;;  %v5935_v35 = vpack.c.b16 %v2529_v37, %v2529_v37  ;;  %v4276_v55 = vld [vmem:[#allocation10 + $0x230] sm:$0xf]  ;;  %v4236_v49 = vld [vmem:[#allocation10 + $0x1e0] sm:$0xf] }
 0x434   :  { %v2542_v12 = vor.u32 %v2541_v46, %v2537_v28  ;;  %v2554_v25 = vor.u32 %v2553_v1, %v2549_v9  ;;  %v4245_v8 = vor.u32 %v4488_v57, %v4244_v56  ;;  %v4486_v21 = vld [vmem:[#allocation10 + $0x1e4] sm:$0xf0]  ;;  %v4277_v17 = vor.u32 %v4496_v59, %v4276_v55  ;;  %v4246_v28 = vld [vmem:[#allocation10 + $0x1f8] sm:$0xf0]  ;;  %v4495_v46 = vld [vmem:[#allocation10 + $0x234] sm:$0xf] }
 0x435   :  { %v2564_v13 = vshll.u32 %v5933_v7, 16  ;;  %v2572_v10 = vshll.u32 %v5935_v35, 16  ;;  %v2562_v45 = vor.u32 %v2560_v52, %v2546_v43  ;;  %v2570_v51 = vor.u32 %v2568_v19, %v2558_v38  ;;  %v4480_v29 = vld [vmem:[#allocation10 + $0x1b4] sm:$0xf0]  ;;  %v4204_v52 = vld [vmem:[#allocation10 + $0x1a0] sm:$0xf] }
 0x436   :  { %v2547_v3 = vsel %vm219_vm14, %v2542_v12, %v2546_v43  ;;  %v2559_v27 = vsel %vm219_vm14, %v2554_v25, %v2558_v38  ;;  %2994 = vmatpush.bf16.msra.mxu1 %v4091_v33  ;;  %v4237_v9 = vor.u32 %v4486_v21, %v4236_v49  ;;  %v4249_v1 = vor.u32 %v4487_v23, %v4246_v28  ;;  %v4278_v43 = vld [vmem:[#allocation10 + $0x238] sm:$0xf0]  ;;  %v4268_v25 = vld [vmem:[#allocation10 + $0x220] sm:$0xf]  ;;  %v4494_v38 = vld [vmem:[#allocation10 + $0x224] sm:$0xf0] }
 0x437   :  { %2722 = vmatmul.bf16.vlgmr.msra.gmra.mxu2 %v2547_v3  ;;  %4078 = vmatmul.msk.bf16.vlgmr.msra.gmra.mxu3 %vm283_vm13, %v2559_v27  ;;  %v2566_v11 = vrot.slane %v2564_v13, 1  ;;  %v2574_v60 = vrot.slane %v2572_v10, 1  ;;  %v4281_v12 = vor.u32 %v4495_v46, %v4278_v43  ;;  %v4229_v37 = vor.u32 %v4484_v26, %v4228_v2  ;;  %v4481_v13 = vld [vmem:[#allocation10 + $0x1c4] sm:$0xf]  ;;  %v4222_v10 = vld [vmem:[#allocation10 + $0x1c8] sm:$0xf0] }
 0x438   :  { %2768 = vmatmul.bf16.vlgmr.msrb.gmra.mxu1 %v2547_v3  ;;  %4081 = vmatmul.msk.bf16.vlgmr.msra.gmra.mxu0 %vm283_vm13, %v2559_v27  ;;  %v4269_v3 = vor.u32 %v4494_v38, %v4268_v25  ;;  %v4238_v27 = vld [vmem:[#allocation10 + $0x1e8] sm:$0xf0]  ;;  %v2576_v44 = vshrl.u32 %v5933_v7, 16  ;;  %v2579_v30 = vshrl.u32 %v5935_v35, 16  ;;  %v4233_v31 = vor.u32 %v4483_v50, %v4230_v61  ;;  %v4478_v19 = vld [vmem:[#allocation10 + $0x1a4] sm:$0xf0] }
 0x439   :  { %v2567_v39 = vsel %vm219_vm14, %v2562_v45, %v2566_v11  ;;  %v2575_v42 = vsel %vm219_vm14, %v2570_v51, %v2574_v60  ;;  %3206 = vmatpush.bf16.msra.mxu3 %v4245_v8  ;;  %3233 = vmatpush.bf16.msra.mxu2 %v4277_v17  ;;  %v4241_v4 = vor.u32 %v4485_v54, %v4238_v27  ;;  %v4479_v33 = vld [vmem:[#allocation10 + $0x1b4] sm:$0xf]  ;;  %v4214_v45 = vld [vmem:[#allocation10 + $0x1b8] sm:$0xf0]  ;;  %v4196_v56 = vld [vmem:[#allocation10 + $0x190] sm:$0xf] }
 0x43a   :  { %3252 = vmatpush.bf16.msrb.mxu1 %v4249_v1  ;;  %3279 = vmatpush.bf16.msra.mxu0 %v4281_v12  ;;  %v2578_v14 = vor.u32 %v2576_v44, %v2566_v11  ;;  %v2581_v34 = vor.u32 %v2579_v30, %v2574_v60  ;;  %v4273_v58 = vor.u32 %v4493_v62, %v4270_v6  ;;  %v4491_v11 = vld [vmem:[#allocation10 + $0x214] sm:$0xf]  ;;  %v4262_v51 = vld [vmem:[#allocation10 + $0x218] sm:$0xf0]  ;;  %v4476_v57 = vld [vmem:[#allocation10 + $0x194] sm:$0xf0] }
 0x43b   :  { %v4213_v41 = vor.u32 %v4480_v29, %v4212_v36  ;;  %v4261_v16 = vor.u32 %v4492_v20, %v4260_v5  ;;  %v4225_v15 = vor.u32 %v4481_v13, %v4222_v10  ;;  %v4265_v60 = vor.u32 %v4491_v11, %v4262_v51  ;;  %v4252_v55 = vld [vmem:[#allocation10 + $0x200] sm:$0xf]  ;;  %v4490_v59 = vld [vmem:[#allocation10 + $0x204] sm:$0xf0]  ;;  %v4477_v49 = vld [vmem:[#allocation10 + $0x1a4] sm:$0xf] }
 0x43c   :  { %v4197_v8 = vor.u32 %v4476_v57, %v4196_v56  ;;  %v4206_v21 = vld [vmem:[#allocation10 + $0x1a8] sm:$0xf0]  ;;  %v4253_v17 = vor.u32 %v4490_v59, %v4252_v55  ;;  %v4475_v28 = vld [vmem:[#allocation10 + $0x194] sm:$0xf]  ;;  %v4198_v46 = vld [vmem:[#allocation10 + $0x198] sm:$0xf0] }
 0x43d   :  { %3207 = vmatpush.bf16.msra.mxu3 %v4237_v9  ;;  %3234 = vmatpush.bf16.msra.mxu2 %v4269_v3  ;;  %v4209_v23 = vor.u32 %v4477_v49, %v4206_v21  ;;  %v4188_v9 = vld [vmem:[#allocation10 + $0x180] sm:$0xf]  ;;  %v4474_v1 = vld [vmem:[#allocation10 + $0x184] sm:$0xf0]  ;;  %v4489_v43 = vld [vmem:[#allocation10 + $0x204] sm:$0xf] }
 0x43e   :  { %3253 = vmatpush.bf16.msrb.mxu1 %v4241_v4  ;;  %3280 = vmatpush.bf16.msra.mxu0 %v4273_v58  ;;  %v4254_v2 = vld [vmem:[#allocation10 + $0x208] sm:$0xf0]  ;;  %v4473_v12 = vld [vmem:[#allocation10 + $0x184] sm:$0xf]  ;;  %v2464_v54 = vld [vmem:[#allocation5 + $0x20] sm:$0x77] }
 0x43f   :  { %v4257_v26 = vor.u32 %v4489_v43, %v4254_v2  ;;  %v4190_v25 = vld [vmem:[#allocation10 + $0x188] sm:$0xf0]  ;;  %v2807_v3 = vunpack.c.l.b16 %v2464_v54  ;;  %v2808_v27 = vunpack.c.h.b16 %v2464_v54  ;;  %v3033_v44 = vld [vmem:[#allocation5] sm:$0xee]  ;;  %v3068_v61 = vrot.slane %v5921_v48, 1 }
 0x440   :  { %v4193_v38 = vor.u32 %v4473_v12, %v4190_v25  ;;  %v3060_v30 = vunpack.c.l.b16 %v3033_v44  ;;  %vm6105_vm14 = vcmask 1046528   ;;  %v3072_v18 = vrot.slane %v5935_v35, 1 }
 0x441   :  { %3208 = vmatpush.bf16.msra.mxu3 %v4229_v37  ;;  %3235 = vmatpush.bf16.msra.mxu2 %v4261_v16  ;;  %v2809_v4 = vpack.c.b16 %v2807_v3, %v2807_v3  ;;  %v2810_v37 = vpack.c.b16 %v2808_v27, %v2808_v27  ;;  %vm6106_vm3 = vmmov %vm6105_vm14 }
 0x442   :  { %3254 = vmatpush.bf16.msrb.mxu1 %v4233_v31  ;;  %3281 = vmatpush.bf16.msra.mxu0 %v4265_v60  ;;  %vm6107_vm4 = vmmov %vm6106_vm3 }
 0x443   :  { %vm6108_vm8 = vmmov %vm6106_vm3 }
 0x444   :  { %vm6109_vm12 = vmmov %vm6106_vm3 }
 0x445   :  { %3209 = vmatpush.bf16.msra.mxu3 %v4221_v0  ;;  %3236 = vmatpush.bf16.msra.mxu2 %v4253_v17  ;;  %v3065_v0 = vrot.slane %v5919_v47, 1  ;;  %vm6110_vm5 = vmmov %vm6106_vm3 }
 0x446   :  { %3255 = vmatpush.bf16.msrb.mxu1 %v4225_v15  ;;  %3282 = vmatpush.bf16.msra.mxu0 %v4257_v26  ;;  %vm6111_vm2 = vmmov %vm6106_vm3 }
 0x447   :  { %2727 = vmatmul.bf16.gmra.mxu2 %v2567_v39  ;;  %4079 = vmatmul.msk.bf16.gmra.mxu3 %vm283_vm13, %v2575_v42  ;;  %vm6112_vm9 = vmmov %vm6111_vm2 }
 0x448   :  { %2773 = vmatmul.bf16.gmra.mxu1 %v2567_v39  ;;  %4082 = vmatmul.msk.bf16.gmra.mxu0 %vm283_vm13, %v2575_v42  ;;  %v4205_v39 = vor.u32 %v4478_v19, %v4204_v52  ;;  %v4217_v42 = vor.u32 %v4479_v33, %v4214_v45 }
 0x449   :  { %3210 = vmatpush.bf16.msra.mxu3 %v4213_v41 }
 0x44a   :  { %3256 = vmatpush.bf16.msrb.mxu1 %v4217_v42 }
 0x44d   :  { %3211 = vmatpush.bf16.msra.mxu3 %v4205_v39 }
 0x44e   :  { %3257 = vmatpush.bf16.msrb.mxu1 %v4209_v23 }
 0x451   :  { %3212 = vmatpush.bf16.msra.mxu3 %v4197_v8 }
 0x457   :  { %2732 = vmatmul.bf16.gmra.mxu2 %v2578_v14  ;;  %4080 = vmatmul.msk.bf16.gmra.mxu3 %vm283_vm13, %v2581_v34 }
 0x458   :  { %2778 = vmatmul.bf16.gmra.mxu1 %v2578_v14  ;;  %4083 = vmatmul.msk.bf16.gmra.mxu0 %vm283_vm13, %v2581_v34  ;;  %v3061_v14 = vunpack.c.h.b16 %v3033_v44  ;;  %v3062_v34 = vpack.c.b16 %v2522_v32, %v3060_v30  ;;  %v3070_v32 = vrot.slane %v5933_v7, 1 }
 0x45a   :  { %v3063_v53 = vpack.c.b16 %v2523_v22, %v3061_v14  ;;  %v3064_v24 = vrot.slane %v3062_v34, 1  ;;  %v3071_v22 = vsel %vm6107_vm4, %v3065_v0, %v3070_v32 }
 0x45c   :  { %v3067_v50 = vrot.slane %v3063_v53, 1  ;;  %v3066_v62 = vsel %vm6105_vm14, %v3064_v24, %v3065_v0 }
 0x45e   :  { %v3069_v6 = vsel %vm6106_vm3, %v3067_v50, %v3068_v61 }
 0x467   :  { %2949 = vmatmul.bf16.vlgmr.msrb.gmra.mxu3 %v5913_v63  ;;  %4180 = vmatmul.msk.bf16.vlgmr.msrb.gmra.mxu2 %vm283_vm13, %v5917_v40 }
 0x468   :  { %2995 = vmatmul.bf16.vlgmr.msra.gmra.mxu1 %v5913_v63  ;;  %4183 = vmatmul.msk.bf16.vlgmr.msrb.gmra.mxu0 %vm283_vm13, %v5917_v40  ;;  %v4201_v63 = vor.u32 %v4475_v28, %v4198_v46  ;;  %v4189_v40 = vor.u32 %v4474_v1, %v4188_v9 }
 0x46a   :  { %3213 = vmatpush.bf16.msra.mxu3 %v4189_v40  ;;  %3258 = vmatpush.bf16.msrb.mxu1 %v4201_v63 }
 0x46e   :  { %3259 = vmatpush.bf16.msrb.mxu1 %v4193_v38 }
 0x477   :  { %2954 = vmatmul.bf16.gmra.mxu3 %v5919_v47  ;;  %4181 = vmatmul.msk.bf16.gmra.mxu2 %vm283_vm13, %v5921_v48 }
 0x478   :  { %3000 = vmatmul.bf16.gmra.mxu1 %v5919_v47  ;;  %4184 = vmatmul.msk.bf16.gmra.mxu0 %vm283_vm13, %v5921_v48  ;;  %v3073_v47 = vsel %vm6108_vm8, %v3068_v61, %v3072_v18 }
 0x487   :  { %2959 = vmatmul.bf16.gmra.mxu3 %v2809_v4  ;;  %4182 = vmatmul.msk.bf16.gmra.mxu2 %vm283_vm13, %v2810_v37 }
 0x488   :  { %3005 = vmatmul.bf16.gmra.mxu1 %v2809_v4  ;;  %4185 = vmatmul.msk.bf16.gmra.mxu0 %vm283_vm13, %v2810_v37 }
 0x497   :  { %3214 = vmatmul.bf16.vlgmr.msra.gmra.mxu3 %v3066_v62  ;;  %4282 = vmatmul.msk.bf16.vlgmr.msra.gmra.mxu2 %vm283_vm13, %v3069_v6 }
 0x498   :  { %3260 = vmatmul.bf16.vlgmr.msrb.gmra.mxu1 %v3066_v62  ;;  %4285 = vmatmul.msk.bf16.vlgmr.msra.gmra.mxu0 %vm283_vm13, %v3069_v6 }
 0x4a7   :  { %3219 = vmatmul.bf16.gmra.mxu3 %v3071_v22  ;;  %4283 = vmatmul.msk.bf16.gmra.mxu2 %vm283_vm13, %v3073_v47 }
 0x4a8   :  { %3265 = vmatmul.bf16.gmra.mxu1 %v3071_v22  ;;  %4286 = vmatmul.msk.bf16.gmra.mxu0 %vm283_vm13, %v3073_v47  ;;  %v3309_v22 = vld [vmem:[#allocation11 + $0x12] ss:$8 sm:$0x3] }
 0x4b5   :  { %v2769_v48 = vpop.f32.mrf.mxu1  ;;  %v2792_v31 = vpop.f32.mrf.mxu0 }
 0x4b6   :  { %v2793_v58 = vadd.f32 %v2792_v31, %v2769_v48 }
 0x4b7   :  { %3224 = vmatmul.bf16.gmra.mxu3 %v3070_v32  ;;  %4284 = vmatmul.msk.bf16.gmra.mxu2 %vm283_vm13, %v3072_v18 }
 0x4b8   :  { %3270 = vmatmul.bf16.gmra.mxu1 %v3070_v32  ;;  %4287 = vmatmul.msk.bf16.gmra.mxu0 %vm283_vm13, %v3072_v18 }
 0x4ba   :  { %v2723_v7 = vpop.f32.mrf.mxu2  ;;  %v2746_v35 = vpop.f32.mrf.mxu3 }
 0x4bb   :  { %v2747_v36 = vadd.f32 %v2746_v35, %v2723_v7 }
 0x4bd   :  { %v2771_v29 = vpop.f32.mrf.mxu1  ;;  %v2794_v5 = vpop.f32.mrf.mxu0 }
 0x4be   :  { %v2795_v41 = vadd.f32 %v2794_v5, %v2771_v29  ;;  %v6009_v5 = vperm.slane %v3309_v22, 1 }
 0x4c2   :  { %v2725_v20 = vpop.f32.mrf.mxu2  ;;  %v2748_v13 = vpop.f32.mrf.mxu3 }
 0x4c3   :  { %v5981_v10 = vadd.f32 %v2748_v13, %v2725_v20 }
 0x4c5   :  { %v2774_v16 = vpop.f32.mrf.mxu1  ;;  %v2797_v15 = vpop.f32.mrf.mxu0 }
 0x4c6   :  { %v5983_v52 = vadd.f32 %v2797_v15, %v2774_v16 }
 0x4ca   :  { %v2728_v19 = vpop.f32.mrf.mxu2  ;;  %v2751_v33 = vpop.f32.mrf.mxu3 }
 0x4cb   :  { %v5985_v45 = vadd.f32 %v2751_v33, %v2728_v19 }
 0x4cd   :  { %v2776_v11 = vpop.f32.mrf.mxu1  ;;  %v2799_v51 = vpop.f32.mrf.mxu0 }
 0x4ce   :  { %v5987_v60 = vadd.f32 %v2799_v51, %v2776_v11 }
 0x4d2   :  { %v2730_v39 = vpop.f32.mrf.mxu2  ;;  %v2753_v42 = vpop.f32.mrf.mxu3 }
 0x4d3   :  { %v5989_v56 = vadd.f32 %v2753_v42, %v2730_v39  ;;  %v6013_v42 = vperm.slane %v3309_v22, 0 }
 0x4d5   :  { %v2779_v57 = vpop.f32.mrf.mxu1  ;;  %v2802_v55 = vpop.f32.mrf.mxu0 }
 0x4d6   :  { %v5991_v8 = vadd.f32 %v2802_v55, %v2779_v57 }
 0x4da   :  { %v2733_v59 = vpop.f32.mrf.mxu2  ;;  %v2756_v49 = vpop.f32.mrf.mxu3 }
 0x4db   :  { %v5993_v21 = vadd.f32 %v2756_v49, %v2733_v59 }
 0x4dd   :  { %v2781_v17 = vpop.f32.mrf.mxu1  ;;  %v2804_v23 = vpop.f32.mrf.mxu0 }
 0x4e2   :  { %v2735_v28 = vpop.f32.mrf.mxu2  ;;  %v2758_v46 = vpop.f32.mrf.mxu3 }
 0x4e5   :  { %v2996_v9 = vpop.f32.mrf.mxu1  ;;  %v3019_v1 = vpop.f32.mrf.mxu0 }
 0x4e6   :  { %v2997_v32 = vadd.f32 %v2996_v9, %v2793_v58 }
 0x4e8   :  { %v3020_v47 = vadd.f32 %v3019_v1, %v2997_v32 }
 0x4ea   :  { %v2950_v43 = vpop.f32.mrf.mxu3  ;;  %v2973_v2 = vpop.f32.mrf.mxu2 }
 0x4eb   :  { %v2951_v35 = vadd.f32 %v2950_v43, %v2747_v36 }
 0x4ed   :  { %v2998_v63 = vpop.f32.mrf.mxu1  ;;  %v3021_v40 = vpop.f32.mrf.mxu0  ;;  %v2974_v33 = vadd.f32 %v2973_v2, %v2951_v35 }
 0x4ee   :  { %v2999_v48 = vadd.f32 %v2998_v63, %v2795_v41 }
 0x4f0   :  { %v3022_v15 = vadd.f32 %v3021_v40, %v2999_v48 }
 0x4f2   :  { %v2952_v26 = vpop.f32.mrf.mxu3  ;;  %v2975_v12 = vpop.f32.mrf.mxu2 }
 0x4f3   :  { %v2953_v11 = vadd.f32 %v2952_v26, %v5981_v10 }
 0x4f5   :  { %v3001_v25 = vpop.f32.mrf.mxu1  ;;  %v3024_v38 = vpop.f32.mrf.mxu0  ;;  %v2976_v59 = vadd.f32 %v2975_v12, %v2953_v11 }
 0x4f6   :  { %v3002_v41 = vadd.f32 %v3001_v25, %v5983_v52 }
 0x4f8   :  { %v3025_v1 = vadd.f32 %v3024_v38, %v3002_v41 }
 0x4fa   :  { %v2955_v54 = vpop.f32.mrf.mxu3  ;;  %v2978_v3 = vpop.f32.mrf.mxu2 }
 0x4fb   :  { %v2956_v63 = vadd.f32 %v2955_v54, %v5985_v45 }
 0x4fd   :  { %v3003_v27 = vpop.f32.mrf.mxu1  ;;  %v5995_v4 = vpop.f32.mrf.mxu0 }
 0x4fe   :  { %v3004_v25 = vadd.f32 %v3003_v27, %v5987_v60 }
 0x502   :  { %v5997_v37 = vpop.f32.mrf.mxu3  ;;  %v5999_v44 = vpop.f32.mrf.mxu2 }
 0x503   :  { %v2958_v22 = vadd.f32 %v5997_v37, %v5989_v56 }
 0x505   :  { %v6001_v30 = vpop.f32.mrf.mxu1  ;;  %v6003_v14 = vpop.f32.mrf.mxu0 }
 0x50a   :  { %v6005_v34 = vpop.f32.mrf.mxu3  ;;  %v6007_v53 = vpop.f32.mrf.mxu2 }
 0x50d   :  { %v3008_v24 = vpop.f32.mrf.mxu1  ;;  %v3031_v50 = vpop.f32.mrf.mxu0 }
 0x512   :  { %v2962_v0 = vpop.f32.mrf.mxu3  ;;  %v2985_v61 = vpop.f32.mrf.mxu2 }
 0x513   :  { %v2979_v0 = vadd.f32 %v2978_v3, %v2956_v63 }
 0x515   :  { %v3261_v62 = vpop.f32.mrf.mxu1  ;;  %v3284_v6 = vpop.f32.mrf.mxu0 }
 0x516   :  { %v3285_v18 = vadd.f32 %v3284_v6, %v3261_v62 }
 0x518   :  { %v3299_v29 = vadd.f32 %v3285_v18, %v3020_v47  ;;  %v3027_v18 = vadd.f32 %v5995_v4, %v3004_v25 }
 0x51a   :  { %v3215_v31 = vpop.f32.mrf.mxu3  ;;  %v3238_v7 = vpop.f32.mrf.mxu2  ;;  %v3316_v58 = vadd.f32 %v6009_v5, %v3299_v29  ;;  %v2981_v29 = vadd.f32 %v5999_v44, %v2958_v22  ;;  %v2961_v44 = vadd.f32 %v6005_v34, %v5993_v21 }
 0x51b   :  { %v3239_v20 = vadd.f32 %v3238_v7, %v3215_v31  ;;  %v3007_v31 = vadd.f32 %v6001_v30, %v5991_v8 }
 0x51c   :  { %v3330_v17 = vrot.slane %v3316_v58, 1 }
 0x51d   :  { %v3263_v13 = vpop.f32.mrf.mxu1  ;;  %v3286_v16 = vpop.f32.mrf.mxu0  ;;  %v3298_v39 = vadd.f32 %v3239_v20, %v2974_v33  ;;  %v3030_v8 = vadd.f32 %v6003_v14, %v3007_v31 }
 0x51e   :  { %v3287_v19 = vadd.f32 %v3286_v16, %v3263_v13 }
 0x51f   :  { %v3315_v28 = vadd.f32 %v6013_v42, %v3298_v39 }
 0x520   :  { %v3301_v51 = vadd.f32 %v3287_v19, %v3022_v15 }
 0x521   :  { %v3327_v26 = vrot.slane %v3315_v28, 1 }
 0x522   :  { %v3318_v36 = vadd.f32 %v6009_v5, %v3301_v51  ;;  %v3217_v57 = vpop.f32.mrf.mxu3  ;;  %v3240_v55 = vpop.f32.mrf.mxu2 }
 0x523   :  { %v3241_v49 = vadd.f32 %v3240_v55, %v3217_v57  ;;  %v2984_v57 = vadd.f32 %v6007_v53, %v2961_v44 }
 0x524   :  { %v3331_v23 = vrot.slane %v3318_v36, 1 }
 0x525   :  { %v3300_v46 = vadd.f32 %v3241_v49, %v2976_v59  ;;  %v3266_v10 = vpop.f32.mrf.mxu1  ;;  %v3289_v9 = vpop.f32.mrf.mxu0 }
 0x526   :  { %v3332_v43 = vsel %vm6109_vm12, %v3330_v17, %v3331_v23  ;;  %v3290_v2 = vadd.f32 %v3289_v9, %v3266_v10 }
 0x527   :  { %3342 = vst.msk [vmem:[%s6082_s9 + $0x8] sm:$0xff] %vm283_vm13, %v3332_v43  ;;  %v3317_v52 = vadd.f32 %v6013_v42, %v3300_v46 }
 0x528   :  { %v3303_v40 = vadd.f32 %v3290_v2, %v3025_v1 }
 0x529   :  { %v3328_v12 = vrot.slane %v3317_v52, 1 }
 0x52a   :  { %v3320_v24 = vadd.f32 %v6009_v5, %v3303_v40  ;;  %v3220_v38 = vpop.f32.mrf.mxu3  ;;  %v3243_v50 = vpop.f32.mrf.mxu2 }
 0x52b   :  { %v3329_v61 = vsel %vm6110_vm5, %v3327_v26, %v3328_v12  ;;  %v3244_v45 = vadd.f32 %v3243_v50, %v3220_v38 }
 0x52c   :  { %3341 = vst [vmem:[%s6082_s9] sm:$0xff] %v3329_v61  ;;  %v3335_v54 = vrot.slane %v3320_v24, 1  ;;  %v3356_v20 = vrot.slane %v3320_v24, 5 }
 0x52d   :  { %v3302_v62 = vadd.f32 %v3244_v45, %v2979_v0  ;;  %v3268_v6 = vpop.f32.mrf.mxu1  ;;  %v3291_v32 = vpop.f32.mrf.mxu0 }
 0x52e   :  { %v3336_v60 = vsel %vm6111_vm2, %v3331_v23, %v3335_v54  ;;  %v3292_v27 = vadd.f32 %v3291_v32, %v3268_v6 }
 0x52f   :  { %3344 = vst.msk [vmem:[%s6082_s9 + $0x18] sm:$0xff] %vm283_vm13, %v3336_v60  ;;  %v3319_v3 = vadd.f32 %v6013_v42, %v3302_v62 }
 0x530   :  { %v3305_v47 = vadd.f32 %v3292_v27, %v3027_v18 }
 0x531   :  { %v3333_v48 = vrot.slane %v3319_v3, 1  ;;  %v3353_v51 = vrot.slane %v3319_v3, 5 }
 0x532   :  { %v3346_v4 = vadd.f32 %v6009_v5, %v3305_v47  ;;  %v3222_v7 = vpop.f32.mrf.mxu3  ;;  %v3245_v35 = vpop.f32.mrf.mxu2 }
 0x533   :  { %v3334_v56 = vsel %vm6112_vm9, %v3328_v12, %v3333_v48  ;;  %v3246_v37 = vadd.f32 %v3245_v35, %v3222_v7 }
 0x534   :  { %3343 = vst [vmem:[%s6082_s9 + $0x10] sm:$0xff] %v3334_v56  ;;  %v3357_v13 = vrot.slane %v3346_v4, 5 }
 0x535   :  { %v3304_v16 = vadd.f32 %v3246_v37, %v2981_v29  ;;  %v3271_v15 = vpop.f32.mrf.mxu1  ;;  %v3294_v19 = vpop.f32.mrf.mxu0 }
 0x536   :  { %v3358_v30 = vsel %vm6113_vm10, %v3356_v20, %v3357_v13  ;;  %v3295_v33 = vadd.f32 %v3294_v19, %v3271_v15 }
 0x537   :  { %4289 = vst.msk [vmem:[%s6082_s9 + $0x28] sm:$0xff] %vm283_vm13, %v3358_v30  ;;  %v3345_v11 = vadd.f32 %v6013_v42, %v3304_v16 }
 0x538   :  { %v3307_v58 = vadd.f32 %v3295_v33, %v3030_v8 }
 0x539   :  { %v3354_v39 = vrot.slane %v3345_v11, 5 }
 0x53a   :  { %v3348_v41 = vadd.f32 %v6009_v5, %v3307_v58  ;;  %v3225_v36 = vpop.f32.mrf.mxu3  ;;  %v3248_v14 = vpop.f32.mrf.mxu2 }
 0x53b   :  { %v3355_v55 = vsel %vm6114_vm6, %v3353_v51, %v3354_v39  ;;  %v3249_v59 = vadd.f32 %v3248_v14, %v3225_v36 }
 0x53c   :  { %4288 = vst [vmem:[%s6082_s9 + $0x20] sm:$0xff] %v3355_v55  ;;  %v3361_v21 = vrot.slane %v3348_v41, 5 }
 0x53d   :  { %v3306_v34 = vadd.f32 %v3249_v59, %v2984_v57  ;;  %v3273_v49 = vpop.f32.mrf.mxu1  ;;  %v3296_v17 = vpop.f32.mrf.mxu0 }
 0x53e   :  { %v3362_v23 = vsel %vm6115_vm15, %v3357_v13, %v3361_v21 }
 0x53f   :  { %4291 = vst.msk [vmem:[%s6082_s9 + $0x38] sm:$0xff] %vm283_vm13, %v3362_v23  ;;  %v3347_v53 = vadd.f32 %v6013_v42, %v3306_v34 }
 0x541   :  { %v3359_v5 = vrot.slane %v3347_v53, 5 }
 0x542   :  { %v3227_v28 = vpop.f32.mrf.mxu3  ;;  %v3250_v46 = vpop.f32.mrf.mxu2 }
 0x543   :  { %v3360_v10 = vsel %vm6116_vm1, %v3354_v39, %v3359_v5 }
 0x544   :  { %4290 = vst [vmem:[%s6082_s9 + $0x30] sm:$0xff] %v3360_v10 }
 0x545   :  { %3376 = vsyncpa [#allocation7], 1 }
 0x546   :  { %3377 = vsyncpa [#allocation9], 1 }
 0x547   :  { %3378 = vsyncpa [#allocation12], 1 }

// kernel: _lambda_.1
= control target key start
LH: loop header
LB: loop body
LE: loop exit
PB: predicated region body
PF: predicated region fallthrough
CT: control target
= control target key end

     0   :  { %14 = vsyncpa [#allocation7], 0  ;;  %s6073_s0 = inlined_call_operand.vmem [shape: f32[2,16,64], index: 0, kind: input, shape index: {}]   ;;  %s6074_s1 = inlined_call_operand.hbm [shape: bf16[5,64,256], index: 1, kind: input, shape index: {}]   ;;  %s6075_s2 = inlined_call_operand.hbm [shape: bf16[3,128,128], index: 2, kind: input, shape index: {}]   ;;  %s6076_s3 = inlined_call_operand.vmem [shape: bf16[3,128,192], index: 3, kind: input, shape index: {}]   ;;  %s6077_s4 = inlined_call_operand.vmem [shape: bf16[128,192], index: 4, kind: input, shape index: {}]   ;;  %s6078_s5 = inlined_call_operand.hbm [shape: bf16[3,192,192], index: 5, kind: input, shape index: {}]   ;;  %s6079_s6 = inlined_call_operand.hbm [shape: f32[11,256], index: 6, kind: input, shape index: {}]   ;;  %s6080_s7 = inlined_call_operand.vmem [shape: f32[192,12], index: 7, kind: input, shape index: {}]   ;;  %s6081_s8 = inlined_call_operand.hbm [shape: f32[12,192], index: 8, kind: input, shape index: {}]   ;;  %s6082_s9 = inlined_call_operand.vmem [shape: f32[2,16,192], index: 9, kind: output, shape index: {}]  }
   0x1   :  { %15 = vsyncpa [#allocation9], 0  ;;  %s36_s11 = sshll.u32 %s6075_s2, 4  ;;  %s37_s11 = int_to_ptr.hbm [resolvable:$true] %s36_s11 }
   0x2   :  { %16 = vsyncpa [#allocation12], 0  ;;  %s4679_s12 = smov [#allocation8]   ;;  %s66_s16 = sshll.u32 %s6079_s6, 4  ;;  %s67_s16 = int_to_ptr.hbm [resolvable:$true] %s66_s16 }
   0x3   :  { %s38_s13 = sshll.u32 %s4679_s12, 4  ;;  %s4680_s17 = smov 64   ;;  %s39_s13 = int_to_ptr.vmem [resolvable:$true] %s38_s13 }
   0x4   :  { %s4681_s18 = smov 4   ;;  %s4682_s19 = smov [#allocation11]  }
   0x5   :  { %44 = dma.hbm_to_vmem [thread:$0]  %s37_s11, 3072, %s39_s13, [#allocation9], %s4680_s17, %s4680_s17, %s4681_s18  }
   0x6   :  { %s68_s20 = sshll.u32 %s4682_s19, 4  ;;  %s4683_s21 = smov 256   ;;  %s69_s20 = int_to_ptr.vmem [resolvable:$true] %s68_s20 }
   0x7   :  { %s4684_s22 = smov 16   ;;  %s23_s24 = sshll.u32 %s6074_s1, 4  ;;  %s24_s24 = int_to_ptr.hbm [resolvable:$true] %s23_s24 }
   0x8   :  { %74 = dma.hbm_to_vmem [thread:$0]  %s67_s16, 512, %s69_s20, [#allocation12], %s4683_s21, %s4683_s21, %s4684_s22  }
   0x9   :  { %s4685_s25 = smov [#allocation6]   ;;  %s53_s28 = sshll.u32 %s6078_s5, 4  ;;  %s54_s28 = int_to_ptr.hbm [resolvable:$true] %s53_s28 }
   0xa   :  { %s25_s26 = sshll.u32 %s4685_s25, 4  ;;  %s4686_s29 = smov 128   ;;  %s26_s26 = int_to_ptr.vmem [resolvable:$true] %s25_s26 }
   0xb   :  { %s4687_s30 = smov 8   ;;  %s4688_s10 = smov [#allocation10]  }
   0xc   :  { %31 = dma.hbm_to_vmem [thread:$0]  %s24_s24, 5120, %s26_s26, [#allocation7], %s4686_s29, %s4686_s29, %s4687_s30  }
   0xd   :  { %s55_s11 = sshll.u32 %s4688_s10, 4  ;;  %s81_s14 = sshll.u32 %s6081_s8, 4  ;;  %s56_s11 = int_to_ptr.vmem [resolvable:$true] %s55_s11  ;;  %s82_s14 = int_to_ptr.hbm [resolvable:$true] %s81_s14 }
   0xe   :  { %61 = dma.hbm_to_vmem [thread:$0]  %s54_s28, 9216, %s56_s11, [#allocation9], %s4686_s29, %s4686_s29, %s4687_s30  }
   0xf   :  { %s4689_s1 = smov [#allocation13]  }
  0x10   :  { %s83_s15 = sshll.u32 %s4689_s1, 4  ;;  %s84_s15 = int_to_ptr.vmem [resolvable:$true] %s83_s15 }
  0x11   :  { %89 = dma.hbm_to_vmem [thread:$0]  %s82_s14, 512, %s84_s15, [#allocation12], %s4683_s21, %s4683_s21, %s4684_s22  }
  0x12   :  { %4673 = dma.done.wait [#allocation7], 5120  }
  0x13   :  { %4674 = vsyncadd [#allocation7], 4294962176 }
  0x14   :  { %4675 = dma.done.wait [#allocation9], 12288  }
  0x15   :  { %4676 = vsyncadd [#allocation9], 4294955008 }
  0x16   :  { %4677 = dma.done.wait [#allocation12], 1024  }
  0x17   :  { %4678 = vsyncadd [#allocation12], 4294966272  ;;  %vm111_vm0 = vcmask 516096   ;;  %v4690_v0 = vmov 0   ;;  %vm149_vm1 = vcmask 519171   ;;  %vm117_vm2 = vcmask 1040384  }
  0x18   :  { %112 = vst.msk [vmem:[#allocation2] sm:$0x1] %vm111_vm0, %v4690_v0  ;;  %v3449_v1 = vld [vmem:[#allocation6 + $0x30] sm:$0xf]  ;;  %v4300_v2 = vld [vmem:[#allocation6 + $0x34] sm:$0xf0] }
  0x19   :  { %115 = vst [vmem:[#allocation3] sm:$0x1] %v4690_v0  ;;  %v3441_v3 = vld [vmem:[#allocation6 + $0x20] sm:$0xf]  ;;  %v3450_v4 = vor.u32 %v4300_v2, %v3449_v1  ;;  %v4298_v5 = vld [vmem:[#allocation6 + $0x24] sm:$0xf0] }
  0x1a   :  { %116 = vst [vmem:[#allocation3 + $0x8] sm:$0x2] %v4690_v0  ;;  %v3411_v6 = vld [vmem:[#allocation6 + $0x70] sm:$0xf]  ;;  %v4308_v7 = vld [vmem:[#allocation6 + $0x74] sm:$0xf0]  ;;  %v3442_v10 = vor.u32 %v4298_v5, %v3441_v3 }
  0x1b   :  { %150 = vst.msk [vmem:[#allocation2 + $0x10] sm:$0x8] %vm149_vm1, %v4690_v0  ;;  %v3412_v8 = vor.u32 %v4308_v7, %v3411_v6  ;;  %v3403_v9 = vld [vmem:[#allocation6 + $0x60] sm:$0xf]  ;;  %vm132_vm3 = vcmask 1044484   ;;  %vm113_vm4 = vcmask 517121   ;;  %393 = vmatpush.bf16.msra.mxu2 %v3450_v4 }
  0x1c   :  { %151 = vst [vmem:[#allocation3 + $0x8] sm:$0x4] %v4690_v0  ;;  %vm147_vm5 = vcmask 518146   ;;  %v3433_v11 = vld [vmem:[#allocation6 + $0x10] sm:$0xf]  ;;  %v125_v17 = vld [vmem:[%s6073_s0] sm:$0xff]  ;;  %vm4783_vm9 = vmor %vm117_vm2, %vm132_vm3 }
  0x1d   :  { %152 = vst [vmem:[#allocation3 + $0x10] sm:$0x8] %v4690_v0  ;;  %v4296_v12 = vld [vmem:[#allocation6 + $0x14] sm:$0xf0]  ;;  %v4306_v13 = vld [vmem:[#allocation6 + $0x64] sm:$0xf0]  ;;  %297 = vmatpush.bf16.msra.mxu0 %v3412_v8  ;;  %v127_v19 = vpack.c.bf16 %v125_v17, %v125_v17 }
  0x1e   :  { %v3404_v14 = vor.u32 %v4306_v13, %v3403_v9  ;;  %v3395_v15 = vld [vmem:[#allocation6 + $0x50] sm:$0xf]  ;;  %v4304_v16 = vld [vmem:[#allocation6 + $0x54] sm:$0xf0]  ;;  %vm142_vm6 = vcmask 519169   ;;  %v126_v18 = vld [vmem:[%s6073_s0 + $0x8] sm:$0xff]  ;;  %v3434_v26 = vor.u32 %v4296_v12, %v3433_v11 }
  0x1f   :  { %v3379_v20 = vld [vmem:[%s6073_s0 + $0x10] sm:$0xff]  ;;  %v3380_v21 = vld [vmem:[%s6073_s0 + $0x18] sm:$0xff]  ;;  %vm6083_vm7 = vcmask 1042432   ;;  %114 = vst.msk [vmem:[#allocation2 + $0x8] sm:$0x2] %vm113_vm4, %v4690_v0  ;;  %v128_v23 = vpack.c.bf16 %v126_v18, %v126_v18  ;;  %vm169_vm8 = vcmask 1046532   ;;  %394 = vmatpush.bf16.msra.mxu2 %v3442_v10  ;;  %v3396_v30 = vor.u32 %v4304_v16, %v3395_v15 }
  0x20   :  { %v3425_v22 = vld [vmem:[#allocation6] sm:$0xf]  ;;  %v164_v24 = vpack.c.bf16 %v3379_v20, %v3379_v20  ;;  %v165_v25 = vpack.c.bf16 %v3380_v21, %v3380_v21  ;;  %148 = vst.msk [vmem:[#allocation2 + $0x8] sm:$0x4] %vm147_vm5, %v4690_v0  ;;  %v4294_v27 = vld [vmem:[#allocation6 + $0x4] sm:$0xf0]  ;;  %vm170_vm11 = vmor %vm6083_vm7, %vm169_vm8 }
  0x21   :  { %v134_v28 = vrot.slane %v127_v19, 7  ;;  %v3387_v29 = vld [vmem:[#allocation6 + $0x40] sm:$0xf]  ;;  %298 = vmatpush.bf16.msra.mxu0 %v3404_v14  ;;  %v136_v32 = vrot.slane %v128_v23, 7  ;;  %v4302_v35 = vld [vmem:[#allocation6 + $0x44] sm:$0xf0]  ;;  %v3426_v41 = vor.u32 %v4294_v27, %v3425_v22 }
  0x22   :  { %v171_v33 = vrot.slane %v164_v24, 5  ;;  %v173_v34 = vrot.slane %v165_v25, 5  ;;  %vm144_vm10 = vcmask 519168   ;;  %v3487_v37 = vld [vmem:[#allocation6 + $0xb0] sm:$0xf]  ;;  %v3388_v45 = vor.u32 %v4302_v35, %v3387_v29 }
  0x23   :  { %v135_v36 = vrot.slane %v134_v28, 4  ;;  %143 = vst.msk [vmem:[#allocation2] sm:$0xe] %vm142_vm6, %v134_v28  ;;  %v138_v38 = vrot.slane %v136_v32, 4  ;;  %v4316_v40 = vld [vmem:[#allocation6 + $0xb4] sm:$0xf0]  ;;  %395 = vmatpush.bf16.msra.mxu2 %v3434_v26 }
  0x24   :  { %v172_v39 = vrot.slane %v171_v33, 4  ;;  %179 = vst.msk [vmem:[#allocation2 + $0x8] sm:$0x8] %vm149_vm1, %v171_v33  ;;  %v175_v43 = vrot.slane %v173_v34, 4  ;;  %vm181_vm12 = vcmask 518144   ;;  %v3488_v46 = vor.u32 %v4316_v40, %v3487_v37 }
  0x25   :  { %v137_v42 = vsel %vm4783_vm9, %v135_v36, %v136_v32  ;;  %299 = vmatpush.bf16.msra.mxu0 %v3396_v30  ;;  %146 = vst.msk [vmem:[#allocation2 + $0x8] sm:$0x1] %vm111_vm0, %v138_v38  ;;  %v3479_v47 = vld [vmem:[#allocation6 + $0xa0] sm:$0xf]  ;;  %v4314_v48 = vld [vmem:[#allocation6 + $0xa4] sm:$0xf0] }
  0x26   :  { %145 = vst.msk [vmem:[#allocation2 + $0x4] sm:$0xf] %vm144_vm10, %v137_v42  ;;  %v174_v44 = vsel %vm170_vm11, %v172_v39, %v173_v34  ;;  %vm283_vm13 = vcmask 523264   ;;  %v3480_v49 = vor.u32 %v4314_v48, %v3479_v47  ;;  %v3471_v50 = vld [vmem:[#allocation6 + $0x90] sm:$0xf]  ;;  %vm6084_vm0 = vcmask 1046528  }
  0x27   :  { %180 = vst.msk [vmem:[#allocation2 + $0xc] sm:$0xf] %vm144_vm10, %v174_v44  ;;  %396 = vmatpush.bf16.msra.mxu2 %v3426_v41  ;;  %v4312_v51 = vld [vmem:[#allocation6 + $0x94] sm:$0xf0]  ;;  %v3525_v55 = vld [vmem:[#allocation6 + $0xf0] sm:$0xf] }
  0x28   :  { %182 = vst.msk [vmem:[#allocation2 + $0x10] sm:$0x7] %vm181_vm12, %v175_v43  ;;  %v4324_v56 = vld [vmem:[#allocation6 + $0xf4] sm:$0xf0]  ;;  %v3472_v58 = vor.u32 %v4312_v51, %v3471_v50  ;;  %vm219_vm14 = vsmask.f32 7424 }
  0x29   :  { %300 = vmatpush.bf16.msra.mxu0 %v3388_v45  ;;  %v3526_v59 = vor.u32 %v4324_v56, %v3525_v55  ;;  %v3517_v3 = vld [vmem:[#allocation6 + $0xe0] sm:$0xf]  ;;  %v4322_v4 = vld [vmem:[#allocation6 + $0xe4] sm:$0xf0]  ;;  %v3509_v9 = vld [vmem:[#allocation6 + $0xd0] sm:$0xf] }
  0x2a   :  { %v3518_v6 = vor.u32 %v4322_v4, %v3517_v3  ;;  %v3463_v7 = vld [vmem:[#allocation6 + $0x80] sm:$0xf]  ;;  %v4310_v8 = vld [vmem:[#allocation6 + $0x84] sm:$0xf0]  ;;  %v4320_v12 = vld [vmem:[#allocation6 + $0xd4] sm:$0xf0] }
  0x2b   :  { %647 = vmatpush.bf16.msrb.mxu2 %v3526_v59  ;;  %v3464_v11 = vor.u32 %v4310_v8, %v3463_v7  ;;  %v3510_v13 = vor.u32 %v4320_v12, %v3509_v9  ;;  %v3501_v14 = vld [vmem:[#allocation6 + $0xc0] sm:$0xf]  ;;  %v4318_v15 = vld [vmem:[#allocation6 + $0xc4] sm:$0xf0]  ;;  %v4307_v23 = vld [vmem:[#allocation6 + $0x74] sm:$0xf] }
  0x2c   :  { %v3502_v18 = vor.u32 %v4318_v15, %v3501_v14  ;;  %v3413_v24 = vld [vmem:[#allocation6 + $0x78] sm:$0xf0]  ;;  %v3563_v28 = vld [vmem:[#allocation6 + $0x130] sm:$0xf]  ;;  %v4332_v29 = vld [vmem:[#allocation6 + $0x134] sm:$0xf0] }
  0x2d   :  { %507 = vmatpush.bf16.msrb.mxu0 %v3488_v46  ;;  %v4796_v52 = vld [vmem:[#allocation2] sm:$0xff]   ;;  %v3416_v26 = vor.u32 %v4307_v23, %v3413_v24  ;;  %v4305_v30 = vld [vmem:[#allocation6 + $0x64] sm:$0xf]  ;;  %v3564_v34 = vor.u32 %v4332_v29, %v3563_v28  ;;  %v3405_v35 = vld [vmem:[#allocation6 + $0x68] sm:$0xf0]  ;;  %vm712_vm1 = vcmask 1045504  }
  0x2e   :  { %3455 = vmatmul.msk.bf16.vlgmr.msra.gmra.mxu2 %vm283_vm13, %v4796_v52  ;;  %v221_v53 = vshrl.u32 %v4796_v52, 16  ;;  %v223_v54 = vshll.u32 %v4796_v52, 16  ;;  %v4802_v57 = vld [vmem:[#allocation2 + $0x8] sm:$0xff]  ;;  %v435_v25 = vld [vmem:[#allocation2] sm:$0xe]  ;;  %v4500_v32 = vunpack.c.h.b16 %v4796_v52  ;;  %v3408_v38 = vor.u32 %v4305_v30, %v3405_v35 }
  0x2f   :  { %v196_v61 = vld [vmem:[#allocation2 + $0x10] sm:$0x7]  ;;  %v228_v62 = vshll.u32 %v4802_v57, 16  ;;  %648 = vmatpush.bf16.msrb.mxu2 %v3518_v6  ;;  %v232_v16 = vshrl.u32 %v4802_v57, 16  ;;  %320 = vmatpush.bf16.msra.mxu1 %v3416_v26  ;;  %v446_v33 = vunpack.c.l.b16 %v435_v25  ;;  %v4303_v36 = vld [vmem:[#allocation6 + $0x54] sm:$0xf] }
  0x30   :  { %v225_v60 = vrot.slane %v223_v54, 1  ;;  %v215_v2 = vunpack.c.l.b16 %v196_v61  ;;  %v187_v22 = vld [vmem:[#allocation2 + $0x10] sm:$0x3]  ;;  %v3397_v37 = vld [vmem:[#allocation6 + $0x58] sm:$0xf0]  ;;  %vm118_vm12 = vcmask 520196  }
  0x31   :  { %508 = vmatpush.bf16.msrb.mxu0 %v3480_v49  ;;  %v230_v1 = vrot.slane %v228_v62, 1  ;;  %v340_v27 = vunpack.c.l.b16 %v187_v22  ;;  %v3400_v40 = vor.u32 %v4303_v36, %v3397_v37  ;;  %v447_v41 = vpack.c.b16 %v4500_v32, %v446_v33  ;;  %v3555_v43 = vld [vmem:[#allocation6 + $0x120] sm:$0xf]  ;;  %v4330_v44 = vld [vmem:[#allocation6 + $0x124] sm:$0xf0] }
  0x32   :  { %v226_v63 = vor.u32 %v225_v60, %v221_v53  ;;  %v4812_v10 = vpack.c.b16 %v215_v2, %v215_v2  ;;  %v4301_v45 = vld [vmem:[#allocation6 + $0x44] sm:$0xf]  ;;  %v3556_v48 = vor.u32 %v4330_v44, %v3555_v43  ;;  %v3389_v49 = vld [vmem:[#allocation6 + $0x48] sm:$0xf0]  ;;  %v581_v55 = vrot.slane %v232_v16, 1 }
  0x33   :  { %649 = vmatpush.bf16.msrb.mxu2 %v3510_v13  ;;  %v234_v19 = vor.u32 %v232_v16, %v230_v1  ;;  %v4824_v39 = vpack.c.b16 %v340_v27, %v340_v27  ;;  %321 = vmatpush.bf16.msra.mxu1 %v3408_v38  ;;  %v574_v46 = vshrl.u32 %v447_v41, 16  ;;  %v577_v47 = vshll.u32 %v447_v41, 16  ;;  %v3547_v59 = vld [vmem:[#allocation6 + $0x110] sm:$0xf]  ;;  %v4328_v60 = vld [vmem:[#allocation6 + $0x114] sm:$0xf0] }
  0x34   :  { %v4808_v5 = vsel %vm219_vm14, %v226_v63, %v230_v1  ;;  %v236_v17 = vshll.u32 %v4812_v10, 16  ;;  %v240_v42 = vshrl.u32 %v4812_v10, 16  ;;  %v3392_v50 = vor.u32 %v4301_v45, %v3389_v49  ;;  %v3539_v12 = vld [vmem:[#allocation6 + $0x100] sm:$0xf]  ;;  %v4326_v13 = vld [vmem:[#allocation6 + $0x104] sm:$0xf0] }
  0x35   :  { %509 = vmatpush.bf16.msrb.mxu0 %v3472_v58  ;;  %v576_v53 = vrot.slane %v574_v46, 1  ;;  %v579_v54 = vrot.slane %v577_v47, 2  ;;  %v582_v56 = vrot.slane %v228_v62, 2  ;;  %v559_v58 = vld [vmem:[#allocation2 + $0x10] sm:$0xf]  ;;  %v3548_v2 = vor.u32 %v4328_v60, %v3547_v59 }
  0x36   :  { %3417 = vmatmul.msk.bf16.vlgmr.msra.gmra.mxu0 %vm283_vm13, %v4808_v5  ;;  %v238_v20 = vrot.slane %v236_v17, 1  ;;  %v570_v1 = vunpack.c.l.b16 %v559_v58  ;;  %vm572_vm15 = vsmask.f32 6400  ;;  %v449_v62 = vrot.slane %v447_v41, 1  ;;  %v4299_v14 = vld [vmem:[#allocation6 + $0x34] sm:$0xf] }
  0x37   :  { %650 = vmatpush.bf16.msrb.mxu2 %v3502_v18  ;;  %322 = vmatpush.bf16.msra.mxu1 %v3400_v40  ;;  %v580_v61 = vor.u32 %v579_v54, %v576_v53  ;;  %v583_v63 = vor.u32 %v582_v56, %v581_v55  ;;  %v3540_v16 = vor.u32 %v4326_v13, %v3539_v12  ;;  %v3451_v17 = vld [vmem:[#allocation6 + $0x38] sm:$0xf0]  ;;  %v4297_v18 = vld [vmem:[#allocation6 + $0x24] sm:$0xf]  ;;  %v4295_v25 = vld [vmem:[#allocation6 + $0x14] sm:$0xf] }
  0x38   :  { %v4819_v21 = vsel %vm219_vm14, %v234_v19, %v238_v20  ;;  %v242_v51 = vor.u32 %v240_v42, %v238_v20  ;;  %v4839_v4 = vpack.c.b16 %v570_v1, %v570_v1  ;;  %v3443_v19 = vld [vmem:[#allocation6 + $0x28] sm:$0xf0]  ;;  %v3454_v20 = vor.u32 %v4299_v14, %v3451_v17  ;;  %v3435_v26 = vld [vmem:[#allocation6 + $0x18] sm:$0xf0]  ;;  %v4315_v27 = vld [vmem:[#allocation6 + $0xb4] sm:$0xf] }
  0x39   :  { %510 = vmatpush.bf16.msrb.mxu0 %v3464_v11  ;;  %v4837_v3 = vsel %vm572_vm15, %v580_v61, %v583_v63  ;;  %v3446_v22 = vor.u32 %v4297_v18, %v3443_v19  ;;  %v3438_v28 = vor.u32 %v4295_v25, %v3435_v26  ;;  %v3489_v29 = vld [vmem:[#allocation6 + $0xb8] sm:$0xf0]  ;;  %v4293_v33 = vld [vmem:[#allocation6 + $0x4] sm:$0xf]  ;;  %v3481_v37 = vld [vmem:[#allocation6 + $0xa8] sm:$0xf0] }
  0x3a   :  { %v586_v6 = vshrl.u32 %v4839_v4, 16  ;;  %v589_v7 = vshll.u32 %v4839_v4, 16  ;;  %416 = vmatpush.bf16.msra.mxu3 %v3454_v20  ;;  %v3492_v30 = vor.u32 %v4315_v27, %v3489_v29  ;;  %v4313_v35 = vld [vmem:[#allocation6 + $0xa4] sm:$0xf]  ;;  %v4311_v38 = vld [vmem:[#allocation6 + $0x94] sm:$0xf] }
  0x3b   :  { %323 = vmatpush.bf16.msra.mxu1 %v3392_v50  ;;  %v3473_v40 = vld [vmem:[#allocation6 + $0x98] sm:$0xf0]  ;;  %v4309_v42 = vld [vmem:[#allocation6 + $0x84] sm:$0xf]  ;;  %v3465_v43 = vld [vmem:[#allocation6 + $0x88] sm:$0xf0] }
  0x3c   :  { %v588_v9 = vrot.slane %v586_v6, 1  ;;  %v591_v11 = vrot.slane %v589_v7, 2  ;;  %v3476_v41 = vor.u32 %v4311_v38, %v3473_v40  ;;  %v3468_v44 = vor.u32 %v4309_v42, %v3465_v43  ;;  %v699_v45 = vld [vmem:[#allocation2] sm:$0xc]  ;;  %v3519_v55 = vld [vmem:[#allocation6 + $0xe8] sm:$0xf0] }
  0x3d   :  { %771 = vmatpush.bf16.msra.mxu0 %v3564_v34  ;;  %v3427_v34 = vld [vmem:[#allocation6 + $0x8] sm:$0xf0]  ;;  %v710_v46 = vunpack.c.l.b16 %v699_v45  ;;  %v714_v49 = vrot.slane %v4802_v57, 2  ;;  %v3527_v53 = vld [vmem:[#allocation6 + $0xf8] sm:$0xf0]  ;;  %v4340_v42 = vld [vmem:[#allocation8 + $0x30] sm:$0xff] }
  0x3e   :  { %3456 = vmatmul.msk.bf16.gmra.mxu2 %vm283_vm13, %v4802_v57  ;;  %3420 = vmatmul.msk.bf16.vlgmr.msra.gmra.mxu1 %vm283_vm13, %v4808_v5  ;;  %v450_v5 = vrot.slane %v4802_v57, 1  ;;  %v4850_v15 = vor.u32 %v591_v11, %v588_v9  ;;  %v3430_v36 = vor.u32 %v4293_v33, %v3427_v34  ;;  %v4319_v58 = vld [vmem:[#allocation6 + $0xd4] sm:$0xf]  ;;  %v3511_v59 = vld [vmem:[#allocation6 + $0xd8] sm:$0xf0]  ;;  %v4339_v43 = vld [vmem:[#allocation8 + $0x28] sm:$0xff] }
  0x3f   :  { %417 = vmatpush.bf16.msra.mxu3 %v3446_v22  ;;  %530 = vmatpush.bf16.msrb.mxu1 %v3492_v30  ;;  %v711_v47 = vpack.c.b16 %v4500_v32, %v710_v46  ;;  %v4321_v32 = vld [vmem:[#allocation6 + $0xe4] sm:$0xf]  ;;  %v4331_v60 = vld [vmem:[#allocation6 + $0x134] sm:$0xf]  ;;  %v3514_v61 = vor.u32 %v4319_v58, %v3511_v59  ;;  %v3541_v12 = vld [vmem:[#allocation6 + $0x108] sm:$0xf0] }
  0x40   :  { %v451_v8 = vsel %vm6084_vm0, %v449_v62, %v450_v5  ;;  %v4854_v23 = vsel %vm572_vm15, %v583_v63, %v4850_v15  ;;  %v3522_v56 = vor.u32 %v4321_v32, %v3519_v55  ;;  %v3565_v63 = vld [vmem:[#allocation6 + $0x138] sm:$0xf0]  ;;  %v4327_v7 = vld [vmem:[#allocation6 + $0x114] sm:$0xf]  ;;  %v4325_v11 = vld [vmem:[#allocation6 + $0x104] sm:$0xf] }
  0x41   :  { %772 = vmatpush.bf16.msra.mxu0 %v3556_v48  ;;  %v713_v48 = vrot.slane %v711_v47, 2  ;;  %v3568_v1 = vor.u32 %v4331_v60, %v3565_v63  ;;  %v3544_v13 = vor.u32 %v4325_v11, %v3541_v12  ;;  %v4338_v47 = vld [vmem:[#allocation8 + $0x20] sm:$0xff]  ;;  %v4336_v32 = vld [vmem:[#allocation8 + $0x10] sm:$0xff]  ;;  %v4355_v63 = vld [vmem:[#allocation8 + $0xa8] sm:$0xff]  ;;  %vm1259_vm10 = vsmask.f32 4368 }
  0x42   :  { %v4356_v55 = vld [vmem:[#allocation8 + $0xb0] sm:$0xff]  ;;  %v4353_v12 = vld [vmem:[#allocation8 + $0x98] sm:$0xff]  ;;  %vm157_vm15 = vcmask 1043459  }
  0x43   :  { %418 = vmatpush.bf16.msra.mxu3 %v3438_v28  ;;  %v715_v50 = vsel %vm712_vm1, %v713_v48, %v714_v49  ;;  %v4349_v48 = vld [vmem:[#allocation8 + $0x78] sm:$0xff]  ;;  %v4348_v58 = vld [vmem:[#allocation8 + $0x70] sm:$0xff] }
  0x44   :  { %1025 = vmatpush.bf16.msra.mxu2 %v4349_v48 }
  0x45   :  { %773 = vmatpush.bf16.msra.mxu0 %v3548_v2  ;;  %v3503_v2 = vld [vmem:[#allocation6 + $0xc8] sm:$0xf0] }
  0x46   :  { %3418 = vmatmul.msk.bf16.gmra.mxu0 %vm283_vm13, %v4819_v21 }
  0x47   :  { %419 = vmatpush.bf16.msra.mxu3 %v3430_v36 }
  0x48   :  { %1026 = vmatpush.bf16.msra.mxu2 %v4348_v58 }
  0x49   :  { %774 = vmatpush.bf16.msra.mxu0 %v3540_v16 }
  0x4a   :  { %3458 = vmatmul.msk.bf16.vlgmr.msra.gmra.mxu3 %vm283_vm13, %v4796_v52  ;;  %v716_v52 = vrot.slane %v4839_v4, 2  ;;  %v4329_v4 = vld [vmem:[#allocation6 + $0x124] sm:$0xf] }
  0x4e   :  { %3457 = vmatmul.msk.bf16.gmra.mxu2 %vm283_vm13, %v4824_v39  ;;  %3421 = vmatmul.msk.bf16.gmra.mxu1 %vm283_vm13, %v4819_v21  ;;  %v452_v21 = vrot.slane %v4812_v10, 1  ;;  %v3484_v10 = vor.u32 %v4313_v35, %v3481_v37 }
  0x50   :  { %v453_v24 = vsel %vm6084_vm0, %v450_v5, %v452_v21  ;;  %531 = vmatpush.bf16.msrb.mxu1 %v3484_v10  ;;  %v3557_v5 = vld [vmem:[#allocation6 + $0x128] sm:$0xf0]  ;;  %v4341_v10 = vld [vmem:[#allocation8 + $0x38] sm:$0xff] }
  0x51   :  { %v3560_v6 = vor.u32 %v4329_v4, %v3557_v5  ;;  %v4937_v4 = vld [vmem:[#allocation11] ss:$8 sm:$0x3] }
  0x52   :  { %v4354_v5 = vld [vmem:[#allocation8 + $0xa0] sm:$0xff] }
  0x54   :  { %532 = vmatpush.bf16.msrb.mxu1 %v3476_v41 }
  0x56   :  { %3419 = vmatmul.msk.bf16.gmra.mxu0 %vm283_vm13, %v242_v51 }
  0x58   :  { %533 = vmatpush.bf16.msrb.mxu1 %v3468_v44 }
  0x5a   :  { %3459 = vmatmul.msk.bf16.gmra.mxu3 %vm283_vm13, %v4802_v57  ;;  %v717_v57 = vsel %vm712_vm1, %v714_v49, %v716_v52  ;;  %v4337_v49 = vld [vmem:[#allocation8 + $0x18] sm:$0xff]  ;;  %vm158_vm1 = vcmask 523271  }
  0x5c   :  { %794 = vmatpush.bf16.msra.mxu1 %v3568_v1  ;;  %v4334_v1 = vld [vmem:[#allocation8] sm:$0xff] }
  0x5e   :  { %3531 = vmatmul.msk.bf16.vlgmr.msrb.gmra.mxu2 %vm283_vm13, %v4837_v3  ;;  %3422 = vmatmul.msk.bf16.gmra.mxu1 %vm283_vm13, %v242_v51  ;;  %v4323_v51 = vld [vmem:[#allocation6 + $0xf4] sm:$0xf] }
  0x5f   :  { %v3530_v54 = vor.u32 %v4323_v51, %v3527_v53 }
  0x60   :  { %795 = vmatpush.bf16.msra.mxu1 %v3560_v6 }
  0x61   :  { %670 = vmatpush.bf16.msrb.mxu3 %v3530_v54  ;;  %v4357_v54 = vld [vmem:[#allocation8 + $0xb8] sm:$0xff] }
  0x65   :  { %671 = vmatpush.bf16.msrb.mxu3 %v3522_v56  ;;  %v4335_v56 = vld [vmem:[#allocation8 + $0x8] sm:$0xff] }
  0x66   :  { %3493 = vmatmul.msk.bf16.vlgmr.msrb.gmra.mxu0 %vm283_vm13, %v451_v8 }
  0x67   :  { %1202 = vmatpush.bf16.msrb.mxu0 %v4357_v54 }
  0x69   :  { %672 = vmatpush.bf16.msrb.mxu3 %v3514_v61 }
  0x6a   :  { %3460 = vmatmul.msk.bf16.gmra.mxu3 %vm283_vm13, %v4824_v39  ;;  %v4317_v39 = vld [vmem:[#allocation6 + $0xc4] sm:$0xf] }
  0x6b   :  { %v3506_v62 = vor.u32 %v4317_v39, %v3503_v2  ;;  %1203 = vmatpush.bf16.msrb.mxu0 %v4356_v55  ;;  %v4347_v39 = vld [vmem:[#allocation8 + $0x68] sm:$0xff] }
  0x6c   :  { %1027 = vmatpush.bf16.msra.mxu2 %v4347_v39 }
  0x6d   :  { %673 = vmatpush.bf16.msrb.mxu3 %v3506_v62  ;;  %v4346_v62 = vld [vmem:[#allocation8 + $0x60] sm:$0xff] }
  0x6e   :  { %3532 = vmatmul.msk.bf16.gmra.mxu2 %vm283_vm13, %v4854_v23  ;;  %3496 = vmatmul.msk.bf16.vlgmr.msrb.gmra.mxu1 %vm283_vm13, %v451_v8  ;;  %v3549_v8 = vld [vmem:[#allocation6 + $0x118] sm:$0xf0] }
  0x6f   :  { %v3552_v9 = vor.u32 %v4327_v7, %v3549_v8  ;;  %1204 = vmatpush.bf16.msrb.mxu0 %v4355_v63  ;;  %v4942_v8 = vperm.slane %v4937_v4, 0 }
  0x70   :  { %1028 = vmatpush.bf16.msra.mxu2 %v4346_v62 }
  0x71   :  { %796 = vmatpush.bf16.msra.mxu1 %v3552_v9  ;;  %1102 = vmatpush.bf16.msra.mxu3 %v4341_v10 }
  0x73   :  { %1205 = vmatpush.bf16.msrb.mxu0 %v4354_v5 }
  0x75   :  { %797 = vmatpush.bf16.msra.mxu1 %v3544_v13  ;;  %1103 = vmatpush.bf16.msra.mxu3 %v4340_v42 }
  0x76   :  { %3494 = vmatmul.msk.bf16.gmra.mxu0 %vm283_vm13, %v453_v24 }
  0x77   :  { %1206 = vmatpush.bf16.msrb.mxu0 %v4353_v12 }
  0x79   :  { %1104 = vmatpush.bf16.msra.mxu3 %v4339_v43 }
  0x7a   :  { %3534 = vmatmul.msk.bf16.vlgmr.msrb.gmra.mxu3 %vm283_vm13, %v4837_v3 }
  0x7d   :  { %1105 = vmatpush.bf16.msra.mxu3 %v4338_v47 }
  0x7e   :  { %3533 = vmatmul.msk.bf16.gmra.mxu2 %vm283_vm13, %v4850_v15  ;;  %3497 = vmatmul.msk.bf16.gmra.mxu1 %vm283_vm13, %v453_v24 }
  0x81   :  { %1106 = vmatpush.bf16.msra.mxu3 %v4337_v49  ;;  %v4350_v49 = vld [vmem:[#allocation8 + $0x80] sm:$0xff] }
  0x85   :  { %1107 = vmatpush.bf16.msra.mxu3 %v4336_v32  ;;  %v4342_v32 = vld [vmem:[#allocation8 + $0x40] sm:$0xff] }
  0x86   :  { %3495 = vmatmul.msk.bf16.gmra.mxu0 %vm283_vm13, %v452_v21 }
  0x89   :  { %1108 = vmatpush.bf16.msra.mxu3 %v4335_v56 }
  0x8a   :  { %3535 = vmatmul.msk.bf16.gmra.mxu3 %vm283_vm13, %v4854_v23 }
  0x8d   :  { %1109 = vmatpush.bf16.msra.mxu3 %v4334_v1 }
  0x8e   :  { %3498 = vmatmul.msk.bf16.gmra.mxu1 %vm283_vm13, %v452_v21 }
  0x96   :  { %3569 = vmatmul.msk.bf16.vlgmr.msra.gmra.mxu0 %vm283_vm13, %v715_v50 }
  0x9a   :  { %3536 = vmatmul.msk.bf16.gmra.mxu3 %vm283_vm13, %v4850_v15 }
  0x9e   :  { %3572 = vmatmul.msk.bf16.vlgmr.msra.gmra.mxu1 %vm283_vm13, %v715_v50 }
  0xa6   :  { %3570 = vmatmul.msk.bf16.gmra.mxu0 %vm283_vm13, %v717_v57 }
  0xae   :  { %3573 = vmatmul.msk.bf16.gmra.mxu1 %vm283_vm13, %v717_v57 }
  0xb1   :  { %v398_v14 = vpop.f32.mrf.mxu2 }
  0xb3   :  { %v302_v16 = vpop.f32.mrf.mxu0 }
  0xb4   :  { %v4882_v17 = vadd.f32 %v398_v14, %v302_v16  ;;  %v4948_v16 = vld [vmem:[#allocation11 + $0x1] ss:$0 sm:$0xff] }
  0xb6   :  { %3571 = vmatmul.msk.bf16.gmra.mxu0 %vm283_vm13, %v716_v52 }
  0xb9   :  { %v4886_v18 = vpop.f32.mrf.mxu2 }
  0xbb   :  { %v4888_v19 = vpop.f32.mrf.mxu0  ;;  %v4901_v26 = vpop.f32.mrf.mxu1 }
  0xbc   :  { %v401_v13 = vadd.f32 %v4886_v18, %v4888_v19 }
  0xbe   :  { %3574 = vmatmul.msk.bf16.gmra.mxu1 %vm283_vm13, %v716_v52 }
  0xc1   :  { %v403_v3 = vpop.f32.mrf.mxu2 }
  0xc3   :  { %v307_v20 = vpop.f32.mrf.mxu0  ;;  %v4906_v29 = vpop.f32.mrf.mxu1 }
  0xc4   :  { %v4892_v22 = vadd.f32 %v403_v3, %v307_v20 }
  0xc9   :  { %v4895_v21 = vpop.f32.mrf.mxu2 }
  0xcb   :  { %v4897_v24 = vpop.f32.mrf.mxu0  ;;  %v4908_v34 = vpop.f32.mrf.mxu1 }
  0xcd   :  { %v4924_v50 = vpop.f32.mrf.mxu3 }
  0xd1   :  { %v408_v25 = vpop.f32.mrf.mxu2 }
  0xd3   :  { %v312_v27 = vpop.f32.mrf.mxu0  ;;  %v4912_v37 = vpop.f32.mrf.mxu1 }
  0xd4   :  { %v4903_v28 = vadd.f32 %v408_v25, %v312_v27  ;;  %v4352_v25 = vld [vmem:[#allocation8 + $0x90] sm:$0xff] }
  0xd5   :  { %v4932_v57 = vpop.f32.mrf.mxu3  ;;  %1207 = vmatpush.bf16.msrb.mxu0 %v4352_v25 }
  0xd9   :  { %v410_v23 = vpop.f32.mrf.mxu2 }
  0xdb   :  { %v314_v30 = vpop.f32.mrf.mxu0  ;;  %v4916_v40 = vpop.f32.mrf.mxu1 }
  0xdc   :  { %v4344_v30 = vld [vmem:[#allocation8 + $0x50] sm:$0xff] }
  0xdd   :  { %v4939_v6 = vpop.f32.mrf.mxu3 }
  0xe1   :  { %v652_v33 = vpop.f32.mrf.mxu2 }
  0xe3   :  { %v512_v35 = vpop.f32.mrf.mxu0  ;;  %v337_v45 = vpop.f32.mrf.mxu1 }
  0xe4   :  { %v549_v2 = vadd.f32 %v512_v35, %v4882_v17  ;;  %v4345_v17 = vld [vmem:[#allocation8 + $0x58] sm:$0xff]  ;;  %v4343_v45 = vld [vmem:[#allocation8 + $0x48] sm:$0xff] }
  0xe5   :  { %1029 = vmatpush.bf16.msra.mxu2 %v4345_v17  ;;  %v4952_v23 = vpop.f32.mrf.mxu3 }
  0xe6   :  { %v689_v7 = vadd.f32 %v652_v33, %v549_v2 }
  0xe9   :  { %v4910_v36 = vpop.f32.mrf.mxu2  ;;  %1030 = vmatpush.bf16.msra.mxu2 %v4344_v30 }
  0xeb   :  { %v514_v15 = vpop.f32.mrf.mxu0  ;;  %v4930_v52 = vpop.f32.mrf.mxu1 }
  0xec   :  { %v551_v3 = vadd.f32 %v514_v15, %v401_v13  ;;  %v4351_v15 = vld [vmem:[#allocation8 + $0x88] sm:$0xff] }
  0xed   :  { %1208 = vmatpush.bf16.msrb.mxu0 %v4351_v15  ;;  %1031 = vmatpush.bf16.msra.mxu2 %v4343_v45  ;;  %v4961_v54 = vpop.f32.mrf.mxu3 }
  0xee   :  { %v691_v33 = vadd.f32 %v4910_v36, %v551_v3 }
  0xf1   :  { %v4914_v38 = vpop.f32.mrf.mxu2  ;;  %1209 = vmatpush.bf16.msrb.mxu0 %v4350_v49  ;;  %1032 = vmatpush.bf16.msra.mxu2 %v4342_v32 }
  0xf3   :  { %v4918_v41 = vpop.f32.mrf.mxu0  ;;  %v4934_v61 = vpop.f32.mrf.mxu1 }
  0xf4   :  { %v553_v47 = vadd.f32 %v4918_v41, %v4892_v22  ;;  %v406_v22 = vadd.f32 %v4895_v21, %v4897_v24 }
  0xf6   :  { %v693_v55 = vadd.f32 %v4914_v38, %v553_v47 }
  0xf9   :  { %v4920_v44 = vpop.f32.mrf.mxu2 }
  0xfb   :  { %v4922_v46 = vpop.f32.mrf.mxu0  ;;  %v4944_v11 = vpop.f32.mrf.mxu1 }
  0xfc   :  { %v555_v39 = vadd.f32 %v4922_v46, %v406_v22  ;;  %v422_v46 = vadd.f32 %v4924_v50, %v4901_v26  ;;  %v424_v26 = vadd.f32 %v4932_v57, %v4906_v29  ;;  %v4990_v57 = vperm.slane %v4937_v4, 1 }
 0x101   :  { %v4926_v51 = vpop.f32.mrf.mxu2 }
 0x103   :  { %v4928_v53 = vpop.f32.mrf.mxu0  ;;  %v4955_v10 = vpop.f32.mrf.mxu1 }
 0x104   :  { %v557_v3 = vadd.f32 %v4928_v53, %v4903_v28 }
 0x109   :  { %v664_v59 = vpop.f32.mrf.mxu2 }
 0x10b   :  { %v524_v60 = vpop.f32.mrf.mxu0 }
 0x10c   :  { %v4964_v60 = vpop.f32.mrf.mxu1 }
 0x113   :  { %v776_v9 = vpop.f32.mrf.mxu0 }
 0x114   :  { %v813_v14 = vadd.f32 %v776_v9, %v689_v7  ;;  %v433_v7 = vpop.f32.mrf.mxu3  ;;  %v695_v9 = vadd.f32 %v4920_v44, %v555_v39  ;;  %v547_v13 = vpop.f32.mrf.mxu1 }
 0x116   :  { %v829_v20 = vadd.f32 %v4942_v8, %v813_v14 }
 0x118   :  { %vm850_vm3 = vcmp.gt.f32.partialorder %v829_v20, 0.0  ;;  %v855_v27 = vmul.f32 %v4948_v16, %v829_v20 }
 0x11a   :  { %v860_v18 = vsel %vm850_vm3, %v829_v20, %v855_v27  ;;  %v550_v27 = vadd.f32 %v4930_v52, %v422_v46  ;;  %v552_v52 = vadd.f32 %v4934_v61, %v424_v26  ;;  %vm5543_vm3 = vmor %vm118_vm12, %vm117_vm2 }
 0x11b   :  { %v865_v19 = vpack.c.bf16 %v860_v18, %v860_v18  ;;  %v778_v35 = vpop.f32.mrf.mxu0  ;;  %120 = vst.msk [vmem:[#allocation5] sm:$0x11] %vm5543_vm3, %v4690_v0 }
 0x11c   :  { %v815_v42 = vadd.f32 %v778_v35, %v691_v33  ;;  %v675_v30 = vpop.f32.mrf.mxu3  ;;  %v697_v33 = vadd.f32 %v4926_v51, %v557_v3  ;;  %v799_v28 = vpop.f32.mrf.mxu1 }
 0x11d   :  { %v872_v43 = vrot.slane %v865_v19, 7  ;;  %v690_v35 = vadd.f32 %v675_v30, %v550_v27 }
 0x11e   :  { %v831_v48 = vadd.f32 %v4942_v8, %v815_v42 }
 0x11f   :  { %880 = vst [vmem:[#allocation3] sm:$0xe] %v872_v43  ;;  %v873_v63 = vrot.slane %v872_v43, 4  ;;  %v814_v29 = vadd.f32 %v799_v28, %v690_v35 }
 0x120   :  { %vm851_vm4 = vcmp.gt.f32.partialorder %v831_v48, 0.0  ;;  %v856_v36 = vmul.f32 %v4948_v16, %v831_v48 }
 0x122   :  { %v861_v56 = vsel %vm851_vm4, %v831_v48, %v856_v36  ;;  %vm5550_vm4 = vmor %vm158_vm1, %vm157_vm15  ;;  %vm2200_vm15 = vcmask 522244  }
 0x123   :  { %v866_v58 = vpack.c.bf16 %v861_v56, %v861_v56  ;;  %v781_v59 = vpop.f32.mrf.mxu0  ;;  %160 = vst.msk [vmem:[#allocation5 + $0x20] sm:$0x88] %vm5550_vm4, %v4690_v0 }
 0x124   :  { %v817_v41 = vadd.f32 %v781_v59, %v693_v55  ;;  %v677_v47 = vpop.f32.mrf.mxu3  ;;  %v801_v56 = vpop.f32.mrf.mxu1  ;;  %v830_v59 = vadd.f32 %v4990_v57, %v814_v29 }
 0x125   :  { %v874_v1 = vrot.slane %v866_v58, 7  ;;  %v692_v36 = vadd.f32 %v677_v47, %v552_v52 }
 0x126   :  { %v833_v2 = vadd.f32 %v4942_v8, %v817_v41  ;;  %v4525_v58 = vld [vmem:[#allocation3] sm:$0xe] }
 0x127   :  { %v875_v62 = vsel %vm4783_vm9, %v873_v63, %v874_v1  ;;  %v876_v38 = vrot.slane %v874_v1, 4  ;;  %v816_v22 = vadd.f32 %v801_v56, %v692_v36 }
 0x128   :  { %881 = vst [vmem:[#allocation3 + $0x4] sm:$0xf] %v875_v62  ;;  %vm852_vm5 = vcmp.gt.f32.partialorder %v833_v2, 0.0  ;;  %v857_v5 = vmul.f32 %v4948_v16, %v833_v2 }
 0x129   :  { %882 = vst [vmem:[#allocation3 + $0x8] sm:$0x1] %v876_v38  ;;  %v832_v4 = vadd.f32 %v4990_v57, %v816_v22  ;;  %v4372_v22 = vld [vmem:[%s6076_s3 + $0x64] sm:$0xf0] }
 0x12a   :  { %v862_v21 = vsel %vm852_vm5, %v833_v2, %v857_v5  ;;  %vm2082_vm5 = vcmask 1043457  }
 0x12b   :  { %v867_v24 = vpack.c.bf16 %v862_v21, %v862_v21  ;;  %v783_v12 = vpop.f32.mrf.mxu0  ;;  %v4999_v38 = vpack.c.bf16 %v832_v4, %v830_v59  ;;  %v429_v21 = vadd.f32 %v4952_v23, %v4912_v37  ;;  %v432_v37 = vadd.f32 %v4961_v54, %v4916_v40  ;;  %v3809_v59 = vld [vmem:[%s6076_s3 + $0x60] sm:$0xf] }
 0x12c   :  { %v819_v14 = vadd.f32 %v783_v12, %v695_v9  ;;  %v680_v9 = vpop.f32.mrf.mxu3  ;;  %v804_v13 = vpop.f32.mrf.mxu1 }
 0x12d   :  { %v886_v17 = vrot.slane %v867_v24, 7 }
 0x12e   :  { %v835_v20 = vadd.f32 %v4942_v8, %v819_v14  ;;  %v556_v14 = vadd.f32 %v4955_v10, %v429_v21  ;;  %v4367_v21 = vld [vmem:[%s6076_s3 + $0x44] sm:$0xf] }
 0x12f   :  { %896 = vst [vmem:[#allocation3 + $0x8] sm:$0x8] %v886_v17  ;;  %v4512_v25 = vld [vmem:[#allocation3] sm:$0xff]   ;;  %v887_v15 = vrot.slane %v886_v17, 4 }
 0x130   :  { %vm853_vm6 = vcmp.gt.f32.partialorder %v835_v20, 0.0  ;;  %v858_v44 = vmul.f32 %v4948_v16, %v835_v20  ;;  %1110 = vmatmul.bf16.vlgmr.msra.gmra.mxu3 %v4512_v25  ;;  %v4524_v49 = vld [vmem:[#allocation3] sm:$0xf0]  ;;  %v954_v61 = vshll.u32 %v4512_v25, 16  ;;  %v952_v5 = vshrl.u32 %v4512_v25, 16 }
 0x131   :  { %v4526_v63 = vor.u32 %v4525_v58, %v4524_v49 }
 0x132   :  { %v863_v50 = vsel %vm853_vm6, %v835_v20, %v858_v44  ;;  %v956_v2 = vrot.slane %v954_v61, 1  ;;  %v4374_v61 = vld [vmem:[%s6076_s3 + $0x74] sm:$0xf0]  ;;  %vm2083_vm6 = vcmask 523269  }
 0x133   :  { %v868_v18 = vpack.c.bf16 %v863_v50, %v863_v50  ;;  %v786_v19 = vpop.f32.mrf.mxu0 }
 0x134   :  { %v821_v53 = vadd.f32 %v786_v19, %v697_v33  ;;  %v957_v31 = vor.u32 %v956_v2, %v952_v5  ;;  %v682_v27 = vpop.f32.mrf.mxu3  ;;  %v806_v33 = vpop.f32.mrf.mxu1  ;;  %v558_v19 = vadd.f32 %v4964_v60, %v432_v37  ;;  %v4370_v2 = vld [vmem:[%s6076_s3 + $0x54] sm:$0xf0]  ;;  %v4363_v37 = vld [vmem:[%s6076_s3 + $0x24] sm:$0xf] }
 0x135   :  { %v888_v42 = vrot.slane %v868_v18, 7  ;;  %v696_v44 = vadd.f32 %v682_v27, %v556_v14  ;;  %v4365_v14 = vld [vmem:[%s6076_s3 + $0x34] sm:$0xf]  ;;  %v4364_v27 = vld [vmem:[%s6076_s3 + $0x24] sm:$0xf0] }
 0x136   :  { %v837_v43 = vadd.f32 %v4942_v8, %v821_v53  ;;  %v427_v8 = vadd.f32 %v4939_v6, %v4908_v34  ;;  %v1146_v34 = vrot.slane %v4526_v63, 1  ;;  %v3811_v63 = vld [vmem:[%s6076_s3 + $0x68] sm:$0xf0] }
 0x137   :  { %v889_v45 = vsel %vm4783_vm9, %v887_v15, %v888_v42  ;;  %v820_v50 = vadd.f32 %v806_v33, %v696_v44  ;;  %v4389_v33 = vld [vmem:[%s6076_s3 + $0xf4] sm:$0xf] }
 0x138   :  { %897 = vst [vmem:[#allocation3 + $0xc] sm:$0xf] %v889_v45  ;;  %vm854_vm8 = vcmp.gt.f32.partialorder %v837_v43, 0.0  ;;  %v859_v51 = vmul.f32 %v4948_v16, %v837_v43  ;;  %v890_v16 = vrot.slane %v888_v42, 4  ;;  %v554_v62 = vadd.f32 %v4944_v11, %v427_v8  ;;  %v3819_v8 = vld [vmem:[%s6076_s3 + $0x78] sm:$0xf0] }
 0x139   :  { %v836_v10 = vadd.f32 %v4990_v57, %v820_v50  ;;  %v3753_v50 = vld [vmem:[%s6076_s3 + $0xf0] sm:$0xf] }
 0x13a   :  { %v864_v48 = vsel %vm854_vm8, %v837_v43, %v859_v51  ;;  %v694_v46 = vadd.f32 %v680_v9, %v554_v62  ;;  %v4369_v62 = vld [vmem:[%s6076_s3 + $0x54] sm:$0xf]  ;;  %v4368_v9 = vld [vmem:[%s6076_s3 + $0x44] sm:$0xf0]  ;;  %vm5649_vm8 = vmor %vm2083_vm6, %vm2082_vm5  ;;  %vm2326_vm6 = vcmask 97280  }
 0x13b   :  { %v869_v32 = vpack.c.bf16 %v864_v48, %v864_v48  ;;  %v788_v55 = vpop.f32.mrf.mxu0  ;;  %vm5799_vm5 = vmor %vm2200_vm15, %vm6083_vm7 }
 0x13c   :  { %v818_v25 = vadd.f32 %v804_v13, %v694_v46  ;;  %v685_v52 = vpop.f32.mrf.mxu3  ;;  %v809_v45 = vpop.f32.mrf.mxu1  ;;  %v3817_v55 = vld [vmem:[%s6076_s3 + $0x70] sm:$0xf] }
 0x13d   :  { %v891_v41 = vrot.slane %v869_v32, 7  ;;  %v698_v40 = vadd.f32 %v685_v52, %v558_v19  ;;  %v3818_v56 = vor.u32 %v4374_v61, %v3817_v55  ;;  %v3785_v46 = vld [vmem:[%s6076_s3 + $0x30] sm:$0xf]  ;;  %v4517_v55 = vunpack.c.l.bf16 %v4999_v38 }
 0x13e   :  { %v834_v26 = vadd.f32 %v4990_v57, %v818_v25  ;;  %v3777_v25 = vld [vmem:[%s6076_s3 + $0x20] sm:$0xf] }
 0x13f   :  { %v892_v1 = vsel %vm4783_vm9, %v890_v16, %v891_v41  ;;  %v4333_v39 = vld [vmem:[#allocation3 + $0x8] sm:$0xff]  ;;  %v822_v51 = vadd.f32 %v809_v45, %v698_v40  ;;  %1635 = vmatpush.bf16.msrb.mxu3 %v3818_v56  ;;  %v4371_v16 = vld [vmem:[%s6076_s3 + $0x64] sm:$0xf]  ;;  %v3810_v41 = vor.u32 %v4372_v22, %v3809_v59  ;;  %v3778_v44 = vor.u32 %v4364_v27, %v3777_v25  ;;  %v3721_v25 = vld [vmem:[%s6076_s3 + $0xb0] sm:$0xf] }
 0x140   :  { %898 = vst [vmem:[#allocation3 + $0x10] sm:$0x7] %v892_v1  ;;  %1115 = vmatmul.bf16.gmra.mxu3 %v4333_v39  ;;  %v1147_v6 = vrot.slane %v4333_v39, 1  ;;  %v959_v7 = vshll.u32 %v4333_v39, 16  ;;  %v4509_v35 = vpack.c.bf16 %v836_v10, %v834_v26  ;;  %v963_v15 = vshrl.u32 %v4333_v39, 16 }
 0x141   :  { %v838_v60 = vadd.f32 %v4990_v57, %v822_v51  ;;  %v4373_v57 = vld [vmem:[%s6076_s3 + $0x74] sm:$0xf]  ;;  %v3814_v4 = vor.u32 %v4371_v16, %v3811_v63  ;;  %v3801_v39 = vld [vmem:[%s6076_s3 + $0x50] sm:$0xf]  ;;  %v3755_v26 = vld [vmem:[%s6076_s3 + $0xf8] sm:$0xf0] }
 0x142   :  { %v1148_v24 = vsel %vm6084_vm0, %v1146_v34, %v1147_v6  ;;  %v961_v12 = vrot.slane %v959_v7, 1  ;;  %4523 = vst [vmem:[#allocation4 + $0x8] sm:$0xff] %v4509_v35   ;;  %v3822_v58 = vor.u32 %v4373_v57, %v3819_v8  ;;  %v3802_v34 = vor.u32 %v4370_v2, %v3801_v39  ;;  %v3793_v7 = vld [vmem:[%s6076_s3 + $0x40] sm:$0xf]  ;;  %v4390_v10 = vld [vmem:[%s6076_s3 + $0xf4] sm:$0xf0] }
 0x143   :  { %1210 = vmatmul.bf16.vlgmr.msrb.gmra.mxu0 %v1148_v24  ;;  %v843_v47 = vpack.c.bf16 %v838_v60, %v838_v60  ;;  %1636 = vmatpush.bf16.msrb.mxu3 %v3810_v41  ;;  %v3794_v24 = vor.u32 %v4368_v9, %v3793_v7  ;;  %v3758_v19 = vor.u32 %v4389_v33, %v3755_v26  ;;  %v3769_v35 = vld [vmem:[%s6076_s3 + $0x10] sm:$0xf]  ;;  %v3771_v40 = vld [vmem:[%s6076_s3 + $0x18] sm:$0xf0]  ;;  %v3745_v45 = vld [vmem:[%s6076_s3 + $0xe0] sm:$0xf] }
 0x144   :  { %v962_v11 = vsel %vm219_vm14, %v957_v31, %v961_v12  ;;  %v965_v43 = vor.u32 %v963_v15, %v961_v12  ;;  %v687_v48 = vpop.f32.mrf.mxu3  ;;  %v811_v49 = vpop.f32.mrf.mxu1  ;;  %1658 = vmatpush.bf16.msra.mxu0 %v3822_v58  ;;  %v3795_v31 = vld [vmem:[%s6076_s3 + $0x48] sm:$0xf0]  ;;  %v4362_v15 = vld [vmem:[%s6076_s3 + $0x14] sm:$0xf0]  ;;  %v4388_v60 = vld [vmem:[%s6076_s3 + $0xe4] sm:$0xf0] }
 0x145   :  { %1033 = vmatmul.bf16.vlgmr.msra.gmra.mxu2 %v962_v11  ;;  %848 = vst [vmem:[#allocation4 + $0x10] sm:$0x3] %v843_v47  ;;  %v3798_v12 = vor.u32 %v4367_v21, %v3795_v31  ;;  %v4366_v11 = vld [vmem:[%s6076_s3 + $0x34] sm:$0xf0]  ;;  %v3770_v52 = vor.u32 %v4362_v15, %v3769_v35  ;;  %v3746_v47 = vor.u32 %v4388_v60, %v3745_v45  ;;  %v3761_v48 = vld [vmem:[%s6076_s3] sm:$0xf]  ;;  %v4518_v21 = vunpack.c.h.bf16 %v4999_v38 }
 0x146   :  { %1526 = vmatpush.bf16.msrb.mxu2 %v3758_v19  ;;  %v4360_v49 = vld [vmem:[%s6076_s3 + $0x4] sm:$0xf0]  ;;  %v3763_v57 = vld [vmem:[%s6076_s3 + $0x8] sm:$0xf0]  ;;  %v4385_v58 = vld [vmem:[%s6076_s3 + $0xd4] sm:$0xf] }
 0x147   :  { %v920_v17 = vld [vmem:[#allocation3 + $0x10] sm:$0xf]  ;;  %1637 = vmatpush.bf16.msrb.mxu3 %v3802_v34  ;;  %v3762_v56 = vor.u32 %v4360_v49, %v3761_v48  ;;  %v3739_v59 = vld [vmem:[%s6076_s3 + $0xd8] sm:$0xf0]  ;;  %v3737_v16 = vld [vmem:[%s6076_s3 + $0xd0] sm:$0xf] }
 0x148   :  { %v903_v3 = vld [vmem:[#allocation3 + $0x10] sm:$0x7]  ;;  %v947_v20 = vunpack.c.l.b16 %v920_v17  ;;  %1659 = vmatpush.bf16.msra.mxu0 %v3814_v4  ;;  %v3786_v17 = vor.u32 %v4366_v11, %v3785_v46  ;;  %v3742_v63 = vor.u32 %v4385_v58, %v3739_v59  ;;  %v4386_v4 = vld [vmem:[%s6076_s3 + $0xd4] sm:$0xf0]  ;;  %v3729_v7 = vld [vmem:[%s6076_s3 + $0xc0] sm:$0xf] }
 0x149   :  { %v1049_v30 = vunpack.c.l.b16 %v903_v3  ;;  %v3787_v3 = vld [vmem:[%s6076_s3 + $0x38] sm:$0xf0]  ;;  %v5151_v41 = vld [vmem:[#allocation11 + $0x2] ss:$0 sm:$0xff]  ;;  %v3738_v2 = vor.u32 %v4386_v4, %v3737_v16  ;;  %v5168_v9 = vld [vmem:[#allocation11 + $0x3] ss:$0 sm:$0xff] }
 0x14a   :  { %v950_v23 = vpack.c.b16 %v947_v20, %v947_v20  ;;  %v3790_v20 = vor.u32 %v4365_v14, %v3787_v3  ;;  %v4384_v31 = vld [vmem:[%s6076_s3 + $0xc4] sm:$0xf0]  ;;  %v3723_v38 = vld [vmem:[%s6076_s3 + $0xb8] sm:$0xf0]  ;;  %v1244_v27 = vrot.slane %v4518_v21, 7 }
 0x14b   :  { %v1050_v28 = vpack.c.b16 %v1049_v30, %v1049_v30  ;;  %1638 = vmatpush.bf16.msrb.mxu3 %v3794_v24  ;;  %v3779_v30 = vld [vmem:[%s6076_s3 + $0x28] sm:$0xf0]  ;;  %v3730_v46 = vor.u32 %v4384_v31, %v3729_v7  ;;  %vm1258_vm9 = vsmask.f32 256  ;;  %v1289_v58 = vld [vmem:[#allocation4 + $0xc] sm:$0xf] }
 0x14c   :  { %v967_v18 = vshll.u32 %v950_v23, 16  ;;  %v1149_v53 = vrot.slane %v950_v23, 1  ;;  %v971_v36 = vshrl.u32 %v950_v23, 16  ;;  %v3699_v16 = vld [vmem:[%s6076_s3 + $0x88] sm:$0xf0]  ;;  %vm5252_vm11 = vmor %vm1258_vm9, %vm1259_vm10  ;;  %vm2086_vm9 = vcmask 1043456  }
 0x14d   :  { %v3963_v21 = vld [vmem:[%s6077_s4 + $0x78] sm:$0xf0]  ;;  %v4376_v31 = vld [vmem:[%s6076_s3 + $0x84] sm:$0xf0]  ;;  %vm2087_vm10 = vcmask 523268  }
 0x14e   :  { %v969_v42 = vrot.slane %v967_v18, 1  ;;  %v1150_v54 = vsel %vm6084_vm0, %v1147_v6, %v1149_v53  ;;  %v3803_v6 = vld [vmem:[%s6076_s3 + $0x58] sm:$0xf0]  ;;  %v3782_v18 = vor.u32 %v4363_v37, %v3779_v30  ;;  %v1288_v37 = vld [vmem:[#allocation4 + $0x8] sm:$0xc]  ;;  %vm5738_vm12 = vmor %vm2087_vm10, %vm2086_vm9  ;;  %vm122_vm10 = vcmask 521221  }
 0x14f   :  { %v3806_v5 = vor.u32 %v4369_v62, %v3803_v6  ;;  %1639 = vmatpush.bf16.msrb.mxu3 %v3786_v17  ;;  %v1243_v62 = vrot.slane %v4517_v55, 7  ;;  %v4383_v6 = vld [vmem:[%s6076_s3 + $0xc4] sm:$0xf]  ;;  %v1291_v19 = vunpack.c.l.bf16 %v1288_v37  ;;  %v4420_v37 = vld [vmem:[%s6077_s4 + $0x64] sm:$0xf0] }
 0x150   :  { %1120 = vmatmul.bf16.gmra.mxu3 %v1050_v28  ;;  %v970_v29 = vsel %vm219_vm14, %v965_v43, %v969_v42  ;;  %v973_v32 = vor.u32 %v971_v36, %v969_v42  ;;  %v4361_v42 = vld [vmem:[%s6076_s3 + $0x14] sm:$0xf]  ;;  %v3747_v43 = vld [vmem:[%s6076_s3 + $0xe8] sm:$0xf0]  ;;  %v4359_v36 = vld [vmem:[%s6076_s3 + $0x4] sm:$0xf] }
 0x151   :  { %1660 = vmatpush.bf16.msra.mxu0 %v3806_v5  ;;  %v3774_v51 = vor.u32 %v4361_v42, %v3771_v40  ;;  %v3766_v22 = vor.u32 %v4359_v36, %v3763_v57  ;;  %v3731_v5 = vld [vmem:[%s6076_s3 + $0xc8] sm:$0xf0]  ;;  %v1245_v35 = vsel %vm117_vm2, %v1243_v62, %v1244_v27  ;;  %v3713_v42 = vld [vmem:[%s6076_s3 + $0xa0] sm:$0xf]  ;;  %v5211_v49 = vrot.slane %v1291_v19, 7 }
 0x152   :  { %v3734_v24 = vor.u32 %v4383_v6, %v3731_v5  ;;  %v4377_v36 = vld [vmem:[%s6076_s3 + $0x94] sm:$0xf]  ;;  %v1292_v5 = vunpack.c.l.bf16 %v1289_v58  ;;  %v1290_v19 = vld [vmem:[#allocation4 + $0x10] sm:$0x3] }
 0x153   :  { %1215 = vmatmul.bf16.gmra.mxu0 %v1150_v54  ;;  %1640 = vmatpush.bf16.msrb.mxu3 %v3778_v44  ;;  %v4387_v54 = vld [vmem:[%s6076_s3 + $0xe4] sm:$0xf]  ;;  %v4421_v6 = vld [vmem:[%s6077_s4 + $0x74] sm:$0xf] }
 0x155   :  { %1038 = vmatmul.bf16.gmra.mxu2 %v970_v29  ;;  %1661 = vmatpush.bf16.msra.mxu0 %v3798_v12  ;;  %v3750_v29 = vor.u32 %v4387_v54, %v3747_v43 }
 0x157   :  { %1641 = vmatpush.bf16.msrb.mxu3 %v3770_v52  ;;  %1527 = vmatpush.bf16.msrb.mxu2 %v3750_v29  ;;  %v4380_v52 = vld [vmem:[%s6076_s3 + $0xa4] sm:$0xf0] }
 0x158   :  { %v3714_v45 = vor.u32 %v4380_v52, %v3713_v42  ;;  %v4405_v52 = vld [vmem:[%s6076_s3 + $0x174] sm:$0xf] }
 0x159   :  { %1662 = vmatpush.bf16.msra.mxu0 %v3790_v20  ;;  %v4381_v20 = vld [vmem:[%s6076_s3 + $0xb4] sm:$0xf] }
 0x15b   :  { %1642 = vmatpush.bf16.msrb.mxu3 %v3762_v56  ;;  %1528 = vmatpush.bf16.msrb.mxu2 %v3742_v63  ;;  %v3961_v63 = vld [vmem:[%s6077_s4 + $0x70] sm:$0xf] }
 0x15d   :  { %1663 = vmatpush.bf16.msra.mxu0 %v3782_v18 }
 0x15f   :  { %1529 = vmatpush.bf16.msrb.mxu2 %v3734_v24  ;;  %v3697_v24 = vld [vmem:[%s6076_s3 + $0x80] sm:$0xf] }
 0x161   :  { %1664 = vmatpush.bf16.msra.mxu0 %v3774_v51 }
 0x163   :  { %1220 = vmatmul.bf16.gmra.mxu0 %v1149_v53  ;;  %v3754_v53 = vor.u32 %v4390_v10, %v3753_v50  ;;  %v4379_v10 = vld [vmem:[%s6076_s3 + $0xa4] sm:$0xf] }
 0x165   :  { %1043 = vmatmul.bf16.gmra.mxu2 %v973_v32  ;;  %1503 = vmatpush.bf16.msrb.mxu1 %v3754_v53  ;;  %v3715_v53 = vld [vmem:[%s6076_s3 + $0xa8] sm:$0xf0] }
 0x166   :  { %1665 = vmatpush.bf16.msra.mxu0 %v3766_v22  ;;  %v3718_v15 = vor.u32 %v4379_v10, %v3715_v53  ;;  %v4375_v22 = vld [vmem:[%s6076_s3 + $0x84] sm:$0xf] }
 0x169   :  { %1504 = vmatpush.bf16.msrb.mxu1 %v3746_v47 }
 0x16d   :  { %1505 = vmatpush.bf16.msrb.mxu1 %v3738_v2 }
 0x171   :  { %1506 = vmatpush.bf16.msrb.mxu1 %v3730_v46 }
 0x1b3   :  { %v5038_v1 = vpop.f32.mrf.mxu3 }
 0x1bb   :  { %v5064_v13 = vpop.f32.mrf.mxu3 }
 0x1c0   :  { %v1211_v23 = vpop.f32.mrf.mxu0 }
 0x1c3   :  { %v5102_v28 = vpop.f32.mrf.mxu3 }
 0x1c8   :  { %v1034_v32 = vpop.f32.mrf.mxu2  ;;  %v1213_v61 = vpop.f32.mrf.mxu0 }
 0x1c9   :  { %v1112_v8 = vadd.f32 %v5038_v1, %v1034_v32  ;;  %v3707_v32 = vld [vmem:[%s6076_s3 + $0x98] sm:$0xf0] }
 0x1ca   :  { %v3710_v55 = vor.u32 %v4377_v36, %v3707_v32  ;;  %v3947_v32 = vld [vmem:[%s6077_s4 + $0x58] sm:$0xf0] }
 0x1cb   :  { %v1225_v1 = vadd.f32 %v1211_v23, %v1112_v8  ;;  %v5156_v39 = vpop.f32.mrf.mxu3  ;;  %v3726_v23 = vor.u32 %v4381_v20, %v3723_v38  ;;  %v3698_v38 = vor.u32 %v4376_v31, %v3697_v24 }
 0x1cd   :  { %v1231_v34 = vadd.f32 %v5151_v41, %v1225_v1  ;;  %1530 = vmatpush.bf16.msrb.mxu2 %v3726_v23 }
 0x1cf   :  { %v1249_v12 = vmul.f32 %v1243_v62, %v1231_v34  ;;  %v3702_v62 = vor.u32 %v4375_v22, %v3699_v16  ;;  %v4422_v34 = vld [vmem:[%s6077_s4 + $0x74] sm:$0xf0]  ;;  %v4416_v16 = vld [vmem:[%s6077_s4 + $0x44] sm:$0xf0] }
 0x1d0   :  { %v1036_v11 = vpop.f32.mrf.mxu2  ;;  %v1216_v14 = vpop.f32.mrf.mxu0  ;;  %v3962_v7 = vor.u32 %v4422_v34, %v3961_v63  ;;  %v4415_v63 = vld [vmem:[%s6077_s4 + $0x44] sm:$0xf] }
 0x1d1   :  { %v1252_v17 = vadd.f32 %v1249_v12, %v5168_v9  ;;  %v1114_v3 = vadd.f32 %v5064_v13, %v1036_v11  ;;  %v4382_v13 = vld [vmem:[%s6076_s3 + $0xb4] sm:$0xf0]  ;;  %1531 = vmatpush.bf16.msrb.mxu2 %v3718_v15 }
 0x1d2   :  { %v3722_v26 = vor.u32 %v4382_v13, %v3721_v25  ;;  %1967 = vmatpush.bf16.msra.mxu3 %v3962_v7  ;;  %v3953_v25 = vld [vmem:[%s6077_s4 + $0x60] sm:$0xf] }
 0x1d3   :  { %v1255_v44 = vpack.c.bf16 %v1252_v17, %v1252_v17  ;;  %v1226_v30 = vadd.f32 %v1213_v61, %v1114_v3  ;;  %v5188_v33 = vpop.f32.mrf.mxu3  ;;  %v3705_v61 = vld [vmem:[%s6076_s3 + $0x90] sm:$0xf]  ;;  %v3966_v17 = vor.u32 %v4421_v6, %v3963_v21  ;;  %v3954_v10 = vor.u32 %v4420_v37, %v3953_v25 }
 0x1d4   :  { %1507 = vmatpush.bf16.msrb.mxu1 %v3722_v26  ;;  %v3955_v26 = vld [vmem:[%s6077_s4 + $0x68] sm:$0xf0] }
 0x1d5   :  { %v1262_v50 = vshrl.u32 %v1255_v44, 16  ;;  %v1232_v18 = vadd.f32 %v5151_v41, %v1226_v30  ;;  %v1265_v54 = vshll.u32 %v1255_v44, 16  ;;  %1532 = vmatpush.bf16.msrb.mxu2 %v3710_v55  ;;  %1990 = vmatpush.bf16.msrb.mxu0 %v3966_v17 }
 0x1d6   :  { %1968 = vmatpush.bf16.msra.mxu3 %v3954_v10 }
 0x1d7   :  { %v5204_v40 = vrot.slane %v1262_v50, 7  ;;  %v1250_v43 = vmul.f32 %v1245_v35, %v1232_v18  ;;  %v5275_v18 = vrot.slane %v1292_v5, 7 }
 0x1d8   :  { %v1039_v51 = vpop.f32.mrf.mxu2  ;;  %v5206_v29 = vpop.f32.mrf.mxu0  ;;  %1508 = vmatpush.bf16.msrb.mxu1 %v3714_v45  ;;  %v4418_v45 = vld [vmem:[%s6077_s4 + $0x54] sm:$0xf0] }
 0x1d9   :  { %v1267_v60 = vor.u32 %v1265_v54, %v5204_v40  ;;  %v1253_v47 = vadd.f32 %v1250_v43, %v5168_v9  ;;  %v1117_v48 = vadd.f32 %v5102_v28, %v1039_v51  ;;  %v4378_v28 = vld [vmem:[%s6076_s3 + $0x94] sm:$0xf0]  ;;  %1533 = vmatpush.bf16.msrb.mxu2 %v3702_v62  ;;  %v1268_v23 = vrot.slane %v5204_v40, 4  ;;  %v3899_v40 = vld [vmem:[%s6076_s3 + $0x178] sm:$0xf0] }
 0x1da   :  { %v3706_v59 = vor.u32 %v4378_v28, %v3705_v61  ;;  %v3902_v43 = vor.u32 %v4405_v52, %v3899_v40  ;;  %v4417_v51 = vld [vmem:[%s6077_s4 + $0x54] sm:$0xf]  ;;  %v1299_v55 = vsel %vm117_vm2, %v5211_v49, %v5275_v18  ;;  %v1293_v61 = vunpack.c.l.bf16 %v1290_v19  ;;  %v3939_v62 = vld [vmem:[%s6077_s4 + $0x48] sm:$0xf0]  ;;  %v4411_v52 = vld [vmem:[%s6077_s4 + $0x24] sm:$0xf] }
 0x1db   :  { %1285 = vst [vmem:[#allocation3] sm:$0xe] %v1267_v60  ;;  %v1256_v56 = vpack.c.bf16 %v1253_v47, %v1253_v47  ;;  %v1227_v57 = vadd.f32 %v1216_v14, %v1117_v48  ;;  %v1123_v8 = vpop.f32.mrf.mxu3  ;;  %v3950_v28 = vor.u32 %v4417_v51, %v3947_v32  ;;  %v3942_v7 = vor.u32 %v4415_v63, %v3939_v62  ;;  %v3923_v40 = vld [vmem:[%s6077_s4 + $0x28] sm:$0xf0]  ;;  %v4404_v51 = vld [vmem:[%s6076_s3 + $0x164] sm:$0xf0] }
 0x1dc   :  { %1509 = vmatpush.bf16.msrb.mxu1 %v3706_v59  ;;  %v3937_v8 = vld [vmem:[%s6077_s4 + $0x40] sm:$0xf]  ;;  %v1300_v24 = vrot.slane %v1293_v61, 7  ;;  %v3913_v32 = vld [vmem:[%s6077_s4 + $0x10] sm:$0xf] }
 0x1dd   :  { %v1270_v4 = vshrl.u32 %v1256_v56, 16  ;;  %v1273_v1 = vshll.u32 %v1256_v56, 16  ;;  %v1233_v2 = vadd.f32 %v5151_v41, %v1227_v57  ;;  %1813 = vmatpush.bf16.msra.mxu2 %v3902_v43  ;;  %v4403_v56 = vld [vmem:[%s6076_s3 + $0x164] sm:$0xf]  ;;  %v3891_v57 = vld [vmem:[%s6076_s3 + $0x168] sm:$0xf0]  ;;  %v3938_v5 = vor.u32 %v4416_v16, %v3937_v8 }
 0x1de   :  { %v3894_v22 = vor.u32 %v4403_v56, %v3891_v57  ;;  %v1301_v37 = vsel %vm117_vm2, %v5275_v18, %v1300_v24  ;;  %v3926_v43 = vor.u32 %v4411_v52, %v3923_v40  ;;  %v4409_v57 = vld [vmem:[%s6077_s4 + $0x14] sm:$0xf]  ;;  %v3915_v8 = vld [vmem:[%s6077_s4 + $0x18] sm:$0xf0]  ;;  %v3905_v62 = vld [vmem:[%s6077_s4] sm:$0xf] }
 0x1df   :  { %v1272_v46 = vrot.slane %v1270_v4, 7  ;;  %v1251_v11 = vmul.f32 %v1244_v27, %v1233_v2  ;;  %v1305_v14 = vmul.f32 %v5211_v49, %v1233_v2  ;;  %v4419_v27 = vld [vmem:[%s6077_s4 + $0x64] sm:$0xf]  ;;  %v3918_v16 = vor.u32 %v4409_v57, %v3915_v8  ;;  %v3907_v24 = vld [vmem:[%s6077_s4 + $0x8] sm:$0xf0] }
 0x1e0   :  { %v1041_v3 = vpop.f32.mrf.mxu2  ;;  %v5257_v20 = vpop.f32.mrf.mxu0  ;;  %1510 = vmatpush.bf16.msrb.mxu1 %v3698_v38  ;;  %v3958_v53 = vor.u32 %v4419_v27, %v3955_v26  ;;  %v3931_v38 = vld [vmem:[%s6077_s4 + $0x38] sm:$0xf0]  ;;  %v3897_v27 = vld [vmem:[%s6076_s3 + $0x170] sm:$0xf] }
 0x1e1   :  { %v1275_v13 = vor.u32 %v1273_v1, %v1272_v46  ;;  %v1254_v44 = vadd.f32 %v1251_v11, %v5168_v9  ;;  %v1308_v30 = vadd.f32 %v1305_v14, %v5168_v9  ;;  %v1119_v50 = vadd.f32 %v5156_v39, %v1041_v3  ;;  %v3945_v39 = vld [vmem:[%s6077_s4 + $0x50] sm:$0xf]  ;;  %1814 = vmatpush.bf16.msra.mxu2 %v3894_v22  ;;  %v4414_v14 = vld [vmem:[%s6077_s4 + $0x34] sm:$0xf0] }
 0x1e2   :  { %v1277_v60 = vrot.slane %v1272_v46, 4  ;;  %1991 = vmatpush.bf16.msrb.mxu0 %v3958_v53  ;;  %v3946_v36 = vor.u32 %v4418_v45, %v3945_v39  ;;  %v3921_v53 = vld [vmem:[%s6077_s4 + $0x20] sm:$0xf] }
 0x1e3   :  { %v1276_v35 = vsel %vm5252_vm11, %v1268_v23, %v1275_v13  ;;  %v1257_v15 = vpack.c.bf16 %v1254_v44, %v1254_v44  ;;  %v1311_v42 = vpack.c.bf16 %v1308_v30, %v1308_v30  ;;  %v1228_v54 = vadd.f32 %v5206_v29, %v1119_v50  ;;  %v4406_v13 = vld [vmem:[%s6076_s3 + $0x174] sm:$0xf0]  ;;  %v4401_v44 = vld [vmem:[%s6076_s3 + $0x154] sm:$0xf]  ;;  %v3883_v30 = vld [vmem:[%s6076_s3 + $0x158] sm:$0xf0] }
 0x1e4   :  { %1286 = vst [vmem:[#allocation3 + $0x4] sm:$0xf] %v1276_v35  ;;  %1969 = vmatpush.bf16.msra.mxu3 %v3946_v36  ;;  %v3898_v19 = vor.u32 %v4406_v13, %v3897_v27  ;;  %v3886_v10 = vor.u32 %v4401_v44, %v3883_v30  ;;  %v4412_v35 = vld [vmem:[%s6077_s4 + $0x24] sm:$0xf0]  ;;  %v3875_v36 = vld [vmem:[%s6076_s3 + $0x148] sm:$0xf0] }
 0x1e5   :  { %v1279_v47 = vshll.u32 %v1257_v15, 16  ;;  %v1315_v48 = vshrl.u32 %v1311_v42, 16  ;;  %v1234_v29 = vadd.f32 %v5151_v41, %v1228_v54  ;;  %v1318_v49 = vshll.u32 %v1311_v42, 16  ;;  %v3859_v27 = vld [vmem:[%s6076_s3 + $0x128] sm:$0xf0] }
 0x1e6   :  { %1992 = vmatpush.bf16.msrb.mxu0 %v3950_v28  ;;  %v3922_v42 = vor.u32 %v4412_v35, %v3921_v53  ;;  %1790 = vmatpush.bf16.msra.mxu1 %v3898_v19  ;;  %v3865_v44 = vld [vmem:[%s6076_s3 + $0x130] sm:$0xf]  ;;  %v4398_v30 = vld [vmem:[%s6076_s3 + $0x134] sm:$0xf0]  ;;  %v3851_v35 = vld [vmem:[%s6076_s3 + $0x118] sm:$0xf0] }
 0x1e7   :  { %v1281_v58 = vsel %vm5252_vm11, %v1277_v60, %v1279_v47  ;;  %v5313_v59 = vrot.slane %v1315_v48, 7  ;;  %v1306_v4 = vmul.f32 %v1299_v55, %v1234_v29  ;;  %1815 = vmatpush.bf16.msra.mxu2 %v3886_v10  ;;  %v4399_v60 = vld [vmem:[%s6076_s3 + $0x144] sm:$0xf]  ;;  %v4410_v29 = vld [vmem:[%s6077_s4 + $0x14] sm:$0xf0] }
 0x1e8   :  { %1287 = vst [vmem:[#allocation3 + $0x8] sm:$0x1] %v1281_v58  ;;  %v1044_v1 = vpop.f32.mrf.mxu2  ;;  %v1223_v2 = vpop.f32.mrf.mxu0  ;;  %1970 = vmatpush.bf16.msra.mxu3 %v3938_v5  ;;  %v3878_v28 = vor.u32 %v4399_v60, %v3875_v36  ;;  %v3914_v56 = vor.u32 %v4410_v29, %v3913_v32  ;;  %v3881_v58 = vld [vmem:[%s6076_s3 + $0x150] sm:$0xf]  ;;  %v4393_v10 = vld [vmem:[%s6076_s3 + $0x114] sm:$0xf] }
 0x1e9   :  { %v1320_v34 = vor.u32 %v1318_v49, %v5313_v59  ;;  %v1122_v6 = vadd.f32 %v5188_v33, %v1044_v1  ;;  %v1309_v21 = vadd.f32 %v1306_v4, %v5168_v9  ;;  %v3929_v33 = vld [vmem:[%s6077_s4 + $0x30] sm:$0xf]  ;;  %v1321_v39 = vrot.slane %v5313_v59, 4  ;;  %v4402_v59 = vld [vmem:[%s6076_s3 + $0x154] sm:$0xf0] }
 0x1ea   :  { %1993 = vmatpush.bf16.msrb.mxu0 %v3942_v7  ;;  %v3930_v3 = vor.u32 %v4414_v14, %v3929_v33  ;;  %v3882_v63 = vor.u32 %v4402_v59, %v3881_v58  ;;  %v4397_v4 = vld [vmem:[%s6076_s3 + $0x134] sm:$0xf]  ;;  %v3867_v1 = vld [vmem:[%s6076_s3 + $0x138] sm:$0xf0]  ;;  %v3854_v52 = vor.u32 %v4393_v10, %v3851_v35  ;;  %v3841_v32 = vld [vmem:[%s6076_s3 + $0x100] sm:$0xf] }
 0x1eb   :  { %1342 = vst [vmem:[#allocation3 + $0x8] sm:$0x8] %v1320_v34  ;;  %v1229_v31 = vadd.f32 %v5257_v20, %v1122_v6  ;;  %v5328_v46 = vld [vmem:[#allocation3] sm:$0xff]   ;;  %v1312_v11 = vpack.c.bf16 %v1309_v21, %v1309_v21  ;;  %1816 = vmatpush.bf16.msra.mxu2 %v3878_v28  ;;  %v3870_v2 = vor.u32 %v4397_v4, %v3867_v1  ;;  %v4408_v34 = vld [vmem:[%s6077_s4 + $0x4] sm:$0xf0] }
 0x1ec   :  { %1643 = vmatmul.bf16.vlgmr.msrb.gmra.mxu3 %v5328_v46  ;;  %1666 = vmatmul.bf16.vlgmr.msra.gmra.mxu0 %v5328_v46  ;;  %v4413_v20 = vld [vmem:[%s6077_s4 + $0x34] sm:$0xf]  ;;  %v1400_v61 = vshll.u32 %v5328_v46, 16  ;;  %v4407_v6 = vld [vmem:[%s6077_s4 + $0x4] sm:$0xf]  ;;  %v3906_v21 = vor.u32 %v4408_v34, %v3905_v62 }
 0x1ed   :  { %v1235_v17 = vadd.f32 %v5151_v41, %v1229_v31  ;;  %v1323_v25 = vshrl.u32 %v1312_v11, 16  ;;  %v3934_v41 = vor.u32 %v4413_v20, %v3931_v38  ;;  %v1326_v50 = vshll.u32 %v1312_v11, 16  ;;  %1971 = vmatpush.bf16.msra.mxu3 %v3930_v3  ;;  %v4400_v3 = vld [vmem:[%s6076_s3 + $0x144] sm:$0xf0]  ;;  %v4527_v59 = vld [vmem:[#allocation3] sm:$0xf0] }
 0x1ee   :  { %v3910_v31 = vor.u32 %v4407_v6, %v3907_v24  ;;  %v1402_v14 = vrot.slane %v1400_v61, 1  ;;  %v1398_v20 = vshrl.u32 %v5328_v46, 16  ;;  %v4392_v29 = vld [vmem:[%s6076_s3 + $0x104] sm:$0xf0] }
 0x1ef   :  { %v1307_v23 = vmul.f32 %v1301_v37, %v1235_v17  ;;  %v1325_v26 = vrot.slane %v1323_v25, 7  ;;  %1994 = vmatpush.bf16.msrb.mxu0 %v3934_v41  ;;  %1817 = vmatpush.bf16.msra.mxu2 %v3870_v2  ;;  %v3873_v17 = vld [vmem:[%s6076_s3 + $0x140] sm:$0xf]  ;;  %v4395_v37 = vld [vmem:[%s6076_s3 + $0x124] sm:$0xf]  ;;  %v3842_v28 = vor.u32 %v4392_v29, %v3841_v32 }
 0x1f0   :  { %v1046_v18 = vpop.f32.mrf.mxu2  ;;  %v3874_v25 = vor.u32 %v4400_v3, %v3873_v17  ;;  %v3862_v41 = vor.u32 %v4395_v37, %v3859_v27  ;;  %v1880_v10 = vld [vmem:[#allocation11 + $0x5] ss:$8 sm:$0x3] }
 0x1f1   :  { %v1310_v15 = vadd.f32 %v1307_v23, %v5168_v9  ;;  %v1328_v54 = vor.u32 %v1326_v50, %v1325_v26  ;;  %v3889_v9 = vld [vmem:[%s6076_s3 + $0x160] sm:$0xf]  ;;  %1972 = vmatpush.bf16.msra.mxu3 %v3922_v42  ;;  %v1330_v5 = vrot.slane %v1325_v26, 4  ;;  %v1403_v23 = vor.u32 %v1402_v14, %v1398_v20  ;;  %v4396_v42 = vld [vmem:[%s6076_s3 + $0x124] sm:$0xf0] }
 0x1f2   :  { %v3890_v48 = vor.u32 %v4404_v51, %v3889_v9  ;;  %v3866_v50 = vor.u32 %v4398_v30, %v3865_v44  ;;  %v3843_v9 = vld [vmem:[%s6076_s3 + $0x108] sm:$0xf0]  ;;  %v5520_v35 = vperm.slane %v1880_v10, 0 }
 0x1f3   :  { %v1313_v45 = vpack.c.bf16 %v1310_v15, %v1310_v15  ;;  %v1329_v47 = vsel %vm5252_vm11, %v1321_v39, %v1328_v54  ;;  %1995 = vmatpush.bf16.msrb.mxu0 %v3926_v43  ;;  %1818 = vmatpush.bf16.msra.mxu2 %v3862_v41  ;;  %v3857_v15 = vld [vmem:[%s6076_s3 + $0x120] sm:$0xf]  ;;  %v3849_v39 = vld [vmem:[%s6076_s3 + $0x110] sm:$0xf]  ;;  %v4394_v54 = vld [vmem:[%s6076_s3 + $0x114] sm:$0xf0] }
 0x1f4   :  { %1343 = vst [vmem:[#allocation3 + $0xc] sm:$0xf] %v1329_v47  ;;  %1791 = vmatpush.bf16.msra.mxu1 %v3890_v48  ;;  %v3858_v40 = vor.u32 %v4396_v42, %v3857_v15  ;;  %v4391_v43 = vld [vmem:[%s6076_s3 + $0x104] sm:$0xf]  ;;  %v3850_v47 = vor.u32 %v4394_v54, %v3849_v39 }
 0x1f5   :  { %v1332_v55 = vshrl.u32 %v1313_v45, 16  ;;  %v1335_v22 = vshll.u32 %v1313_v45, 16  ;;  %1973 = vmatpush.bf16.msra.mxu3 %v3914_v56  ;;  %v3846_v51 = vor.u32 %v4391_v43, %v3843_v9 }
 0x1f7   :  { %v1334_v49 = vrot.slane %v1332_v55, 7  ;;  %1996 = vmatpush.bf16.msrb.mxu0 %v3918_v16  ;;  %1819 = vmatpush.bf16.msra.mxu2 %v3854_v52  ;;  %v2258_v52 = vld [vmem:[%s6080_s7 + $0x78] sm:$0xff] }
 0x1f8   :  { %1792 = vmatpush.bf16.msra.mxu1 %v3882_v63 }
 0x1f9   :  { %v1337_v7 = vor.u32 %v1335_v22, %v1334_v49  ;;  %1974 = vmatpush.bf16.msra.mxu3 %v3906_v21  ;;  %v4528_v49 = vld [vmem:[#allocation3] sm:$0xe] }
 0x1fa   :  { %v4529_v22 = vor.u32 %v4528_v49, %v4527_v59  ;;  %v2255_v59 = vld [vmem:[%s6080_s7 + $0x60] sm:$0xff] }
 0x1fb   :  { %v1338_v11 = vsel %vm5252_vm11, %v1330_v5, %v1337_v7  ;;  %v5426_v33 = vld [vmem:[#allocation3 + $0x8] sm:$0xff]  ;;  %1997 = vmatpush.bf16.msrb.mxu0 %v3910_v31  ;;  %1820 = vmatpush.bf16.msra.mxu2 %v3846_v51 }
 0x1fc   :  { %1344 = vst [vmem:[#allocation3 + $0x10] sm:$0x7] %v1338_v11  ;;  %1648 = vmatmul.bf16.gmra.mxu3 %v5426_v33  ;;  %1671 = vmatmul.bf16.gmra.mxu0 %v5426_v33  ;;  %v1405_v38 = vshll.u32 %v5426_v33, 16  ;;  %v1409_v55 = vshrl.u32 %v5426_v33, 16  ;;  %v1703_v16 = vrot.slane %v5426_v33, 1  ;;  %v1702_v63 = vrot.slane %v4529_v22, 1 }
 0x1fd   :  { %1793 = vmatpush.bf16.msra.mxu1 %v3874_v25  ;;  %v2266_v51 = vld [vmem:[%s6080_s7 + $0xb8] sm:$0xff] }
 0x1fe   :  { %v1407_v13 = vrot.slane %v1405_v38, 1  ;;  %v1704_v4 = vsel %vm6084_vm0, %v1702_v63, %v1703_v16 }
 0x200   :  { %v1408_v26 = vsel %vm219_vm14, %v1403_v23, %v1407_v13  ;;  %v1411_v56 = vor.u32 %v1409_v55, %v1407_v13  ;;  %v2256_v55 = vld [vmem:[%s6080_s7 + $0x68] sm:$0xff] }
 0x201   :  { %1511 = vmatmul.bf16.vlgmr.msrb.gmra.mxu1 %v1408_v26  ;;  %1534 = vmatmul.bf16.vlgmr.msrb.gmra.mxu2 %v1408_v26 }
 0x202   :  { %1794 = vmatpush.bf16.msra.mxu1 %v3866_v50  ;;  %2299 = vmatpush.msrb.mxu2 %v2266_v51 }
 0x203   :  { %v1349_v18 = vld [vmem:[#allocation3 + $0x10] sm:$0x7] }
 0x204   :  { %v1366_v19 = vld [vmem:[#allocation3 + $0x10] sm:$0xf]  ;;  %v1550_v60 = vunpack.c.l.b16 %v1349_v18 }
 0x205   :  { %v1393_v53 = vunpack.c.l.b16 %v1366_v19 }
 0x206   :  { %1795 = vmatpush.bf16.msra.mxu1 %v3858_v40  ;;  %v1551_v36 = vpack.c.b16 %v1550_v60, %v1550_v60  ;;  %v5525_v40 = vperm.slane %v1880_v10, 1  ;;  %v2257_v60 = vld [vmem:[%s6080_s7 + $0x70] sm:$0xff] }
 0x207   :  { %v1396_v45 = vpack.c.b16 %v1393_v53, %v1393_v53  ;;  %v1847_v53 = vld [vmem:[#allocation11 + $0x4] ss:$8 sm:$0x3] }
 0x208   :  { %v5530_v43 = vperm.slane %v1847_v53, 0 }
 0x209   :  { %v1413_v48 = vshll.u32 %v1396_v45, 16  ;;  %v1417_v8 = vshrl.u32 %v1396_v45, 16 }
 0x20a   :  { %1796 = vmatpush.bf16.msra.mxu1 %v3850_v47 }
 0x20b   :  { %v1415_v61 = vrot.slane %v1413_v48, 1 }
 0x20c   :  { %1653 = vmatmul.bf16.gmra.mxu3 %v1551_v36  ;;  %1676 = vmatmul.bf16.gmra.mxu0 %v1551_v36  ;;  %v4110_v36 = vld [vmem:[#allocation10 + $0x30] sm:$0xf] }
 0x20d   :  { %v1416_v57 = vsel %vm219_vm14, %v1411_v56, %v1415_v61  ;;  %v1419_v58 = vor.u32 %v1417_v8, %v1415_v61  ;;  %v2014_v8 = vld [vmem:[#allocation11 + $0x6] ss:$8 sm:$0x3] }
 0x20e   :  { %1797 = vmatpush.bf16.msra.mxu1 %v3842_v28 }
 0x211   :  { %1516 = vmatmul.bf16.gmra.mxu1 %v1416_v57  ;;  %1539 = vmatmul.bf16.gmra.mxu2 %v1416_v57 }
 0x212   :  { %2271 = vmatpush.msrb.mxu1 %v2258_v52 }
 0x214   :  { %2272 = vmatpush.msrb.mxu1 %v2257_v60 }
 0x216   :  { %2273 = vmatpush.msrb.mxu1 %v2256_v55 }
 0x218   :  { %2274 = vmatpush.msrb.mxu1 %v2255_v59 }
 0x21c   :  { %1975 = vmatmul.bf16.vlgmr.msra.gmra.mxu3 %v5328_v46  ;;  %1998 = vmatmul.bf16.vlgmr.msrb.gmra.mxu0 %v5328_v46  ;;  %v1705_v46 = vrot.slane %v1396_v45, 1 }
 0x21e   :  { %v1706_v1 = vsel %vm6084_vm0, %v1703_v16, %v1705_v46 }
 0x221   :  { %1521 = vmatmul.bf16.gmra.mxu1 %v1419_v58  ;;  %1544 = vmatmul.bf16.gmra.mxu2 %v1419_v58  ;;  %v5563_v58 = vperm.slane %v1847_v53, 1 }
 0x22c   :  { %1980 = vmatmul.bf16.gmra.mxu3 %v5426_v33  ;;  %2003 = vmatmul.bf16.gmra.mxu0 %v5426_v33 }
 0x231   :  { %1798 = vmatmul.bf16.vlgmr.msra.gmra.mxu1 %v1704_v4  ;;  %1821 = vmatmul.bf16.vlgmr.msra.gmra.mxu2 %v1704_v4 }
 0x23c   :  { %1985 = vmatmul.bf16.gmra.mxu3 %v1396_v45  ;;  %2008 = vmatmul.bf16.gmra.mxu0 %v1396_v45 }
 0x241   :  { %1803 = vmatmul.bf16.gmra.mxu1 %v1706_v1  ;;  %1826 = vmatmul.bf16.gmra.mxu2 %v1706_v1 }
 0x251   :  { %1808 = vmatmul.bf16.gmra.mxu1 %v1705_v46  ;;  %1831 = vmatmul.bf16.gmra.mxu2 %v1705_v46  ;;  %v2254_v46 = vld [vmem:[%s6080_s7 + $0x58] sm:$0xff] }
 0x252   :  { %2275 = vmatpush.msrb.mxu1 %v2254_v46 }
 0x269   :  { %v1667_v2 = vpop.f32.mrf.mxu0 }
 0x26f   :  { %v1644_v62 = vpop.f32.mrf.mxu3 }
 0x271   :  { %v5490_v34 = vpop.f32.mrf.mxu0 }
 0x277   :  { %v5492_v6 = vpop.f32.mrf.mxu3 }
 0x279   :  { %v5494_v5 = vpop.f32.mrf.mxu0 }
 0x27e   :  { %v1512_v7 = vpop.f32.mrf.mxu1 }
 0x27f   :  { %v5496_v21 = vpop.f32.mrf.mxu3  ;;  %v1645_v42 = vadd.f32 %v1644_v62, %v1512_v7  ;;  %v5574_v62 = vperm.slane %v2014_v8, 0 }
 0x281   :  { %v5498_v24 = vpop.f32.mrf.mxu0 }
 0x284   :  { %v1535_v31 = vpop.f32.mrf.mxu2 }
 0x285   :  { %v1668_v56 = vadd.f32 %v1667_v2, %v1535_v31 }
 0x286   :  { %v1514_v11 = vpop.f32.mrf.mxu1 }
 0x287   :  { %v5500_v33 = vpop.f32.mrf.mxu3  ;;  %v1647_v63 = vadd.f32 %v5492_v6, %v1514_v11  ;;  %v5581_v11 = vperm.slane %v2014_v8, 1 }
 0x289   :  { %v5502_v14 = vpop.f32.mrf.mxu0 }
 0x28c   :  { %v5504_v17 = vpop.f32.mrf.mxu2 }
 0x28d   :  { %v1670_v52 = vadd.f32 %v5490_v34, %v5504_v17 }
 0x28e   :  { %v5506_v3 = vpop.f32.mrf.mxu1 }
 0x28f   :  { %v5508_v20 = vpop.f32.mrf.mxu3 }
 0x291   :  { %v1679_v38 = vpop.f32.mrf.mxu0 }
 0x292   :  { %v2265_v38 = vld [vmem:[%s6080_s7 + $0xb0] sm:$0xff] }
 0x293   :  { %2300 = vmatpush.msrb.mxu2 %v2265_v38 }
 0x294   :  { %v5510_v25 = vpop.f32.mrf.mxu2 }
 0x296   :  { %v5512_v37 = vpop.f32.mrf.mxu1 }
 0x297   :  { %v1656_v27 = vpop.f32.mrf.mxu3 }
 0x299   :  { %v1999_v41 = vpop.f32.mrf.mxu0 }
 0x29a   :  { %v2000_v61 = vadd.f32 %v1999_v41, %v5525_v40 }
 0x29c   :  { %v5514_v23 = vpop.f32.mrf.mxu2  ;;  %v2025_v1 = vrot.slane %v2000_v61, 1 }
 0x29e   :  { %v5516_v13 = vpop.f32.mrf.mxu1 }
 0x29f   :  { %v1976_v44 = vpop.f32.mrf.mxu3 }
 0x2a0   :  { %v1977_v47 = vadd.f32 %v1976_v44, %v5520_v35 }
 0x2a1   :  { %v2001_v30 = vpop.f32.mrf.mxu0 }
 0x2a2   :  { %v5540_v48 = vadd.f32 %v2001_v30, %v5525_v40  ;;  %v2022_v49 = vrot.slane %v1977_v47, 1  ;;  %v2253_v30 = vld [vmem:[%s6080_s7 + $0x50] sm:$0xff]  ;;  %v2250_v47 = vld [vmem:[%s6080_s7 + $0x38] sm:$0xff] }
 0x2a3   :  { %2276 = vmatpush.msrb.mxu1 %v2253_v30  ;;  %v4691_v30 = vmov 16.0  }
 0x2a4   :  { %v5518_v26 = vpop.f32.mrf.mxu2  ;;  %v2026_v22 = vrot.slane %v5540_v48, 1  ;;  %v1650_v48 = vadd.f32 %v5496_v21, %v5506_v3  ;;  %v1673_v21 = vadd.f32 %v5494_v5, %v5510_v25  ;;  %v2248_v5 = vld [vmem:[%s6080_s7 + $0x28] sm:$0xff]  ;;  %v1652_v25 = vadd.f32 %v5500_v33, %v5512_v37  ;;  %v2247_v37 = vld [vmem:[%s6080_s7 + $0x20] sm:$0xff] }
 0x2a5   :  { %4543 = vrcp.f32 %v4691_v30 }
 0x2a6   :  { %v1524_v50 = vpop.f32.mrf.mxu1 }
 0x2a7   :  { %v1978_v18 = vpop.f32.mrf.mxu3  ;;  %v2027_v50 = vsel %vm6084_vm0, %v2025_v1, %v2026_v22 }
 0x2a8   :  { %v5528_v39 = vadd.f32 %v1978_v18, %v5520_v35 }
 0x2a9   :  { %v2004_v19 = vpop.f32.mrf.mxu0 }
 0x2aa   :  { %v2023_v28 = vrot.slane %v5528_v39, 1  ;;  %v2005_v18 = vadd.f32 %v2004_v19, %v5525_v40 }
 0x2ac   :  { %v1547_v15 = vpop.f32.mrf.mxu2  ;;  %v2024_v2 = vsel %vm6084_vm0, %v2022_v49, %v2023_v28  ;;  %v2249_v49 = vld [vmem:[%s6080_s7 + $0x30] sm:$0xff] }
 0x2ad   :  { %v2252_v15 = vld [vmem:[%s6080_s7 + $0x48] sm:$0xff] }
 0x2ae   :  { %v1799_v54 = vpop.f32.mrf.mxu1  ;;  %2277 = vmatpush.msrb.mxu1 %v2252_v15 }
 0x2af   :  { %v1836_v45 = vadd.f32 %v1799_v54, %v1645_v42  ;;  %v1981_v9 = vpop.f32.mrf.mxu3 }
 0x2b0   :  { %v1982_v7 = vadd.f32 %v1981_v9, %v5520_v35  ;;  %v5607_v9 = vrot.slane %v2005_v18, 1 }
 0x2b1   :  { %v2006_v32 = vpop.f32.mrf.mxu0  ;;  %v1853_v57 = vadd.f32 %v5530_v43, %v1836_v45  ;;  %v2251_v45 = vld [vmem:[%s6080_s7 + $0x40] sm:$0xff] }
 0x2b2   :  { %v5593_v42 = vrot.slane %v1982_v7, 1  ;;  %2278 = vmatpush.msrb.mxu1 %v2251_v45  ;;  %v5610_v60 = vadd.f32 %v2006_v32, %v5525_v40  ;;  %v2031_v3 = vsel %vm6084_vm0, %v2026_v22, %v5607_v9  ;;  %v5645_v22 = vadd.f32 %v5498_v24, %v5514_v23  ;;  %v4118_v7 = vld [vmem:[#allocation10 + $0x40] sm:$0xf] }
 0x2b3   :  { %v2038_v27 = vmul.f32 %v2024_v2, %v1853_v57  ;;  %v5668_v23 = vadd.f32 %v5508_v20, %v5516_v13  ;;  %v2246_v20 = vld [vmem:[%s6080_s7 + $0x18] sm:$0xff] }
 0x2b4   :  { %v1822_v16 = vpop.f32.mrf.mxu2  ;;  %v2029_v55 = vsel %vm6084_vm0, %v2023_v28, %v5593_v42  ;;  %2279 = vmatpush.msrb.mxu1 %v2250_v47 }
 0x2b5   :  { %v1837_v4 = vadd.f32 %v1822_v16, %v1668_v56  ;;  %v5598_v39 = vadd.f32 %v5574_v62, %v2038_v27  ;;  %v2264_v16 = vld [vmem:[%s6080_s7 + $0xa8] sm:$0xff] }
 0x2b6   :  { %v1801_v31 = vpop.f32.mrf.mxu1  ;;  %2280 = vmatpush.msrb.mxu1 %v2249_v49  ;;  %2301 = vmatpush.msrb.mxu2 %v2264_v16  ;;  %v2261_v49 = vld [vmem:[%s6080_s7 + $0x90] sm:$0xff] }
 0x2b7   :  { %v1854_v6 = vadd.f32 %v5563_v58, %v1837_v4  ;;  %v1838_v41 = vadd.f32 %v1801_v31, %v1647_v63  ;;  %v1983_v44 = vpop.f32.mrf.mxu3  ;;  %v2142_v63 = vrot.slane %v5610_v60, 1  ;;  %v2097_v13 = vrot.slane %v5598_v39, 1 }
 0x2b8   :  { %v5622_v61 = vadd.f32 %v1983_v44, %v5520_v35  ;;  %2281 = vmatpush.msrb.mxu1 %v2248_v5 }
 0x2b9   :  { %v2039_v10 = vmul.f32 %v2027_v50, %v1854_v6  ;;  %v5588_v53 = vpop.f32.mrf.mxu0  ;;  %v1855_v19 = vadd.f32 %v5530_v43, %v1838_v41  ;;  %v2143_v18 = vsel %vm6084_vm0, %v5607_v9, %v2142_v63 }
 0x2ba   :  { %v2140_v31 = vrot.slane %v5622_v61, 1  ;;  %2282 = vmatpush.msrb.mxu1 %v2247_v37  ;;  %v2259_v61 = vld [vmem:[%s6080_s7 + $0x80] sm:$0xff] }
 0x2bb   :  { %v5601_v54 = vadd.f32 %v5581_v11, %v2039_v10  ;;  %v2040_v57 = vmul.f32 %v2029_v55, %v1855_v19  ;;  %v5684_v10 = vadd.f32 %v5588_v53, %v5525_v40  ;;  %v2263_v40 = vld [vmem:[%s6080_s7 + $0xa0] sm:$0xff]  ;;  %v2262_v53 = vld [vmem:[%s6080_s7 + $0x98] sm:$0xff] }
 0x2bc   :  { %v1824_v51 = vpop.f32.mrf.mxu2  ;;  %2283 = vmatpush.msrb.mxu1 %v2246_v20  ;;  %2302 = vmatpush.msrb.mxu2 %v2263_v40 }
 0x2bd   :  { %v2055_v34 = vpack.c.bf16 %v5601_v54, %v5598_v39  ;;  %v1839_v17 = vadd.f32 %v1824_v51, %v1670_v52  ;;  %v2051_v6 = vadd.f32 %v5574_v62, %v2040_v57  ;;  %v2141_v52 = vsel %vm6084_vm0, %v5593_v42, %v2140_v31 }
 0x2be   :  { %v1804_v32 = vpop.f32.mrf.mxu1  ;;  %v2146_v16 = vrot.slane %v5684_v10, 1  ;;  %2303 = vmatpush.msrb.mxu2 %v2262_v53 }
 0x2bf   :  { %v2059_v56 = vshrl.u32 %v2055_v34, 16  ;;  %v1856_v8 = vadd.f32 %v5563_v58, %v1839_v17  ;;  %v1986_v59 = vpop.f32.mrf.mxu3  ;;  %v1840_v28 = vadd.f32 %v1804_v32, %v1650_v48  ;;  %v2062_v46 = vshll.u32 %v2055_v34, 16  ;;  %v2245_v32 = vld [vmem:[%s6080_s7 + $0x10] sm:$0xff] }
 0x2c0   :  { %v5661_v24 = vadd.f32 %v1986_v59, %v5520_v35  ;;  %v2098_v45 = vrot.slane %v2051_v6, 1  ;;  %2284 = vmatpush.msrb.mxu1 %v2245_v32  ;;  %2304 = vmatpush.msrb.mxu2 %v2261_v49  ;;  %v2147_v20 = vsel %vm6084_vm0, %v2142_v63, %v2146_v16 }
 0x2c1   :  { %v5636_v4 = vrot.slane %v2059_v56, 7  ;;  %v2041_v1 = vmul.f32 %v2031_v3, %v1856_v8  ;;  %v2011_v2 = vpop.f32.mrf.mxu0  ;;  %v1857_v38 = vadd.f32 %v5530_v43, %v1840_v28  ;;  %v5710_v3 = vpop.eup %4543  ;;  %v2100_v28 = vrot.slane %v5601_v54, 1  ;;  %v2260_v54 = vld [vmem:[%s6080_s7 + $0x88] sm:$0xff] }
 0x2c2   :  { %v2144_v34 = vrot.slane %v5661_v24, 1  ;;  %v2099_v5 = vsel %vm6084_vm0, %v2097_v13, %v2098_v45  ;;  %2305 = vmatpush.msrb.mxu2 %v2260_v54  ;;  %vm2132_vm1 = vweird.f32 %v5710_v3 }
 0x2c3   :  { %v2064_v27 = vor.u32 %v2062_v46, %v5636_v4  ;;  %v5658_v33 = vadd.f32 %v5581_v11, %v2041_v1  ;;  %v2042_v41 = vmul.f32 %v5593_v42, %v1857_v38  ;;  %v2154_v48 = vmul.f32 %v2141_v52, %v1857_v38  ;;  %v2243_v1 = vld [vmem:[%s6080_s7] sm:$0xff] }
 0x2c4   :  { %v1827_v44 = vpop.f32.mrf.mxu2  ;;  %v2065_v2 = vrot.slane %v5636_v4, 4  ;;  %v2145_v4 = vsel %vm6084_vm0, %v2140_v31, %v2144_v34  ;;  %2306 = vmatpush.msrb.mxu2 %v2259_v61 }
 0x2c5   :  { %2085 = vst.msk [vmem:[#allocation5] sm:$0xee] %vm5649_vm8, %v2064_v27  ;;  %v2056_v35 = vpack.c.bf16 %v5658_v33, %v2051_v6  ;;  %v1841_v50 = vadd.f32 %v1827_v44, %v1673_v21  ;;  %v2053_v15 = vadd.f32 %v5574_v62, %v2042_v41  ;;  %v2101_v47 = vrot.slane %v5658_v33, 1  ;;  %v2244_v21 = vld [vmem:[%s6080_s7 + $0x8] sm:$0xff] }
 0x2c6   :  { %v1806_v19 = vpop.f32.mrf.mxu1  ;;  %2285 = vmatpush.msrb.mxu1 %v2244_v21  ;;  %v5726_v6 = vadd.f32 %v2154_v48, %v5574_v62 }
 0x2c7   :  { %v2067_v51 = vshrl.u32 %v2056_v35, 16  ;;  %v1858_v17 = vadd.f32 %v5563_v58, %v1841_v50  ;;  %v1988_v39 = vpop.f32.mrf.mxu3  ;;  %v2103_v42 = vrot.slane %v2053_v15, 1  ;;  %v1842_v55 = vadd.f32 %v1806_v19, %v1652_v25 }
 0x2c8   :  { %v2070_v57 = vshll.u32 %v2056_v35, 16  ;;  %v2102_v44 = vsel %vm6084_vm0, %v2100_v28, %v2101_v47  ;;  %2286 = vmatpush.msrb.mxu1 %v2243_v1 }
 0x2c9   :  { %v2069_v56 = vrot.slane %v2067_v51, 7  ;;  %v2043_v8 = vmul.f32 %v5607_v9, %v1858_v17  ;;  %v2155_v59 = vmul.f32 %v2143_v18, %v1858_v17  ;;  %v2104_v46 = vsel %vm6084_vm0, %v2098_v45, %v2103_v42 }
 0x2ca   :  { %v1859_v9 = vadd.f32 %v5530_v43, %v1842_v55  ;;  %v2111_v27 = vadd.f32 %v2104_v46, %v2099_v5  ;;  %v2118_v51 = vsel %vm283_vm13, %v2102_v44, 0.0 }
 0x2cb   :  { %v2072_v25 = vor.u32 %v2070_v57, %v2069_v56  ;;  %v2054_v38 = vadd.f32 %v5581_v11, %v2043_v8  ;;  %v5729_v33 = vadd.f32 %v2155_v59, %v5581_v11  ;;  %v2317_v57 = vld [vmem:[#allocation13 + $0x10] sm:$0xf]  ;;  %v2315_v8 = vld [vmem:[#allocation13] sm:$0xff]  ;;  %v1678_v59 = vadd.f32 %v5502_v14, %v5518_v26 }
 0x2cc   :  { %v1829_v37 = vpop.f32.mrf.mxu2  ;;  %v2156_v18 = vmul.f32 %v2145_v4, %v1859_v9  ;;  %v2112_v17 = vrot.slane %v2111_v27, 4  ;;  %3968 = vmatpush.msk.msrb.mxu3 %vm2086_vm9, %v2317_v57 }
 0x2cd   :  { %v2057_v30 = vpack.c.bf16 %v2054_v38, %v2053_v15  ;;  %v2105_v35 = vrot.slane %v2054_v38, 1  ;;  %v1843_v50 = vadd.f32 %v1829_v37, %v5645_v22  ;;  %v2166_v31 = vpack.c.bf16 %v5729_v33, %v5726_v6 }
 0x2ce   :  { %v1809_v13 = vpop.f32.mrf.mxu1  ;;  %v2073_v22 = vsel %vm5252_vm11, %v2065_v2, %v2072_v25  ;;  %v2074_v15 = vrot.slane %v2069_v56, 4  ;;  %v2162_v55 = vadd.f32 %v2156_v18, %v5574_v62  ;;  %v2128_v2 = vmul.f32 16.0, %v5710_v3  ;;  %2351 = vmatpush.msrb.mxu3 %v2315_v8 }
 0x2cf   :  { %v2076_v52 = vshll.u32 %v2057_v30, 16  ;;  %v2106_v19 = vsel %vm6084_vm0, %v2101_v47, %v2105_v35  ;;  %v1860_v45 = vadd.f32 %v5563_v58, %v1843_v50  ;;  %2089 = vst.msk [vmem:[#allocation5 + $0x8] sm:$0xff] %vm5738_vm12, %v2073_v22  ;;  %v2170_v63 = vshrl.u32 %v2166_v31, 16 }
 0x2d0   :  { %v2119_v60 = vsel %vm283_vm13, %v2106_v19, 0.0  ;;  %v1844_v42 = vadd.f32 %v1809_v13, %v5668_v23  ;;  %v2173_v48 = vshll.u32 %v2166_v31, 16  ;;  %v2113_v23 = vadd.f32 %v2112_v17, %v2111_v27 }
 0x2d1   :  { %v2078_v39 = vsel %vm5252_vm11, %v2074_v15, %v2076_v52  ;;  %v2120_v40 = vadd.f32 %v2119_v60, %v2118_v51  ;;  %v2157_v53 = vmul.f32 %v2147_v20, %v1860_v45  ;;  %v2172_v47 = vrot.slane %v2170_v63, 7 }
 0x2d2   :  { %2090 = vst.msk [vmem:[#allocation5 + $0x10] sm:$0x11] %vm5543_vm3, %v2078_v39  ;;  %v1861_v56 = vadd.f32 %v5530_v43, %v1844_v42  ;;  %v2210_v9 = vrot.slane %v2162_v55, 5  ;;  %v2209_v25 = vrot.slane %v5726_v6, 5  ;;  %v2114_v27 = vrot.slane %v2113_v23, 2 }
 0x2d3   :  { %v2163_v32 = vadd.f32 %v2157_v53, %v5581_v11  ;;  %v2175_v49 = vor.u32 %v2173_v48, %v2172_v47  ;;  %v2121_v5 = vrot.slane %v2120_v40, 4  ;;  %v2129_v30 = vsub.f32 1.0, %v2128_v2 }
 0x2d4   :  { %v1832_v21 = vpop.f32.mrf.mxu2  ;;  %v2158_v46 = vmul.f32 %v2144_v34, %v1861_v56  ;;  %v2211_v4 = vsel %vm6083_vm7, %v2209_v25, %v2210_v9  ;;  %v2176_v50 = vrot.slane %v2172_v47, 4  ;;  %v2212_v6 = vrot.slane %v5729_v33, 5 }
 0x2d5   :  { %v2167_v28 = vpack.c.bf16 %v2163_v32, %v2162_v55  ;;  %2197 = vst.msk [vmem:[#allocation5 + $0x10] sm:$0x88] %vm5550_vm4, %v2175_v49  ;;  %v1845_v1 = vadd.f32 %v1832_v21, %v1678_v59  ;;  %v2213_v37 = vrot.slane %v2163_v32, 5  ;;  %v2122_v35 = vadd.f32 %v2121_v5, %v2120_v40 }
 0x2d6   :  { %v1811_v43 = vpop.f32.mrf.mxu1  ;;  %v2164_v26 = vadd.f32 %v2158_v46, %v5574_v62  ;;  %v2115_v20 = vadd.f32 %v2114_v27, %v2113_v23  ;;  %v2130_v52 = vmul.f32 %v5710_v3, %v2129_v30 }
 0x2d7   :  { %v2178_v14 = vshrl.u32 %v2167_v28, 16  ;;  %v1862_v38 = vadd.f32 %v5563_v58, %v1845_v1  ;;  %v2181_v24 = vshll.u32 %v2167_v28, 16  ;;  %v2214_v22 = vsel %vm6083_vm7, %v2212_v6, %v2213_v37 }
 0x2d8   :  { %v2215_v34 = vrot.slane %v2164_v26, 5  ;;  %v2123_v19 = vrot.slane %v2122_v35, 2  ;;  %v2230_v51 = vsel %vm283_vm13, %v2214_v22, 0.0  ;;  %v2116_v60 = vrot.slane %v2115_v20, 1 }
 0x2d9   :  { %v2180_v54 = vrot.slane %v2178_v14, 7  ;;  %v2159_v44 = vmul.f32 %v2146_v16, %v1862_v38  ;;  %v2131_v42 = vadd.f32 %v5710_v3, %v2130_v52 }
 0x2da   :  { %v2216_v62 = vsel %vm6083_vm7, %v2210_v9, %v2215_v34  ;;  %v2124_v47 = vadd.f32 %v2123_v19, %v2122_v35  ;;  %v2117_v49 = vadd.f32 %v2116_v60, %v2115_v20  ;;  %v2267_v34 = vld [vmem:[#allocation11 + $0x7] ss:$0 sm:$0xff]  ;;  %v4463_v20 = vld [vmem:[#allocation10 + $0x134] sm:$0xf]  ;;  %v4032_v19 = vld [vmem:[#allocation10 + $0x120] sm:$0xf] }
 0x2db   :  { %v2183_v61 = vor.u32 %v2181_v24, %v2180_v54  ;;  %v2223_v31 = vadd.f32 %v2216_v62, %v2211_v4  ;;  %v2165_v58 = vadd.f32 %v2159_v44, %v5581_v11  ;;  %v2185_v48 = vrot.slane %v2180_v54, 4  ;;  %v2318_v24 = vld [vmem:[#allocation13 + $0x18] sm:$0xf]  ;;  %v2311_v44 = vld [vmem:[#allocation11 + $0x10] ss:$0 sm:$0xff] }
 0x2dc   :  { %v1834_v18 = vpop.f32.mrf.mxu2  ;;  %v2133_v23 = vsel %vm2132_vm1, %v5710_v3, %v2131_v42  ;;  %v2125_v46 = vrot.slane %v2124_v47, 1  ;;  %3970 = vmatpush.msk.msra.mxu1 %vm2086_vm9, %v2318_v24  ;;  %v2316_v3 = vld [vmem:[#allocation13 + $0x8] sm:$0xff]  ;;  %v4467_v24 = vld [vmem:[#allocation10 + $0x154] sm:$0xf]  ;;  %vm121_vm9 = vcmask 1041409  }
 0x2dd   :  { %v2184_v13 = vsel %vm5252_vm11, %v2176_v50, %v2183_v61  ;;  %v2224_v10 = vrot.slane %v2223_v31, 4  ;;  %v2168_v16 = vpack.c.bf16 %v2165_v58, %v2164_v26  ;;  %v2217_v15 = vrot.slane %v2165_v58, 5  ;;  %v2320_v61 = vld [vmem:[#allocation11 + $0x11] ss:$8 sm:$0x3] }
 0x2de   :  { %2198 = vst.msk [vmem:[#allocation5 + $0x18] sm:$0xff] %vm5738_vm12, %v2184_v13  ;;  %v2134_v1 = vmul.f32 %v2133_v23, %v2117_v49  ;;  %v2126_v14 = vadd.f32 %v2125_v46, %v2124_v47  ;;  %2371 = vmatpush.msra.mxu1 %v2316_v3  ;;  %v2323_v62 = vperm.slane %v2320_v61, 1  ;;  %v4040_v58 = vld [vmem:[#allocation10 + $0x130] sm:$0xf]  ;;  %v4464_v18 = vld [vmem:[#allocation10 + $0x134] sm:$0xf0] }
 0x2df   :  { %v2225_v33 = vadd.f32 %v2224_v10, %v2223_v31  ;;  %v2187_v45 = vshrl.u32 %v2168_v16, 16  ;;  %v2218_v11 = vsel %vm6083_vm7, %v2213_v37, %v2217_v15  ;;  %v2190_v39 = vshll.u32 %v2168_v16, 16  ;;  %v4042_v16 = vld [vmem:[#allocation10 + $0x138] sm:$0xf0]  ;;  %v4018_v49 = vld [vmem:[#allocation10 + $0x108] sm:$0xf0] }
 0x2e0   :  { %v2231_v17 = vsel %vm283_vm13, %v2218_v11, 0.0  ;;  %v2135_v25 = vmul.f32 %v2133_v23, %v2126_v14  ;;  %v2322_v22 = vperm.slane %v2320_v61, 0  ;;  %v4041_v10 = vor.u32 %v4464_v18, %v4040_v58  ;;  %v4058_v3 = vld [vmem:[#allocation10 + $0x158] sm:$0xf0] }
 0x2e1   :  { %v2189_v63 = vrot.slane %v2187_v45, 7  ;;  %v2232_v40 = vadd.f32 %v2231_v17, %v2230_v51  ;;  %v2226_v53 = vrot.slane %v2225_v33, 2  ;;  %v4045_v15 = vor.u32 %v4463_v20, %v4042_v16  ;;  %v4461_v45 = vld [vmem:[#allocation10 + $0x124] sm:$0xf]  ;;  %v4034_v17 = vld [vmem:[#allocation10 + $0x128] sm:$0xf0] }
 0x2e2   :  { %2714 = vmatpush.bf16.msra.mxu2 %v4041_v10  ;;  %v4037_v60 = vor.u32 %v4461_v45, %v4034_v17  ;;  %v4064_v20 = vld [vmem:[#allocation10 + $0x160] sm:$0xf]  ;;  %v4453_v16 = vld [vmem:[#allocation10 + $0xe4] sm:$0xf]  ;;  %v4452_v45 = vld [vmem:[#allocation10 + $0xd4] sm:$0xf0] }
 0x2e3   :  { %v2192_v55 = vor.u32 %v2190_v39, %v2189_v63  ;;  %v2233_v56 = vrot.slane %v2232_v40, 4  ;;  %v2227_v57 = vadd.f32 %v2226_v53, %v2225_v33  ;;  %v4462_v33 = vld [vmem:[#allocation10 + $0x124] sm:$0xf0]  ;;  %v4024_v39 = vld [vmem:[#allocation10 + $0x110] sm:$0xf]  ;;  %vm154_vm7 = vcmask 522246  }
 0x2e4   :  { %v4033_v51 = vor.u32 %v4462_v33, %v4032_v19  ;;  %v4459_v53 = vld [vmem:[#allocation10 + $0x114] sm:$0xf] }
 0x2e5   :  { %v2193_v8 = vsel %vm5252_vm11, %v2185_v48, %v2192_v55  ;;  %v2234_v59 = vadd.f32 %v2233_v56, %v2232_v40  ;;  %v2228_v21 = vrot.slane %v2227_v57, 1  ;;  %v4460_v40 = vld [vmem:[#allocation10 + $0x114] sm:$0xf0]  ;;  %v4026_v48 = vld [vmem:[#allocation10 + $0x118] sm:$0xf0] }
 0x2e6   :  { %2202 = vst.msk [vmem:[#allocation5 + $0x20] sm:$0x77] %vm5799_vm5, %v2193_v8  ;;  %2715 = vmatpush.bf16.msra.mxu2 %v4033_v51  ;;  %v4025_v47 = vor.u32 %v4460_v40, %v4024_v39  ;;  %v4029_v56 = vor.u32 %v4459_v53, %v4026_v48  ;;  %v4458_v8 = vld [vmem:[#allocation10 + $0x104] sm:$0xf0]  ;;  %v4468_v51 = vld [vmem:[#allocation10 + $0x154] sm:$0xf0] }
 0x2e7   :  { %v2229_v28 = vadd.f32 %v2228_v21, %v2227_v57  ;;  %v2235_v9 = vrot.slane %v2234_v59, 2  ;;  %v4016_v57 = vld [vmem:[#allocation10 + $0x100] sm:$0xf]  ;;  %v4465_v39 = vld [vmem:[#allocation10 + $0x144] sm:$0xf] }
 0x2e8   :  { %v5834_v53 = vld [vmem:[#allocation5] sm:$0xee] }
 0x2e9   :  { %v2239_v43 = vmul.f32 %v2229_v28, %v2133_v23  ;;  %v2236_v2 = vadd.f32 %v2235_v9, %v2234_v59  ;;  %v4457_v59 = vld [vmem:[#allocation10 + $0x104] sm:$0xf]  ;;  %v4471_v9 = vld [vmem:[#allocation10 + $0x174] sm:$0xf] }
 0x2ea   :  { %2716 = vmatpush.bf16.msra.mxu2 %v4025_v47  ;;  %v4021_v28 = vor.u32 %v4457_v59, %v4018_v49 }
 0x2eb   :  { %v2241_v5 = vsel %vm117_vm2, %v2134_v1, %v2239_v43  ;;  %v2237_v26 = vrot.slane %v2236_v2, 1  ;;  %v4074_v1 = vld [vmem:[#allocation10 + $0x178] sm:$0xf0]  ;;  %v4469_v43 = vld [vmem:[#allocation10 + $0x164] sm:$0xf] }
 0x2ec   :  { %2287 = vmatmul.f32.vlgmr.msrb.gmra.mxu1 %v2241_v5  ;;  %v4077_v14 = vor.u32 %v4471_v9, %v4074_v1  ;;  %v4048_v1 = vld [vmem:[#allocation10 + $0x140] sm:$0xf] }
 0x2ed   :  { %v2238_v12 = vadd.f32 %v2237_v26, %v2236_v2  ;;  %2760 = vmatpush.bf16.msrb.mxu1 %v4045_v15  ;;  %v4066_v26 = vld [vmem:[#allocation10 + $0x168] sm:$0xf0] }
 0x2ee   :  { %2787 = vmatpush.bf16.msra.mxu0 %v4077_v14  ;;  %v4002_v15 = vld [vmem:[#allocation10 + $0xe8] sm:$0xf0]  ;;  %v2418_v14 = vunpack.c.h.bf16 %v5834_v53 }
 0x2ef   :  { %v2240_v38 = vmul.f32 %v2238_v12, %v2133_v23  ;;  %v4017_v23 = vor.u32 %v4458_v8, %v4016_v57  ;;  %v4008_v12 = vld [vmem:[#allocation10 + $0xf0] sm:$0xf]  ;;  %v4005_v33 = vor.u32 %v4453_v16, %v4002_v15  ;;  %v5847_v8 = vld [vmem:[#allocation5 + $0x10] sm:$0x11]  ;;  %v4166_v57 = vld [vmem:[#allocation10 + $0xa0] sm:$0xf] }
 0x2f1   :  { %v2242_v54 = vsel %vm117_vm2, %v2135_v25, %v2240_v38  ;;  %2761 = vmatpush.bf16.msrb.mxu1 %v4037_v60  ;;  %2717 = vmatpush.bf16.msra.mxu2 %v4017_v23  ;;  %v4456_v25 = vld [vmem:[#allocation10 + $0xf4] sm:$0xf0]  ;;  %v4451_v60 = vld [vmem:[#allocation10 + $0xd4] sm:$0xf]  ;;  %v4450_v23 = vld [vmem:[#allocation10 + $0xc4] sm:$0xf0] }
 0x2f2   :  { %3967 = vmatmul.msk.f32.vlgmr.msrb.gmra.mxu2 %vm283_vm13, %v2242_v54  ;;  %v4069_v54 = vor.u32 %v4469_v43, %v4066_v26  ;;  %v4466_v43 = vld [vmem:[#allocation10 + $0x144] sm:$0xf0]  ;;  %v4449_v26 = vld [vmem:[#allocation10 + $0xc4] sm:$0xf] }
 0x2f4   :  { %2788 = vmatpush.bf16.msra.mxu0 %v4069_v54 }
 0x2f5   :  { %2762 = vmatpush.bf16.msrb.mxu1 %v4029_v56  ;;  %v4050_v56 = vld [vmem:[#allocation10 + $0x148] sm:$0xf0] }
 0x2f6   :  { %v4053_v49 = vor.u32 %v4465_v39, %v4050_v56  ;;  %v4176_v39 = vld [vmem:[#allocation10 + $0xb8] sm:$0xf0] }
 0x2f9   :  { %2763 = vmatpush.bf16.msrb.mxu1 %v4021_v28 }
 0x369   :  { %v2288_v27 = vpop.f32.mrf.mxu1 }
 0x36a   :  { %v2289_v4 = vadd.f32 %v2288_v27, %v2267_v34  ;;  %v4072_v34 = vld [vmem:[#allocation10 + $0x170] sm:$0xf] }
 0x375   :  { %v2308_v37 = vpop.f32.mrf.mxu2 }
 0x376   :  { %v2309_v30 = vadd.f32 %v2308_v37, %v2289_v4  ;;  %v4009_v37 = vor.u32 %v4456_v25, %v4008_v12  ;;  %v3986_v12 = vld [vmem:[#allocation10 + $0xc8] sm:$0xf0] }
 0x377   :  { %v5860_v25 = vld [vmem:[#allocation5 + $0x10] sm:$0x88] }
 0x378   :  { %vm2312_vm11 = vcmp.gt.f32.partialorder %v2309_v30, 0.0  ;;  %v2313_v35 = vmul.f32 %v2311_v44, %v2309_v30  ;;  %v4472_v44 = vld [vmem:[#allocation10 + $0x174] sm:$0xf0]  ;;  %2718 = vmatpush.bf16.msra.mxu2 %v4009_v37  ;;  %v2440_v15 = vunpack.c.l.bf16 %v5860_v25 }
 0x379   :  { %v4073_v61 = vor.u32 %v4472_v44, %v4072_v34 }
 0x37a   :  { %v2314_v50 = vsel %vm2312_vm11, %v2309_v30, %v2313_v35  ;;  %v4455_v30 = vld [vmem:[#allocation10 + $0xf4] sm:$0xf]  ;;  %v4010_v35 = vld [vmem:[#allocation10 + $0xf8] sm:$0xf0] }
 0x37b   :  { %3969 = vmatmul.msk.f32.vlgmr.msrb.gmra.mxu3 %vm2326_vm6, %v2314_v50  ;;  %3971 = vmatmul.msk.f32.vlgmr.msra.gmra.mxu1 %vm2326_vm6, %v2314_v50  ;;  %vm153_vm6 = vcmask 1042434  }
 0x37c   :  { %2741 = vmatpush.bf16.msra.mxu3 %v4073_v61  ;;  %v3989_v61 = vor.u32 %v4449_v26, %v3986_v12 }
 0x3f8   :  { %v2373_v6 = vpop.f32.mrf.mxu1 }
 0x3f9   :  { %v2374_v31 = vadd.f32 %v2373_v6, %v2323_v62  ;;  %v4013_v62 = vor.u32 %v4455_v30, %v4010_v35  ;;  %v4000_v6 = vld [vmem:[#allocation10 + $0xe0] sm:$0xf]  ;;  %v4049_v30 = vor.u32 %v4466_v43, %v4048_v1 }
 0x3fb   :  { %v3973_v13 = vmul.f32 -1.442695, %v2374_v31  ;;  %v4454_v31 = vld [vmem:[#allocation10 + $0xe4] sm:$0xf0]  ;;  %2764 = vmatpush.bf16.msrb.mxu1 %v4013_v62  ;;  %v4142_v62 = vld [vmem:[#allocation10 + $0x70] sm:$0xf] }
 0x3fc   :  { %v4001_v18 = vor.u32 %v4454_v31, %v4000_v6  ;;  %v4440_v6 = vld [vmem:[#allocation10 + $0x74] sm:$0xf0]  ;;  %v4174_v31 = vld [vmem:[#allocation10 + $0xb0] sm:$0xf] }
 0x3fd   :  { %4545 = vpow2.f32 %v3973_v13  ;;  %v4470_v13 = vld [vmem:[#allocation10 + $0x164] sm:$0xf0] }
 0x3fe   :  { %v2353_v52 = vpop.f32.mrf.mxu3  ;;  %v4065_v10 = vor.u32 %v4470_v13, %v4064_v20  ;;  %2719 = vmatpush.bf16.msra.mxu2 %v4001_v18  ;;  %v4143_v20 = vor.u32 %v4440_v6, %v4142_v62  ;;  %v4448_v13 = vld [vmem:[#allocation10 + $0xb4] sm:$0xf0]  ;;  %v4445_v62 = vld [vmem:[#allocation10 + $0xa4] sm:$0xf] }
 0x3ff   :  { %v2354_v11 = vadd.f32 %v2353_v52, %v2322_v22  ;;  %v4061_v22 = vor.u32 %v4467_v24, %v4058_v3  ;;  %v3992_v52 = vld [vmem:[#allocation10 + $0xd0] sm:$0xf]  ;;  %2765 = vmatpush.bf16.msrb.mxu1 %v4005_v33  ;;  %v2417_v24 = vunpack.c.l.bf16 %v5834_v53  ;;  %v4439_v33 = vld [vmem:[#allocation10 + $0x74] sm:$0xf] }
 0x400   :  { %v3993_v48 = vor.u32 %v4452_v45, %v3992_v52  ;;  %2742 = vmatpush.bf16.msra.mxu3 %v4065_v10  ;;  %v4438_v10 = vld [vmem:[#allocation10 + $0x64] sm:$0xf0]  ;;  %v4144_v45 = vld [vmem:[#allocation10 + $0x78] sm:$0xf0] }
 0x401   :  { %v3972_v63 = vmul.f32 -1.442695, %v2354_v11  ;;  %v4056_v11 = vld [vmem:[#allocation10 + $0x150] sm:$0xf]  ;;  %2789 = vmatpush.bf16.msra.mxu0 %v4061_v22  ;;  %v4134_v22 = vld [vmem:[#allocation10 + $0x60] sm:$0xf] }
 0x402   :  { %v4057_v59 = vor.u32 %v4468_v51, %v4056_v11  ;;  %2720 = vmatpush.bf16.msra.mxu2 %v3993_v48  ;;  %v4447_v11 = vld [vmem:[#allocation10 + $0xb4] sm:$0xf]  ;;  %v4135_v48 = vor.u32 %v4438_v10, %v4134_v22 }
 0x403   :  { %v4546_v42 = vpop.eup %4545  ;;  %4547 = vpow2.f32 %v3972_v63  ;;  %v3994_v63 = vld [vmem:[#allocation10 + $0xd8] sm:$0xf0]  ;;  %v4179_v56 = vor.u32 %v4447_v11, %v4176_v39 }
 0x404   :  { %v5812_v55 = vadd.f32 1.0, %v4546_v42  ;;  %v3997_v9 = vor.u32 %v4451_v60, %v3994_v63  ;;  %2743 = vmatpush.bf16.msra.mxu3 %v4057_v59  ;;  %v4147_v63 = vor.u32 %v4439_v33, %v4144_v45 }
 0x405   :  { %2790 = vmatpush.bf16.msra.mxu0 %v4053_v49 }
 0x406   :  { %4549 = vrcp.f32 %v5812_v55  ;;  %v2408_v21 = vand.u32 2147483647, %v5812_v55  ;;  %v2410_v2 = vand.u32 2147483648, %v5812_v55  ;;  %vm2404_vm1 = vweird.f32 %v5812_v55  ;;  %2766 = vmatpush.bf16.msrb.mxu1 %v3997_v9 }
 0x408   :  { %vm5824_vm2 = vcmp.eq.f32.partialorder %v2408_v21, 8.507059e+37  ;;  %v2411_v50 = vor.u32 1.1754944e-38, %v2410_v2  ;;  %v3984_v21 = vld [vmem:[#allocation10 + $0xc0] sm:$0xf]  ;;  %2744 = vmatpush.bf16.msra.mxu3 %v4049_v30 }
 0x409   :  { %v4548_v46 = vpop.eup %4547  ;;  %v3985_v3 = vor.u32 %v4450_v23, %v3984_v21  ;;  %3014 = vmatpush.bf16.msrb.mxu0 %v4179_v56 }
 0x40a   :  { %v5817_v5 = vadd.f32 1.0, %v4548_v46  ;;  %2767 = vmatpush.bf16.msrb.mxu1 %v3989_v61  ;;  %v4128_v61 = vld [vmem:[#allocation10 + $0x58] sm:$0xf0] }
 0x40b   :  { %2721 = vmatpush.bf16.msra.mxu2 %v3985_v3 }
 0x40c   :  { %v5819_v38 = vpop.eup %4549  ;;  %4551 = vrcp.f32 %v5817_v5  ;;  %v2395_v47 = vand.u32 2147483648, %v5817_v5  ;;  %vm2389_vm0 = vweird.f32 %v5817_v5  ;;  %v2393_v37 = vand.u32 2147483647, %v5817_v5  ;;  %2941 = vmatpush.bf16.msrb.mxu3 %v4143_v20  ;;  %v4432_v20 = vld [vmem:[#allocation10 + $0x34] sm:$0xf0] }
 0x40d   :  { %v2400_v27 = vmul.f32 %v5819_v38, %v5812_v55  ;;  %vm2405_vm15 = vweird.f32 %v5819_v38  ;;  %v5845_v55 = vld [vmem:[#allocation5 + $0x8] sm:$0xff]  ;;  %v4111_v10 = vor.u32 %v4432_v20, %v4110_v36 }
 0x40e   :  { %vm5841_vm11 = vmor %vm2404_vm1, %vm2405_vm15  ;;  %v2396_v44 = vor.u32 1.1754944e-38, %v2395_v47  ;;  %v2420_v35 = vunpack.c.h.bf16 %v5845_v55  ;;  %2987 = vmatpush.bf16.msra.mxu1 %v4147_v63  ;;  %v4441_v36 = vld [vmem:[#allocation10 + $0x84] sm:$0xf] }
 0x40f   :  { %v2401_v58 = vsub.f32 1.0, %v2400_v27  ;;  %vm123_vm1 = vmor %vm122_vm10, %vm121_vm9  ;;  %v5868_v27 = vld [vmem:[#allocation5 + $0x20] sm:$0x77]  ;;  %vm6113_vm10 = vcmask 1042432  }
 0x410   :  { %124 = vst.msk [vmem:[#allocation5 + $0x10] sm:$0x22] %vm123_vm1, %v4690_v0  ;;  %v2444_v49 = vunpack.c.l.bf16 %v5868_v27  ;;  %2942 = vmatpush.bf16.msrb.mxu3 %v4135_v48 }
 0x411   :  { %v2402_v19 = vmul.f32 %v5819_v38, %v2401_v58  ;;  %v2441_v58 = vunpack.c.h.bf16 %v5860_v25 }
 0x412   :  { %v5830_v17 = vpop.eup %4551 }
 0x413   :  { %v2403_v40 = vadd.f32 %v5819_v38, %v2402_v19  ;;  %v2385_v42 = vmul.f32 %v5830_v17, %v5817_v5  ;;  %vm2390_vm15 = vweird.f32 %v5830_v17  ;;  %v2421_v5 = vunpack.c.l.bf16 %v5847_v8 }
 0x414   :  { %v4175_v19 = vor.u32 %v4448_v13, %v4174_v31  ;;  %v4158_v13 = vld [vmem:[#allocation10 + $0x90] sm:$0xf] }
 0x415   :  { %v2407_v28 = vsel %vm5841_vm11, %v5819_v38, %v2403_v40  ;;  %v2386_v46 = vsub.f32 1.0, %v2385_v42  ;;  %vm155_vm11 = vmor %vm154_vm7, %vm153_vm6  ;;  %v5862_v38 = vld [vmem:[#allocation5 + $0x18] sm:$0xff]  ;;  %v2445_v42 = vunpack.c.h.bf16 %v5868_v27 }
 0x416   :  { %v2412_v2 = vsel %vm5824_vm2, %v2411_v50, %v2407_v28  ;;  %156 = vst.msk [vmem:[#allocation5 + $0x10] sm:$0x44] %vm155_vm11, %v4690_v0  ;;  %vm5872_vm7 = vmor %vm2389_vm0, %vm2390_vm15  ;;  %v2422_v50 = vunpack.c.h.bf16 %v5847_v8  ;;  %v2419_v0 = vunpack.c.l.bf16 %v5845_v55  ;;  %v2443_v16 = vunpack.c.h.bf16 %v5862_v38  ;;  %v4126_v40 = vld [vmem:[#allocation10 + $0x50] sm:$0xf]  ;;  %v4446_v55 = vld [vmem:[#allocation10 + $0xa4] sm:$0xf0]  ;;  %2968 = vmatpush.bf16.msrb.mxu2 %v4175_v19 }
 0x417   :  { %v2387_v54 = vmul.f32 %v5830_v17, %v2386_v46  ;;  %v2424_v34 = vperm.slane %v2412_v2, 0  ;;  %v2442_v52 = vunpack.c.l.bf16 %v5862_v38  ;;  %v2447_v51 = vperm.slane %v2412_v2, 1  ;;  %v4437_v8 = vld [vmem:[#allocation10 + $0x64] sm:$0xf]  ;;  %v4136_v28 = vld [vmem:[#allocation10 + $0x68] sm:$0xf0]  ;;  %vm6114_vm6 = vmmov %vm6113_vm10 }
 0x418   :  { %vm2394_vm0 = vcmp.eq.f32.partialorder %v2393_v37, 8.507059e+37  ;;  %v4167_v23 = vor.u32 %v4446_v55, %v4166_v57  ;;  %v4139_v43 = vor.u32 %v4437_v8, %v4136_v28  ;;  %v4431_v8 = vld [vmem:[#allocation10 + $0x34] sm:$0xf]  ;;  %vm6115_vm15 = vmmov %vm6114_vm6 }
 0x419   :  { %v2388_v18 = vadd.f32 %v5830_v17, %v2387_v54  ;;  %v2426_v46 = vmul.f32 %v2424_v34, %v2418_v14  ;;  %v2428_v9 = vmul.f32 %v2424_v34, %v2420_v35  ;;  %v2430_v1 = vmul.f32 %v2424_v34, %v2422_v50  ;;  %v4434_v35 = vld [vmem:[#allocation10 + $0x44] sm:$0xf0]  ;;  %vm6116_vm1 = vmmov %vm6114_vm6 }
 0x41a   :  { %v2449_v38 = vmul.f32 %v2447_v51, %v2441_v58  ;;  %v2451_v4 = vmul.f32 %v2447_v51, %v2443_v16  ;;  %2969 = vmatpush.bf16.msrb.mxu2 %v4167_v23  ;;  %v2453_v14 = vmul.f32 %v2447_v51, %v2445_v42  ;;  %2988 = vmatpush.bf16.msra.mxu1 %v4139_v43  ;;  %v4168_v58 = vld [vmem:[#allocation10 + $0xa8] sm:$0xf0]  ;;  %v4444_v16 = vld [vmem:[#allocation10 + $0x94] sm:$0xf0]  ;;  %v4102_v51 = vld [vmem:[#allocation10 + $0x20] sm:$0xf] }
 0x41b   :  { %v2392_v60 = vsel %vm5872_vm7, %v5830_v17, %v2388_v18  ;;  %v4436_v17 = vld [vmem:[#allocation10 + $0x54] sm:$0xf0]  ;;  %v4119_v50 = vor.u32 %v4434_v35, %v4118_v7  ;;  %v4171_v41 = vor.u32 %v4445_v62, %v4168_v58  ;;  %v4159_v45 = vor.u32 %v4444_v16, %v4158_v13  ;;  %v4430_v42 = vld [vmem:[#allocation10 + $0x24] sm:$0xf0]  ;;  %v4160_v23 = vld [vmem:[#allocation10 + $0x98] sm:$0xf0] }
 0x41c   :  { %v2397_v47 = vsel %vm2394_vm0, %v2396_v44, %v2392_v60  ;;  %v4127_v27 = vor.u32 %v4436_v17, %v4126_v40  ;;  %v4103_v56 = vor.u32 %v4430_v42, %v4102_v51  ;;  %v4443_v17 = vld [vmem:[#allocation10 + $0x94] sm:$0xf]  ;;  %v4096_v62 = vld [vmem:[#allocation10 + $0x18] sm:$0xf0]  ;;  %v4426_v58 = vld [vmem:[#allocation10 + $0x4] sm:$0xf0] }
 0x41d   :  { %v2423_v59 = vperm.slane %v2397_v47, 0  ;;  %v2446_v21 = vperm.slane %v2397_v47, 1  ;;  %3015 = vmatpush.bf16.msrb.mxu0 %v4171_v41  ;;  %v4425_v16 = vld [vmem:[#allocation10 + $0x4] sm:$0xf] }
 0x41e   :  { %2943 = vmatpush.bf16.msrb.mxu3 %v4127_v27  ;;  %2970 = vmatpush.bf16.msrb.mxu2 %v4159_v45 }
 0x41f   :  { %v2425_v2 = vmul.f32 %v2423_v59, %v2417_v24  ;;  %v2427_v26 = vmul.f32 %v2423_v59, %v2419_v0  ;;  %v2429_v12 = vmul.f32 %v2423_v59, %v2421_v5  ;;  %v2448_v25 = vmul.f32 %v2446_v21, %v2440_v15  ;;  %v4435_v0 = vld [vmem:[#allocation10 + $0x54] sm:$0xf]  ;;  %v4433_v15 = vld [vmem:[#allocation10 + $0x44] sm:$0xf]  ;;  %v4112_v59 = vld [vmem:[#allocation10 + $0x38] sm:$0xf0] }
 0x420   :  { %v2450_v54 = vmul.f32 %v2446_v21, %v2442_v52  ;;  %v2452_v3 = vmul.f32 %v2446_v21, %v2444_v49  ;;  %v4131_v31 = vor.u32 %v4435_v0, %v4128_v61  ;;  %v4120_v52 = vld [vmem:[#allocation10 + $0x48] sm:$0xf0]  ;;  %v4427_v61 = vld [vmem:[#allocation10 + $0x14] sm:$0xf] }
 0x421   :  { %v2431_v37 = vpack.c.bf16 %v2426_v46, %v2425_v2  ;;  %v2432_v44 = vpack.c.bf16 %v2428_v9, %v2427_v26  ;;  %v2433_v30 = vpack.c.bf16 %v2430_v1, %v2429_v12  ;;  %v2454_v34 = vpack.c.bf16 %v2449_v38, %v2448_v25  ;;  %v4104_v0 = vld [vmem:[#allocation10 + $0x28] sm:$0xf0] }
 0x422   :  { %v2455_v53 = vpack.c.bf16 %v2451_v4, %v2450_v54  ;;  %v2456_v24 = vpack.c.bf16 %v2453_v14, %v2452_v3  ;;  %2944 = vmatpush.bf16.msrb.mxu3 %v4119_v50  ;;  %2989 = vmatpush.bf16.msra.mxu1 %v4131_v31  ;;  %v4123_v11 = vor.u32 %v4433_v15, %v4120_v52  ;;  %v4086_v31 = vld [vmem:[#allocation10] sm:$0xf]  ;;  %v4088_v15 = vld [vmem:[#allocation10 + $0x8] sm:$0xf0] }
 0x423   :  { %2434 = vst.msk [vmem:[#allocation5] sm:$0xee] %vm5649_vm8, %v2431_v37  ;;  %v4115_v26 = vor.u32 %v4431_v8, %v4112_v59  ;;  %v4163_v54 = vor.u32 %v4443_v17, %v4160_v23  ;;  %v4099_v41 = vor.u32 %v4427_v61, %v4096_v62  ;;  %v4496_v59 = vld [vmem:[#allocation10 + $0x234] sm:$0xf0]  ;;  %v4487_v23 = vld [vmem:[#allocation10 + $0x1f4] sm:$0xf] }
 0x424   :  { %2435 = vst.msk [vmem:[#allocation5 + $0x8] sm:$0xff] %vm5738_vm12, %v2432_v44  ;;  %v4094_v44 = vld [vmem:[#allocation10 + $0x10] sm:$0xf]  ;;  %v4230_v61 = vld [vmem:[#allocation10 + $0x1d8] sm:$0xf0] }
 0x425   :  { %2436 = vst.msk [vmem:[#allocation5 + $0x10] sm:$0x11] %vm5543_vm3, %v2433_v30  ;;  %3016 = vmatpush.bf16.msrb.mxu0 %v4163_v54  ;;  %v4428_v30 = vld [vmem:[#allocation10 + $0x14] sm:$0xf0]  ;;  %v4485_v54 = vld [vmem:[#allocation10 + $0x1e4] sm:$0xf] }
 0x426   :  { %2457 = vst.msk [vmem:[#allocation5 + $0x10] sm:$0x88] %vm5550_vm4, %v2454_v34  ;;  %2945 = vmatpush.bf16.msrb.mxu3 %v4111_v10  ;;  %2990 = vmatpush.bf16.msra.mxu1 %v4123_v11  ;;  %v4095_v14 = vor.u32 %v4428_v30, %v4094_v44  ;;  %v4150_v34 = vld [vmem:[#allocation10 + $0x80] sm:$0xf]  ;;  %v4493_v62 = vld [vmem:[#allocation10 + $0x224] sm:$0xf] }
 0x427   :  { %2458 = vst.msk [vmem:[#allocation5 + $0x18] sm:$0xff] %vm5738_vm12, %v2455_v53  ;;  %v4442_v53 = vld [vmem:[#allocation10 + $0x84] sm:$0xf0] }
 0x428   :  { %2459 = vst.msk [vmem:[#allocation5 + $0x20] sm:$0x77] %vm5799_vm5, %v2456_v24  ;;  %v4429_v24 = vld [vmem:[#allocation10 + $0x24] sm:$0xf]  ;;  %v4151_v50 = vor.u32 %v4442_v53, %v4150_v34  ;;  %v4220_v53 = vld [vmem:[#allocation10 + $0x1c0] sm:$0xf] }
 0x42a   :  { %v2460_v6 = vld [vmem:[#allocation5] sm:$0xff]  ;;  %2946 = vmatpush.bf16.msrb.mxu3 %v4103_v56  ;;  %2991 = vmatpush.bf16.msra.mxu1 %v4115_v26  ;;  %v4244_v56 = vld [vmem:[#allocation10 + $0x1f0] sm:$0xf] }
 0x42b   :  { %v5907_v18 = vld [vmem:[#allocation5 + $0x8] sm:$0xff]  ;;  %v2520_v29 = vunpack.c.l.b16 %v2460_v6  ;;  %v2521_v5 = vunpack.c.h.b16 %v2460_v6  ;;  %v4107_v6 = vor.u32 %v4429_v24, %v4104_v0  ;;  %2971 = vmatpush.bf16.msrb.mxu2 %v4151_v50  ;;  %v4484_v26 = vld [vmem:[#allocation10 + $0x1d4] sm:$0xf0]  ;;  %v4482_v24 = vld [vmem:[#allocation10 + $0x1c4] sm:$0xf0] }
 0x42c   :  { %v2522_v32 = vunpack.c.l.b16 %v5907_v18  ;;  %v2523_v22 = vunpack.c.h.b16 %v5907_v18  ;;  %v4483_v50 = vld [vmem:[#allocation10 + $0x1d4] sm:$0xf]  ;;  %v4221_v0 = vor.u32 %v4482_v24, %v4220_v53 }
 0x42d   :  { %v3976_v19 = vld [vmem:[#allocation5 + $0x10] sm:$0xf]  ;;  %v4423_v33 = vld [vmem:[#allocation5 + $0x14] sm:$0xf] }
 0x42e   :  { %v4424_v60 = vld [vmem:[#allocation5 + $0x14] sm:$0xf0]  ;;  %v5913_v63 = vpack.c.b16 %v2522_v32, %v2520_v29  ;;  %v3978_v39 = vld [vmem:[#allocation5 + $0x18] sm:$0xf0]  ;;  %v5917_v40 = vpack.c.b16 %v2523_v22, %v2521_v5  ;;  %2947 = vmatpush.bf16.msrb.mxu3 %v4095_v14  ;;  %v4087_v29 = vor.u32 %v4426_v58, %v4086_v31  ;;  %v4152_v5 = vld [vmem:[#allocation10 + $0x88] sm:$0xf0]  ;;  %2992 = vmatpush.bf16.msra.mxu1 %v4107_v6 }
 0x42f   :  { %v5919_v47 = vor.u32 %v4424_v60, %v3976_v19  ;;  %v5921_v48 = vor.u32 %v4423_v33, %v3978_v39  ;;  %v2489_v2 = vld [vmem:[#allocation5 + $0x20] sm:$0xff]  ;;  %v4155_v20 = vor.u32 %v4441_v36, %v4152_v5  ;;  %v4091_v33 = vor.u32 %v4425_v16, %v4088_v15  ;;  %v4270_v6 = vld [vmem:[#allocation10 + $0x228] sm:$0xf0]  ;;  %v4212_v36 = vld [vmem:[#allocation10 + $0x1b0] sm:$0xf] }
 0x430   :  { %v2539_v57 = vshll.u32 %v5913_v63, 16  ;;  %v2551_v55 = vshll.u32 %v5917_v40, 16  ;;  %v2537_v28 = vshrl.u32 %v5913_v63, 16  ;;  %v2549_v9 = vshrl.u32 %v5917_v40, 16  ;;  %v4260_v5 = vld [vmem:[#allocation10 + $0x210] sm:$0xf] }
 0x431   :  { %v2544_v49 = vshll.u32 %v5919_v47, 16  ;;  %v2556_v21 = vshll.u32 %v5921_v48, 16  ;;  %v2528_v4 = vunpack.c.l.b16 %v2489_v2  ;;  %v2529_v37 = vunpack.c.h.b16 %v2489_v2  ;;  %3017 = vmatpush.bf16.msrb.mxu0 %v4155_v20  ;;  %v4228_v2 = vld [vmem:[#allocation10 + $0x1d0] sm:$0xf]  ;;  %v4492_v20 = vld [vmem:[#allocation10 + $0x214] sm:$0xf0] }
 0x432   :  { %v2541_v46 = vrot.slane %v2539_v57, 1  ;;  %v2553_v1 = vrot.slane %v2551_v55, 1  ;;  %2948 = vmatpush.bf16.msrb.mxu3 %v4087_v29  ;;  %v2560_v52 = vshrl.u32 %v5919_v47, 16  ;;  %v2568_v19 = vshrl.u32 %v5921_v48, 16  ;;  %2993 = vmatpush.bf16.msra.mxu1 %v4099_v41  ;;  %v4488_v57 = vld [vmem:[#allocation10 + $0x1f4] sm:$0xf0] }
 0x433   :  { %v2546_v43 = vrot.slane %v2544_v49, 1  ;;  %v2558_v38 = vrot.slane %v2556_v21, 1  ;;  %v5933_v7 = vpack.c.b16 %v2528_v4, %v2528_v4  ;;  %v5935_v35 = vpack.c.b16 %v2529_v37, %v2529_v37  ;;  %v4276_v55 = vld [vmem:[#allocation10 + $0x230] sm:$0xf]  ;;  %v4236_v49 = vld [vmem:[#allocation10 + $0x1e0] sm:$0xf] }
 0x434   :  { %v2542_v12 = vor.u32 %v2541_v46, %v2537_v28  ;;  %v2554_v25 = vor.u32 %v2553_v1, %v2549_v9  ;;  %v4245_v8 = vor.u32 %v4488_v57, %v4244_v56  ;;  %v4486_v21 = vld [vmem:[#allocation10 + $0x1e4] sm:$0xf0]  ;;  %v4277_v17 = vor.u32 %v4496_v59, %v4276_v55  ;;  %v4246_v28 = vld [vmem:[#allocation10 + $0x1f8] sm:$0xf0]  ;;  %v4495_v46 = vld [vmem:[#allocation10 + $0x234] sm:$0xf] }
 0x435   :  { %v2564_v13 = vshll.u32 %v5933_v7, 16  ;;  %v2572_v10 = vshll.u32 %v5935_v35, 16  ;;  %v2562_v45 = vor.u32 %v2560_v52, %v2546_v43  ;;  %v2570_v51 = vor.u32 %v2568_v19, %v2558_v38  ;;  %v4480_v29 = vld [vmem:[#allocation10 + $0x1b4] sm:$0xf0]  ;;  %v4204_v52 = vld [vmem:[#allocation10 + $0x1a0] sm:$0xf] }
 0x436   :  { %v2547_v3 = vsel %vm219_vm14, %v2542_v12, %v2546_v43  ;;  %v2559_v27 = vsel %vm219_vm14, %v2554_v25, %v2558_v38  ;;  %2994 = vmatpush.bf16.msra.mxu1 %v4091_v33  ;;  %v4237_v9 = vor.u32 %v4486_v21, %v4236_v49  ;;  %v4249_v1 = vor.u32 %v4487_v23, %v4246_v28  ;;  %v4278_v43 = vld [vmem:[#allocation10 + $0x238] sm:$0xf0]  ;;  %v4268_v25 = vld [vmem:[#allocation10 + $0x220] sm:$0xf]  ;;  %v4494_v38 = vld [vmem:[#allocation10 + $0x224] sm:$0xf0] }
 0x437   :  { %2722 = vmatmul.bf16.vlgmr.msra.gmra.mxu2 %v2547_v3  ;;  %4078 = vmatmul.msk.bf16.vlgmr.msra.gmra.mxu3 %vm283_vm13, %v2559_v27  ;;  %v2566_v11 = vrot.slane %v2564_v13, 1  ;;  %v2574_v60 = vrot.slane %v2572_v10, 1  ;;  %v4281_v12 = vor.u32 %v4495_v46, %v4278_v43  ;;  %v4229_v37 = vor.u32 %v4484_v26, %v4228_v2  ;;  %v4481_v13 = vld [vmem:[#allocation10 + $0x1c4] sm:$0xf]  ;;  %v4222_v10 = vld [vmem:[#allocation10 + $0x1c8] sm:$0xf0] }
 0x438   :  { %2768 = vmatmul.bf16.vlgmr.msrb.gmra.mxu1 %v2547_v3  ;;  %4081 = vmatmul.msk.bf16.vlgmr.msra.gmra.mxu0 %vm283_vm13, %v2559_v27  ;;  %v4269_v3 = vor.u32 %v4494_v38, %v4268_v25  ;;  %v4238_v27 = vld [vmem:[#allocation10 + $0x1e8] sm:$0xf0]  ;;  %v2576_v44 = vshrl.u32 %v5933_v7, 16  ;;  %v2579_v30 = vshrl.u32 %v5935_v35, 16  ;;  %v4233_v31 = vor.u32 %v4483_v50, %v4230_v61  ;;  %v4478_v19 = vld [vmem:[#allocation10 + $0x1a4] sm:$0xf0] }
 0x439   :  { %v2567_v39 = vsel %vm219_vm14, %v2562_v45, %v2566_v11  ;;  %v2575_v42 = vsel %vm219_vm14, %v2570_v51, %v2574_v60  ;;  %3206 = vmatpush.bf16.msra.mxu3 %v4245_v8  ;;  %3233 = vmatpush.bf16.msra.mxu2 %v4277_v17  ;;  %v4241_v4 = vor.u32 %v4485_v54, %v4238_v27  ;;  %v4479_v33 = vld [vmem:[#allocation10 + $0x1b4] sm:$0xf]  ;;  %v4214_v45 = vld [vmem:[#allocation10 + $0x1b8] sm:$0xf0]  ;;  %v4196_v56 = vld [vmem:[#allocation10 + $0x190] sm:$0xf] }
 0x43a   :  { %3252 = vmatpush.bf16.msrb.mxu1 %v4249_v1  ;;  %3279 = vmatpush.bf16.msra.mxu0 %v4281_v12  ;;  %v2578_v14 = vor.u32 %v2576_v44, %v2566_v11  ;;  %v2581_v34 = vor.u32 %v2579_v30, %v2574_v60  ;;  %v4273_v58 = vor.u32 %v4493_v62, %v4270_v6  ;;  %v4491_v11 = vld [vmem:[#allocation10 + $0x214] sm:$0xf]  ;;  %v4262_v51 = vld [vmem:[#allocation10 + $0x218] sm:$0xf0]  ;;  %v4476_v57 = vld [vmem:[#allocation10 + $0x194] sm:$0xf0] }
 0x43b   :  { %v4213_v41 = vor.u32 %v4480_v29, %v4212_v36  ;;  %v4261_v16 = vor.u32 %v4492_v20, %v4260_v5  ;;  %v4225_v15 = vor.u32 %v4481_v13, %v4222_v10  ;;  %v4265_v60 = vor.u32 %v4491_v11, %v4262_v51  ;;  %v4252_v55 = vld [vmem:[#allocation10 + $0x200] sm:$0xf]  ;;  %v4490_v59 = vld [vmem:[#allocation10 + $0x204] sm:$0xf0]  ;;  %v4477_v49 = vld [vmem:[#allocation10 + $0x1a4] sm:$0xf] }
 0x43c   :  { %v4197_v8 = vor.u32 %v4476_v57, %v4196_v56  ;;  %v4206_v21 = vld [vmem:[#allocation10 + $0x1a8] sm:$0xf0]  ;;  %v4253_v17 = vor.u32 %v4490_v59, %v4252_v55  ;;  %v4475_v28 = vld [vmem:[#allocation10 + $0x194] sm:$0xf]  ;;  %v4198_v46 = vld [vmem:[#allocation10 + $0x198] sm:$0xf0] }
 0x43d   :  { %3207 = vmatpush.bf16.msra.mxu3 %v4237_v9  ;;  %3234 = vmatpush.bf16.msra.mxu2 %v4269_v3  ;;  %v4209_v23 = vor.u32 %v4477_v49, %v4206_v21  ;;  %v4188_v9 = vld [vmem:[#allocation10 + $0x180] sm:$0xf]  ;;  %v4474_v1 = vld [vmem:[#allocation10 + $0x184] sm:$0xf0]  ;;  %v4489_v43 = vld [vmem:[#allocation10 + $0x204] sm:$0xf] }
 0x43e   :  { %3253 = vmatpush.bf16.msrb.mxu1 %v4241_v4  ;;  %3280 = vmatpush.bf16.msra.mxu0 %v4273_v58  ;;  %v4254_v2 = vld [vmem:[#allocation10 + $0x208] sm:$0xf0]  ;;  %v4473_v12 = vld [vmem:[#allocation10 + $0x184] sm:$0xf]  ;;  %v2464_v54 = vld [vmem:[#allocation5 + $0x20] sm:$0x77] }
 0x43f   :  { %v4257_v26 = vor.u32 %v4489_v43, %v4254_v2  ;;  %v4190_v25 = vld [vmem:[#allocation10 + $0x188] sm:$0xf0]  ;;  %v2807_v3 = vunpack.c.l.b16 %v2464_v54  ;;  %v2808_v27 = vunpack.c.h.b16 %v2464_v54  ;;  %v3033_v44 = vld [vmem:[#allocation5] sm:$0xee]  ;;  %v3068_v61 = vrot.slane %v5921_v48, 1 }
 0x440   :  { %v4193_v38 = vor.u32 %v4473_v12, %v4190_v25  ;;  %v3060_v30 = vunpack.c.l.b16 %v3033_v44  ;;  %vm6105_vm14 = vcmask 1046528   ;;  %v3072_v18 = vrot.slane %v5935_v35, 1 }
 0x441   :  { %3208 = vmatpush.bf16.msra.mxu3 %v4229_v37  ;;  %3235 = vmatpush.bf16.msra.mxu2 %v4261_v16  ;;  %v2809_v4 = vpack.c.b16 %v2807_v3, %v2807_v3  ;;  %v2810_v37 = vpack.c.b16 %v2808_v27, %v2808_v27  ;;  %vm6106_vm3 = vmmov %vm6105_vm14 }
 0x442   :  { %3254 = vmatpush.bf16.msrb.mxu1 %v4233_v31  ;;  %3281 = vmatpush.bf16.msra.mxu0 %v4265_v60  ;;  %vm6107_vm4 = vmmov %vm6106_vm3 }
 0x443   :  { %vm6108_vm8 = vmmov %vm6106_vm3 }
 0x444   :  { %vm6109_vm12 = vmmov %vm6106_vm3 }
 0x445   :  { %3209 = vmatpush.bf16.msra.mxu3 %v4221_v0  ;;  %3236 = vmatpush.bf16.msra.mxu2 %v4253_v17  ;;  %v3065_v0 = vrot.slane %v5919_v47, 1  ;;  %vm6110_vm5 = vmmov %vm6106_vm3 }
 0x446   :  { %3255 = vmatpush.bf16.msrb.mxu1 %v4225_v15  ;;  %3282 = vmatpush.bf16.msra.mxu0 %v4257_v26  ;;  %vm6111_vm2 = vmmov %vm6106_vm3 }
 0x447   :  { %2727 = vmatmul.bf16.gmra.mxu2 %v2567_v39  ;;  %4079 = vmatmul.msk.bf16.gmra.mxu3 %vm283_vm13, %v2575_v42  ;;  %vm6112_vm9 = vmmov %vm6111_vm2 }
 0x448   :  { %2773 = vmatmul.bf16.gmra.mxu1 %v2567_v39  ;;  %4082 = vmatmul.msk.bf16.gmra.mxu0 %vm283_vm13, %v2575_v42  ;;  %v4205_v39 = vor.u32 %v4478_v19, %v4204_v52  ;;  %v4217_v42 = vor.u32 %v4479_v33, %v4214_v45 }
 0x449   :  { %3210 = vmatpush.bf16.msra.mxu3 %v4213_v41 }
 0x44a   :  { %3256 = vmatpush.bf16.msrb.mxu1 %v4217_v42 }
 0x44d   :  { %3211 = vmatpush.bf16.msra.mxu3 %v4205_v39 }
 0x44e   :  { %3257 = vmatpush.bf16.msrb.mxu1 %v4209_v23 }
 0x451   :  { %3212 = vmatpush.bf16.msra.mxu3 %v4197_v8 }
 0x457   :  { %2732 = vmatmul.bf16.gmra.mxu2 %v2578_v14  ;;  %4080 = vmatmul.msk.bf16.gmra.mxu3 %vm283_vm13, %v2581_v34 }
 0x458   :  { %2778 = vmatmul.bf16.gmra.mxu1 %v2578_v14  ;;  %4083 = vmatmul.msk.bf16.gmra.mxu0 %vm283_vm13, %v2581_v34  ;;  %v3061_v14 = vunpack.c.h.b16 %v3033_v44  ;;  %v3062_v34 = vpack.c.b16 %v2522_v32, %v3060_v30  ;;  %v3070_v32 = vrot.slane %v5933_v7, 1 }
 0x45a   :  { %v3063_v53 = vpack.c.b16 %v2523_v22, %v3061_v14  ;;  %v3064_v24 = vrot.slane %v3062_v34, 1  ;;  %v3071_v22 = vsel %vm6107_vm4, %v3065_v0, %v3070_v32 }
 0x45c   :  { %v3067_v50 = vrot.slane %v3063_v53, 1  ;;  %v3066_v62 = vsel %vm6105_vm14, %v3064_v24, %v3065_v0 }
 0x45e   :  { %v3069_v6 = vsel %vm6106_vm3, %v3067_v50, %v3068_v61 }
 0x467   :  { %2949 = vmatmul.bf16.vlgmr.msrb.gmra.mxu3 %v5913_v63  ;;  %4180 = vmatmul.msk.bf16.vlgmr.msrb.gmra.mxu2 %vm283_vm13, %v5917_v40 }
 0x468   :  { %2995 = vmatmul.bf16.vlgmr.msra.gmra.mxu1 %v5913_v63  ;;  %4183 = vmatmul.msk.bf16.vlgmr.msrb.gmra.mxu0 %vm283_vm13, %v5917_v40  ;;  %v4201_v63 = vor.u32 %v4475_v28, %v4198_v46  ;;  %v4189_v40 = vor.u32 %v4474_v1, %v4188_v9 }
 0x46a   :  { %3213 = vmatpush.bf16.msra.mxu3 %v4189_v40  ;;  %3258 = vmatpush.bf16.msrb.mxu1 %v4201_v63 }
 0x46e   :  { %3259 = vmatpush.bf16.msrb.mxu1 %v4193_v38 }
 0x477   :  { %2954 = vmatmul.bf16.gmra.mxu3 %v5919_v47  ;;  %4181 = vmatmul.msk.bf16.gmra.mxu2 %vm283_vm13, %v5921_v48 }
 0x478   :  { %3000 = vmatmul.bf16.gmra.mxu1 %v5919_v47  ;;  %4184 = vmatmul.msk.bf16.gmra.mxu0 %vm283_vm13, %v5921_v48  ;;  %v3073_v47 = vsel %vm6108_vm8, %v3068_v61, %v3072_v18 }
 0x487   :  { %2959 = vmatmul.bf16.gmra.mxu3 %v2809_v4  ;;  %4182 = vmatmul.msk.bf16.gmra.mxu2 %vm283_vm13, %v2810_v37 }
 0x488   :  { %3005 = vmatmul.bf16.gmra.mxu1 %v2809_v4  ;;  %4185 = vmatmul.msk.bf16.gmra.mxu0 %vm283_vm13, %v2810_v37 }
 0x497   :  { %3214 = vmatmul.bf16.vlgmr.msra.gmra.mxu3 %v3066_v62  ;;  %4282 = vmatmul.msk.bf16.vlgmr.msra.gmra.mxu2 %vm283_vm13, %v3069_v6 }
 0x498   :  { %3260 = vmatmul.bf16.vlgmr.msrb.gmra.mxu1 %v3066_v62  ;;  %4285 = vmatmul.msk.bf16.vlgmr.msra.gmra.mxu0 %vm283_vm13, %v3069_v6 }
 0x4a7   :  { %3219 = vmatmul.bf16.gmra.mxu3 %v3071_v22  ;;  %4283 = vmatmul.msk.bf16.gmra.mxu2 %vm283_vm13, %v3073_v47 }
 0x4a8   :  { %3265 = vmatmul.bf16.gmra.mxu1 %v3071_v22  ;;  %4286 = vmatmul.msk.bf16.gmra.mxu0 %vm283_vm13, %v3073_v47  ;;  %v3309_v22 = vld [vmem:[#allocation11 + $0x12] ss:$8 sm:$0x3] }
 0x4b5   :  { %v2769_v48 = vpop.f32.mrf.mxu1  ;;  %v2792_v31 = vpop.f32.mrf.mxu0 }
 0x4b6   :  { %v2793_v58 = vadd.f32 %v2792_v31, %v2769_v48 }
 0x4b7   :  { %3224 = vmatmul.bf16.gmra.mxu3 %v3070_v32  ;;  %4284 = vmatmul.msk.bf16.gmra.mxu2 %vm283_vm13, %v3072_v18 }
 0x4b8   :  { %3270 = vmatmul.bf16.gmra.mxu1 %v3070_v32  ;;  %4287 = vmatmul.msk.bf16.gmra.mxu0 %vm283_vm13, %v3072_v18 }
 0x4ba   :  { %v2723_v7 = vpop.f32.mrf.mxu2  ;;  %v2746_v35 = vpop.f32.mrf.mxu3 }
 0x4bb   :  { %v2747_v36 = vadd.f32 %v2746_v35, %v2723_v7 }
 0x4bd   :  { %v2771_v29 = vpop.f32.mrf.mxu1  ;;  %v2794_v5 = vpop.f32.mrf.mxu0 }
 0x4be   :  { %v2795_v41 = vadd.f32 %v2794_v5, %v2771_v29  ;;  %v6009_v5 = vperm.slane %v3309_v22, 1 }
 0x4c2   :  { %v2725_v20 = vpop.f32.mrf.mxu2  ;;  %v2748_v13 = vpop.f32.mrf.mxu3 }
 0x4c3   :  { %v5981_v10 = vadd.f32 %v2748_v13, %v2725_v20 }
 0x4c5   :  { %v2774_v16 = vpop.f32.mrf.mxu1  ;;  %v2797_v15 = vpop.f32.mrf.mxu0 }
 0x4c6   :  { %v5983_v52 = vadd.f32 %v2797_v15, %v2774_v16 }
 0x4ca   :  { %v2728_v19 = vpop.f32.mrf.mxu2  ;;  %v2751_v33 = vpop.f32.mrf.mxu3 }
 0x4cb   :  { %v5985_v45 = vadd.f32 %v2751_v33, %v2728_v19 }
 0x4cd   :  { %v2776_v11 = vpop.f32.mrf.mxu1  ;;  %v2799_v51 = vpop.f32.mrf.mxu0 }
 0x4ce   :  { %v5987_v60 = vadd.f32 %v2799_v51, %v2776_v11 }
 0x4d2   :  { %v2730_v39 = vpop.f32.mrf.mxu2  ;;  %v2753_v42 = vpop.f32.mrf.mxu3 }
 0x4d3   :  { %v5989_v56 = vadd.f32 %v2753_v42, %v2730_v39  ;;  %v6013_v42 = vperm.slane %v3309_v22, 0 }
 0x4d5   :  { %v2779_v57 = vpop.f32.mrf.mxu1  ;;  %v2802_v55 = vpop.f32.mrf.mxu0 }
 0x4d6   :  { %v5991_v8 = vadd.f32 %v2802_v55, %v2779_v57 }
 0x4da   :  { %v2733_v59 = vpop.f32.mrf.mxu2  ;;  %v2756_v49 = vpop.f32.mrf.mxu3 }
 0x4db   :  { %v5993_v21 = vadd.f32 %v2756_v49, %v2733_v59 }
 0x4dd   :  { %v2781_v17 = vpop.f32.mrf.mxu1  ;;  %v2804_v23 = vpop.f32.mrf.mxu0 }
 0x4e2   :  { %v2735_v28 = vpop.f32.mrf.mxu2  ;;  %v2758_v46 = vpop.f32.mrf.mxu3 }
 0x4e5   :  { %v2996_v9 = vpop.f32.mrf.mxu1  ;;  %v3019_v1 = vpop.f32.mrf.mxu0 }
 0x4e6   :  { %v2997_v32 = vadd.f32 %v2996_v9, %v2793_v58 }
 0x4e8   :  { %v3020_v47 = vadd.f32 %v3019_v1, %v2997_v32 }
 0x4ea   :  { %v2950_v43 = vpop.f32.mrf.mxu3  ;;  %v2973_v2 = vpop.f32.mrf.mxu2 }
 0x4eb   :  { %v2951_v35 = vadd.f32 %v2950_v43, %v2747_v36 }
 0x4ed   :  { %v2998_v63 = vpop.f32.mrf.mxu1  ;;  %v3021_v40 = vpop.f32.mrf.mxu0  ;;  %v2974_v33 = vadd.f32 %v2973_v2, %v2951_v35 }
 0x4ee   :  { %v2999_v48 = vadd.f32 %v2998_v63, %v2795_v41 }
 0x4f0   :  { %v3022_v15 = vadd.f32 %v3021_v40, %v2999_v48 }
 0x4f2   :  { %v2952_v26 = vpop.f32.mrf.mxu3  ;;  %v2975_v12 = vpop.f32.mrf.mxu2 }
 0x4f3   :  { %v2953_v11 = vadd.f32 %v2952_v26, %v5981_v10 }
 0x4f5   :  { %v3001_v25 = vpop.f32.mrf.mxu1  ;;  %v3024_v38 = vpop.f32.mrf.mxu0  ;;  %v2976_v59 = vadd.f32 %v2975_v12, %v2953_v11 }
 0x4f6   :  { %v3002_v41 = vadd.f32 %v3001_v25, %v5983_v52 }
 0x4f8   :  { %v3025_v1 = vadd.f32 %v3024_v38, %v3002_v41 }
 0x4fa   :  { %v2955_v54 = vpop.f32.mrf.mxu3  ;;  %v2978_v3 = vpop.f32.mrf.mxu2 }
 0x4fb   :  { %v2956_v63 = vadd.f32 %v2955_v54, %v5985_v45 }
 0x4fd   :  { %v3003_v27 = vpop.f32.mrf.mxu1  ;;  %v5995_v4 = vpop.f32.mrf.mxu0 }
 0x4fe   :  { %v3004_v25 = vadd.f32 %v3003_v27, %v5987_v60 }
 0x502   :  { %v5997_v37 = vpop.f32.mrf.mxu3  ;;  %v5999_v44 = vpop.f32.mrf.mxu2 }
 0x503   :  { %v2958_v22 = vadd.f32 %v5997_v37, %v5989_v56 }
 0x505   :  { %v6001_v30 = vpop.f32.mrf.mxu1  ;;  %v6003_v14 = vpop.f32.mrf.mxu0 }
 0x50a   :  { %v6005_v34 = vpop.f32.mrf.mxu3  ;;  %v6007_v53 = vpop.f32.mrf.mxu2 }
 0x50d   :  { %v3008_v24 = vpop.f32.mrf.mxu1  ;;  %v3031_v50 = vpop.f32.mrf.mxu0 }
 0x512   :  { %v2962_v0 = vpop.f32.mrf.mxu3  ;;  %v2985_v61 = vpop.f32.mrf.mxu2 }
 0x513   :  { %v2979_v0 = vadd.f32 %v2978_v3, %v2956_v63 }
 0x515   :  { %v3261_v62 = vpop.f32.mrf.mxu1  ;;  %v3284_v6 = vpop.f32.mrf.mxu0 }
 0x516   :  { %v3285_v18 = vadd.f32 %v3284_v6, %v3261_v62 }
 0x518   :  { %v3299_v29 = vadd.f32 %v3285_v18, %v3020_v47  ;;  %v3027_v18 = vadd.f32 %v5995_v4, %v3004_v25 }
 0x51a   :  { %v3215_v31 = vpop.f32.mrf.mxu3  ;;  %v3238_v7 = vpop.f32.mrf.mxu2  ;;  %v3316_v58 = vadd.f32 %v6009_v5, %v3299_v29  ;;  %v2981_v29 = vadd.f32 %v5999_v44, %v2958_v22  ;;  %v2961_v44 = vadd.f32 %v6005_v34, %v5993_v21 }
 0x51b   :  { %v3239_v20 = vadd.f32 %v3238_v7, %v3215_v31  ;;  %v3007_v31 = vadd.f32 %v6001_v30, %v5991_v8 }
 0x51c   :  { %v3330_v17 = vrot.slane %v3316_v58, 1 }
 0x51d   :  { %v3263_v13 = vpop.f32.mrf.mxu1  ;;  %v3286_v16 = vpop.f32.mrf.mxu0  ;;  %v3298_v39 = vadd.f32 %v3239_v20, %v2974_v33  ;;  %v3030_v8 = vadd.f32 %v6003_v14, %v3007_v31 }
 0x51e   :  { %v3287_v19 = vadd.f32 %v3286_v16, %v3263_v13 }
 0x51f   :  { %v3315_v28 = vadd.f32 %v6013_v42, %v3298_v39 }
 0x520   :  { %v3301_v51 = vadd.f32 %v3287_v19, %v3022_v15 }
 0x521   :  { %v3327_v26 = vrot.slane %v3315_v28, 1 }
 0x522   :  { %v3318_v36 = vadd.f32 %v6009_v5, %v3301_v51  ;;  %v3217_v57 = vpop.f32.mrf.mxu3  ;;  %v3240_v55 = vpop.f32.mrf.mxu2 }
 0x523   :  { %v3241_v49 = vadd.f32 %v3240_v55, %v3217_v57  ;;  %v2984_v57 = vadd.f32 %v6007_v53, %v2961_v44 }
 0x524   :  { %v3331_v23 = vrot.slane %v3318_v36, 1 }
 0x525   :  { %v3300_v46 = vadd.f32 %v3241_v49, %v2976_v59  ;;  %v3266_v10 = vpop.f32.mrf.mxu1  ;;  %v3289_v9 = vpop.f32.mrf.mxu0 }
 0x526   :  { %v3332_v43 = vsel %vm6109_vm12, %v3330_v17, %v3331_v23  ;;  %v3290_v2 = vadd.f32 %v3289_v9, %v3266_v10 }
 0x527   :  { %3342 = vst.msk [vmem:[%s6082_s9 + $0x8] sm:$0xff] %vm283_vm13, %v3332_v43  ;;  %v3317_v52 = vadd.f32 %v6013_v42, %v3300_v46 }
 0x528   :  { %v3303_v40 = vadd.f32 %v3290_v2, %v3025_v1 }
 0x529   :  { %v3328_v12 = vrot.slane %v3317_v52, 1 }
 0x52a   :  { %v3320_v24 = vadd.f32 %v6009_v5, %v3303_v40  ;;  %v3220_v38 = vpop.f32.mrf.mxu3  ;;  %v3243_v50 = vpop.f32.mrf.mxu2 }
 0x52b   :  { %v3329_v61 = vsel %vm6110_vm5, %v3327_v26, %v3328_v12  ;;  %v3244_v45 = vadd.f32 %v3243_v50, %v3220_v38 }
 0x52c   :  { %3341 = vst [vmem:[%s6082_s9] sm:$0xff] %v3329_v61  ;;  %v3335_v54 = vrot.slane %v3320_v24, 1  ;;  %v3356_v20 = vrot.slane %v3320_v24, 5 }
 0x52d   :  { %v3302_v62 = vadd.f32 %v3244_v45, %v2979_v0  ;;  %v3268_v6 = vpop.f32.mrf.mxu1  ;;  %v3291_v32 = vpop.f32.mrf.mxu0 }
 0x52e   :  { %v3336_v60 = vsel %vm6111_vm2, %v3331_v23, %v3335_v54  ;;  %v3292_v27 = vadd.f32 %v3291_v32, %v3268_v6 }
 0x52f   :  { %3344 = vst.msk [vmem:[%s6082_s9 + $0x18] sm:$0xff] %vm283_vm13, %v3336_v60  ;;  %v3319_v3 = vadd.f32 %v6013_v42, %v3302_v62 }
 0x530   :  { %v3305_v47 = vadd.f32 %v3292_v27, %v3027_v18 }
 0x531   :  { %v3333_v48 = vrot.slane %v3319_v3, 1  ;;  %v3353_v51 = vrot.slane %v3319_v3, 5 }
 0x532   :  { %v3346_v4 = vadd.f32 %v6009_v5, %v3305_v47  ;;  %v3222_v7 = vpop.f32.mrf.mxu3  ;;  %v3245_v35 = vpop.f32.mrf.mxu2 }
 0x533   :  { %v3334_v56 = vsel %vm6112_vm9, %v3328_v12, %v3333_v48  ;;  %v3246_v37 = vadd.f32 %v3245_v35, %v3222_v7 }
 0x534   :  { %3343 = vst [vmem:[%s6082_s9 + $0x10] sm:$0xff] %v3334_v56  ;;  %v3357_v13 = vrot.slane %v3346_v4, 5 }
 0x535   :  { %v3304_v16 = vadd.f32 %v3246_v37, %v2981_v29  ;;  %v3271_v15 = vpop.f32.mrf.mxu1  ;;  %v3294_v19 = vpop.f32.mrf.mxu0 }
 0x536   :  { %v3358_v30 = vsel %vm6113_vm10, %v3356_v20, %v3357_v13  ;;  %v3295_v33 = vadd.f32 %v3294_v19, %v3271_v15 }
 0x537   :  { %4289 = vst.msk [vmem:[%s6082_s9 + $0x28] sm:$0xff] %vm283_vm13, %v3358_v30  ;;  %v3345_v11 = vadd.f32 %v6013_v42, %v3304_v16 }
 0x538   :  { %v3307_v58 = vadd.f32 %v3295_v33, %v3030_v8 }
 0x539   :  { %v3354_v39 = vrot.slane %v3345_v11, 5 }
 0x53a   :  { %v3348_v41 = vadd.f32 %v6009_v5, %v3307_v58  ;;  %v3225_v36 = vpop.f32.mrf.mxu3  ;;  %v3248_v14 = vpop.f32.mrf.mxu2 }
 0x53b   :  { %v3355_v55 = vsel %vm6114_vm6, %v3353_v51, %v3354_v39  ;;  %v3249_v59 = vadd.f32 %v3248_v14, %v3225_v36 }
 0x53c   :  { %4288 = vst [vmem:[%s6082_s9 + $0x20] sm:$0xff] %v3355_v55  ;;  %v3361_v21 = vrot.slane %v3348_v41, 5 }
 0x53d   :  { %v3306_v34 = vadd.f32 %v3249_v59, %v2984_v57  ;;  %v3273_v49 = vpop.f32.mrf.mxu1  ;;  %v3296_v17 = vpop.f32.mrf.mxu0 }
 0x53e   :  { %v3362_v23 = vsel %vm6115_vm15, %v3357_v13, %v3361_v21 }
 0x53f   :  { %4291 = vst.msk [vmem:[%s6082_s9 + $0x38] sm:$0xff] %vm283_vm13, %v3362_v23  ;;  %v3347_v53 = vadd.f32 %v6013_v42, %v3306_v34 }
 0x541   :  { %v3359_v5 = vrot.slane %v3347_v53, 5 }
 0x542   :  { %v3227_v28 = vpop.f32.mrf.mxu3  ;;  %v3250_v46 = vpop.f32.mrf.mxu2 }
 0x543   :  { %v3360_v10 = vsel %vm6116_vm1, %v3354_v39, %v3359_v5 }
 0x544   :  { %4290 = vst [vmem:[%s6082_s9 + $0x30] sm:$0xff] %v3360_v10 }
 0x545   :  { %3376 = vsyncpa [#allocation7], 1 }
 0x546   :  { %3377 = vsyncpa [#allocation9], 1 }
 0x547   :  { %3378 = vsyncpa [#allocation12], 1 }

</bundles_post_ra>
